<compile_context>
chip_gen: v7x
topology: tpu7x:2x2x1
jax: 0.10.0
libtpu: 0.0.40
codegen_flags: <defaults>
</compile_context>

<pallas_src>
import functools

import jax
import jax.numpy as jnp
import numpy as np
from jax.experimental import pallas as pl
from jax.experimental.pallas import tpu as pltpu

LANE = 128


def _round_up(x, m):
    return (x + m - 1) // m * m


def _pick_cout_tile(cout_p):
    """256-wide Cout tiles on 256-wide-MXU parts (v6e/v7x), else 128."""
    if cout_p % 256 != 0:
        return LANE
    try:
        kind = jax.devices()[0].device_kind.lower()
    except Exception:
        return LANE
    if any(v in kind for v in ("v2", "v3", "v4", "v5")):   # 128-wide MXU parts
        return LANE
    return 256


def _convbnact_kernel(x_ref, w_ref, b_ref, o_ref, acc_ref, *, stride, act,
                      fold_kw):
    """One (batch n, Cout tile j, output-row tile i) grid step."""
    # x_ref  : (1, Hp, Wp, cin_p)    bf16 padded image, resident per batch index
    # w_ref  : (kH, kW*cin_p, TCO)   bf16 weights (BN scale folded, kw folded into K)
    # b_ref  : (1, TCO)              f32 folded BN bias
    # o_ref  : (1, th, Wo_p, TCO)    bf16 output slab
    # acc_ref: (th*Wo_p, TCO)        f32 VMEM scratch accumulator
    _, th, wo, tco = o_ref.shape
    cin = x_ref.shape[3]
    kH = w_ref.shape[0]
    kW = w_ref.shape[1] // cin

    i = pl.program_id(2)                        # row-tile axis is innermost
    row0 = pl.multiple_of(i * th * stride, th * stride)

    first = [True]

    def accum(contrib):
        if first[0]:
            acc_ref[...] = contrib              # skip an explicit zero-init pass
            first[0] = False
        else:
            acc_ref[...] += contrib

    if fold_kw:
        # stride == 1 path: one band load per kh, im2col along W in-register,
        # then a single (th*wo, kW*cin) x (kW*cin, TCO) MXU matmul per kh.
        # Pure dot-accumulate chain into acc_ref (MRB-friendly on v7x).
        for kh in range(kH):
            band = x_ref[0, pl.ds(row0 + kh, th), :, :]           # (th, Wp, cin)
            patch = jnp.concatenate(
                [band[:, kw:kw + wo, :] for kw in range(kW)], axis=-1)
            patch = patch.reshape(th * wo, kW * cin)
            accum(jnp.dot(patch, w_ref[kh],
                          preferred_element_type=jnp.float32))
    else:
        # Fallback: one (th*wo, cin) x (cin, TCO) matmul per (kh, kw) tap.
        for kh in range(kH):
            for kw in range(kW):
                if stride == 1:
                    patch = x_ref[0, pl.ds(row0 + kh, th), pl.ds(kw, wo), :]
                else:
                    patch = x_ref[0, pl.ds(row0 + kh, th, stride),
                                  pl.ds(kw, wo, stride), :]
                patch = patch.reshape(th * wo, cin)
                accum(jnp.dot(patch, w_ref[kh, kw * cin:(kw + 1) * cin, :],
                              preferred_element_type=jnp.float32))

    # Fused epilogue (once per grid step): folded BN bias + activation, in f32.
    y = acc_ref[...] + b_ref[...]
    if act == "relu6":
        y = jnp.clip(y, 0.0, 6.0)
    elif act == "relu":
        y = jnp.maximum(y, 0.0)
    o_ref[0] = y.reshape(th, wo, tco).astype(o_ref.dtype)


def conv_bn_act(x_nchw, weight, gamma, beta, running_mean, running_var, *,
                stride=1, eps=1e-5, act="relu6", max_acc_rows=256,
                out_dtype=jnp.float32):
    """Fused Conv2d(bias=False) -> BatchNorm2d(eval) -> ReLU6.  PyTorch NCHW API."""
    N, Cin, H, W = x_nchw.shape
    Cout, Cin_w, kH, kW = weight.shape
    assert Cin == Cin_w, "groups != 1 not supported"   # TODO(synk): grouped conv
    pad = (kH - 1) // 2
    Ho = (H + 2 * pad - kH) // stride + 1
    Wo = (W + 2 * pad - kW) // stride + 1

    cin_p = _round_up(Cin, 16)               # bf16 native (16,128) sublane packing
    cout_p = _round_up(Cout, LANE)
    cout_tile = _pick_cout_tile(cout_p)
    Wo_p = _round_up(Wo, 8)                  # layout-preserving reshapes, dense vst
    Hp = H + 2 * pad
    Wp = max(W + 2 * pad, (Wo_p - 1) * stride + kW)

    # ---- wrapper-side glue (plain JAX): BN folding, layout, padding -----------
    scale = (gamma / jnp.sqrt(running_var + eps)).astype(jnp.float32)   # (Cout,)
    bias = (beta - running_mean * scale).astype(jnp.float32)
    bias_p = jnp.pad(bias, (0, cout_p - Cout)).reshape(1, cout_p)

    w = jnp.transpose(weight.astype(jnp.float32), (2, 3, 1, 0))   # (kH,kW,Cin,Cout)
    w = w * scale[None, None, None, :]            # fold BN scale into conv weights
    w = jnp.pad(w, ((0, 0), (0, 0), (0, cin_p - Cin), (0, cout_p - Cout)))
    w = w.astype(jnp.bfloat16).reshape(kH, kW * cin_p, cout_p)    # kw folded into K

    # bf16 BEFORE the transpose/pad staging passes (halves the HBM bytes).
    # TODO(synk): an NHWC end-to-end model would remove these staging passes.
    x_nhwc = jnp.transpose(x_nchw.astype(jnp.bfloat16), (0, 2, 3, 1))
    x_pad = jnp.pad(x_nhwc, ((0, 0), (pad, Hp - H - pad),
                             (pad, Wp - W - pad), (0, cin_p - Cin)))

    # Output-row tile: largest divisor of Ho keeping th*Wo_p <= max_acc_rows.
    # The accumulator is VMEM scratch, so this is a VMEM knob, not a vreg one.
    row_budget = max(max_acc_rows, Wo_p)
    th = 1
    for d in range(1, Ho + 1):
        if Ho % d == 0 and d * Wo_p <= row_budget:
            th = d
    n_ht = Ho // th
    n_ct = cout_p // cout_tile

    def build(fold_kw, image_buffers):
        img_kwargs = {}
        if image_buffers is not None:
            img_kwargs["pipeline_mode"] = pl.Buffered(image_buffers)
        img_bufs = image_buffers if image_buffers is not None else 2
        vmem_need = (Hp * Wp * cin_p * 2 * img_bufs            # resident image
                     + kH * kW * cin_p * cout_tile * 2 * 2     # weights (dbl-buffered)
                     + cout_tile * 4 * 2                       # bias
                     + th * Wo_p * cout_tile * 2 * 2           # bf16 output slab
                     + th * Wo_p * cout_tile * 4)              # f32 accumulator
        vmem_limit = int(min(max(2 * vmem_need + (4 << 20), 32 << 20), 100 << 20))
        return pl.pallas_call(
            functools.partial(_convbnact_kernel, stride=stride, act=act,
                              fold_kw=fold_kw),
            out_shape=jax.ShapeDtypeStruct((N, Ho, Wo_p, cout_p), jnp.bfloat16),
            grid_spec=pltpu.PrefetchScalarGridSpec(
                num_scalar_prefetch=0,
                # Cout-tile axis in the middle, row-tile innermost: weight/bias
                # blocks are fetched once per Cout tile; the padded image block
                # depends only on n and stays resident for the whole image.
                grid=(N, n_ct, n_ht),
                in_specs=[
                    pl.BlockSpec((1, Hp, Wp, cin_p),
                                 lambda n, j, i: (n, 0, 0, 0), **img_kwargs),
                    pl.BlockSpec((kH, kW * cin_p, cout_tile),
                                 lambda n, j, i: (0, 0, j)),
                    pl.BlockSpec((1, cout_tile), lambda n, j, i: (0, j)),
                ],
                out_specs=pl.BlockSpec((1, th, Wo_p, cout_tile),
                                       lambda n, j, i: (n, i, 0, j)),
                scratch_shapes=[pltpu.VMEM((th * Wo_p, cout_tile), jnp.float32)],
            ),
            compiler_params=pltpu.CompilerParams(
                dimension_semantics=("parallel", "parallel", "parallel"),
                vmem_limit_bytes=vmem_limit,
            ),
        )

    # Preferred config first; fall back if a feature (single-buffered input via
    # Buffered(1), unaligned minor-dim concat) is unavailable in the toolchain.
    configs = ([(True, 1), (True, None)] if stride == 1 else []) + [(False, None)]
    out_nhwc, err = None, None
    for cfg in configs:
        try:
            out_nhwc = build(*cfg)(x_pad, w, bias_p)
            break
        except Exception as e:          # pragma: no cover - toolchain fallback
            err = e
    if out_nhwc is None:
        raise err

    out = jnp.transpose(out_nhwc[:, :, :Wo, :Cout], (0, 3, 1, 2))  # crop + NCHW
    return out.astype(out_dtype)


def _reference(x_nchw, weight, gamma, beta, running_mean, running_var, *,
               stride=1, eps=1e-5):
    pad = (weight.shape[2] - 1) // 2
    y = jax.lax.conv_general_dilated(
        x_nchw.astype(jnp.float32), weight.astype(jnp.float32),
        window_strides=(stride, stride),
        padding=((pad, pad), (pad, pad)),
        dimension_numbers=("NCHW", "OIHW", "NCHW"))
    scale = gamma / jnp.sqrt(running_var + eps)
    bias = beta - running_mean * scale
    y = y * scale[None, :, None, None] + bias[None, :, None, None]
    return jnp.clip(y, 0.0, 6.0)


if __name__ == "__main__":
    key = jax.random.PRNGKey(0)
    k_x, k_w, k_g, k_b, k_m, k_v = jax.random.split(key, 6)

    N, Cin, H, W = 2, 4, 16, 16
    Cout, ksize, stride = 8, 3, 1

    x = jax.random.normal(k_x, (N, Cin, H, W), jnp.float32)
    weight = jax.random.normal(k_w, (Cout, Cin, ksize, ksize), jnp.float32) * 0.1
    gamma = 1.0 + 0.1 * jax.random.normal(k_g, (Cout,), jnp.float32)
    beta = 0.1 * jax.random.normal(k_b, (Cout,), jnp.float32)
    running_mean = 0.1 * jax.random.normal(k_m, (Cout,), jnp.float32)
    running_var = jnp.abs(1.0 + 0.1 * jax.random.normal(k_v, (Cout,), jnp.float32))

    out = conv_bn_act(x, weight, gamma, beta, running_mean, running_var,
                      stride=stride)
    out = jax.block_until_ready(out)

    ref = _reference(x, weight, gamma, beta, running_mean, running_var,
                     stride=stride)
    # bf16 inputs + bf16 output with f32 accumulation -> ~1e-2 agreement vs f32.
    np.testing.assert_allclose(np.asarray(out), np.asarray(ref),
                               rtol=3e-2, atol=4e-2)
    print("KERNEL_OK")
</pallas_src>

<mosaic_0001>
module attributes {stable_mosaic.version = 11 : i64} {
  func.func @_convbnact_kernel(%arg0: i32, %arg1: i32, %arg2: i32, %arg3: memref<1x18x18x16xbf16, #tpu.memory_space<vmem>>, %arg4: memref<3x48x128xbf16, #tpu.memory_space<vmem>>, %arg5: memref<1x128xf32, #tpu.memory_space<vmem>>, %arg6: memref<1x16x16x128xbf16, #tpu.memory_space<vmem>>, %arg7: memref<256x128xf32, #tpu.memory_space<vmem>>) attributes {dimension_semantics = [#tpu.dimension_semantics<parallel>, #tpu.dimension_semantics<parallel>, #tpu.dimension_semantics<parallel>], iteration_bounds = array<i64: 2, 1, 1>, scalar_prefetch = 0 : i64, scratch_operands = 1 : i64, tpu.core_type = #tpu.core_type<tc>, window_params = [{pipeline_mode = #tpu.pipeline_mode<synchronous>, transform_indices = @transform_0, window_bounds = array<i64: 1, 18, 18, 16>}, {transform_indices = @transform_1, window_bounds = array<i64: 3, 48, 128>}, {transform_indices = @transform_2, window_bounds = array<i64: 1, 128>}, {transform_indices = @transform_3, window_bounds = array<i64: 1, 16, 16, 128>}]} {
    %c16_i32 = arith.constant 16 : i32
    %0 = arith.muli %arg2, %c16_i32 : i32
    %c1_i32 = arith.constant 1 : i32
    %1 = arith.muli %0, %c1_i32 : i32
    %2 = tpu.assume_multiple %1, 16 : i32
    %c0_i32 = arith.constant 0 : i32
    %3 = arith.addi %2, %c0_i32 : i32
    %c0 = arith.constant 0 : index
    %4 = arith.index_cast %3 : i32 to index
    %c0_0 = arith.constant 0 : index
    %c0_1 = arith.constant 0 : index
    %5 = vector.load %arg3[%c0, %4, %c0_0, %c0_1] : memref<1x18x18x16xbf16, #tpu.memory_space<vmem>>, vector<1x16x18x16xbf16>
    %6 = vector.shape_cast %5 : vector<1x16x18x16xbf16> to vector<16x18x16xbf16>
    %7 = vector.extract_strided_slice %6 {offsets = [0, 0, 0], sizes = [16, 16, 16], strides = [1, 1, 1]} : vector<16x18x16xbf16> to vector<16x16x16xbf16>
    %8 = vector.extract_strided_slice %6 {offsets = [0, 1, 0], sizes = [16, 16, 16], strides = [1, 1, 1]} : vector<16x18x16xbf16> to vector<16x16x16xbf16>
    %9 = vector.extract_strided_slice %6 {offsets = [0, 2, 0], sizes = [16, 16, 16], strides = [1, 1, 1]} : vector<16x18x16xbf16> to vector<16x16x16xbf16>
    %10 = tpu.concatenate %7, %8, %9 in 2 : vector<16x16x16xbf16>, vector<16x16x16xbf16>, vector<16x16x16xbf16> -> vector<16x16x48xbf16>
    %11 = vector.shape_cast %10 : vector<16x16x48xbf16> to vector<256x48xbf16>
    %c0_2 = arith.constant 0 : index
    %c0_3 = arith.constant 0 : index
    %c0_4 = arith.constant 0 : index
    %12 = vector.load %arg4[%c0_2, %c0_3, %c0_4] : memref<3x48x128xbf16, #tpu.memory_space<vmem>>, vector<1x48x128xbf16>
    %13 = vector.shape_cast %12 : vector<1x48x128xbf16> to vector<48x128xbf16>
    %cst = arith.constant dense<0.000000e+00> : vector<256x128xf32>
    %14 = tpu.matmul %11, %13, %cst {dimension_numbers = #tpu.dot_dimension_numbers<[1], [0], [0], [1], [0, 0, 1, 1], [], []>} : vector<256x48xbf16>, vector<48x128xbf16>, vector<256x128xf32> -> vector<256x128xf32>
    %c0_5 = arith.constant 0 : index
    %c0_6 = arith.constant 0 : index
    %15 = vector.load %arg7[%c0_5, %c0_6] : memref<256x128xf32, #tpu.memory_space<vmem>>, vector<256x128xf32>
    tpu.vector_store %arg7[%c0_5, %c0_6], %14 {strides = array<i32>} : memref<256x128xf32, #tpu.memory_space<vmem>>, vector<256x128xf32>,
    %c1_i32_7 = arith.constant 1 : i32
    %16 = arith.addi %2, %c1_i32_7 : i32
    %c0_8 = arith.constant 0 : index
    %17 = arith.index_cast %16 : i32 to index
    %c0_9 = arith.constant 0 : index
    %c0_10 = arith.constant 0 : index
    %18 = vector.load %arg3[%c0_8, %17, %c0_9, %c0_10] : memref<1x18x18x16xbf16, #tpu.memory_space<vmem>>, vector<1x16x18x16xbf16>
    %19 = vector.shape_cast %18 : vector<1x16x18x16xbf16> to vector<16x18x16xbf16>
    %20 = vector.extract_strided_slice %19 {offsets = [0, 0, 0], sizes = [16, 16, 16], strides = [1, 1, 1]} : vector<16x18x16xbf16> to vector<16x16x16xbf16>
    %21 = vector.extract_strided_slice %19 {offsets = [0, 1, 0], sizes = [16, 16, 16], strides = [1, 1, 1]} : vector<16x18x16xbf16> to vector<16x16x16xbf16>
    %22 = vector.extract_strided_slice %19 {offsets = [0, 2, 0], sizes = [16, 16, 16], strides = [1, 1, 1]} : vector<16x18x16xbf16> to vector<16x16x16xbf16>
    %23 = tpu.concatenate %20, %21, %22 in 2 : vector<16x16x16xbf16>, vector<16x16x16xbf16>, vector<16x16x16xbf16> -> vector<16x16x48xbf16>
    %24 = vector.shape_cast %23 : vector<16x16x48xbf16> to vector<256x48xbf16>
    %c1 = arith.constant 1 : index
    %c0_11 = arith.constant 0 : index
    %c0_12 = arith.constant 0 : index
    %25 = vector.load %arg4[%c1, %c0_11, %c0_12] : memref<3x48x128xbf16, #tpu.memory_space<vmem>>, vector<1x48x128xbf16>
    %26 = vector.shape_cast %25 : vector<1x48x128xbf16> to vector<48x128xbf16>
    %cst_13 = arith.constant dense<0.000000e+00> : vector<256x128xf32>
    %27 = tpu.matmul %24, %26, %cst_13 {dimension_numbers = #tpu.dot_dimension_numbers<[1], [0], [0], [1], [0, 0, 1, 1], [], []>} : vector<256x48xbf16>, vector<48x128xbf16>, vector<256x128xf32> -> vector<256x128xf32>
    %c0_14 = arith.constant 0 : index
    %c0_15 = arith.constant 0 : index
    %28 = vector.load %arg7[%c0_14, %c0_15] : memref<256x128xf32, #tpu.memory_space<vmem>>, vector<256x128xf32>
    %29 = arith.addf %28, %27 : vector<256x128xf32>
    %c0_16 = arith.constant 0 : index
    %c0_17 = arith.constant 0 : index
    %30 = vector.load %arg7[%c0_16, %c0_17] : memref<256x128xf32, #tpu.memory_space<vmem>>, vector<256x128xf32>
    tpu.vector_store %arg7[%c0_16, %c0_17], %29 {strides = array<i32>} : memref<256x128xf32, #tpu.memory_space<vmem>>, vector<256x128xf32>,
    %c2_i32 = arith.constant 2 : i32
    %31 = arith.addi %2, %c2_i32 : i32
    %c0_18 = arith.constant 0 : index
    %32 = arith.index_cast %31 : i32 to index
    %c0_19 = arith.constant 0 : index
    %c0_20 = arith.constant 0 : index
    %33 = vector.load %arg3[%c0_18, %32, %c0_19, %c0_20] : memref<1x18x18x16xbf16, #tpu.memory_space<vmem>>, vector<1x16x18x16xbf16>
    %34 = vector.shape_cast %33 : vector<1x16x18x16xbf16> to vector<16x18x16xbf16>
    %35 = vector.extract_strided_slice %34 {offsets = [0, 0, 0], sizes = [16, 16, 16], strides = [1, 1, 1]} : vector<16x18x16xbf16> to vector<16x16x16xbf16>
    %36 = vector.extract_strided_slice %34 {offsets = [0, 1, 0], sizes = [16, 16, 16], strides = [1, 1, 1]} : vector<16x18x16xbf16> to vector<16x16x16xbf16>
    %37 = vector.extract_strided_slice %34 {offsets = [0, 2, 0], sizes = [16, 16, 16], strides = [1, 1, 1]} : vector<16x18x16xbf16> to vector<16x16x16xbf16>
    %38 = tpu.concatenate %35, %36, %37 in 2 : vector<16x16x16xbf16>, vector<16x16x16xbf16>, vector<16x16x16xbf16> -> vector<16x16x48xbf16>
    %39 = vector.shape_cast %38 : vector<16x16x48xbf16> to vector<256x48xbf16>
    %c2 = arith.constant 2 : index
    %c0_21 = arith.constant 0 : index
    %c0_22 = arith.constant 0 : index
    %40 = vector.load %arg4[%c2, %c0_21, %c0_22] : memref<3x48x128xbf16, #tpu.memory_space<vmem>>, vector<1x48x128xbf16>
    %41 = vector.shape_cast %40 : vector<1x48x128xbf16> to vector<48x128xbf16>
    %cst_23 = arith.constant dense<0.000000e+00> : vector<256x128xf32>
    %42 = tpu.matmul %39, %41, %cst_23 {dimension_numbers = #tpu.dot_dimension_numbers<[1], [0], [0], [1], [0, 0, 1, 1], [], []>} : vector<256x48xbf16>, vector<48x128xbf16>, vector<256x128xf32> -> vector<256x128xf32>
    %c0_24 = arith.constant 0 : index
    %c0_25 = arith.constant 0 : index
    %43 = vector.load %arg7[%c0_24, %c0_25] : memref<256x128xf32, #tpu.memory_space<vmem>>, vector<256x128xf32>
    %44 = arith.addf %43, %42 : vector<256x128xf32>
    %c0_26 = arith.constant 0 : index
    %c0_27 = arith.constant 0 : index
    %45 = vector.load %arg7[%c0_26, %c0_27] : memref<256x128xf32, #tpu.memory_space<vmem>>, vector<256x128xf32>
    tpu.vector_store %arg7[%c0_26, %c0_27], %44 {strides = array<i32>} : memref<256x128xf32, #tpu.memory_space<vmem>>, vector<256x128xf32>,
    %c0_28 = arith.constant 0 : index
    %c0_29 = arith.constant 0 : index
    %46 = vector.load %arg7[%c0_28, %c0_29] : memref<256x128xf32, #tpu.memory_space<vmem>>, vector<256x128xf32>
    %c0_30 = arith.constant 0 : index
    %c0_31 = arith.constant 0 : index
    %47 = vector.load %arg5[%c0_30, %c0_31] : memref<1x128xf32, #tpu.memory_space<vmem>>, vector<1x128xf32>
    %48 = vector.broadcast %47 : vector<1x128xf32> to vector<256x128xf32>
    %49 = arith.addf %46, %48 : vector<256x128xf32>
    %cst_32 = arith.constant 0.000000e+00 : f32
    %cst_33 = arith.constant 6.000000e+00 : f32
    %50 = vector.broadcast %cst_32 : f32 to vector<256x128xf32>
    %51 = arith.maximumf %50, %49 : vector<256x128xf32>
    %52 = vector.broadcast %cst_33 : f32 to vector<256x128xf32>
    %53 = arith.minimumf %52, %51 : vector<256x128xf32>
    %54 = vector.shape_cast %53 : vector<256x128xf32> to vector<16x16x128xf32>
    %55 = arith.truncf %54 : vector<16x16x128xf32> to vector<16x16x128xbf16>
    %c0_34 = arith.constant 0 : index
    %c0_35 = arith.constant 0 : index
    %c0_36 = arith.constant 0 : index
    %c0_37 = arith.constant 0 : index
    %56 = vector.load %arg6[%c0_34, %c0_35, %c0_36, %c0_37] : memref<1x16x16x128xbf16, #tpu.memory_space<vmem>>, vector<1x16x16x128xbf16>
    %57 = vector.shape_cast %56 : vector<1x16x16x128xbf16> to vector<16x16x128xbf16>
    %58 = vector.shape_cast %55 : vector<16x16x128xbf16> to vector<1x16x16x128xbf16>
    tpu.vector_store %arg6[%c0_34, %c0_35, %c0_36, %c0_37], %58 {strides = array<i32>} : memref<1x16x16x128xbf16, #tpu.memory_space<vmem>>, vector<1x16x16x128xbf16>,
    return
  }
  func.func @transform_0(%arg0: i32, %arg1: i32, %arg2: i32) -> (i32, i32, i32, i32) {
    %c0_i32 = arith.constant 0 : i32
    %c0_i32_0 = arith.constant 0 : i32
    %c0_i32_1 = arith.constant 0 : i32
    %c0_i32_2 = arith.constant 0 : i32
    return %arg0, %c0_i32, %c0_i32_0, %c0_i32_1 : i32, i32, i32, i32
  }
  func.func @transform_1(%arg0: i32, %arg1: i32, %arg2: i32) -> (i32, i32, i32) {
    %c0_i32 = arith.constant 0 : i32
    %c0_i32_0 = arith.constant 0 : i32
    %c0_i32_1 = arith.constant 0 : i32
    return %c0_i32, %c0_i32_0, %arg1 : i32, i32, i32
  }
  func.func @transform_2(%arg0: i32, %arg1: i32, %arg2: i32) -> (i32, i32) {
    %c0_i32 = arith.constant 0 : i32
    %c0_i32_0 = arith.constant 0 : i32
    return %c0_i32, %arg1 : i32, i32
  }
  func.func @transform_3(%arg0: i32, %arg1: i32, %arg2: i32) -> (i32, i32, i32, i32) {
    %c0_i32 = arith.constant 0 : i32
    %c0_i32_0 = arith.constant 0 : i32
    return %arg0, %arg2, %c0_i32, %arg1 : i32, i32, i32, i32
  }
}

module attributes {stable_mosaic.version = 11 : i64} {
  func.func @_convbnact_kernel(%arg0: i32, %arg1: i32, %arg2: i32, %arg3: memref<1x18x18x16xbf16, #tpu.memory_space<vmem>>, %arg4: memref<3x48x128xbf16, #tpu.memory_space<vmem>>, %arg5: memref<1x128xf32, #tpu.memory_space<vmem>>, %arg6: memref<1x16x16x128xbf16, #tpu.memory_space<vmem>>, %arg7: memref<256x128xf32, #tpu.memory_space<vmem>>) attributes {dimension_semantics = [#tpu.dimension_semantics<parallel>, #tpu.dimension_semantics<parallel>, #tpu.dimension_semantics<parallel>], iteration_bounds = array<i64: 2, 1, 1>, scalar_prefetch = 0 : i64, scratch_operands = 1 : i64, tpu.core_type = #tpu.core_type<tc>, window_params = [{transform_indices = @transform_0, window_bounds = array<i64: 1, 18, 18, 16>}, {transform_indices = @transform_1, window_bounds = array<i64: 3, 48, 128>}, {transform_indices = @transform_2, window_bounds = array<i64: 1, 128>}, {transform_indices = @transform_3, window_bounds = array<i64: 1, 16, 16, 128>}]} {
    %c16_i32 = arith.constant 16 : i32
    %0 = arith.muli %arg2, %c16_i32 : i32
    %c1_i32 = arith.constant 1 : i32
    %1 = arith.muli %0, %c1_i32 : i32
    %2 = tpu.assume_multiple %1, 16 : i32
    %c0_i32 = arith.constant 0 : i32
    %3 = arith.addi %2, %c0_i32 : i32
    %c0 = arith.constant 0 : index
    %4 = arith.index_cast %3 : i32 to index
    %c0_0 = arith.constant 0 : index
    %c0_1 = arith.constant 0 : index
    %5 = vector.load %arg3[%c0, %4, %c0_0, %c0_1] : memref<1x18x18x16xbf16, #tpu.memory_space<vmem>>, vector<1x16x18x16xbf16>
    %6 = vector.shape_cast %5 : vector<1x16x18x16xbf16> to vector<16x18x16xbf16>
    %7 = vector.extract_strided_slice %6 {offsets = [0, 0, 0], sizes = [16, 16, 16], strides = [1, 1, 1]} : vector<16x18x16xbf16> to vector<16x16x16xbf16>
    %8 = vector.extract_strided_slice %6 {offsets = [0, 1, 0], sizes = [16, 16, 16], strides = [1, 1, 1]} : vector<16x18x16xbf16> to vector<16x16x16xbf16>
    %9 = vector.extract_strided_slice %6 {offsets = [0, 2, 0], sizes = [16, 16, 16], strides = [1, 1, 1]} : vector<16x18x16xbf16> to vector<16x16x16xbf16>
    %10 = tpu.concatenate %7, %8, %9 in 2 : vector<16x16x16xbf16>, vector<16x16x16xbf16>, vector<16x16x16xbf16> -> vector<16x16x48xbf16>
    %11 = vector.shape_cast %10 : vector<16x16x48xbf16> to vector<256x48xbf16>
    %c0_2 = arith.constant 0 : index
    %c0_3 = arith.constant 0 : index
    %c0_4 = arith.constant 0 : index
    %12 = vector.load %arg4[%c0_2, %c0_3, %c0_4] : memref<3x48x128xbf16, #tpu.memory_space<vmem>>, vector<1x48x128xbf16>
    %13 = vector.shape_cast %12 : vector<1x48x128xbf16> to vector<48x128xbf16>
    %cst = arith.constant dense<0.000000e+00> : vector<256x128xf32>
    %14 = tpu.matmul %11, %13, %cst {dimension_numbers = #tpu.dot_dimension_numbers<[1], [0], [0], [1], [0, 0, 1, 1], [], []>} : vector<256x48xbf16>, vector<48x128xbf16>, vector<256x128xf32> -> vector<256x128xf32>
    %c0_5 = arith.constant 0 : index
    %c0_6 = arith.constant 0 : index
    %15 = vector.load %arg7[%c0_5, %c0_6] : memref<256x128xf32, #tpu.memory_space<vmem>>, vector<256x128xf32>
    tpu.vector_store %arg7[%c0_5, %c0_6], %14 {strides = array<i32>} : memref<256x128xf32, #tpu.memory_space<vmem>>, vector<256x128xf32>,
    %c1_i32_7 = arith.constant 1 : i32
    %16 = arith.addi %2, %c1_i32_7 : i32
    %c0_8 = arith.constant 0 : index
    %17 = arith.index_cast %16 : i32 to index
    %c0_9 = arith.constant 0 : index
    %c0_10 = arith.constant 0 : index
    %18 = vector.load %arg3[%c0_8, %17, %c0_9, %c0_10] : memref<1x18x18x16xbf16, #tpu.memory_space<vmem>>, vector<1x16x18x16xbf16>
    %19 = vector.shape_cast %18 : vector<1x16x18x16xbf16> to vector<16x18x16xbf16>
    %20 = vector.extract_strided_slice %19 {offsets = [0, 0, 0], sizes = [16, 16, 16], strides = [1, 1, 1]} : vector<16x18x16xbf16> to vector<16x16x16xbf16>
    %21 = vector.extract_strided_slice %19 {offsets = [0, 1, 0], sizes = [16, 16, 16], strides = [1, 1, 1]} : vector<16x18x16xbf16> to vector<16x16x16xbf16>
    %22 = vector.extract_strided_slice %19 {offsets = [0, 2, 0], sizes = [16, 16, 16], strides = [1, 1, 1]} : vector<16x18x16xbf16> to vector<16x16x16xbf16>
    %23 = tpu.concatenate %20, %21, %22 in 2 : vector<16x16x16xbf16>, vector<16x16x16xbf16>, vector<16x16x16xbf16> -> vector<16x16x48xbf16>
    %24 = vector.shape_cast %23 : vector<16x16x48xbf16> to vector<256x48xbf16>
    %c1 = arith.constant 1 : index
    %c0_11 = arith.constant 0 : index
    %c0_12 = arith.constant 0 : index
    %25 = vector.load %arg4[%c1, %c0_11, %c0_12] : memref<3x48x128xbf16, #tpu.memory_space<vmem>>, vector<1x48x128xbf16>
    %26 = vector.shape_cast %25 : vector<1x48x128xbf16> to vector<48x128xbf16>
    %cst_13 = arith.constant dense<0.000000e+00> : vector<256x128xf32>
    %27 = tpu.matmul %24, %26, %cst_13 {dimension_numbers = #tpu.dot_dimension_numbers<[1], [0], [0], [1], [0, 0, 1, 1], [], []>} : vector<256x48xbf16>, vector<48x128xbf16>, vector<256x128xf32> -> vector<256x128xf32>
    %c0_14 = arith.constant 0 : index
    %c0_15 = arith.constant 0 : index
    %28 = vector.load %arg7[%c0_14, %c0_15] : memref<256x128xf32, #tpu.memory_space<vmem>>, vector<256x128xf32>
    %29 = arith.addf %28, %27 : vector<256x128xf32>
    %c0_16 = arith.constant 0 : index
    %c0_17 = arith.constant 0 : index
    %30 = vector.load %arg7[%c0_16, %c0_17] : memref<256x128xf32, #tpu.memory_space<vmem>>, vector<256x128xf32>
    tpu.vector_store %arg7[%c0_16, %c0_17], %29 {strides = array<i32>} : memref<256x128xf32, #tpu.memory_space<vmem>>, vector<256x128xf32>,
    %c2_i32 = arith.constant 2 : i32
    %31 = arith.addi %2, %c2_i32 : i32
    %c0_18 = arith.constant 0 : index
    %32 = arith.index_cast %31 : i32 to index
    %c0_19 = arith.constant 0 : index
    %c0_20 = arith.constant 0 : index
    %33 = vector.load %arg3[%c0_18, %32, %c0_19, %c0_20] : memref<1x18x18x16xbf16, #tpu.memory_space<vmem>>, vector<1x16x18x16xbf16>
    %34 = vector.shape_cast %33 : vector<1x16x18x16xbf16> to vector<16x18x16xbf16>
    %35 = vector.extract_strided_slice %34 {offsets = [0, 0, 0], sizes = [16, 16, 16], strides = [1, 1, 1]} : vector<16x18x16xbf16> to vector<16x16x16xbf16>
    %36 = vector.extract_strided_slice %34 {offsets = [0, 1, 0], sizes = [16, 16, 16], strides = [1, 1, 1]} : vector<16x18x16xbf16> to vector<16x16x16xbf16>
    %37 = vector.extract_strided_slice %34 {offsets = [0, 2, 0], sizes = [16, 16, 16], strides = [1, 1, 1]} : vector<16x18x16xbf16> to vector<16x16x16xbf16>
    %38 = tpu.concatenate %35, %36, %37 in 2 : vector<16x16x16xbf16>, vector<16x16x16xbf16>, vector<16x16x16xbf16> -> vector<16x16x48xbf16>
    %39 = vector.shape_cast %38 : vector<16x16x48xbf16> to vector<256x48xbf16>
    %c2 = arith.constant 2 : index
    %c0_21 = arith.constant 0 : index
    %c0_22 = arith.constant 0 : index
    %40 = vector.load %arg4[%c2, %c0_21, %c0_22] : memref<3x48x128xbf16, #tpu.memory_space<vmem>>, vector<1x48x128xbf16>
    %41 = vector.shape_cast %40 : vector<1x48x128xbf16> to vector<48x128xbf16>
    %cst_23 = arith.constant dense<0.000000e+00> : vector<256x128xf32>
    %42 = tpu.matmul %39, %41, %cst_23 {dimension_numbers = #tpu.dot_dimension_numbers<[1], [0], [0], [1], [0, 0, 1, 1], [], []>} : vector<256x48xbf16>, vector<48x128xbf16>, vector<256x128xf32> -> vector<256x128xf32>
    %c0_24 = arith.constant 0 : index
    %c0_25 = arith.constant 0 : index
    %43 = vector.load %arg7[%c0_24, %c0_25] : memref<256x128xf32, #tpu.memory_space<vmem>>, vector<256x128xf32>
    %44 = arith.addf %43, %42 : vector<256x128xf32>
    %c0_26 = arith.constant 0 : index
    %c0_27 = arith.constant 0 : index
    %45 = vector.load %arg7[%c0_26, %c0_27] : memref<256x128xf32, #tpu.memory_space<vmem>>, vector<256x128xf32>
    tpu.vector_store %arg7[%c0_26, %c0_27], %44 {strides = array<i32>} : memref<256x128xf32, #tpu.memory_space<vmem>>, vector<256x128xf32>,
    %c0_28 = arith.constant 0 : index
    %c0_29 = arith.constant 0 : index
    %46 = vector.load %arg7[%c0_28, %c0_29] : memref<256x128xf32, #tpu.memory_space<vmem>>, vector<256x128xf32>
    %c0_30 = arith.constant 0 : index
    %c0_31 = arith.constant 0 : index
    %47 = vector.load %arg5[%c0_30, %c0_31] : memref<1x128xf32, #tpu.memory_space<vmem>>, vector<1x128xf32>
    %48 = vector.broadcast %47 : vector<1x128xf32> to vector<256x128xf32>
    %49 = arith.addf %46, %48 : vector<256x128xf32>
    %cst_32 = arith.constant 0.000000e+00 : f32
    %cst_33 = arith.constant 6.000000e+00 : f32
    %50 = vector.broadcast %cst_32 : f32 to vector<256x128xf32>
    %51 = arith.maximumf %50, %49 : vector<256x128xf32>
    %52 = vector.broadcast %cst_33 : f32 to vector<256x128xf32>
    %53 = arith.minimumf %52, %51 : vector<256x128xf32>
    %54 = vector.shape_cast %53 : vector<256x128xf32> to vector<16x16x128xf32>
    %55 = arith.truncf %54 : vector<16x16x128xf32> to vector<16x16x128xbf16>
    %c0_34 = arith.constant 0 : index
    %c0_35 = arith.constant 0 : index
    %c0_36 = arith.constant 0 : index
    %c0_37 = arith.constant 0 : index
    %56 = vector.load %arg6[%c0_34, %c0_35, %c0_36, %c0_37] : memref<1x16x16x128xbf16, #tpu.memory_space<vmem>>, vector<1x16x16x128xbf16>
    %57 = vector.shape_cast %56 : vector<1x16x16x128xbf16> to vector<16x16x128xbf16>
    %58 = vector.shape_cast %55 : vector<16x16x128xbf16> to vector<1x16x16x128xbf16>
    tpu.vector_store %arg6[%c0_34, %c0_35, %c0_36, %c0_37], %58 {strides = array<i32>} : memref<1x16x16x128xbf16, #tpu.memory_space<vmem>>, vector<1x16x16x128xbf16>,
    return
  }
  func.func @transform_0(%arg0: i32, %arg1: i32, %arg2: i32) -> (i32, i32, i32, i32) {
    %c0_i32 = arith.constant 0 : i32
    %c0_i32_0 = arith.constant 0 : i32
    %c0_i32_1 = arith.constant 0 : i32
    %c0_i32_2 = arith.constant 0 : i32
    return %arg0, %c0_i32, %c0_i32_0, %c0_i32_1 : i32, i32, i32, i32
  }
  func.func @transform_1(%arg0: i32, %arg1: i32, %arg2: i32) -> (i32, i32, i32) {
    %c0_i32 = arith.constant 0 : i32
    %c0_i32_0 = arith.constant 0 : i32
    %c0_i32_1 = arith.constant 0 : i32
    return %c0_i32, %c0_i32_0, %arg1 : i32, i32, i32
  }
  func.func @transform_2(%arg0: i32, %arg1: i32, %arg2: i32) -> (i32, i32) {
    %c0_i32 = arith.constant 0 : i32
    %c0_i32_0 = arith.constant 0 : i32
    return %c0_i32, %arg1 : i32, i32
  }
  func.func @transform_3(%arg0: i32, %arg1: i32, %arg2: i32) -> (i32, i32, i32, i32) {
    %c0_i32 = arith.constant 0 : i32
    %c0_i32_0 = arith.constant 0 : i32
    return %arg0, %arg2, %c0_i32, %arg1 : i32, i32, i32, i32
  }
}

module attributes {stable_mosaic.version = 11 : i64} {
  func.func @_convbnact_kernel(%arg0: i32, %arg1: i32, %arg2: i32, %arg3: memref<1x18x18x16xbf16, #tpu.memory_space<vmem>>, %arg4: memref<3x48x128xbf16, #tpu.memory_space<vmem>>, %arg5: memref<1x128xf32, #tpu.memory_space<vmem>>, %arg6: memref<1x16x16x128xbf16, #tpu.memory_space<vmem>>, %arg7: memref<256x128xf32, #tpu.memory_space<vmem>>) attributes {dimension_semantics = [#tpu.dimension_semantics<parallel>, #tpu.dimension_semantics<parallel>, #tpu.dimension_semantics<parallel>], iteration_bounds = array<i64: 2, 1, 1>, scalar_prefetch = 0 : i64, scratch_operands = 1 : i64, tpu.core_type = #tpu.core_type<tc>, window_params = [{transform_indices = @transform_0, window_bounds = array<i64: 1, 18, 18, 16>}, {transform_indices = @transform_1, window_bounds = array<i64: 3, 48, 128>}, {transform_indices = @transform_2, window_bounds = array<i64: 1, 128>}, {transform_indices = @transform_3, window_bounds = array<i64: 1, 16, 16, 128>}]} {
    %c16_i32 = arith.constant 16 : i32
    %0 = arith.muli %arg2, %c16_i32 : i32
    %c1_i32 = arith.constant 1 : i32
    %1 = arith.muli %0, %c1_i32 : i32
    %2 = tpu.assume_multiple %1, 16 : i32
    %c0_i32 = arith.constant 0 : i32
    %3 = arith.addi %2, %c0_i32 : i32
    %c0 = arith.constant 0 : index
    %4 = arith.index_cast %3 : i32 to index
    %c0_0 = arith.constant 0 : index
    %c0_1 = arith.constant 0 : index
    %5 = vector.load %arg3[%c0, %4, %c0_0, %c0_1] : memref<1x18x18x16xbf16, #tpu.memory_space<vmem>>, vector<1x16x16x16xbf16>
    %6 = vector.shape_cast %5 : vector<1x16x16x16xbf16> to vector<16x16x16xbf16>
    %7 = vector.shape_cast %6 : vector<16x16x16xbf16> to vector<256x16xbf16>
    %c0_2 = arith.constant 0 : index
    %c0_3 = arith.constant 0 : index
    %c0_4 = arith.constant 0 : index
    %8 = vector.load %arg4[%c0_2, %c0_3, %c0_4] : memref<3x48x128xbf16, #tpu.memory_space<vmem>>, vector<1x16x128xbf16>
    %9 = vector.shape_cast %8 : vector<1x16x128xbf16> to vector<16x128xbf16>
    %cst = arith.constant dense<0.000000e+00> : vector<256x128xf32>
    %10 = tpu.matmul %7, %9, %cst {dimension_numbers = #tpu.dot_dimension_numbers<[1], [0], [0], [1], [0, 0, 1, 1], [], []>} : vector<256x16xbf16>, vector<16x128xbf16>, vector<256x128xf32> -> vector<256x128xf32>
    %c0_5 = arith.constant 0 : index
    %c0_6 = arith.constant 0 : index
    %11 = vector.load %arg7[%c0_5, %c0_6] : memref<256x128xf32, #tpu.memory_space<vmem>>, vector<256x128xf32>
    tpu.vector_store %arg7[%c0_5, %c0_6], %10 {strides = array<i32>} : memref<256x128xf32, #tpu.memory_space<vmem>>, vector<256x128xf32>,
    %c0_i32_7 = arith.constant 0 : i32
    %12 = arith.addi %2, %c0_i32_7 : i32
    %c0_8 = arith.constant 0 : index
    %13 = arith.index_cast %12 : i32 to index
    %c1 = arith.constant 1 : index
    %c0_9 = arith.constant 0 : index
    %14 = vector.load %arg3[%c0_8, %13, %c1, %c0_9] : memref<1x18x18x16xbf16, #tpu.memory_space<vmem>>, vector<1x16x16x16xbf16>
    %15 = vector.shape_cast %14 : vector<1x16x16x16xbf16> to vector<16x16x16xbf16>
    %16 = vector.shape_cast %15 : vector<16x16x16xbf16> to vector<256x16xbf16>
    %c0_10 = arith.constant 0 : index
    %c16 = arith.constant 16 : index
    %c0_11 = arith.constant 0 : index
    %17 = vector.load %arg4[%c0_10, %c16, %c0_11] : memref<3x48x128xbf16, #tpu.memory_space<vmem>>, vector<1x16x128xbf16>
    %18 = vector.shape_cast %17 : vector<1x16x128xbf16> to vector<16x128xbf16>
    %cst_12 = arith.constant dense<0.000000e+00> : vector<256x128xf32>
    %19 = tpu.matmul %16, %18, %cst_12 {dimension_numbers = #tpu.dot_dimension_numbers<[1], [0], [0], [1], [0, 0, 1, 1], [], []>} : vector<256x16xbf16>, vector<16x128xbf16>, vector<256x128xf32> -> vector<256x128xf32>
    %c0_13 = arith.constant 0 : index
    %c0_14 = arith.constant 0 : index
    %20 = vector.load %arg7[%c0_13, %c0_14] : memref<256x128xf32, #tpu.memory_space<vmem>>, vector<256x128xf32>
    %21 = arith.addf %20, %19 : vector<256x128xf32>
    %c0_15 = arith.constant 0 : index
    %c0_16 = arith.constant 0 : index
    %22 = vector.load %arg7[%c0_15, %c0_16] : memref<256x128xf32, #tpu.memory_space<vmem>>, vector<256x128xf32>
    tpu.vector_store %arg7[%c0_15, %c0_16], %21 {strides = array<i32>} : memref<256x128xf32, #tpu.memory_space<vmem>>, vector<256x128xf32>,
    %c0_i32_17 = arith.constant 0 : i32
    %23 = arith.addi %2, %c0_i32_17 : i32
    %c0_18 = arith.constant 0 : index
    %24 = arith.index_cast %23 : i32 to index
    %c2 = arith.constant 2 : index
    %c0_19 = arith.constant 0 : index
    %25 = vector.load %arg3[%c0_18, %24, %c2, %c0_19] : memref<1x18x18x16xbf16, #tpu.memory_space<vmem>>, vector<1x16x16x16xbf16>
    %26 = vector.shape_cast %25 : vector<1x16x16x16xbf16> to vector<16x16x16xbf16>
    %27 = vector.shape_cast %26 : vector<16x16x16xbf16> to vector<256x16xbf16>
    %c0_20 = arith.constant 0 : index
    %c32 = arith.constant 32 : index
    %c0_21 = arith.constant 0 : index
    %28 = vector.load %arg4[%c0_20, %c32, %c0_21] : memref<3x48x128xbf16, #tpu.memory_space<vmem>>, vector<1x16x128xbf16>
    %29 = vector.shape_cast %28 : vector<1x16x128xbf16> to vector<16x128xbf16>
    %cst_22 = arith.constant dense<0.000000e+00> : vector<256x128xf32>
    %30 = tpu.matmul %27, %29, %cst_22 {dimension_numbers = #tpu.dot_dimension_numbers<[1], [0], [0], [1], [0, 0, 1, 1], [], []>} : vector<256x16xbf16>, vector<16x128xbf16>, vector<256x128xf32> -> vector<256x128xf32>
    %c0_23 = arith.constant 0 : index
    %c0_24 = arith.constant 0 : index
    %31 = vector.load %arg7[%c0_23, %c0_24] : memref<256x128xf32, #tpu.memory_space<vmem>>, vector<256x128xf32>
    %32 = arith.addf %31, %30 : vector<256x128xf32>
    %c0_25 = arith.constant 0 : index
    %c0_26 = arith.constant 0 : index
    %33 = vector.load %arg7[%c0_25, %c0_26] : memref<256x128xf32, #tpu.memory_space<vmem>>, vector<256x128xf32>
    tpu.vector_store %arg7[%c0_25, %c0_26], %32 {strides = array<i32>} : memref<256x128xf32, #tpu.memory_space<vmem>>, vector<256x128xf32>,
    %c1_i32_27 = arith.constant 1 : i32
    %34 = arith.addi %2, %c1_i32_27 : i32
    %c0_28 = arith.constant 0 : index
    %35 = arith.index_cast %34 : i32 to index
    %c0_29 = arith.constant 0 : index
    %c0_30 = arith.constant 0 : index
    %36 = vector.load %arg3[%c0_28, %35, %c0_29, %c0_30] : memref<1x18x18x16xbf16, #tpu.memory_space<vmem>>, vector<1x16x16x16xbf16>
    %37 = vector.shape_cast %36 : vector<1x16x16x16xbf16> to vector<16x16x16xbf16>
    %38 = vector.shape_cast %37 : vector<16x16x16xbf16> to vector<256x16xbf16>
    %c1_31 = arith.constant 1 : index
    %c0_32 = arith.constant 0 : index
    %c0_33 = arith.constant 0 : index
    %39 = vector.load %arg4[%c1_31, %c0_32, %c0_33] : memref<3x48x128xbf16, #tpu.memory_space<vmem>>, vector<1x16x128xbf16>
    %40 = vector.shape_cast %39 : vector<1x16x128xbf16> to vector<16x128xbf16>
    %cst_34 = arith.constant dense<0.000000e+00> : vector<256x128xf32>
    %41 = tpu.matmul %38, %40, %cst_34 {dimension_numbers = #tpu.dot_dimension_numbers<[1], [0], [0], [1], [0, 0, 1, 1], [], []>} : vector<256x16xbf16>, vector<16x128xbf16>, vector<256x128xf32> -> vector<256x128xf32>
    %c0_35 = arith.constant 0 : index
    %c0_36 = arith.constant 0 : index
    %42 = vector.load %arg7[%c0_35, %c0_36] : memref<256x128xf32, #tpu.memory_space<vmem>>, vector<256x128xf32>
    %43 = arith.addf %42, %41 : vector<256x128xf32>
    %c0_37 = arith.constant 0 : index
    %c0_38 = arith.constant 0 : index
    %44 = vector.load %arg7[%c0_37, %c0_38] : memref<256x128xf32, #tpu.memory_space<vmem>>, vector<256x128xf32>
    tpu.vector_store %arg7[%c0_37, %c0_38], %43 {strides = array<i32>} : memref<256x128xf32, #tpu.memory_space<vmem>>, vector<256x128xf32>,
    %c1_i32_39 = arith.constant 1 : i32
    %45 = arith.addi %2, %c1_i32_39 : i32
    %c0_40 = arith.constant 0 : index
    %46 = arith.index_cast %45 : i32 to index
    %c1_41 = arith.constant 1 : index
    %c0_42 = arith.constant 0 : index
    %47 = vector.load %arg3[%c0_40, %46, %c1_41, %c0_42] : memref<1x18x18x16xbf16, #tpu.memory_space<vmem>>, vector<1x16x16x16xbf16>
    %48 = vector.shape_cast %47 : vector<1x16x16x16xbf16> to vector<16x16x16xbf16>
    %49 = vector.shape_cast %48 : vector<16x16x16xbf16> to vector<256x16xbf16>
    %c1_43 = arith.constant 1 : index
    %c16_44 = arith.constant 16 : index
    %c0_45 = arith.constant 0 : index
    %50 = vector.load %arg4[%c1_43, %c16_44, %c0_45] : memref<3x48x128xbf16, #tpu.memory_space<vmem>>, vector<1x16x128xbf16>
    %51 = vector.shape_cast %50 : vector<1x16x128xbf16> to vector<16x128xbf16>
    %cst_46 = arith.constant dense<0.000000e+00> : vector<256x128xf32>
    %52 = tpu.matmul %49, %51, %cst_46 {dimension_numbers = #tpu.dot_dimension_numbers<[1], [0], [0], [1], [0, 0, 1, 1], [], []>} : vector<256x16xbf16>, vector<16x128xbf16>, vector<256x128xf32> -> vector<256x128xf32>
    %c0_47 = arith.constant 0 : index
    %c0_48 = arith.constant 0 : index
    %53 = vector.load %arg7[%c0_47, %c0_48] : memref<256x128xf32, #tpu.memory_space<vmem>>, vector<256x128xf32>
    %54 = arith.addf %53, %52 : vector<256x128xf32>
    %c0_49 = arith.constant 0 : index
    %c0_50 = arith.constant 0 : index
    %55 = vector.load %arg7[%c0_49, %c0_50] : memref<256x128xf32, #tpu.memory_space<vmem>>, vector<256x128xf32>
    tpu.vector_store %arg7[%c0_49, %c0_50], %54 {strides = array<i32>} : memref<256x128xf32, #tpu.memory_space<vmem>>, vector<256x128xf32>,
    %c1_i32_51 = arith.constant 1 : i32
    %56 = arith.addi %2, %c1_i32_51 : i32
    %c0_52 = arith.constant 0 : index
    %57 = arith.index_cast %56 : i32 to index
    %c2_53 = arith.constant 2 : index
    %c0_54 = arith.constant 0 : index
    %58 = vector.load %arg3[%c0_52, %57, %c2_53, %c0_54] : memref<1x18x18x16xbf16, #tpu.memory_space<vmem>>, vector<1x16x16x16xbf16>
    %59 = vector.shape_cast %58 : vector<1x16x16x16xbf16> to vector<16x16x16xbf16>
    %60 = vector.shape_cast %59 : vector<16x16x16xbf16> to vector<256x16xbf16>
    %c1_55 = arith.constant 1 : index
    %c32_56 = arith.constant 32 : index
    %c0_57 = arith.constant 0 : index
    %61 = vector.load %arg4[%c1_55, %c32_56, %c0_57] : memref<3x48x128xbf16, #tpu.memory_space<vmem>>, vector<1x16x128xbf16>
    %62 = vector.shape_cast %61 : vector<1x16x128xbf16> to vector<16x128xbf16>
    %cst_58 = arith.constant dense<0.000000e+00> : vector<256x128xf32>
    %63 = tpu.matmul %60, %62, %cst_58 {dimension_numbers = #tpu.dot_dimension_numbers<[1], [0], [0], [1], [0, 0, 1, 1], [], []>} : vector<256x16xbf16>, vector<16x128xbf16>, vector<256x128xf32> -> vector<256x128xf32>
    %c0_59 = arith.constant 0 : index
    %c0_60 = arith.constant 0 : index
    %64 = vector.load %arg7[%c0_59, %c0_60] : memref<256x128xf32, #tpu.memory_space<vmem>>, vector<256x128xf32>
    %65 = arith.addf %64, %63 : vector<256x128xf32>
    %c0_61 = arith.constant 0 : index
    %c0_62 = arith.constant 0 : index
    %66 = vector.load %arg7[%c0_61, %c0_62] : memref<256x128xf32, #tpu.memory_space<vmem>>, vector<256x128xf32>
    tpu.vector_store %arg7[%c0_61, %c0_62], %65 {strides = array<i32>} : memref<256x128xf32, #tpu.memory_space<vmem>>, vector<256x128xf32>,
    %c2_i32 = arith.constant 2 : i32
    %67 = arith.addi %2, %c2_i32 : i32
    %c0_63 = arith.constant 0 : index
    %68 = arith.index_cast %67 : i32 to index
    %c0_64 = arith.constant 0 : index
    %c0_65 = arith.constant 0 : index
    %69 = vector.load %arg3[%c0_63, %68, %c0_64, %c0_65] : memref<1x18x18x16xbf16, #tpu.memory_space<vmem>>, vector<1x16x16x16xbf16>
    %70 = vector.shape_cast %69 : vector<1x16x16x16xbf16> to vector<16x16x16xbf16>
    %71 = vector.shape_cast %70 : vector<16x16x16xbf16> to vector<256x16xbf16>
    %c2_66 = arith.constant 2 : index
    %c0_67 = arith.constant 0 : index
    %c0_68 = arith.constant 0 : index
    %72 = vector.load %arg4[%c2_66, %c0_67, %c0_68] : memref<3x48x128xbf16, #tpu.memory_space<vmem>>, vector<1x16x128xbf16>
    %73 = vector.shape_cast %72 : vector<1x16x128xbf16> to vector<16x128xbf16>
    %cst_69 = arith.constant dense<0.000000e+00> : vector<256x128xf32>
    %74 = tpu.matmul %71, %73, %cst_69 {dimension_numbers = #tpu.dot_dimension_numbers<[1], [0], [0], [1], [0, 0, 1, 1], [], []>} : vector<256x16xbf16>, vector<16x128xbf16>, vector<256x128xf32> -> vector<256x128xf32>
    %c0_70 = arith.constant 0 : index
    %c0_71 = arith.constant 0 : index
    %75 = vector.load %arg7[%c0_70, %c0_71] : memref<256x128xf32, #tpu.memory_space<vmem>>, vector<256x128xf32>
    %76 = arith.addf %75, %74 : vector<256x128xf32>
    %c0_72 = arith.constant 0 : index
    %c0_73 = arith.constant 0 : index
    %77 = vector.load %arg7[%c0_72, %c0_73] : memref<256x128xf32, #tpu.memory_space<vmem>>, vector<256x128xf32>
    tpu.vector_store %arg7[%c0_72, %c0_73], %76 {strides = array<i32>} : memref<256x128xf32, #tpu.memory_space<vmem>>, vector<256x128xf32>,
    %c2_i32_74 = arith.constant 2 : i32
    %78 = arith.addi %2, %c2_i32_74 : i32
    %c0_75 = arith.constant 0 : index
    %79 = arith.index_cast %78 : i32 to index
    %c1_76 = arith.constant 1 : index
    %c0_77 = arith.constant 0 : index
    %80 = vector.load %arg3[%c0_75, %79, %c1_76, %c0_77] : memref<1x18x18x16xbf16, #tpu.memory_space<vmem>>, vector<1x16x16x16xbf16>
    %81 = vector.shape_cast %80 : vector<1x16x16x16xbf16> to vector<16x16x16xbf16>
    %82 = vector.shape_cast %81 : vector<16x16x16xbf16> to vector<256x16xbf16>
    %c2_78 = arith.constant 2 : index
    %c16_79 = arith.constant 16 : index
    %c0_80 = arith.constant 0 : index
    %83 = vector.load %arg4[%c2_78, %c16_79, %c0_80] : memref<3x48x128xbf16, #tpu.memory_space<vmem>>, vector<1x16x128xbf16>
    %84 = vector.shape_cast %83 : vector<1x16x128xbf16> to vector<16x128xbf16>
    %cst_81 = arith.constant dense<0.000000e+00> : vector<256x128xf32>
    %85 = tpu.matmul %82, %84, %cst_81 {dimension_numbers = #tpu.dot_dimension_numbers<[1], [0], [0], [1], [0, 0, 1, 1], [], []>} : vector<256x16xbf16>, vector<16x128xbf16>, vector<256x128xf32> -> vector<256x128xf32>
    %c0_82 = arith.constant 0 : index
    %c0_83 = arith.constant 0 : index
    %86 = vector.load %arg7[%c0_82, %c0_83] : memref<256x128xf32, #tpu.memory_space<vmem>>, vector<256x128xf32>
    %87 = arith.addf %86, %85 : vector<256x128xf32>
    %c0_84 = arith.constant 0 : index
    %c0_85 = arith.constant 0 : index
    %88 = vector.load %arg7[%c0_84, %c0_85] : memref<256x128xf32, #tpu.memory_space<vmem>>, vector<256x128xf32>
    tpu.vector_store %arg7[%c0_84, %c0_85], %87 {strides = array<i32>} : memref<256x128xf32, #tpu.memory_space<vmem>>, vector<256x128xf32>,
    %c2_i32_86 = arith.constant 2 : i32
    %89 = arith.addi %2, %c2_i32_86 : i32
    %c0_87 = arith.constant 0 : index
    %90 = arith.index_cast %89 : i32 to index
    %c2_88 = arith.constant 2 : index
    %c0_89 = arith.constant 0 : index
    %91 = vector.load %arg3[%c0_87, %90, %c2_88, %c0_89] : memref<1x18x18x16xbf16, #tpu.memory_space<vmem>>, vector<1x16x16x16xbf16>
    %92 = vector.shape_cast %91 : vector<1x16x16x16xbf16> to vector<16x16x16xbf16>
    %93 = vector.shape_cast %92 : vector<16x16x16xbf16> to vector<256x16xbf16>
    %c2_90 = arith.constant 2 : index
    %c32_91 = arith.constant 32 : index
    %c0_92 = arith.constant 0 : index
    %94 = vector.load %arg4[%c2_90, %c32_91, %c0_92] : memref<3x48x128xbf16, #tpu.memory_space<vmem>>, vector<1x16x128xbf16>
    %95 = vector.shape_cast %94 : vector<1x16x128xbf16> to vector<16x128xbf16>
    %cst_93 = arith.constant dense<0.000000e+00> : vector<256x128xf32>
    %96 = tpu.matmul %93, %95, %cst_93 {dimension_numbers = #tpu.dot_dimension_numbers<[1], [0], [0], [1], [0, 0, 1, 1], [], []>} : vector<256x16xbf16>, vector<16x128xbf16>, vector<256x128xf32> -> vector<256x128xf32>
    %c0_94 = arith.constant 0 : index
    %c0_95 = arith.constant 0 : index
    %97 = vector.load %arg7[%c0_94, %c0_95] : memref<256x128xf32, #tpu.memory_space<vmem>>, vector<256x128xf32>
    %98 = arith.addf %97, %96 : vector<256x128xf32>
    %c0_96 = arith.constant 0 : index
    %c0_97 = arith.constant 0 : index
    %99 = vector.load %arg7[%c0_96, %c0_97] : memref<256x128xf32, #tpu.memory_space<vmem>>, vector<256x128xf32>
    tpu.vector_store %arg7[%c0_96, %c0_97], %98 {strides = array<i32>} : memref<256x128xf32, #tpu.memory_space<vmem>>, vector<256x128xf32>,
    %c0_98 = arith.constant 0 : index
    %c0_99 = arith.constant 0 : index
    %100 = vector.load %arg7[%c0_98, %c0_99] : memref<256x128xf32, #tpu.memory_space<vmem>>, vector<256x128xf32>
    %c0_100 = arith.constant 0 : index
    %c0_101 = arith.constant 0 : index
    %101 = vector.load %arg5[%c0_100, %c0_101] : memref<1x128xf32, #tpu.memory_space<vmem>>, vector<1x128xf32>
    %102 = vector.broadcast %101 : vector<1x128xf32> to vector<256x128xf32>
    %103 = arith.addf %100, %102 : vector<256x128xf32>
    %cst_102 = arith.constant 0.000000e+00 : f32
    %cst_103 = arith.constant 6.000000e+00 : f32
    %104 = vector.broadcast %cst_102 : f32 to vector<256x128xf32>
    %105 = arith.maximumf %104, %103 : vector<256x128xf32>
    %106 = vector.broadcast %cst_103 : f32 to vector<256x128xf32>
    %107 = arith.minimumf %106, %105 : vector<256x128xf32>
    %108 = vector.shape_cast %107 : vector<256x128xf32> to vector<16x16x128xf32>
    %109 = arith.truncf %108 : vector<16x16x128xf32> to vector<16x16x128xbf16>
    %c0_104 = arith.constant 0 : index
    %c0_105 = arith.constant 0 : index
    %c0_106 = arith.constant 0 : index
    %c0_107 = arith.constant 0 : index
    %110 = vector.load %arg6[%c0_104, %c0_105, %c0_106, %c0_107] : memref<1x16x16x128xbf16, #tpu.memory_space<vmem>>, vector<1x16x16x128xbf16>
    %111 = vector.shape_cast %110 : vector<1x16x16x128xbf16> to vector<16x16x128xbf16>
    %112 = vector.shape_cast %109 : vector<16x16x128xbf16> to vector<1x16x16x128xbf16>
    tpu.vector_store %arg6[%c0_104, %c0_105, %c0_106, %c0_107], %112 {strides = array<i32>} : memref<1x16x16x128xbf16, #tpu.memory_space<vmem>>, vector<1x16x16x128xbf16>,
    return
  }
  func.func @transform_0(%arg0: i32, %arg1: i32, %arg2: i32) -> (i32, i32, i32, i32) {
    %c0_i32 = arith.constant 0 : i32
    %c0_i32_0 = arith.constant 0 : i32
    %c0_i32_1 = arith.constant 0 : i32
    %c0_i32_2 = arith.constant 0 : i32
    return %arg0, %c0_i32, %c0_i32_0, %c0_i32_1 : i32, i32, i32, i32
  }
  func.func @transform_1(%arg0: i32, %arg1: i32, %arg2: i32) -> (i32, i32, i32) {
    %c0_i32 = arith.constant 0 : i32
    %c0_i32_0 = arith.constant 0 : i32
    %c0_i32_1 = arith.constant 0 : i32
    return %c0_i32, %c0_i32_0, %arg1 : i32, i32, i32
  }
  func.func @transform_2(%arg0: i32, %arg1: i32, %arg2: i32) -> (i32, i32) {
    %c0_i32 = arith.constant 0 : i32
    %c0_i32_0 = arith.constant 0 : i32
    return %c0_i32, %arg1 : i32, i32
  }
  func.func @transform_3(%arg0: i32, %arg1: i32, %arg2: i32) -> (i32, i32, i32, i32) {
    %c0_i32 = arith.constant 0 : i32
    %c0_i32_0 = arith.constant 0 : i32
    return %arg0, %arg2, %c0_i32, %arg1 : i32, i32, i32, i32
  }
}

</mosaic_0001>

<bundles_post_ra>
// kernel: tpu_custom_call.1
= control target key start
LH: loop header
LB: loop body
LE: loop exit
PB: predicated region body
PF: predicated region fallthrough
CT: control target
= control target key end

     0   :  { %8 = vsyncpa [#allocation4], 0  ;;  %s5220_s0 = inlined_call_operand.vmem [shape: bf16[2,18,18,16], index: 0, kind: input, shape index: {}]   ;;  %s5221_s1 = inlined_call_operand.vmem [shape: bf16[3,48,128], index: 1, kind: input, shape index: {}]   ;;  %s5222_s2 = inlined_call_operand.vmem [shape: f32[1,128], index: 2, kind: input, shape index: {}]   ;;  %s5223_s3 = inlined_call_operand.hbm [shape: bf16[2,16,16,128], index: 3, kind: output, shape index: {}]  }
   0x1   :  { %10 = vsyncpa [#allocation4 + $0x1], 0  ;;  %s4157_s12 = smov 0   ;;  %s4159_s13 = smov 0  }
   0x2   :  { %s4161_s14 = smov 0   ;;  %s4163_s15 = smov 0  }
   0x3   :  { %s4165_s16 = smov 0   ;;  %s4167_s17 = smov 0  }
   0x4 LB: > { %s3181_s18 = sadd.s32 4294967295, %s4130_s17   ;;  %s3182_s19 = sadd.s32 4294967294, %s4130_s17   ;;  %s4130_s17 = sphi %s4167_s17, %s16_s17   ;;  %s4126_s16 = sphi %s4165_s16, %s5230_s16   ;;  %s4122_s15 = sphi %s4163_s15, %s5229_s15   ;;  %s4118_s14 = sphi %s4161_s14, %s5228_s14   ;;  %s4114_s13 = sphi %s4159_s13, %s5227_s13   ;;  %s4110_s12 = sphi %s4157_s12, %s5226_s12  }
   0x5   : > { %s35_s20 = sadd.s32 1, %s4126_s16  ;;  %s124_s21 = sadd.s32 1, %s4118_s14 }
   0x6   : > { %p37_p0 = scmp.ge.s32.totalorder %s35_s20, 2  ;;  %p134_p1 = scmp.ne.s32.totalorder %s4118_s14, %s4114_s13 }
   0x7   : > { %p135_p2 = scmp.eq.s32.totalorder %s3181_s18, 1  ;;  %p140_p3 = scmp.ne.s32.totalorder %s4114_s13, %s4110_s12 }
   0x8   : > { %s5232_s20 = smov (%p37_p0, %s35_s20), 0  ;;  %p141_p5 = scmp.eq.s32.totalorder %s3182_s19, 1 }
   0x9   : > { %p4197_p4 = por %p135_p2, %p134_p1  ;;  %s117_s23 = ssub.s32 %s4126_s16, %s5232_s20 }
   0xa   : > { %p3186_p6 = scmp.ge.s32.totalorder %s4130_s17, 1  ;;  %p122_p7 = scmp.eq.s32.totalorder %s117_s23, 0 }
   0xb   : > { %p4204_p8 = por %p141_p5, %p140_p3  ;;  %p180_p9 = scmp.lt.s32.totalorder %s4130_s17, 3 }
   0xc   : > { %s4210_s25 = scalar_select %p122_p7, %s4118_s14, %s124_s21  }
   0xd   : > { %p181_p10 = pnand %p3186_p6, %p180_p9 }
   0xe   : > { %p211_p11 = scmp.lt.s32.totalorder (!%p181_p10), %s4122_s15, 1  ;;  %v3979_v0 = vld [vmem:[%s5221_s1] sm:$0xff] (!%p181_p10)   ;;  %v4220_v1 = vld [vmem:[%s5221_s1 + $0x18] sm:$0xff] (!%p181_p10)   ;;  %vm630_vm0 = vcmask (!%p181_p10), 1046528   ;;  %vm405_vm1 = vsmask.f32 (!%p181_p10), 7424 }
   0xf   : > { %184 = sbr.rel (%p181_p10) target bundleno = 577 (0x241), region = 32  ;;  %3673 = vmatprep.subr.bf16.mxu1 (!%p181_p10), %v3979_v0  ;;  %3711 = vmatprep.subr.bf16.mxu0 (!%p181_p10), %v4220_v1  ;;  %s4132_s8 = smov (!%p181_p10), 32   ;;  %vm711_vm2 = vcmask (!%p181_p10), 130048   ;;  %vm744_vm3 = vcmask (!%p181_p10), 261120   ;;  %vm801_vm4 = vcmask (!%p181_p10), 392192  }
  0x10   : > { %3674 = vmatpush3.bf16.msra.mxu1 (!%p181_p10), %v3979_v0  ;;  %3712 = vmatpush3.bf16.msra.mxu0 (!%p181_p10), %v4220_v1  ;;  %s4133_s9 = smov (!%p181_p10), 16   ;;  %s3520_s21 = sshll.u32 (!%p181_p10), %s4122_s15, 11 }
  0x11   : > { %s5166_s28 = scalar_lea.hbm (!%p181_p10), %s5223_s3, %s3520_s21  ;;  %s4134_s30 = smov (!%p181_p10), [#allocation3]  }
  0x16   : > { %s212_s26 = scalar_select %p211_p11, %s4122_s15, 1 }
  0x18   : > { %s3857_s4 = smul.u32 216, %s212_s26 }
  0x1a   : > { %s4226_s7 = scalar_lea.vmem %s5220_s0, %s3857_s4  ;;  %s4056_s4 = sshll.u32 %s4134_s30, 4  ;;  %s4057_s4 = int_to_ptr.vmem [resolvable:$false] %s4056_s4 }
  0x1b   : > { %v3917_v2 = vld [vmem:[%s4226_s7 + $0xc] sm:$0xff]   ;;  %v3918_v3 = vld [vmem:[%s4226_s7 + $0x14] ss:$0 sps:$4 sm:$0x11]   ;;  %v3919_v4 = vld [vmem:[%s4226_s7] sm:$0xff]   ;;  %s4058_s5 = scalar_lea.vmem %s4057_s4, 4096 }
  0x1c   : > { %v634_v5 = vrot.slane %v3917_v2, 1  ;;  %v635_v6 = vrot.slane %v3918_v3, 1  ;;  %v3920_v7 = vld [vmem:[%s4226_s7 + $0x8] ss:$0 sps:$4 sm:$0x11]   ;;  %v3921_v8 = vld [vmem:[%s4226_s7 + $0xc] sm:$0xff]  }
  0x1d   : > { %v631_v9 = vrot.slane %v3919_v4, 1  ;;  %v407_v10 = vshrl.u32 %v3919_v4, 16  ;;  %v632_v12 = vrot.slane %v3920_v7, 1  ;;  %v3922_v13 = vld [vmem:[%s4226_s7 + $0x14] ss:$0 sps:$4 sm:$0x11]  }
  0x1e   : > { %v636_v11 = vsel %vm630_vm0, %v634_v5, %v635_v6  ;;  %v1431_v14 = vrot.slane %v3921_v8, 1  ;;  %v409_v15 = vshll.u32 %v3919_v4, 16  ;;  %v414_v16 = vshll.u32 %v3920_v7, 16  ;;  %v3923_v17 = vld [vmem:[%s4226_s7 + $0x18] sm:$0xff]   ;;  %v4243_v33 = vld [vmem:[%s4226_s7 + $0x24] sm:$0xff]   ;;  %v4265_v62 = vld [vmem:[%s4226_s7 + $0x30] sm:$0xff]  }
  0x1f   : > { %681 = vrot.lane.b32.xlu0 %v636_v11, %s4132_s8  ;;  %v633_v18 = vsel %vm630_vm0, %v631_v9, %v632_v12  ;;  %v1432_v19 = vrot.slane %v3922_v13, 1  ;;  %v1208_v20 = vshrl.u32 %v3921_v8, 16  ;;  %v3924_v23 = vld [vmem:[%s4226_s7 + $0x20] ss:$0 sps:$4 sm:$0x11]   ;;  %v1434_v24 = vrot.slane %v3923_v17, 1 }
  0x20   : > { %679 = vrot.lane.b32.xlu1 %v633_v18, %s4132_s8  ;;  %v411_v21 = vrot.slane %v409_v15, 1  ;;  %v416_v22 = vrot.slane %v414_v16, 1  ;;  %v1210_v26 = vshll.u32 %v3921_v8, 16  ;;  %v1215_v27 = vshll.u32 %v3922_v13, 16  ;;  %v3927_v43 = vld [vmem:[%s4226_s7 + $0x18] sm:$0xff]   ;;  %v4259_v55 = vld [vmem:[%s4226_s7 + $0x24] sm:$0xff]  }
  0x21   : > { %v1433_v25 = vsel %vm630_vm0, %v1431_v14, %v1432_v19  ;;  %v419_v28 = vshrl.u32 %v3917_v2, 16  ;;  %v1435_v30 = vrot.slane %v3924_v23, 1  ;;  %v421_v31 = vshll.u32 %v3917_v2, 16  ;;  %v4249_v42 = vld [vmem:[%s4226_s7 + $0x2c] ss:$0 sps:$4 sm:$0x11]  }
  0x22   : > { %v412_v29 = vor.u32 %v411_v21, %v407_v10  ;;  %v426_v32 = vshll.u32 %v3918_v3, 16  ;;  %v1212_v34 = vrot.slane %v1210_v26, 1  ;;  %v1217_v35 = vrot.slane %v1215_v27, 1  ;;  %v3928_v54 = vld [vmem:[%s4226_s7 + $0x20] ss:$0 sps:$4 sm:$0x11]  }
  0x23   : > { %v1220_v36 = vshrl.u32 %v3923_v17, 16  ;;  %v1222_v37 = vshll.u32 %v3923_v17, 16  ;;  %v1436_v39 = vsel %vm630_vm0, %v1434_v24, %v1435_v30  ;;  %v423_v40 = vrot.slane %v421_v31, 1  ;;  %v4269_v3 = vld [vmem:[%s4226_s7 + $0x2c] ss:$0 sps:$4 sm:$0x11]  }
  0x24   : > { %1479 = vrot.lane.b32.xlu1 %v1433_v25, %s4132_s8  ;;  %v417_v38 = vsel %vm405_vm1, %v412_v29, %v416_v22  ;;  %v428_v41 = vrot.slane %v426_v32, 1  ;;  %v1213_v44 = vor.u32 %v1212_v34, %v1208_v20  ;;  %v1227_v46 = vshll.u32 %v3924_v23, 16  ;;  %v3932_v13 = vld [vmem:[%s4226_s7 + $0x38] ss:$0 sps:$4 sm:$0x11]   ;;  %v4282_v18 = vld [vmem:[%s4226_s7 + $0x3c] sm:$0xff]  }
  0x25   : > { %598 = vrot.lane.b32.xlu0 %v417_v38, %s4133_s9  ;;  %v1224_v45 = vrot.slane %v1222_v37, 1  ;;  %v1232_v47 = vshrl.u32 %v4243_v33, 16  ;;  %v424_v48 = vor.u32 %v423_v40, %v419_v28  ;;  %v1234_v49 = vshll.u32 %v4243_v33, 16  ;;  %v4285_v21 = vld [vmem:[%s4226_s7 + $0x30] sm:$0xff]   ;;  %v4293_v25 = vld [vmem:[%s4226_s7 + $0x3c] sm:$0xff]  }
  0x26   : > { %v1239_v50 = vshll.u32 %v4249_v42, 16  ;;  %v1218_v51 = vsel %vm405_vm1, %v1213_v44, %v1217_v35  ;;  %v1229_v53 = vrot.slane %v1227_v46, 1  ;;  %v431_v57 = vshrl.u32 %v3927_v43, 16  ;;  %v4290_v24 = vld [vmem:[%s4226_s7 + $0x44] ss:$0 sps:$4 sm:$0x11]  }
  0x27   : > { %v1225_v52 = vor.u32 %v1224_v45, %v1220_v36  ;;  %v1236_v56 = vrot.slane %v1234_v49, 1  ;;  %v433_v58 = vshll.u32 %v3927_v43, 16  ;;  %v429_v59 = vsel %vm405_vm1, %v424_v48, %v428_v41  ;;  %v3936_v35 = vld [vmem:[%s4226_s7 + $0x38] ss:$0 sps:$4 sm:$0x11]   ;;  %v4317_v48 = vld [vmem:[%s4226_s7 + $0x48] sm:$0xff]  }
  0x28   : > { %1481 = vrot.lane.b32.xlu1 %v1436_v39, %s4132_s8  ;;  %v1241_v60 = vrot.slane %v1239_v50, 1  ;;  %v438_v61 = vshll.u32 %v3928_v54, 16  ;;  %v443_v5 = vshrl.u32 %v4259_v55, 16  ;;  %v445_v6 = vshll.u32 %v4259_v55, 16 }
  0x29   : > { %1399 = vrot.lane.b32.xlu0 %v1218_v51, %s4133_s9  ;;  %v1230_v63 = vsel %vm405_vm1, %v1225_v52, %v1229_v53  ;;  %v1237_v0 = vor.u32 %v1236_v56, %v1232_v47  ;;  %v435_v2 = vrot.slane %v433_v58, 1  ;;  %v450_v8 = vshll.u32 %v4269_v3, 16  ;;  %v3940_v56 = vld [vmem:[%s4226_s7 + $0x50] ss:$0 sps:$4 sm:$0x11]  }
  0x2a   : > { %v440_v4 = vrot.slane %v438_v61, 1  ;;  %v637_v10 = vrot.slane %v3927_v43, 1  ;;  %v638_v11 = vrot.slane %v3928_v54, 1  ;;  %v447_v12 = vrot.slane %v445_v6, 1  ;;  %v4330_v61 = vld [vmem:[%s4226_s7 + $0x54] sm:$0xff]  }
  0x2b   : > { %v436_v7 = vor.u32 %v435_v2, %v431_v57  ;;  %v1242_v9 = vsel %vm405_vm1, %v1237_v0, %v1241_v60  ;;  %v452_v15 = vrot.slane %v450_v8, 1  ;;  %v1244_v16 = vshrl.u32 %v4265_v62, 16  ;;  %v4310_v43 = vld [vmem:[%s4226_s7 + $0x44] ss:$0 sps:$4 sm:$0x11]  }
  0x2c   : > { %600 = vrot.lane.b32.xlu1 %v429_v59, %s4133_s9  ;;  %v1246_v17 = vshll.u32 %v4265_v62, 16  ;;  %v448_v19 = vor.u32 %v447_v12, %v443_v5  ;;  %v1251_v20 = vshll.u32 %v3932_v13, 16  ;;  %v1437_v22 = vrot.slane %v4243_v33, 1  ;;  %v4347_v12 = vld [vmem:[%s4226_s7 + $0x54] sm:$0xff]  }
  0x2d   : > { %1401 = vrot.lane.b32.xlu0 %v1230_v63, %s4133_s9  ;;  %v441_v14 = vsel %vm405_vm1, %v436_v7, %v440_v4  ;;  %v639_v26 = vsel %vm630_vm0, %v637_v10, %v638_v11  ;;  %v1438_v27 = vrot.slane %v4249_v42, 1  ;;  %v1440_v28 = vrot.slane %v4265_v62, 1  ;;  %v4337_v7 = vld [vmem:[%s4226_s7 + $0x48] sm:$0xff]   ;;  %v4344_v11 = vld [vmem:[%s4226_s7 + $0x5c] ss:$0 sps:$4 sm:$0x11]  }
  0x2e   : > { %v1248_v23 = vrot.slane %v1246_v17, 1  ;;  %v453_v29 = vsel %vm405_vm1, %v448_v19, %v452_v15  ;;  %v1253_v31 = vrot.slane %v1251_v20, 1  ;;  %v1258_v32 = vshll.u32 %v4282_v18, 16  ;;  %v3944_v15 = vld [vmem:[%s4226_s7 + $0x50] ss:$0 sps:$4 sm:$0x11]  }
  0x2f   : > { %v1441_v33 = vrot.slane %v3932_v13, 1  ;;  %v1256_v34 = vshrl.u32 %v4282_v18, 16  ;;  %v457_v36 = vshll.u32 %v4285_v21, 16  ;;  %v1263_v37 = vshll.u32 %v4290_v24, 16 }
  0x30   : > { %1403 = vrot.lane.b32.xlu1 %v1242_v9, %s4133_s9  ;;  %v1249_v30 = vor.u32 %v1248_v23, %v1244_v16  ;;  %v455_v38 = vshrl.u32 %v4285_v21, 16  ;;  %v1439_v39 = vsel %vm630_vm0, %v1437_v22, %v1438_v27  ;;  %v1260_v40 = vrot.slane %v1258_v32, 1 }
  0x31   : > { %602 = vrot.lane.b32.xlu0 %v441_v14, %s4133_s9  ;;  %v459_v41 = vrot.slane %v457_v36, 1  ;;  %v462_v42 = vshll.u32 %v3936_v35, 16  ;;  %v640_v45 = vrot.slane %v4259_v55, 1  ;;  %v641_v46 = vrot.slane %v4269_v3, 1 }
  0x32   : > { %v1254_v44 = vsel %vm405_vm1, %v1249_v30, %v1253_v31  ;;  %v469_v47 = vshll.u32 %v4293_v25, 16  ;;  %v1265_v49 = vrot.slane %v1263_v37, 1  ;;  %v467_v51 = vshrl.u32 %v4293_v25, 16 }
  0x33   : > { %v464_v50 = vrot.slane %v462_v42, 1  ;;  %v1442_v52 = vsel %vm630_vm0, %v1440_v28, %v1441_v33  ;;  %v1261_v53 = vor.u32 %v1260_v40, %v1256_v34  ;;  %v460_v54 = vor.u32 %v459_v41, %v455_v38  ;;  %v3947_v33 = vld [vmem:[%s4226_s7 + $0x60] sm:$0xff]   ;;  %v3948_v40 = vld [vmem:[%s4226_s7 + $0x68] ss:$0 sps:$4 sm:$0x11]  }
  0x34   : > { %683 = vrot.lane.b32.xlu1 %v639_v26, %s4132_s8  ;;  %v474_v55 = vshll.u32 %v4310_v43, 16  ;;  %v642_v57 = vsel %vm630_vm0, %v640_v45, %v641_v46  ;;  %v471_v58 = vrot.slane %v469_v47, 1  ;;  %v1270_v59 = vshll.u32 %v4317_v48, 16  ;;  %v4361_v26 = vld [vmem:[%s4226_s7 + $0x5c] ss:$0 sps:$4 sm:$0x11]  }
  0x35   : > { %604 = vrot.lane.b32.xlu0 %v453_v29, %s4133_s9  ;;  %v643_v60 = vrot.slane %v4285_v21, 1  ;;  %v1266_v62 = vsel %vm405_vm1, %v1261_v53, %v1265_v49  ;;  %v465_v63 = vsel %vm405_vm1, %v460_v54, %v464_v50  ;;  %v644_v0 = vrot.slane %v3936_v35, 1 }
  0x36   : > { %v1268_v2 = vshrl.u32 %v4317_v48, 16  ;;  %v472_v3 = vor.u32 %v471_v58, %v467_v51  ;;  %v476_v4 = vrot.slane %v474_v55, 1  ;;  %v1272_v5 = vrot.slane %v1270_v59, 1  ;;  %v4385_v55 = vld [vmem:[%s4226_s7 + $0x60] sm:$0xff]  }
  0x37   : > { %v1275_v6 = vshll.u32 %v3940_v56, 16  ;;  %v1443_v8 = vrot.slane %v4282_v18, 1  ;;  %v1444_v9 = vrot.slane %v4290_v24, 1  ;;  %v1446_v10 = vrot.slane %v4317_v48, 1  ;;  %v4379_v48 = vld [vmem:[%s4226_s7 + $0x18] sm:$0xff]  }
  0x38   : > { %1483 = vrot.lane.b32.xlu1 %v1439_v39, %s4132_s8  ;;  %v645_v13 = vsel %vm630_vm0, %v643_v60, %v644_v0  ;;  %v1282_v14 = vshll.u32 %v4330_v61, 16  ;;  %v477_v16 = vsel %vm405_vm1, %v472_v3, %v476_v4  ;;  %v1273_v17 = vor.u32 %v1272_v5, %v1268_v2  ;;  %v4391_v60 = vld [vmem:[%s4226_s7 + $0x20] ss:$0 sps:$4 sm:$0x11]  }
  0x39   : > { %1405 = vrot.lane.b32.xlu0 %v1254_v44, %s4133_s9  ;;  %v1277_v18 = vrot.slane %v1275_v6, 1  ;;  %v481_v19 = vshll.u32 %v4337_v7, 16  ;;  %v1447_v20 = vrot.slane %v3940_v56, 1  ;;  %v646_v21 = vrot.slane %v4293_v25, 1  ;;  %v4401_v6 = vld [vmem:[%s4226_s7 + $0x6c] sm:$0xff]  }
  0x3a   : > { %v647_v22 = vrot.slane %v4310_v43, 1  ;;  %v1280_v23 = vshrl.u32 %v4330_v61, 16  ;;  %v1287_v24 = vshll.u32 %v4344_v11, 16  ;;  %v1445_v27 = vsel %vm630_vm0, %v1443_v8, %v1444_v9  ;;  %v3952_v2 = vld [vmem:[%s4226_s7 + $0x68] ss:$0 sps:$4 sm:$0x11]  }
  0x3b   : > { %v1284_v28 = vrot.slane %v1282_v14, 1  ;;  %v479_v29 = vshrl.u32 %v4337_v7, 16  ;;  %v1278_v25 = vsel %vm405_vm1, %v1273_v17, %v1277_v18  ;;  %v483_v30 = vrot.slane %v481_v19, 1 }
  0x3c   : > { %1485 = vrot.lane.b32.xlu1 %v1442_v52, %s4132_s8  ;;  %v486_v31 = vshll.u32 %v3944_v15, 16  ;;  %v493_v32 = vshll.u32 %v4347_v12, 16  ;;  %v1289_v34 = vrot.slane %v1287_v24, 1  ;;  %v491_v35 = vshrl.u32 %v4347_v12, 16 }
  0x3d   : > { %685 = vrot.lane.b32.xlu0 %v642_v57, %s4132_s8  ;;  %v1448_v36 = vsel %vm630_vm0, %v1446_v10, %v1447_v20  ;;  %v648_v37 = vsel %vm630_vm0, %v646_v21, %v647_v22  ;;  %v1285_v38 = vor.u32 %v1284_v28, %v1280_v23  ;;  %v498_v39 = vshll.u32 %v4361_v26, 16 }
  0x3e   : > { %v484_v41 = vor.u32 %v483_v30, %v479_v29  ;;  %v488_v42 = vrot.slane %v486_v31, 1  ;;  %v495_v43 = vrot.slane %v493_v32, 1  ;;  %v1294_v44 = vshll.u32 %v3947_v33, 16  ;;  %v3956_v29 = vld [vmem:[%s4226_s7 + $0x2c] ss:$0 sps:$4 sm:$0x11]  }
  0x3f   : > { %v649_v45 = vrot.slane %v4337_v7, 1  ;;  %v650_v46 = vrot.slane %v3944_v15, 1  ;;  %v1292_v47 = vshrl.u32 %v3947_v33, 16  ;;  %v1290_v49 = vsel %vm405_vm1, %v1285_v38, %v1289_v34  ;;  %v4414_v15 = vld [vmem:[%s4226_s7 + $0x74] ss:$0 sps:$4 sm:$0x11]  }
  0x40   : > { %1407 = vrot.lane.b32.xlu1 %v1266_v62, %s4133_s9  ;;  %v500_v50 = vrot.slane %v498_v39, 1  ;;  %v1299_v51 = vshll.u32 %v3948_v40, 16  ;;  %v489_v52 = vsel %vm405_vm1, %v484_v41, %v488_v42  ;;  %v496_v53 = vor.u32 %v495_v43, %v491_v35  ;;  %v4430_v32 = vld [vmem:[%s4226_s7 + $0x30] sm:$0xff]   ;;  %v4441_v43 = vld [vmem:[%s4226_s7 + $0x38] ss:$0 sps:$4 sm:$0x11]  }
  0x41   : > { %606 = vrot.lane.b32.xlu0 %v465_v63, %s4133_s9  ;;  %v1296_v54 = vrot.slane %v1294_v44, 1  ;;  %v1449_v56 = vrot.slane %v4330_v61, 1  ;;  %v1450_v57 = vrot.slane %v4344_v11, 1  ;;  %v1452_v58 = vrot.slane %v3947_v33, 1 }
  0x42   : > { %v1453_v59 = vrot.slane %v3948_v40, 1  ;;  %v2072_v62 = vshll.u32 %v4379_v48, 16  ;;  %v651_v63 = vsel %vm630_vm0, %v649_v45, %v650_v46  ;;  %v652_v0 = vrot.slane %v4347_v12, 1  ;;  %v4409_v12 = vld [vmem:[%s4226_s7 + $0x24] sm:$0xff]  }
  0x43   : > { %v501_v61 = vsel %vm405_vm1, %v496_v53, %v500_v50  ;;  %v1297_v3 = vor.u32 %v1296_v54, %v1292_v47  ;;  %v1301_v4 = vrot.slane %v1299_v51, 1  ;;  %v505_v5 = vshll.u32 %v4385_v55, 16  ;;  %v3960_v45 = vld [vmem:[%s4226_s7 + $0x80] ss:$0 sps:$4 sm:$0x11]  }
  0x44   : > { %687 = vrot.lane.b32.xlu1 %v645_v13, %s4132_s8  ;;  %v653_v7 = vrot.slane %v4361_v26, 1  ;;  %v2070_v8 = vshrl.u32 %v4379_v48, 16  ;;  %v2074_v9 = vrot.slane %v2072_v62, 1  ;;  %v2077_v10 = vshll.u32 %v4391_v60, 16 }
  0x45   : > { %608 = vrot.lane.b32.xlu0 %v477_v16, %s4133_s9  ;;  %v503_v11 = vshrl.u32 %v4385_v55, 16  ;;  %v1451_v13 = vsel %vm630_vm0, %v1449_v56, %v1450_v57  ;;  %v510_v14 = vshll.u32 %v3952_v2, 16  ;;  %v1302_v16 = vsel %vm405_vm1, %v1297_v3, %v1301_v4  ;;  %v4468_v3 = vld [vmem:[%s4226_s7 + $0x3c] sm:$0xff]  }
  0x46   : > { %v507_v17 = vrot.slane %v505_v5, 1  ;;  %v517_v18 = vshll.u32 %v4401_v6, 16  ;;  %v1454_v19 = vsel %vm630_vm0, %v1452_v58, %v1453_v59  ;;  %v654_v20 = vsel %vm630_vm0, %v652_v0, %v653_v7 }
  0x47   : > { %v2075_v21 = vor.u32 %v2074_v9, %v2070_v8  ;;  %v2079_v22 = vrot.slane %v2077_v10, 1  ;;  %v515_v23 = vshrl.u32 %v4401_v6, 16  ;;  %v522_v24 = vshll.u32 %v4414_v15, 16 }
  0x48   : > { %1487 = vrot.lane.b32.xlu1 %v1445_v27, %s4132_s8  ;;  %v508_v26 = vor.u32 %v507_v17, %v503_v11  ;;  %v512_v27 = vrot.slane %v510_v14, 1  ;;  %v519_v28 = vrot.slane %v517_v18, 1  ;;  %v655_v30 = vrot.slane %v4385_v55, 1  ;;  %v3964_v11 = vld [vmem:[%s4226_s7 + $0x44] ss:$0 sps:$4 sm:$0x11]  }
  0x49   : > { %1409 = vrot.lane.b32.xlu0 %v1278_v25, %s4133_s9  ;;  %v2084_v25 = vshll.u32 %v4409_v12, 16  ;;  %v2293_v31 = vrot.slane %v4379_v48, 1  ;;  %v2080_v33 = vsel %vm405_vm1, %v2075_v21, %v2079_v22  ;;  %v656_v34 = vrot.slane %v3952_v2, 1  ;;  %v4450_v48 = vld [vmem:[%s4226_s7 + $0x84] sm:$0xff]  }
  0x4a   : > { %v524_v35 = vrot.slane %v522_v24, 1  ;;  %v513_v38 = vsel %vm405_vm1, %v508_v26, %v512_v27  ;;  %v520_v39 = vor.u32 %v519_v28, %v515_v23  ;;  %v2089_v41 = vshll.u32 %v3956_v29, 16  ;;  %v4481_v17 = vld [vmem:[%s4226_s7 + $0x48] sm:$0xff]   ;;  %v4489_v27 = vld [vmem:[%s4226_s7 + $0x90] sm:$0xff]  }
  0x4b   : > { %v2086_v40 = vrot.slane %v2084_v25, 1  ;;  %v2294_v42 = vrot.slane %v4391_v60, 1  ;;  %v2096_v44 = vshll.u32 %v4430_v32, 16  ;;  %v657_v46 = vsel %vm630_vm0, %v655_v30, %v656_v34  ;;  %v4497_v25 = vld [vmem:[%s4226_s7 + $0x50] ss:$0 sps:$4 sm:$0x11]  }
  0x4c   : > { %1489 = vrot.lane.b32.xlu1 %v1448_v36, %s4132_s8  ;;  %v2082_v36 = vshrl.u32 %v4409_v12, 16  ;;  %v2091_v51 = vrot.slane %v2089_v41, 1  ;;  %v658_v54 = vrot.slane %v4401_v6, 1  ;;  %v659_v55 = vrot.slane %v4414_v15, 1  ;;  %v4507_v34 = vld [vmem:[%s4226_s7 + $0x9c] sm:$0xff]   ;;  %v4522_v41 = vld [vmem:[%s5221_s1 + $0x28] sm:$0xff]  }
  0x4d   : > { %689 = vrot.lane.b32.xlu0 %v648_v37, %s4132_s8  ;;  %v4436_v37 = vld [vmem:[%s4226_s7 + $0x78] sm:$0xff]   ;;  %v2295_v53 = vsel %vm630_vm0, %v2293_v31, %v2294_v42  ;;  %v2297_v56 = vrot.slane %v3956_v29, 1  ;;  %v2094_v57 = vshrl.u32 %v4430_v32, 16  ;;  %v2101_v58 = vshll.u32 %v4441_v43, 16  ;;  %v3983_v29 = vld [vmem:[%s5221_s1 + $0x8] sm:$0xff]  }
  0x4e   : > { %v529_v47 = vshll.u32 %v4436_v37, 16  ;;  %v2087_v50 = vor.u32 %v2086_v40, %v2082_v36  ;;  %v534_v59 = vshll.u32 %v3960_v45, 16  ;;  %v2098_v60 = vrot.slane %v2096_v44, 1  ;;  %3675 = vmatprep.subr.bf16.mxu1 %v3983_v29  ;;  %v3985_v40 = vld [vmem:[%s5221_s1 + $0x10] sm:$0xff]  }
  0x4f   : > { %v527_v62 = vshrl.u32 %v4436_v37, 16  ;;  %v541_v0 = vshll.u32 %v4450_v48, 16  ;;  %v2103_v4 = vrot.slane %v2101_v58, 1  ;;  %v539_v6 = vshrl.u32 %v4450_v48, 16  ;;  %3676 = vmatpush3.bf16.msra.mxu1 %v3983_v29 }
  0x50   : > { %1411 = vrot.lane.b32.xlu1 %v1290_v49, %s4133_s9  ;;  %v525_v49 = vsel %vm405_vm1, %v520_v39, %v524_v35  ;;  %v2092_v2 = vsel %vm405_vm1, %v2087_v50, %v2091_v51  ;;  %v536_v5 = vrot.slane %v534_v59, 1  ;;  %v2099_v8 = vor.u32 %v2098_v60, %v2094_v57  ;;  %v4512_v35 = vld [vmem:[%s5221_s1 + $0x20] sm:$0xff]   ;;  %3677 = vmatprep.subr.bf16.mxu1 %v3985_v40 }
  0x51   : > { %610 = vrot.lane.b32.xlu0 %v489_v52, %s4133_s9  ;;  %v2296_v52 = vrot.slane %v4409_v12, 1  ;;  %v543_v10 = vrot.slane %v541_v0, 1  ;;  %v660_v12 = vsel %vm630_vm0, %v658_v54, %v659_v55  ;;  %v2108_v14 = vshll.u32 %v4468_v3, 16  ;;  %3713 = vmatprep.subr.bf16.mxu0 %v4512_v35  ;;  %v4535_v50 = vld [vmem:[%s4226_s7 + $0xa4] ss:$0 sps:$4 sm:$0x11]  }
  0x52   : > { %v661_v15 = vrot.slane %v4436_v37, 1  ;;  %v2104_v18 = vsel %vm405_vm1, %v2099_v8, %v2103_v4  ;;  %v2299_v21 = vrot.slane %v4430_v32, 1  ;;  %v2106_v23 = vshrl.u32 %v4468_v3, 16  ;;  %3714 = vmatpush3.bf16.msra.mxu0 %v4512_v35  ;;  %v4541_v55 = vld [vmem:[%s4226_s7 + $0x54] sm:$0xff]   ;;  %v4557_v4 = vld [vmem:[%s4226_s7 + $0x60] sm:$0xff]  }
  0x53   : > { %v2298_v7 = vsel %vm630_vm0, %v2296_v52, %v2297_v56  ;;  %v2110_v24 = vrot.slane %v2108_v14, 1  ;;  %v2113_v26 = vshll.u32 %v3964_v11, 16  ;;  %v2300_v28 = vrot.slane %v4441_v43, 1  ;;  %3715 = vmatprep.subr.bf16.mxu0 %v4522_v41  ;;  %3678 = vmatpush3.bf16.msra.mxu1 %v3985_v40  ;;  %v4568_v14 = vld [vmem:[%s4226_s7 + $0x68] ss:$0 sps:$4 sm:$0x11]  }
  0x54   : > { %691 = vrot.lane.b32.xlu1 %v651_v63, %s4132_s8  ;;  %v531_v63 = vrot.slane %v529_v47, 1  ;;  %v2120_v30 = vshll.u32 %v4481_v17, 16  ;;  %v664_v32 = vrot.slane %v4450_v48, 1  ;;  %v553_v39 = vshll.u32 %v4489_v27, 16  ;;  %3787 = vmatprep.subr.bf16.mxu1 %v4220_v1  ;;  %v4597_v40 = vld [vmem:[%s4226_s7 + $0x6c] sm:$0xff]  }
  0x55   : > { %612 = vrot.lane.b32.xlu0 %v501_v61, %s4133_s9  ;;  %v4465_v61 = vld [vmem:[%s4226_s7 + $0x8c] ss:$0 sps:$4 sm:$0x11]   ;;  %v2111_v37 = vor.u32 %v2110_v24, %v2106_v23  ;;  %v2302_v42 = vrot.slane %v4468_v3, 1  ;;  %v2303_v43 = vrot.slane %v3964_v11, 1  ;;  %v2125_v47 = vshll.u32 %v4497_v25, 16 }
  0x56   : > { %v532_v9 = vor.u32 %v531_v63, %v527_v62  ;;  %v665_v44 = vrot.slane %v4465_v61, 1  ;;  %v2301_v48 = vsel %vm630_vm0, %v2299_v21, %v2300_v28  ;;  %v551_v52 = vshrl.u32 %v4489_v27, 16  ;;  %3716 = vmatpush3.bf16.msra.mxu0 %v4522_v41 }
  0x57   : > { %v565_v54 = vshll.u32 %v4507_v34, 16  ;;  %v2304_v56 = vsel %vm630_vm0, %v2302_v42, %v2303_v43  ;;  %v2127_v59 = vrot.slane %v2125_v47, 1  ;;  %v570_v62 = vshll.u32 %v4535_v50, 16 }
  0x58   : > { %1491 = vrot.lane.b32.xlu1 %v1451_v13, %s4132_s8  ;;  %v546_v13 = vshll.u32 %v4465_v61, 16  ;;  %v666_v57 = vsel %vm630_vm0, %v664_v32, %v665_v44  ;;  %v563_v1 = vshrl.u32 %v4507_v34, 16  ;;  %v2132_v61 = vshll.u32 %v4541_v55, 16  ;;  %v4603_v44 = vld [vmem:[%s4226_s7 + $0x74] ss:$0 sps:$4 sm:$0x11]  }
  0x59   : > { %1413 = vrot.lane.b32.xlu0 %v1302_v16, %s4133_s9  ;;  %v662_v16 = vrot.slane %v3960_v45, 1  ;;  %v2118_v45 = vshrl.u32 %v4481_v17, 16  ;;  %v567_v0 = vrot.slane %v565_v54, 1  ;;  %v667_v3 = vrot.slane %v4489_v27, 1  ;;  %v4581_v27 = vld [vmem:[%s4226_s7 + $0xb4] sm:$0xff]  }
  0x5a   : > { %v548_v22 = vrot.slane %v546_v13, 1  ;;  %v2130_v8 = vshrl.u32 %v4541_v55, 16  ;;  %v671_v29 = vrot.slane %v4535_v50, 1 }
  0x5b   : > { %v663_v31 = vsel %vm630_vm0, %v661_v15, %v662_v16  ;;  %v568_v11 = vor.u32 %v567_v0, %v563_v1  ;;  %v2305_v15 = vrot.slane %v4481_v17, 1  ;;  %v2144_v16 = vshll.u32 %v4557_v4, 16  ;;  %v4620_v1 = vld [vmem:[%s4226_s7 + $0x80] ss:$0 sps:$4 sm:$0x11]   ;;  %v4623_v0 = vld [vmem:[%s4226_s7 + $0x6c] sm:$0xff]  }
  0x5c   : > { %1493 = vrot.lane.b32.xlu1 %v1454_v19, %s4132_s8  ;;  %v537_v19 = vsel %vm405_vm1, %v532_v9, %v536_v5  ;;  %v4564_v9 = vld [vmem:[%s4226_s7 + $0xa8] sm:$0xff]   ;;  %v2308_v17 = vrot.slane %v4541_v55, 1  ;;  %v4612_v55 = vld [vmem:[%s4226_s7 + $0x78] sm:$0xff]  }
  0x5d   : > { %693 = vrot.lane.b32.xlu0 %v654_v20, %s4132_s8  ;;  %v544_v20 = vor.u32 %v543_v10, %v539_v6  ;;  %v577_v21 = vshll.u32 %v4564_v9, 16 }
  0x5f   : > { %v549_v36 = vsel %vm405_vm1, %v544_v20, %v548_v22  ;;  %v2306_v20 = vrot.slane %v4497_v25, 1  ;;  %v2146_v25 = vrot.slane %v2144_v16, 1  ;;  %v2314_v16 = vrot.slane %v4597_v40, 1 }
  0x60   : > { %2261 = vrot.lane.b32.xlu1 %v2080_v33, %s4133_s9  ;;  %v4504_v33 = vld [vmem:[%s4226_s7 + $0x98] ss:$0 sps:$4 sm:$0x11]  }
  0x61   : > { %614 = vrot.lane.b32.xlu0 %v513_v38, %s4133_s9  ;;  %v2115_v38 = vrot.slane %v2113_v26, 1  ;;  %v668_v6 = vrot.slane %v4504_v33, 1  ;;  %v670_v26 = vrot.slane %v4507_v34, 1  ;;  %v2307_v32 = vsel %vm630_vm0, %v2305_v15, %v2306_v20  ;;  %v4639_v15 = vld [vmem:[%s4226_s7 + $0x78] sm:$0xff]  }
  0x62   : > { %v579_v34 = vrot.slane %v577_v21, 1  ;;  %v2166_v20 = vshrl.u32 %v4612_v55, 16 }
  0x63   : > { %v2116_v51 = vsel %vm405_vm1, %v2111_v37, %v2115_v38  ;;  %v4592_v37 = vld [vmem:[%s4226_s7 + $0xbc] ss:$0 sps:$4 sm:$0x11]   ;;  %v672_v43 = vsel %vm630_vm0, %v670_v26, %v671_v29 }
  0x64   : > { %695 = vrot.lane.b32.xlu1 %v657_v46, %s4132_s8  ;;  %v2122_v46 = vrot.slane %v2120_v30, 1  ;;  %v2142_v30 = vshrl.u32 %v4557_v4, 16 }
  0x65   : > { %616 = vrot.lane.b32.xlu0 %v525_v49, %s4133_s9  ;;  %v558_v49 = vshll.u32 %v4504_v33, 16  ;;  %v575_v33 = vshrl.u32 %v4564_v9, 16 }
  0x66   : > { %v2123_v58 = vor.u32 %v2122_v46, %v2118_v45  ;;  %v2147_v45 = vor.u32 %v2146_v25, %v2142_v30  ;;  %v1318_v30 = vshll.u32 %v4639_v15, 16  ;;  %v4658_v25 = vld [vmem:[%s4226_s7 + $0x84] sm:$0xff]  }
  0x67   : > { %v560_v60 = vrot.slane %v558_v49, 1  ;;  %v580_v47 = vor.u32 %v579_v34, %v575_v33  ;;  %v1316_v33 = vshrl.u32 %v4639_v15, 16  ;;  %v4664_v34 = vld [vmem:[%s5221_s1 + $0x30] sm:$0xff]  }
  0x68   : > { %2341 = vrot.lane.b32.xlu1 %v2295_v53, %s4132_s8  ;;  %v555_v53 = vrot.slane %v553_v39, 1  ;;  %v2128_v5 = vsel %vm405_vm1, %v2123_v58, %v2127_v59  ;;  %v589_v39 = vshll.u32 %v4581_v27, 16  ;;  %v2161_v58 = vshll.u32 %v4603_v44, 16  ;;  %3749 = vmatprep.subr.bf16.mxu0 %v4664_v34 }
  0x69   : > { %2263 = vrot.lane.b32.xlu0 %v2092_v2, %s4133_s9  ;;  %v3972_v2 = vld [vmem:[%s4226_s7 + $0x5c] ss:$0 sps:$4 sm:$0x11]  }
  0x6a   : > { %v556_v63 = vor.u32 %v555_v53, %v551_v52  ;;  %v2137_v13 = vshll.u32 %v3972_v2, 16  ;;  %v2309_v28 = vrot.slane %v3972_v2, 1  ;;  %v591_v50 = vrot.slane %v589_v39, 1 }
  0x6b   : > { %v2156_v52 = vshll.u32 %v4597_v40, 16  ;;  %v673_v53 = vrot.slane %v4564_v9, 1  ;;  %v2168_v2 = vshll.u32 %v4612_v55, 16 }
  0x6c   : > { %2343 = vrot.lane.b32.xlu1 %v2298_v7, %s4132_s8  ;;  %v572_v7 = vrot.slane %v570_v62, 1  ;;  %v561_v10 = vsel %vm405_vm1, %v556_v63, %v560_v60  ;;  %v2139_v24 = vrot.slane %v2137_v13, 1  ;;  %v2310_v42 = vsel %vm630_vm0, %v2308_v17, %v2309_v28 }
  0x6d   : > { %697 = vrot.lane.b32.xlu0 %v660_v12, %s4132_s8  ;;  %v2134_v12 = vrot.slane %v2132_v61, 1  ;;  %v2158_v63 = vrot.slane %v2156_v52, 1  ;;  %v1306_v13 = vshll.u32 %v4623_v0, 16  ;;  %v2170_v21 = vrot.slane %v2168_v2, 1  ;;  %v4694_v2 = vld [vmem:[%s4226_s7 + $0x84] sm:$0xff]  }
  0x6e   : > { %v573_v22 = vsel %vm405_vm1, %v568_v11, %v572_v7  ;;  %v2163_v7 = vrot.slane %v2161_v58, 1  ;;  %v1304_v28 = vshrl.u32 %v4623_v0, 16  ;;  %v1455_v52 = vrot.slane %v4623_v0, 1 }
  0x6f   : > { %v2135_v23 = vor.u32 %v2134_v12, %v2130_v8  ;;  %v4634_v8 = vld [vmem:[%s4226_s7 + $0x74] ss:$0 sps:$4 sm:$0x11]   ;;  %v1308_v29 = vrot.slane %v1306_v13, 1  ;;  %v2317_v58 = vrot.slane %v4612_v55, 1 }
  0x70   : > { %2265 = vrot.lane.b32.xlu1 %v2104_v18, %s4133_s9  ;;  %v3976_v18 = vld [vmem:[%s4226_s7 + $0xb0] ss:$0 sps:$4 sm:$0x11]   ;;  %v4702_v13 = vld [vmem:[%s4226_s7 + $0x98] ss:$0 sps:$4 sm:$0x11]  }
  0x71   : > { %618 = vrot.lane.b32.xlu0 %v537_v19, %s4133_s9  ;;  %v669_v19 = vsel %vm630_vm0, %v667_v3, %v668_v6  ;;  %v2140_v38 = vsel %vm405_vm1, %v2135_v23, %v2139_v24  ;;  %v674_v54 = vrot.slane %v3976_v18, 1  ;;  %v2312_v6 = vrot.slane %v4568_v14, 1  ;;  %v4652_v24 = vld [vmem:[%s4226_s7 + $0x80] ss:$0 sps:$4 sm:$0x11]  }
  0x72   : > { %v1311_v23 = vshll.u32 %v4634_v8, 16 }
  0x73   : > { %v675_v3 = vsel %vm630_vm0, %v673_v53, %v674_v54  ;;  %v4682_v53 = vld [vmem:[%s4226_s7 + $0x90] sm:$0xff]  }
  0x74   : > { %699 = vrot.lane.b32.xlu1 %v663_v31, %s4132_s8  ;;  %v2149_v31 = vshll.u32 %v4568_v14, 16  ;;  %v676_v14 = vrot.slane %v4581_v27, 1  ;;  %v4023_v54 = vld [vmem:[%s4226_s7 + $0xc] sm:$0xff]  }
  0x75   : > { %620 = vrot.lane.b32.xlu0 %v549_v36, %s4133_s9  ;;  %v582_v36 = vshll.u32 %v3976_v18, 16  ;;  %v2315_v18 = vrot.slane %v4603_v44, 1  ;;  %v1323_v44 = vshll.u32 %v4652_v24, 16 }
  0x76   : > { %v2151_v46 = vrot.slane %v2149_v31, 1 }
  0x77   : > { %v584_v49 = vrot.slane %v582_v36, 1  ;;  %v4022_v36 = vld [vmem:[%s4226_s7] sm:$0xff]  }
  0x78   : > { %2345 = vrot.lane.b32.xlu1 %v2301_v48, %s4132_s8  ;;  %v587_v48 = vshrl.u32 %v4581_v27, 16 }
  0x79   : > { %2267 = vrot.lane.b32.xlu0 %v2116_v51, %s4133_s9  ;;  %v594_v51 = vshll.u32 %v4592_v37, 16  ;;  %v585_v59 = vsel %vm405_vm1, %v580_v47, %v584_v49  ;;  %v1320_v49 = vrot.slane %v1318_v30, 1  ;;  %v4725_v30 = vld [vmem:[%s4226_s7 + $0x90] sm:$0xff]  }
  0x7a   : > { %v592_v60 = vor.u32 %v591_v50, %v587_v48  ;;  %v1309_v48 = vor.u32 %v1308_v29, %v1304_v28  ;;  %v2180_v50 = vshll.u32 %v4658_v25, 16 }
  0x7b   : > { %v596_v62 = vrot.slane %v594_v51, 1 }
  0x7c   : > { %2347 = vrot.lane.b32.xlu1 %v2304_v56, %s4132_s8  ;;  %v2152_v56 = vsel %vm405_vm1, %v2147_v45, %v2151_v46  ;;  %v4674_v45 = vld [vmem:[%s4226_s7 + $0x8c] ss:$0 sps:$4 sm:$0x11]  }
  0x7d   : > { %701 = vrot.lane.b32.xlu0 %v666_v57, %s4132_s8  ;;  %v2154_v57 = vshrl.u32 %v4597_v40, 16  ;;  %v597_v11 = vsel %vm405_vm1, %v592_v60, %v596_v62  ;;  %v1325_v62 = vrot.slane %v1323_v44, 1 }
  0x7f   : > { %v2159_v12 = vor.u32 %v2158_v63, %v2154_v57  ;;  %v1456_v57 = vrot.slane %v4634_v8, 1  ;;  %v2178_v63 = vshrl.u32 %v4658_v25, 16  ;;  %v2185_v8 = vshll.u32 %v4674_v45, 16 }
  0x80   : > { %2269 = vrot.lane.b32.xlu1 %v2128_v5, %s4133_s9  ;;  %v2311_v5 = vrot.slane %v4557_v4, 1  ;;  %v2173_v4 = vshll.u32 %v4620_v1, 16 }
  0x81   : > { %622 = vrot.lane.b32.xlu0 %v561_v10, %s4133_s9  ;;  %v2164_v17 = vsel %vm405_vm1, %v2159_v12, %v2163_v7  ;;  %v2182_v7 = vrot.slane %v2180_v50, 1  ;;  %v2187_v29 = vrot.slane %v2185_v8, 1 }
  0x83   : > { %v2183_v28 = vor.u32 %v2182_v7, %v2178_v63  ;;  %v1340_v7 = vshrl.u32 %v4725_v30, 16 }
  0x84   : > { %703 = vrot.lane.b32.xlu1 %v669_v19, %s4132_s8  ;;  %v677_v19 = vrot.slane %v4592_v37, 1 }
  0x85   : > { %624 = vrot.lane.b32.xlu0 %v573_v22, %s4133_s9  ;;  %v2313_v22 = vsel %vm630_vm0, %v2311_v5, %v2312_v6  ;;  %v1321_v6 = vor.u32 %v1320_v49, %v1316_v33  ;;  %v2320_v33 = vrot.slane %v4658_v25, 1  ;;  %v2188_v50 = vsel %vm405_vm1, %v2183_v28, %v2187_v29 }
  0x86   : > { %v678_v47 = vsel %vm630_vm0, %v676_v14, %v677_v19  ;;  %v4711_v19 = vld [vmem:[%s4226_s7 + $0x8c] ss:$0 sps:$4 sm:$0x11]  }
  0x88   : > { %2349 = vrot.lane.b32.xlu1 %v2307_v32, %s4132_s8  ;;  %v2175_v32 = vrot.slane %v2173_v4, 1 }
  0x89   : > { %2271 = vrot.lane.b32.xlu0 %v2140_v38, %s4133_s9  ;;  %v2316_v38 = vsel %vm630_vm0, %v2314_v16, %v2315_v18  ;;  %v2192_v16 = vshll.u32 %v4682_v53, 16  ;;  %v4025_v18 = vld [vmem:[%s4226_s7 + $0x18] sm:$0xff]  }
  0x8c   : > { %2351 = vrot.lane.b32.xlu1 %v2310_v42, %s4132_s8  ;;  %v2171_v42 = vor.u32 %v2170_v21, %v2166_v20  ;;  %v4020_v20 = vld [vmem:[%s5221_s1 + $0x38] sm:$0xff]  }
  0x8d   : > { %705 = vrot.lane.b32.xlu0 %v672_v43, %s4132_s8  ;;  %v1313_v43 = vrot.slane %v1311_v23, 1  ;;  %v2318_v23 = vrot.slane %v4620_v1, 1  ;;  %v2321_v1 = vrot.slane %v4674_v45, 1  ;;  %v4744_v45 = vld [vmem:[%s4226_s7 + $0x98] ss:$0 sps:$4 sm:$0x11]  }
  0x8e   : > { %v2176_v60 = vsel %vm405_vm1, %v2171_v42, %v2175_v32  ;;  %v2197_v42 = vshll.u32 %v4702_v13, 16  ;;  %v1347_v63 = vshll.u32 %v4744_v45, 16 }
  0x8f   : > { %v1314_v5 = vsel %vm405_vm1, %v1309_v48, %v1313_v43  ;;  %v1328_v43 = vshrl.u32 %v4694_v2, 16  ;;  %v2319_v44 = vsel %vm630_vm0, %v2317_v58, %v2318_v23  ;;  %v4786_v23 = vld [vmem:[%s4226_s7 + $0x9c] sm:$0xff]  }
  0x90   : > { %2273 = vrot.lane.b32.xlu1 %v2152_v56, %s4133_s9 }
  0x91   : > { %626 = vrot.lane.b32.xlu0 %v585_v59, %s4133_s9  ;;  %v4628_v61 = vpop.permute.xlu0 %681 }
  0x92   : > { %v680_v10 = vpop.permute.xlu1 %679 }
  0x94   : > { %707 = vrot.lane.b32.xlu1 %v675_v3, %s4132_s8 }
  0x95   : > { %628 = vrot.lane.b32.xlu0 %v597_v11, %s4133_s9 }
  0x96   : > { %v1480_v26 = vpop.permute.xlu1 %1479 }
  0x97   : > { %v599_v31 = vpop.permute.xlu0 %598 }
  0x98   : > { %v713_v37 = vsel %vm711_vm2, %v4022_v36, %v599_v31  ;;  %2353 = vrot.lane.b32.xlu1 %v2313_v22, %s4132_s8  ;;  %v1457_v22 = vsel %vm630_vm0, %v1455_v52, %v1456_v57  ;;  %v4026_v31 = vld [vmem:[%s5221_s1 + $0x18] sm:$0xff]   ;;  %v1458_v36 = vrot.slane %v4639_v15, 1  ;;  %v2322_v57 = vsel %vm630_vm0, %v2320_v33, %v2321_v1 }
  0x99   : > { %2275 = vrot.lane.b32.xlu0 %v2164_v17, %s4133_s9  ;;  %v746_v39 = vsel %vm744_vm3, %v713_v37, %v680_v10  ;;  %v4024_v10 = vld [vmem:[%s4226_s7 + $0xc] sm:$0xff]   ;;  %v1326_v17 = vsel %vm405_vm1, %v1321_v6, %v1325_v62  ;;  %v1459_v37 = vrot.slane %v4652_v24, 1  ;;  %v4754_v52 = vld [vmem:[%s4226_s7 + $0x9c] sm:$0xff]  }
  0x9a   : > { %3679 = vmatprep.mubr.msk.bf16.mxu1 %vm801_vm4, %v746_v39  ;;  %v1482_v46 = vpop.permute.xlu1 %1481  ;;  %v2194_v39 = vrot.slane %v2192_v16, 1 }
  0x9b   : > { %v1400_v51 = vpop.permute.xlu0 %1399  ;;  %v1460_v58 = vsel %vm630_vm0, %v1458_v36, %v1459_v37  ;;  %v2323_v37 = vrot.slane %v4682_v53, 1 }
  0x9c   : > { %v1512_v56 = vsel %vm711_vm2, %v4023_v54, %v1400_v51  ;;  %2355 = vrot.lane.b32.xlu1 %v2316_v38, %s4132_s8  ;;  %v2190_v38 = vshrl.u32 %v4682_v53, 16  ;;  %v1342_v51 = vshll.u32 %v4725_v30, 16 }
  0x9d   : > { %709 = vrot.lane.b32.xlu0 %v678_v47, %s4132_s8  ;;  %v1544_v59 = vsel %vm744_vm3, %v1512_v56, %v1480_v26  ;;  %v1330_v26 = vshll.u32 %v4694_v2, 16  ;;  %v4027_v47 = vld [vmem:[%s4226_s7 + $0x18] sm:$0xff]  }
  0x9e   : > { %3717 = vmatprep.mubr.msk.bf16.mxu0 %vm801_vm4, %v1544_v59  ;;  %v601_v3 = vpop.permute.xlu1 %600  ;;  %v2195_v59 = vor.u32 %v2194_v39, %v2190_v38  ;;  %v1344_v8 = vrot.slane %v1342_v51, 1  ;;  %v4799_v38 = vld [vmem:[%s4226_s7 + $0xb0] ss:$0 sps:$4 sm:$0x11]   ;;  %v2326_v51 = vrot.slane %v4754_v52, 1 }
  0x9f   : > { %v715_v11 = vsel %vm711_vm2, %v4024_v10, %v601_v3  ;;  %v1402_v12 = vpop.permute.xlu0 %1401  ;;  %v1332_v24 = vrot.slane %v1330_v26, 1  ;;  %v4028_v3 = vld [vmem:[%s4226_s7 + $0x24] sm:$0xff]   ;;  %v4029_v26 = vld [vmem:[%s4226_s7 + $0x30] sm:$0xff]  }
  0xa0   : > { %v1514_v4 = vsel %vm711_vm2, %v4025_v18, %v1402_v12  ;;  %2277 = vrot.lane.b32.xlu1 %v2176_v60, %s4133_s9  ;;  %v748_v14 = vsel %vm744_vm3, %v715_v11, %v4628_v61  ;;  %v4769_v10 = vld [vmem:[%s4226_s7 + $0xa4] ss:$0 sps:$4 sm:$0x11]   ;;  %v2204_v11 = vshll.u32 %v4754_v52, 16  ;;  %v1461_v18 = vrot.slane %v4694_v2, 1 }
  0xa1   : > { %1415 = vrot.lane.b32.xlu0 %v1314_v5, %s4133_s9  ;;  %3680 = vmatmul.mubr.msk.bf16.vlgmr.msra.gmra.mrb[0].mxu1 %vm801_vm4, %v748_v14  ;;  %v1546_v21 = vsel %vm744_vm3, %v1514_v4, %v1482_v46  ;;  %v4021_v46 = vld [vmem:[%s5221_s1 + $0x40] sm:$0xff]   ;;  %v1333_v60 = vor.u32 %v1332_v24, %v1328_v43  ;;  %v1462_v4 = vrot.slane %v4711_v19, 1  ;;  %v1345_v28 = vor.u32 %v1344_v8, %v1340_v7 }
  0xa2   : > { %3718 = vmatmul.mubr.msk.bf16.vlgmr.msra.gmra.mrb[0].mxu0 %vm801_vm4, %v1546_v21  ;;  %v1404_v61 = vpop.permute.xlu1 %1403  ;;  %3790 = vmatpush3.bf16.msra.mxu1 %v4026_v31  ;;  %v2202_v21 = vshrl.u32 %v4754_v52, 16  ;;  %v2209_v29 = vshll.u32 %v4769_v10, 16  ;;  %v4030_v31 = vld [vmem:[%s4226_s7 + $0x24] sm:$0xff]   ;;  %v1354_v24 = vshll.u32 %v4786_v23, 16 }
  0xa3   : > { %v603_v32 = vpop.permute.xlu0 %602  ;;  %3750 = vmatpush3.bf16.msra.mxu0 %v4664_v34  ;;  %3788 = vmatprep.subr.bf16.mxu1 %v4512_v35  ;;  %v1335_v34 = vshll.u32 %v4711_v19, 16  ;;  %v1516_v5 = vsel %vm711_vm2, %v4028_v3, %v1404_v61  ;;  %v2206_v19 = vrot.slane %v2204_v11, 1  ;;  %v1463_v39 = vsel %vm630_vm0, %v1461_v18, %v1462_v4  ;;  %v4031_v3 = vld [vmem:[%s4226_s7 + $0x30] sm:$0xff]  }
  0xa4   : > { %1495 = vrot.lane.b32.xlu1 %v1457_v22, %s4132_s8  ;;  %3751 = vmatprep.subr.bf16.mxu0 %v4020_v20  ;;  %v717_v48 = vsel %vm711_vm2, %v4027_v47, %v603_v32  ;;  %v4783_v22 = vld [vmem:[%s4226_s7 + $0xa8] sm:$0xff]  }
  0xa5   : > { %1417 = vrot.lane.b32.xlu0 %v1326_v17, %s4133_s9  ;;  %v1337_v62 = vrot.slane %v1335_v34, 1  ;;  %v2216_v43 = vshll.u32 %v4783_v22, 16  ;;  %v2207_v47 = vor.u32 %v2206_v19, %v2202_v21 }
  0xa6   : > { %v684_v49 = vpop.permute.xlu1 %683  ;;  %3791 = vmatpush3.bf16.msra.mxu1 %v4512_v35  ;;  %v2199_v35 = vrot.slane %v2197_v42, 1  ;;  %v2324_v42 = vrot.slane %v4702_v13, 1  ;;  %v1464_v13 = vrot.slane %v4725_v30, 1 }
  0xa7   : > { %v750_v54 = vsel %vm744_vm3, %v717_v48, %v684_v49  ;;  %v605_v56 = vpop.permute.xlu0 %604  ;;  %3752 = vmatpush3.bf16.msra.mxu0 %v4020_v20  ;;  %3789 = vmatprep.subr.bf16.mxu1 %v4522_v41  ;;  %v1338_v20 = vsel %vm405_vm1, %v1333_v60, %v1337_v62  ;;  %v2211_v48 = vrot.slane %v2209_v29, 1  ;;  %v4812_v49 = vld [vmem:[%s4226_s7 + $0xa8] sm:$0xff]   ;;  %v2218_v60 = vrot.slane %v2216_v43, 1  ;;  %v4846_v29 = vld [vmem:[%s4226_s7 + $0xbc] ss:$0 sps:$4 sm:$0x11]  }
  0xa8   : > { %2357 = vrot.lane.b32.xlu1 %v2319_v44, %s4132_s8  ;;  %3683 = vmatprep.mubr.msk.bf16.mxu1 %vm801_vm4, %v750_v54  ;;  %v2200_v14 = vsel %vm405_vm1, %v2195_v59, %v2199_v35  ;;  %v719_v32 = vsel %vm711_vm2, %v4030_v31, %v605_v56  ;;  %v4807_v44 = vld [vmem:[%s4226_s7 + $0xa4] ss:$0 sps:$4 sm:$0x11]   ;;  %v1465_v54 = vrot.slane %v4744_v45, 1  ;;  %v2327_v56 = vrot.slane %v4769_v10, 1  ;;  %v4833_v10 = vld [vmem:[%s4226_s7 + $0xb4] sm:$0xff]  }
  0xa9   : > { %2279 = vrot.lane.b32.xlu0 %v2188_v50, %s4133_s9  ;;  %3753 = vmatprep.subr.bf16.mxu0 %v4021_v46  ;;  %v1352_v59 = vshrl.u32 %v4786_v23, 16  ;;  %v2325_v35 = vsel %vm630_vm0, %v2323_v37, %v2324_v42  ;;  %v1356_v62 = vrot.slane %v1354_v24, 1  ;;  %v4826_v45 = vld [vmem:[%s4226_s7 + $0xb0] ss:$0 sps:$4 sm:$0x11]   ;;  %v2212_v7 = vsel %vm405_vm1, %v2207_v47, %v2211_v48  ;;  %v4855_v37 = vld [vmem:[%s4226_s7 + $0xc0] sm:$0xff]  }
  0xaa   : > { %v1484_v6 = vpop.permute.xlu1 %1483  ;;  %3792 = vmatpush3.bf16.msra.mxu1 %v4522_v41  ;;  %v1349_v41 = vrot.slane %v1347_v63, 1  ;;  %v1359_v63 = vshll.u32 %v4807_v44, 16  ;;  %v1366_v8 = vshll.u32 %v4812_v49, 16  ;;  %v1466_v18 = vsel %vm630_vm0, %v1464_v13, %v1465_v54  ;;  %v4034_v13 = vld [vmem:[%s4226_s7 + $0x3c] sm:$0xff]  }
  0xab   : > { %v1548_v12 = vsel %vm744_vm3, %v1516_v5, %v1484_v6  ;;  %v1406_v16 = vpop.permute.xlu0 %1405  ;;  %3754 = vmatpush3.bf16.msra.mxu0 %v4021_v46  ;;  %v1371_v21 = vshll.u32 %v4826_v45, 16  ;;  %v2228_v31 = vshll.u32 %v4833_v10, 16  ;;  %v2226_v24 = vshrl.u32 %v4833_v10, 16 }
  0xac   : > { %2359 = vrot.lane.b32.xlu1 %v2322_v57, %s4132_s8  ;;  %3721 = vmatprep.mubr.msk.bf16.mxu0 %vm801_vm4, %v1548_v12  ;;  %v1518_v61 = vsel %vm711_vm2, %v4029_v26, %v1406_v16  ;;  %v1350_v46 = vsel %vm405_vm1, %v1345_v28, %v1349_v41  ;;  %v2214_v57 = vshrl.u32 %v4783_v22, 16  ;;  %v2328_v16 = vsel %vm630_vm0, %v2326_v51, %v2327_v56  ;;  %v4032_v26 = vld [vmem:[%s4226_s7 + $0x3c] sm:$0xff]  }
  0xad   : > { %1497 = vrot.lane.b32.xlu0 %v1460_v58, %s4132_s8  ;;  %v2221_v58 = vshll.u32 %v4799_v38, 16  ;;  %v1361_v41 = vrot.slane %v1359_v63, 1  ;;  %v1364_v28 = vshrl.u32 %v4812_v49, 16  ;;  %v1368_v19 = vrot.slane %v1366_v8, 1 }
  0xae   : > { %v1486_v17 = vpop.permute.xlu1 %1485  ;;  %v1373_v43 = vrot.slane %v1371_v21, 1  ;;  %v2233_v51 = vshll.u32 %v4846_v29, 16  ;;  %v2330_v63 = vrot.slane %v4799_v38, 1  ;;  %v1470_v38 = vrot.slane %v4812_v49, 1 }
  0xaf   : > { %v1550_v33 = vsel %vm744_vm3, %v1518_v61, %v1486_v17  ;;  %v686_v1 = vpop.permute.xlu0 %685  ;;  %v2223_v4 = vrot.slane %v2221_v58, 1 }
  0xb0   : > { %v752_v36 = vsel %vm744_vm3, %v719_v32, %v686_v1  ;;  %2281 = vrot.lane.b32.xlu1 %v2200_v14, %s4133_s9  ;;  %3722 = vmatmul.mubr.msk.bf16.gmra.mrb[4].mxu0 %vm801_vm4, %v1550_v33  ;;  %v2219_v14 = vor.u32 %v2218_v60, %v2214_v57  ;;  %v1467_v1 = vrot.slane %v4786_v23, 1 }
  0xb1   : > { %1419 = vrot.lane.b32.xlu0 %v1338_v20, %s4133_s9  ;;  %3684 = vmatmul.mubr.msk.bf16.gmra.mrb[4].mxu1 %vm801_vm4, %v752_v36  ;;  %v1357_v20 = vor.u32 %v1356_v62, %v1352_v59  ;;  %v1468_v36 = vrot.slane %v4807_v44, 1  ;;  %v2230_v44 = vrot.slane %v2228_v31, 1  ;;  %v4874_v59 = vld [vmem:[%s4226_s7 + $0xc8] ss:$0 sps:$4 sm:$0x11]   ;;  %v2329_v62 = vrot.slane %v4783_v22, 1 }
  0xb2   : > { %v1408_v34 = vpop.permute.xlu1 %1407  ;;  %v2245_v21 = vshll.u32 %v4874_v59, 16 }
  0xb3   : > { %v607_v50 = vpop.permute.xlu0 %606  ;;  %v1520_v61 = vsel %vm711_vm2, %v4032_v26, %v1408_v34  ;;  %v1362_v42 = vsel %vm405_vm1, %v1357_v20, %v1361_v41  ;;  %v4862_v34 = vld [vmem:[%s4226_s7 + $0xb4] sm:$0xff]   ;;  %v1469_v60 = vsel %vm630_vm0, %v1467_v1, %v1468_v36  ;;  %v2231_v8 = vor.u32 %v2230_v44, %v2226_v24  ;;  %v4909_v1 = vld [vmem:[%s4226_s7 + $0xcc] sm:$0xff]  }
  0xb4   : > { %1499 = vrot.lane.b32.xlu1 %v1463_v39, %s4132_s8  ;;  %v721_v5 = vsel %vm711_vm2, %v4031_v3, %v607_v50  ;;  %v2224_v39 = vsel %vm405_vm1, %v2219_v14, %v2223_v4  ;;  %v1369_v50 = vor.u32 %v1368_v19, %v1364_v28  ;;  %v4883_v3 = vld [vmem:[%s4226_s7 + $0xbc] ss:$0 sps:$4 sm:$0x11]   ;;  %v2333_v4 = vrot.slane %v4846_v29, 1  ;;  %v4035_v29 = vld [vmem:[%s4226_s7 + $0x48] sm:$0xff]   ;;  %v4036_v44 = vld [vmem:[%s4226_s7 + $0x54] sm:$0xff]  }
  0xb5   : > { %1421 = vrot.lane.b32.xlu0 %v1350_v46, %s4133_s9  ;;  %v4033_v46 = vld [vmem:[%s4226_s7 + $0x48] sm:$0xff]   ;;  %v1471_v14 = vrot.slane %v4826_v45, 1  ;;  %v2238_v20 = vshrl.u32 %v4855_v37, 16  ;;  %v2331_v26 = vsel %vm630_vm0, %v2329_v62, %v2330_v63  ;;  %v1383_v28 = vshll.u32 %v4883_v3, 16 }
  0xb6   : > { %v688_v6 = vpop.permute.xlu1 %687  ;;  %v4902_v19 = vld [vmem:[%s4226_s7 + $0xc8] ss:$0 sps:$4 sm:$0x11]   ;;  %v1473_v62 = vrot.slane %v4862_v34, 1  ;;  %v1474_v63 = vrot.slane %v4883_v3, 1 }
  0xb7   : > { %v754_v11 = vsel %vm744_vm3, %v721_v5, %v688_v6  ;;  %v609_v12 = vpop.permute.xlu0 %608  ;;  %v1378_v5 = vshll.u32 %v4862_v34, 16 }
  0xb8   : > { %2361 = vrot.lane.b32.xlu1 %v2325_v35, %s4132_s8  ;;  %3687 = vmatprep.mubr.msk.bf16.mxu1 %vm801_vm4, %v754_v11  ;;  %v723_v54 = vsel %vm711_vm2, %v4034_v13, %v609_v12  ;;  %v2240_v35 = vshll.u32 %v4855_v37, 16  ;;  %v2235_v11 = vrot.slane %v2233_v51, 1  ;;  %v4888_v12 = vld [vmem:[%s4226_s7 + $0xc0] sm:$0xff]  }
  0xb9   : > { %2283 = vrot.lane.b32.xlu0 %v2212_v7, %s4133_s9  ;;  %v1374_v7 = vsel %vm405_vm1, %v1369_v50, %v1373_v43  ;;  %v1472_v43 = vsel %vm630_vm0, %v1470_v38, %v1471_v14  ;;  %v1395_v50 = vshll.u32 %v4902_v19, 16 }
  0xba   : > { %v1488_v17 = vpop.permute.xlu1 %1487  ;;  %v2242_v41 = vrot.slane %v2240_v35, 1 }
  0xbb   : > { %v1552_v32 = vsel %vm744_vm3, %v1520_v61, %v1488_v17  ;;  %v1410_v33 = vpop.permute.xlu0 %1409  ;;  %v1376_v61 = vshrl.u32 %v4862_v34, 16  ;;  %v1380_v17 = vrot.slane %v1378_v5, 1 }
  0xbc   : > { %2363 = vrot.lane.b32.xlu1 %v2328_v16, %s4132_s8  ;;  %3725 = vmatprep.mubr.msk.bf16.mxu0 %vm801_vm4, %v1552_v32  ;;  %v1522_v47 = vsel %vm711_vm2, %v4033_v46, %v1410_v33  ;;  %v2236_v32 = vsel %vm405_vm1, %v2231_v8, %v2235_v11  ;;  %v1390_v33 = vshll.u32 %v4888_v12, 16  ;;  %v2243_v24 = vor.u32 %v2242_v41, %v2238_v20  ;;  %v4037_v11 = vld [vmem:[%s4226_s7 + $0x60] sm:$0xff]   ;;  %v4038_v20 = vld [vmem:[%s4226_s7 + $0x54] sm:$0xff]  }
  0xbd   : > { %1501 = vrot.lane.b32.xlu0 %v1466_v18, %s4132_s8  ;;  %v2332_v18 = vrot.slane %v4833_v10, 1  ;;  %v2247_v46 = vrot.slane %v2245_v21, 1  ;;  %v2250_v8 = vshrl.u32 %v4909_v1, 16 }
  0xbe   : > { %v1490_v48 = vpop.permute.xlu1 %1489 }
  0xbf   : > { %v1554_v56 = vsel %vm744_vm3, %v1522_v47, %v1490_v48  ;;  %v690_v57 = vpop.permute.xlu0 %689  ;;  %v1381_v47 = vor.u32 %v1380_v17, %v1376_v61  ;;  %v1385_v48 = vrot.slane %v1383_v28, 1  ;;  %v2248_v5 = vsel %vm405_vm1, %v2243_v24, %v2247_v46 }
  0xc0   : > { %v756_v58 = vsel %vm744_vm3, %v723_v54, %v690_v57  ;;  %2285 = vrot.lane.b32.xlu1 %v2224_v39, %s4133_s9  ;;  %3726 = vmatmul.mubr.msk.bf16.gmra.mrb[8].mxu0 %vm801_vm4, %v1554_v56  ;;  %v1388_v54 = vshrl.u32 %v4888_v12, 16  ;;  %v1392_v56 = vrot.slane %v1390_v33, 1  ;;  %v4019_v57 = vld [vmem:[%s4226_s7 + $0xd4] ss:$0 sps:$4 sm:$0x11]   ;;  %v1475_v61 = vsel %vm630_vm0, %v1473_v62, %v1474_v63  ;;  %v4042_v63 = vld [vmem:[%s4226_s7 + $0x6c] sm:$0xff]  }
  0xc1   : > { %1423 = vrot.lane.b32.xlu0 %v1362_v42, %s4133_s9  ;;  %3688 = vmatmul.mubr.msk.bf16.gmra.mrb[8].mxu1 %vm801_vm4, %v756_v58  ;;  %v2334_v42 = vsel %vm630_vm0, %v2332_v18, %v2333_v4  ;;  %v2252_v58 = vshll.u32 %v4909_v1, 16  ;;  %v2257_v14 = vshll.u32 %v4019_v57, 16  ;;  %v2335_v17 = vrot.slane %v4855_v37, 1 }
  0xc2   : > { %v1412_v6 = vpop.permute.xlu1 %1411  ;;  %v1393_v4 = vor.u32 %v1392_v56, %v1388_v54  ;;  %v2336_v28 = vrot.slane %v4874_v59, 1 }
  0xc3   : > { %v611_v16 = vpop.permute.xlu0 %610  ;;  %v1524_v51 = vsel %vm711_vm2, %v4036_v44, %v1412_v6  ;;  %v1386_v6 = vsel %vm405_vm1, %v1381_v47, %v1385_v48  ;;  %v2254_v38 = vrot.slane %v2252_v58, 1  ;;  %v1476_v47 = vrot.slane %v4888_v12, 1 }
  0xc4   : > { %1503 = vrot.lane.b32.xlu1 %v1469_v60, %s4132_s8  ;;  %v725_v31 = vsel %vm711_vm2, %v4035_v29, %v611_v16  ;;  %v1477_v48 = vrot.slane %v4902_v19, 1 }
  0xc5   : > { %1425 = vrot.lane.b32.xlu0 %v1374_v7, %s4133_s9  ;;  %v1397_v7 = vrot.slane %v1395_v50, 1 }
  0xc6   : > { %v692_v45 = vpop.permute.xlu1 %691 }
  0xc7   : > { %v758_v36 = vsel %vm744_vm3, %v725_v31, %v692_v45  ;;  %v613_v39 = vpop.permute.xlu0 %612  ;;  %v1398_v31 = vsel %vm405_vm1, %v1393_v4, %v1397_v7  ;;  %v2255_v45 = vor.u32 %v2254_v38, %v2250_v8 }
  0xc8   : > { %2365 = vrot.lane.b32.xlu1 %v2331_v26, %s4132_s8  ;;  %3691 = vmatprep.mubr.msk.bf16.mxu1 %vm801_vm4, %v758_v36  ;;  %v727_v41 = vsel %vm711_vm2, %v4038_v20, %v613_v39  ;;  %v2337_v36 = vsel %vm630_vm0, %v2335_v17, %v2336_v28  ;;  %v2338_v39 = vrot.slane %v4909_v1, 1  ;;  %v4045_v17 = vld [vmem:[%s4226_s7 + $0x3c] sm:$0xff]  }
  0xc9   : > { %2287 = vrot.lane.b32.xlu0 %v2236_v32, %s4133_s9  ;;  %v2259_v32 = vrot.slane %v2257_v14, 1 }
  0xca   : > { %v1492_v13 = vpop.permute.xlu1 %1491 }
  0xcb   : > { %v1556_v35 = vsel %vm744_vm3, %v1524_v51, %v1492_v13  ;;  %v1414_v60 = vpop.permute.xlu0 %1413  ;;  %v2260_v46 = vsel %vm405_vm1, %v2255_v45, %v2259_v32  ;;  %v4040_v13 = vld [vmem:[%s4226_s7 + $0x18] sm:$0xff]  }
  0xcc   : > { %2367 = vrot.lane.b32.xlu1 %v2334_v42, %s4132_s8  ;;  %3729 = vmatprep.mubr.msk.bf16.mxu0 %vm801_vm4, %v1556_v35  ;;  %v1526_v16 = vsel %vm711_vm2, %v4037_v11, %v1414_v60  ;;  %v2339_v42 = vrot.slane %v4019_v57, 1  ;;  %v1478_v57 = vsel %vm630_vm0, %v1476_v47, %v1477_v48  ;;  %v4041_v35 = vld [vmem:[%s4226_s7 + $0x24] sm:$0xff]  }
  0xcd   : > { %1505 = vrot.lane.b32.xlu0 %v1472_v43, %s4132_s8  ;;  %v4039_v43 = vld [vmem:[%s4226_s7 + $0x60] sm:$0xff]   ;;  %v4048_v48 = vld [vmem:[%s4226_s7 + $0x48] sm:$0xff]  }
  0xce   : > { %v1494_v18 = vpop.permute.xlu1 %1493  ;;  %v2340_v51 = vsel %vm630_vm0, %v2338_v39, %v2339_v42 }
  0xcf   : > { %v1558_v3 = vsel %vm744_vm3, %v1526_v16, %v1494_v18  ;;  %v694_v21 = vpop.permute.xlu0 %693  ;;  %v4043_v18 = vld [vmem:[%s4226_s7 + $0x78] sm:$0xff]  }
  0xd0   : > { %v760_v26 = vsel %vm744_vm3, %v727_v41, %v694_v21  ;;  %2289 = vrot.lane.b32.xlu1 %v2248_v5, %s4133_s9  ;;  %3730 = vmatmul.mubr.msk.bf16.gmra.mrb[12].mxu0 %vm801_vm4, %v1558_v3  ;;  %v4044_v41 = vld [vmem:[%s4226_s7 + $0x30] sm:$0xff]  }
  0xd1   : > { %1427 = vrot.lane.b32.xlu0 %v1386_v6, %s4133_s9  ;;  %3692 = vmatmul.mubr.msk.bf16.gmra.mrb[12].mxu1 %vm801_vm4, %v760_v26 }
  0xd2   : > { %v2262_v29 = vpop.permute.xlu1 %2261 }
  0xd3   : > { %v615_v33 = vpop.permute.xlu0 %614  ;;  %v2374_v54 = vsel %vm711_vm2, %v4040_v13, %v2262_v29 }
  0xd4   : > { %1507 = vrot.lane.b32.xlu1 %v1475_v61, %s4132_s8  ;;  %v729_v24 = vsel %vm711_vm2, %v4039_v43, %v615_v33  ;;  %v4047_v43 = vld [vmem:[%s4226_s7 + $0x90] sm:$0xff]  }
  0xd5   : > { %1429 = vrot.lane.b32.xlu0 %v1398_v31, %s4133_s9  ;;  %v4046_v31 = vld [vmem:[%s4226_s7 + $0x84] sm:$0xff]  }
  0xd6   : > { %v696_v59 = vpop.permute.xlu1 %695 }
  0xd7   : > { %v762_v50 = vsel %vm744_vm3, %v729_v24, %v696_v59  ;;  %v617_v44 = vpop.permute.xlu0 %616 }
  0xd8   : > { %2369 = vrot.lane.b32.xlu1 %v2337_v36, %s4132_s8  ;;  %3695 = vmatprep.mubr.msk.bf16.mxu1 %vm801_vm4, %v762_v50  ;;  %v731_v5 = vsel %vm711_vm2, %v4042_v63, %v617_v44 }
  0xd9   : > { %2291 = vrot.lane.b32.xlu0 %v2260_v46, %s4133_s9  ;;  %s208_s9 = sand.u32 1, %s4114_s13  }
  0xda   : > { %v2342_v56 = vpop.permute.xlu1 %2341  ;;  %s3187_s18 = sshll.u32 %s208_s9, 7  ;;  %s5174_s15 = scalar_lea.sflag [#allocation4], %s208_s9 }
  0xdb   : > { %v2406_v19 = vsel %vm744_vm3, %v2374_v54, %v2342_v56  ;;  %v2264_v58 = vpop.permute.xlu0 %2263  ;;  %v4049_v54 = vld [vmem:[%s4226_s7 + $0x54] sm:$0xff]   ;;  %s5111_s19 = scalar_lea.vmem [#allocation3], %s3187_s18 }
  0xdc   : > { %2371 = vrot.lane.b32.xlu1 %v2340_v51, %s4132_s8  ;;  %3755 = vmatprep.mubr.msk.bf16.mxu0 %vm801_vm4, %v2406_v19  ;;  %v2376_v60 = vsel %vm711_vm2, %v4041_v35, %v2264_v58  ;;  %v4050_v19 = vld [vmem:[%s4226_s7 + $0x9c] sm:$0xff]   ;;  %s3064_s23 = sshll.u32 %s5111_s19, 4  ;;  %s5168_s23 = int_to_ptr.vmem [resolvable:$true] %s3064_s23 }
  0xdd   : > { %1509 = vrot.lane.b32.xlu0 %v1478_v57, %s4132_s8  ;;  %s4052_s29 = scalar_lea.vmem %s5168_s23, 2048  ;;  %p4059_p1 = scmp.lt.s32.totalorder %s5168_s23, %s4057_s4 }
  0xde   : > { %v2344_v62 = vpop.permute.xlu1 %2343  ;;  %p4053_p12 = scmp.ne.s32.totalorder %s5168_s23, %s4052_s29  ;;  %p4060_p2 = scmp.lt.s32.totalorder %s4058_s5, %s4052_s29 }
  0xdf   : > { %v2408_v6 = vsel %vm744_vm3, %v2376_v60, %v2344_v62  ;;  %v698_v7 = vpop.permute.xlu0 %697 }
  0xe0   : > { %v764_v8 = vsel %vm744_vm3, %v731_v5, %v698_v7  ;;  %3756 = vmatmul.mubr.msk.bf16.vlgmr.msra.gmra.mrb[0].mxu0 %vm801_vm4, %v2408_v6  ;;  %p4054_p13 = pnand %p4053_p12, %p4197_p4  ;;  %p4061_p3 = por %p4060_p2, %p4059_p1 }
  0xe1   : > { %3696 = vmatmul.mubr.msk.bf16.gmra.mrb[16].mxu1 %vm801_vm4, %v764_v8 }
  0xe2   : > { %v2266_v11 = vpop.permute.xlu1 %2265  ;;  %p4055_p0 = pneg %p4054_p13 }
  0xe3   : > { %v619_v16 = vpop.permute.xlu0 %618  ;;  %v2378_v3 = vsel %vm711_vm2, %v4044_v41, %v2266_v11 }
  0xe4   : > { %v733_v4 = vsel %vm711_vm2, %v4043_v18, %v619_v16  ;;  %v4051_v16 = vld [vmem:[%s4226_s7 + $0x60] sm:$0xff]   ;;  %p4062_p5 = pnand %p4061_p3, %p4055_p0 }
  0xe6   : > { %v700_v38 = vpop.permute.xlu1 %699 }
  0xe7   : > { %v766_v14 = vsel %vm744_vm3, %v733_v4, %v700_v38  ;;  %v621_v20 = vpop.permute.xlu0 %620 }
  0xe8   : > { %3699 = vmatprep.mubr.msk.bf16.mxu1 %vm801_vm4, %v766_v14  ;;  %v735_v45 = vsel %vm711_vm2, %v4046_v31, %v621_v20 }
  0xea   : > { %v2346_v21 = vpop.permute.xlu1 %2345 }
  0xeb   : > { %v2410_v26 = vsel %vm744_vm3, %v2378_v3, %v2346_v21  ;;  %v2268_v61 = vpop.permute.xlu0 %2267 }
  0xec   : > { %3759 = vmatprep.mubr.msk.bf16.mxu0 %vm801_vm4, %v2410_v26  ;;  %v2380_v28 = vsel %vm711_vm2, %v4045_v17, %v2268_v61 }
  0xee   : > { %v2348_v29 = vpop.permute.xlu1 %2347 }
  0xef   : > { %v2412_v32 = vsel %vm744_vm3, %v2380_v28, %v2348_v29  ;;  %v702_v33 = vpop.permute.xlu0 %701 }
  0xf0   : > { %v768_v36 = vsel %vm744_vm3, %v735_v45, %v702_v33  ;;  %3760 = vmatmul.mubr.msk.bf16.gmra.mrb[4].mxu0 %vm801_vm4, %v2412_v32 }
  0xf1   : > { %3700 = vmatmul.mubr.msk.bf16.gmra.mrb[20].mxu1 %vm801_vm4, %v768_v36 }
  0xf2   : > { %v2270_v39 = vpop.permute.xlu1 %2269 }
  0xf3   : > { %v623_v42 = vpop.permute.xlu0 %622  ;;  %v2382_v50 = vsel %vm711_vm2, %v4048_v48, %v2270_v39 }
  0xf4   : > { %v737_v24 = vsel %vm711_vm2, %v4047_v43, %v623_v42 }
  0xf6   : > { %v704_v59 = vpop.permute.xlu1 %703 }
  0xf7   : > { %v770_v46 = vsel %vm744_vm3, %v737_v24, %v704_v59  ;;  %v625_v47 = vpop.permute.xlu0 %624 }
  0xf8   : > { %3703 = vmatprep.mubr.msk.bf16.mxu1 %vm801_vm4, %v770_v46  ;;  %v739_v58 = vsel %vm711_vm2, %v4050_v19, %v625_v47 }
  0xfa   : > { %v2350_v44 = vpop.permute.xlu1 %2349 }
  0xfb   : > { %v2414_v51 = vsel %vm744_vm3, %v2382_v50, %v2350_v44  ;;  %v2272_v13 = vpop.permute.xlu0 %2271 }
  0xfc   : > { %3763 = vmatprep.mubr.msk.bf16.mxu0 %vm801_vm4, %v2414_v51  ;;  %v2384_v56 = vsel %vm711_vm2, %v4049_v54, %v2272_v13 }
  0xfe   : > { %v2352_v57 = vpop.permute.xlu1 %2351 }
  0xff   : > { %v2416_v35 = vsel %vm744_vm3, %v2384_v56, %v2352_v57  ;;  %v706_v60 = vpop.permute.xlu0 %705 }
 0x100   : > { %v772_v62 = vsel %vm744_vm3, %v739_v58, %v706_v60  ;;  %3764 = vmatmul.mubr.msk.bf16.gmra.mrb[8].mxu0 %vm801_vm4, %v2416_v35 }
 0x101   : > { %3704 = vmatmul.mubr.msk.bf16.gmra.mrb[24].mxu1 %vm801_vm4, %v772_v62 }
 0x102   : > { %v2274_v63 = vpop.permute.xlu1 %2273 }
 0x103   : > { %v627_v5 = vpop.permute.xlu0 %626  ;;  %v2386_v18 = vsel %vm711_vm2, %v4051_v16, %v2274_v63 }
 0x104   : > { %v741_v6 = vsel %vm711_vm2, %v4564_v9, %v627_v5 }
 0x106   : > { %v708_v7 = vpop.permute.xlu1 %707 }
 0x107   : > { %v774_v8 = vsel %vm744_vm3, %v741_v6, %v708_v7  ;;  %v629_v11 = vpop.permute.xlu0 %628 }
 0x108   : > { %3707 = vmatprep.mubr.msk.bf16.mxu1 %vm801_vm4, %v774_v8  ;;  %v743_v9 = vsel %vm711_vm2, %v4581_v27, %v629_v11 }
 0x10a   : > { %v2354_v4 = vpop.permute.xlu1 %2353 }
 0x10b   : > { %v2418_v38 = vsel %vm744_vm3, %v2386_v18, %v2354_v4  ;;  %v2276_v14 = vpop.permute.xlu0 %2275 }
 0x10c   : > { %3767 = vmatprep.mubr.msk.bf16.mxu0 %vm801_vm4, %v2418_v38  ;;  %v2388_v20 = vsel %vm711_vm2, %v4597_v40, %v2276_v14 }
 0x10e   : > { %v2356_v41 = vpop.permute.xlu1 %2355 }
 0x10f   : > { %v2420_v3 = vsel %vm744_vm3, %v2388_v20, %v2356_v41  ;;  %v710_v21 = vpop.permute.xlu0 %709 }
 0x110   : > { %v776_v26 = vsel %vm744_vm3, %v743_v9, %v710_v21  ;;  %3768 = vmatmul.mubr.msk.bf16.gmra.mrb[12].mxu0 %vm801_vm4, %v2420_v3 }
 0x111   : > { %3708 = vmatmul.mubr.msk.bf16.gmra.mrb[28].mxu1 %vm801_vm4, %v776_v26 }
 0x112   : > { %v2278_v61 = vpop.permute.xlu1 %2277 }
 0x113   : > { %v1416_v17 = vpop.permute.xlu0 %1415  ;;  %v2390_v27 = vsel %vm711_vm2, %v4612_v55, %v2278_v61 }
 0x114   : > { %v1528_v28 = vsel %vm711_vm2, %v4623_v0, %v1416_v17 }
 0x116   : > { %v1496_v29 = vpop.permute.xlu1 %1495 }
 0x117   : > { %v1560_v40 = vsel %vm744_vm3, %v1528_v28, %v1496_v29  ;;  %v1418_v31 = vpop.permute.xlu0 %1417 }
 0x118   : > { %3733 = vmatprep.mubr.msk.bf16.mxu1 %vm801_vm4, %v1560_v40  ;;  %v1530_v0 = vsel %vm711_vm2, %v4639_v15, %v1418_v31 }
 0x11a   : > { %v2358_v45 = vpop.permute.xlu1 %2357 }
 0x11b   : > { %v2422_v32 = vsel %vm744_vm3, %v2390_v27, %v2358_v45  ;;  %v2280_v33 = vpop.permute.xlu0 %2279 }
 0x11c   : > { %3771 = vmatprep.mubr.msk.bf16.mxu0 %vm801_vm4, %v2422_v32  ;;  %v2392_v36 = vsel %vm711_vm2, %v4658_v25, %v2280_v33 }
 0x11e   : > { %v2360_v39 = vpop.permute.xlu1 %2359 }
 0x11f   : > { %v2424_v42 = vsel %vm744_vm3, %v2392_v36, %v2360_v39  ;;  %v1498_v43 = vpop.permute.xlu0 %1497 }
 0x120   : > { %v1562_v24 = vsel %vm744_vm3, %v1530_v0, %v1498_v43  ;;  %3772 = vmatmul.mubr.msk.bf16.gmra.mrb[16].mxu0 %vm801_vm4, %v2424_v42 }
 0x121   : > { %3734 = vmatmul.mubr.msk.bf16.vlgmr.msra.gmra.mrb[16].mxu1 %vm801_vm4, %v1562_v24 }
 0x122   : > { %v2282_v55 = vpop.permute.xlu1 %2281 }
 0x123   : > { %v1420_v59 = vpop.permute.xlu0 %1419  ;;  %v2394_v15 = vsel %vm711_vm2, %v4682_v53, %v2282_v55 }
 0x124   : > { %v1532_v46 = vsel %vm711_vm2, %v4694_v2, %v1420_v59  ;;  %v5102_v59 = vld [vmem:[%s5222_s2] ss:$0 sm:$0xff] }
 0x126   : > { %v1500_v47 = vpop.permute.xlu1 %1499 }
 0x127   : > { %v1564_v25 = vsel %vm744_vm3, %v1532_v46, %v1500_v47  ;;  %v1422_v48 = vpop.permute.xlu0 %1421 }
 0x128   : > { %3737 = vmatprep.mubr.msk.bf16.mxu1 %vm801_vm4, %v1564_v25  ;;  %v1534_v2 = vsel %vm711_vm2, %v4725_v30, %v1422_v48 }
 0x12a   : > { %v2362_v50 = vpop.permute.xlu1 %2361 }
 0x12b   : > { %v2426_v44 = vsel %vm744_vm3, %v2394_v15, %v2362_v50  ;;  %v2284_v51 = vpop.permute.xlu0 %2283 }
 0x12c   : > { %3775 = vmatprep.mubr.msk.bf16.mxu0 %vm801_vm4, %v2426_v44  ;;  %v2396_v13 = vsel %vm711_vm2, %v4754_v52, %v2284_v51 }
 0x12e   : > { %v2364_v54 = vpop.permute.xlu1 %2363 }
 0x12f   : > { %v2428_v56 = vsel %vm744_vm3, %v2396_v13, %v2364_v54  ;;  %v1502_v57 = vpop.permute.xlu0 %1501 }
 0x130   : > { %v1566_v19 = vsel %vm744_vm3, %v1534_v2, %v1502_v57  ;;  %3776 = vmatmul.mubr.msk.bf16.gmra.mrb[20].mxu0 %vm801_vm4, %v2428_v56 }
 0x131   : > { %3738 = vmatmul.mubr.msk.bf16.gmra.mrb[20].mxu1 %vm801_vm4, %v1566_v19 }
 0x132   : > { %v2286_v53 = vpop.permute.xlu1 %2285 }
 0x133   : > { %v1424_v58 = vpop.permute.xlu0 %1423  ;;  %v2398_v30 = vsel %vm711_vm2, %v4783_v22, %v2286_v53 }
 0x134   : > { %v1536_v35 = vsel %vm711_vm2, %v4786_v23, %v1424_v58 }
 0x136   : > { %v1504_v60 = vpop.permute.xlu1 %1503 }
 0x137   : > { %v1568_v52 = vsel %vm744_vm3, %v1536_v35, %v1504_v60  ;;  %v1426_v62 = vpop.permute.xlu0 %1425 }
 0x138   : > { %3741 = vmatprep.mubr.msk.bf16.mxu1 %vm801_vm4, %v1568_v52  ;;  %v1538_v23 = vsel %vm711_vm2, %v4812_v49, %v1426_v62 }
 0x13a   : > { %v2366_v63 = vpop.permute.xlu1 %2365 }
 0x13b   : > { %v2430_v5 = vsel %vm744_vm3, %v2398_v30, %v2366_v63  ;;  %v2288_v6 = vpop.permute.xlu0 %2287 }
 0x13c   : > { %3779 = vmatprep.mubr.msk.bf16.mxu0 %vm801_vm4, %v2430_v5  ;;  %v2400_v7 = vsel %vm711_vm2, %v4833_v10, %v2288_v6 }
 0x13e   : > { %v2368_v8 = vpop.permute.xlu1 %2367 }
 0x13f   : > { %v2432_v11 = vsel %vm744_vm3, %v2400_v7, %v2368_v8  ;;  %v1506_v16 = vpop.permute.xlu0 %1505 }
 0x140   : > { %v1570_v18 = vsel %vm744_vm3, %v1538_v23, %v1506_v16  ;;  %3780 = vmatmul.mubr.msk.bf16.gmra.mrb[24].mxu0 %vm801_vm4, %v2432_v11 }
 0x141   : > { %3742 = vmatmul.mubr.msk.bf16.gmra.mrb[24].mxu1 %vm801_vm4, %v1570_v18 }
 0x142   : > { %v2290_v22 = vpop.permute.xlu1 %2289 }
 0x143   : > { %v1428_v4 = vpop.permute.xlu0 %1427  ;;  %v2402_v49 = vsel %vm711_vm2, %v4855_v37, %v2290_v22 }
 0x144   : > { %v1540_v38 = vsel %vm711_vm2, %v4862_v34, %v1428_v4 }
 0x146   : > { %v1508_v14 = vpop.permute.xlu1 %1507 }
 0x147   : > { %v1572_v10 = vsel %vm744_vm3, %v1540_v38, %v1508_v14  ;;  %v1430_v20 = vpop.permute.xlu0 %1429 }
 0x148   : > { %3745 = vmatprep.mubr.msk.bf16.mxu1 %vm801_vm4, %v1572_v10  ;;  %v1542_v34 = vsel %vm711_vm2, %v4888_v12, %v1430_v20 }
 0x14a   : > { %v2370_v41 = vpop.permute.xlu1 %2369 }
 0x14b   : > { %v2434_v9 = vsel %vm744_vm3, %v2402_v49, %v2370_v41  ;;  %v2292_v3 = vpop.permute.xlu0 %2291 }
 0x14c   : > { %3783 = vmatprep.mubr.msk.bf16.mxu0 %vm801_vm4, %v2434_v9  ;;  %v2404_v21 = vsel %vm711_vm2, %v4909_v1, %v2292_v3 }
 0x14e   : > { %v2372_v26 = vpop.permute.xlu1 %2371 }
 0x14f   : > { %v2436_v61 = vsel %vm744_vm3, %v2404_v21, %v2372_v26  ;;  %v1510_v17 = vpop.permute.xlu0 %1509 }
 0x150   : > { %v1574_v28 = vsel %vm744_vm3, %v1542_v34, %v1510_v17  ;;  %3784 = vmatmul.mubr.msk.bf16.gmra.mrb[28].mxu0 %vm801_vm4, %v2436_v61 }
 0x151   : > { %3746 = vmatmul.mubr.msk.bf16.gmra.mrb[28].mxu1 %vm801_vm4, %v1574_v28 }
 0x174   : > { %v3681_v37 = vpop.f32.mrb[0].mxu1 }
 0x175   : > { %v868_v29 = vpop.f32.mrb[1].mxu1 }
 0x176   : > { %v3682_v40 = vpop.f32.mrb[2].mxu1 }
 0x177   : > { %v871_v31 = vpop.f32.mrb[3].mxu1 }
 0x184   : > { %v3685_v27 = vpop.f32.mrb[4].mxu1 }
 0x185   : > { %v884_v45 = vpop.f32.mrb[5].mxu1 }
 0x186   : > { %v3686_v1 = vpop.f32.mrb[6].mxu1 }
 0x187   : > { %v887_v32 = vpop.f32.mrb[7].mxu1 }
 0x194   : > { %v3689_v33 = vpop.f32.mrb[8].mxu1 }
 0x195   : > { %v900_v36 = vpop.f32.mrb[9].mxu1 }
 0x196   : > { %v5087_v12 = vpop.f32.mrb[10].mxu1 }
 0x197   : > { %v5089_v39 = vpop.f32.mrb[11].mxu1 }
 0x1a4   : > { %v5091_v0 = vpop.f32.mrb[12].mxu1 }
 0x1a5   : > { %v5093_v42 = vpop.f32.mrb[13].mxu1 }
 0x1a6   : > { %v5095_v43 = vpop.f32.mrb[14].mxu1 }
 0x1a7   : > { %v5097_v24 = vpop.f32.mrb[15].mxu1 }
 0x1b3   : > { %v3757_v55 = vpop.f32.mrb[0].mxu0 }
 0x1b4   : > { %v3793_v46 = vadd.f32 %v3757_v55, %v3681_v37  ;;  %v2528_v47 = vpop.f32.mrb[1].mxu0 }
 0x1b5   : > { %v3794_v25 = vadd.f32 %v2528_v47, %v868_v29  ;;  %v3758_v48 = vpop.f32.mrb[2].mxu0 }
 0x1b6   : > { %v2792_v15 = vadd.f32 %v3793_v46, %v5102_v59  ;;  %v3795_v50 = vadd.f32 %v3758_v48, %v3682_v40  ;;  %v2531_v44 = vpop.f32.mrb[3].mxu0 }
 0x1b7   : > { %v2790_v51 = vadd.f32 %v3794_v25, %v5102_v59  ;;  %v3796_v13 = vadd.f32 %v2531_v44, %v871_v31 }
 0x1b8   : > { %v2824_v54 = vmax.f32 %v2792_v15, 0.0  ;;  %v2793_v2 = vadd.f32 %v3795_v50, %v5102_v59 }
 0x1b9   : > { %v2822_v56 = vmax.f32 %v2790_v51, 0.0  ;;  %v2791_v57 = vadd.f32 %v3796_v13, %v5102_v59 }
 0x1ba   : > { %v2825_v19 = vmax.f32 %v2793_v2, 0.0  ;;  %v2856_v58 = vmin.f32 %v2824_v54, 6.0 }
 0x1bb   : > { %v2823_v53 = vmax.f32 %v2791_v57, 0.0  ;;  %v2854_v60 = vmin.f32 %v2822_v56, 6.0 }
 0x1bc   : > { %v2857_v35 = vmin.f32 %v2825_v19, 6.0 }
 0x1bd   : > { %v2855_v52 = vmin.f32 %v2823_v53, 6.0 }
 0x1be   : > { %v3529_v62 = vpack.c.bf16 %v2857_v35, %v2856_v58 }
 0x1bf   : > { %v3524_v30 = vpack.c.bf16 %v2855_v52, %v2854_v60 }
 0x1c0   : > { %3601 = vst [vmem:[%s5111_s19 + $0x8] sm:$0xff] %v3529_v62  }
 0x1c1   : > { %3525 = vst [vmem:[%s5111_s19] sm:$0xff] %v3524_v30  }
 0x1c3   : > { %v3761_v63 = vpop.f32.mrb[4].mxu0 }
 0x1c4   : > { %v3797_v5 = vadd.f32 %v3761_v63, %v3685_v27  ;;  %v2544_v6 = vpop.f32.mrb[5].mxu0 }
 0x1c5   : > { %v3798_v7 = vadd.f32 %v2544_v6, %v884_v45  ;;  %v3762_v8 = vpop.f32.mrb[6].mxu0 }
 0x1c6   : > { %v2796_v23 = vadd.f32 %v3797_v5, %v5102_v59  ;;  %v3799_v11 = vadd.f32 %v3762_v8, %v3686_v1  ;;  %v2547_v16 = vpop.f32.mrb[7].mxu0 }
 0x1c7   : > { %v2794_v18 = vadd.f32 %v3798_v7, %v5102_v59  ;;  %v3800_v22 = vadd.f32 %v2547_v16, %v887_v32 }
 0x1c8   : > { %v2828_v4 = vmax.f32 %v2796_v23, 0.0  ;;  %v2797_v38 = vadd.f32 %v3799_v11, %v5102_v59 }
 0x1c9   : > { %v2826_v14 = vmax.f32 %v2794_v18, 0.0  ;;  %v2795_v10 = vadd.f32 %v3800_v22, %v5102_v59 }
 0x1ca   : > { %v2829_v20 = vmax.f32 %v2797_v38, 0.0  ;;  %v2860_v41 = vmin.f32 %v2828_v4, 6.0 }
 0x1cb   : > { %v2827_v49 = vmax.f32 %v2795_v10, 0.0  ;;  %v2858_v3 = vmin.f32 %v2826_v14, 6.0 }
 0x1cc   : > { %v2861_v9 = vmin.f32 %v2829_v20, 6.0 }
 0x1cd   : > { %v2859_v21 = vmin.f32 %v2827_v49, 6.0 }
 0x1ce   : > { %v3539_v26 = vpack.c.bf16 %v2861_v9, %v2860_v41 }
 0x1cf   : > { %v3534_v34 = vpack.c.bf16 %v2859_v21, %v2858_v3 }
 0x1d0   : > { %3603 = vst [vmem:[%s5111_s19 + $0x18] sm:$0xff] %v3539_v26  }
 0x1d1   : > { %3602 = vst [vmem:[%s5111_s19 + $0x10] sm:$0xff] %v3534_v34  }
 0x1d3   : > { %v3765_v61 = vpop.f32.mrb[8].mxu0 }
 0x1d4   : > { %v3801_v17 = vadd.f32 %v3765_v61, %v3689_v33  ;;  %v2560_v28 = vpop.f32.mrb[9].mxu0 }
 0x1d5   : > { %v3802_v37 = vadd.f32 %v2560_v28, %v900_v36  ;;  %v3766_v29 = vpop.f32.mrb[10].mxu0 }
 0x1d6   : > { %v2800_v40 = vadd.f32 %v3801_v17, %v5102_v59  ;;  %v3803_v31 = vadd.f32 %v3766_v29, %v5087_v12  ;;  %v2563_v27 = vpop.f32.mrb[11].mxu0 }
 0x1d7   : > { %v2798_v45 = vadd.f32 %v3802_v37, %v5102_v59  ;;  %v3804_v1 = vadd.f32 %v2563_v27, %v5089_v39 }
 0x1d8   : > { %v2832_v32 = vmax.f32 %v2800_v40, 0.0  ;;  %v2801_v55 = vadd.f32 %v3803_v31, %v5102_v59 }
 0x1d9   : > { %v2830_v46 = vmax.f32 %v2798_v45, 0.0  ;;  %v2799_v33 = vadd.f32 %v3804_v1, %v5102_v59 }
 0x1da   : > { %v2833_v47 = vmax.f32 %v2801_v55, 0.0  ;;  %v2864_v25 = vmin.f32 %v2832_v32, 6.0 }
 0x1db   : > { %v2831_v36 = vmax.f32 %v2799_v33, 0.0  ;;  %v2862_v15 = vmin.f32 %v2830_v46, 6.0 }
 0x1dc   : > { %v2865_v48 = vmin.f32 %v2833_v47, 6.0 }
 0x1dd   : > { %v2863_v50 = vmin.f32 %v2831_v36, 6.0 }
 0x1de   : > { %v3549_v12 = vpack.c.bf16 %v2865_v48, %v2864_v25 }
 0x1df   : > { %v3544_v44 = vpack.c.bf16 %v2863_v50, %v2862_v15 }
 0x1e0   : > { %3605 = vst [vmem:[%s5111_s19 + $0x28] sm:$0xff] %v3549_v12  }
 0x1e1   : > { %3604 = vst [vmem:[%s5111_s19 + $0x20] sm:$0xff] %v3544_v44  }
 0x1e3   : > { %v3769_v51 = vpop.f32.mrb[12].mxu0 }
 0x1e4   : > { %v3805_v13 = vadd.f32 %v3769_v51, %v5091_v0  ;;  %v2576_v39 = vpop.f32.mrb[13].mxu0 }
 0x1e5   : > { %v3806_v54 = vadd.f32 %v2576_v39, %v5093_v42  ;;  %v3770_v2 = vpop.f32.mrb[14].mxu0 }
 0x1e6   : > { %v2804_v56 = vadd.f32 %v3805_v13, %v5102_v59  ;;  %v3807_v57 = vadd.f32 %v3770_v2, %v5095_v43  ;;  %v2579_v19 = vpop.f32.mrb[15].mxu0 }
 0x1e7   : > { %v2802_v53 = vadd.f32 %v3806_v54, %v5102_v59  ;;  %v3808_v58 = vadd.f32 %v2579_v19, %v5097_v24 }
 0x1e8   : > { %v2836_v35 = vmax.f32 %v2804_v56, 0.0  ;;  %v2805_v60 = vadd.f32 %v3807_v57, %v5102_v59 }
 0x1e9   : > { %v2834_v52 = vmax.f32 %v2802_v53, 0.0  ;;  %v2803_v0 = vadd.f32 %v3808_v58, %v5102_v59 }
 0x1ea   : > { %v2837_v62 = vmax.f32 %v2805_v60, 0.0  ;;  %v2868_v30 = vmin.f32 %v2836_v35, 6.0 }
 0x1eb   : > { %v2835_v42 = vmax.f32 %v2803_v0, 0.0  ;;  %v2866_v5 = vmin.f32 %v2834_v52, 6.0 }
 0x1ec   : > { %v2869_v63 = vmin.f32 %v2837_v62, 6.0 }
 0x1ed   : > { %v2867_v6 = vmin.f32 %v2835_v42, 6.0 }
 0x1ee   : > { %v3559_v43 = vpack.c.bf16 %v2869_v63, %v2868_v30 }
 0x1ef   : > { %v3554_v7 = vpack.c.bf16 %v2867_v6, %v2866_v5 }
 0x1f0   : > { %3607 = vst [vmem:[%s5111_s19 + $0x38] sm:$0xff] %v3559_v43  }
 0x1f1   : > { %3606 = vst [vmem:[%s5111_s19 + $0x30] sm:$0xff] %v3554_v7  }
 0x1f3   : > { %v3773_v8 = vpop.f32.mrb[16].mxu0 }
 0x1f4   : > { %v3735_v23 = vpop.f32.mrb[16].mxu1  ;;  %v2592_v11 = vpop.f32.mrb[17].mxu0 }
 0x1f5   : > { %v3809_v24 = vadd.f32 %v3773_v8, %v3735_v23  ;;  %v1730_v16 = vpop.f32.mrb[17].mxu1  ;;  %v3774_v18 = vpop.f32.mrb[18].mxu0 }
 0x1f6   : > { %v3810_v22 = vadd.f32 %v2592_v11, %v1730_v16  ;;  %v3736_v4 = vpop.f32.mrb[18].mxu1  ;;  %v2595_v38 = vpop.f32.mrb[19].mxu0 }
 0x1f7   : > { %v2808_v14 = vadd.f32 %v3809_v24, %v5102_v59  ;;  %v3811_v10 = vadd.f32 %v3774_v18, %v3736_v4  ;;  %v1733_v20 = vpop.f32.mrb[19].mxu1 }
 0x1f8   : > { %v2806_v49 = vadd.f32 %v3810_v22, %v5102_v59  ;;  %v3812_v41 = vadd.f32 %v2595_v38, %v1733_v20 }
 0x1f9   : > { %v2840_v9 = vmax.f32 %v2808_v14, 0.0  ;;  %v2809_v3 = vadd.f32 %v3811_v10, %v5102_v59 }
 0x1fa   : > { %v2838_v21 = vmax.f32 %v2806_v49, 0.0  ;;  %v2807_v26 = vadd.f32 %v3812_v41, %v5102_v59 }
 0x1fb   : > { %v2841_v34 = vmax.f32 %v2809_v3, 0.0  ;;  %v2872_v17 = vmin.f32 %v2840_v9, 6.0 }
 0x1fc   : > { %v2839_v61 = vmax.f32 %v2807_v26, 0.0  ;;  %v2870_v37 = vmin.f32 %v2838_v21, 6.0 }
 0x1fd   : > { %v2873_v28 = vmin.f32 %v2841_v34, 6.0 }
 0x1fe   : > { %v2871_v29 = vmin.f32 %v2839_v61, 6.0 }
 0x1ff   : > { %v3569_v40 = vpack.c.bf16 %v2873_v28, %v2872_v17 }
 0x200   : > { %v3564_v31 = vpack.c.bf16 %v2871_v29, %v2870_v37 }
 0x201   : > { %3609 = vst [vmem:[%s5111_s19 + $0x48] sm:$0xff] %v3569_v40  }
 0x202   : > { %3608 = vst [vmem:[%s5111_s19 + $0x40] sm:$0xff] %v3564_v31  }
 0x203   : > { %v3777_v27 = vpop.f32.mrb[20].mxu0 }
 0x204   : > { %v3739_v45 = vpop.f32.mrb[20].mxu1  ;;  %v2608_v1 = vpop.f32.mrb[21].mxu0 }
 0x205   : > { %v3813_v32 = vadd.f32 %v3777_v27, %v3739_v45  ;;  %v1746_v55 = vpop.f32.mrb[21].mxu1  ;;  %v3778_v46 = vpop.f32.mrb[22].mxu0 }
 0x206   : > { %v3814_v33 = vadd.f32 %v2608_v1, %v1746_v55  ;;  %v3740_v47 = vpop.f32.mrb[22].mxu1  ;;  %v2611_v36 = vpop.f32.mrb[23].mxu0 }
 0x207   : > { %v2812_v25 = vadd.f32 %v3813_v32, %v5102_v59  ;;  %v3815_v48 = vadd.f32 %v3778_v46, %v3740_v47  ;;  %v1749_v15 = vpop.f32.mrb[23].mxu1 }
 0x208   : > { %v2810_v50 = vadd.f32 %v3814_v33, %v5102_v59  ;;  %v3816_v12 = vadd.f32 %v2611_v36, %v1749_v15 }
 0x209   : > { %v2844_v44 = vmax.f32 %v2812_v25, 0.0  ;;  %v2813_v51 = vadd.f32 %v3815_v48, %v5102_v59 }
 0x20a   : > { %v2842_v13 = vmax.f32 %v2810_v50, 0.0  ;;  %v2811_v39 = vadd.f32 %v3816_v12, %v5102_v59 }
 0x20b   : > { %v2845_v54 = vmax.f32 %v2813_v51, 0.0  ;;  %v2876_v56 = vmin.f32 %v2844_v44, 6.0 }
 0x20c   : > { %v2843_v2 = vmax.f32 %v2811_v39, 0.0  ;;  %v2874_v19 = vmin.f32 %v2842_v13, 6.0 }
 0x20d   : > { %v2877_v57 = vmin.f32 %v2845_v54, 6.0 }
 0x20e   : > { %v2875_v53 = vmin.f32 %v2843_v2, 6.0 }
 0x20f   : > { %v3579_v58 = vpack.c.bf16 %v2877_v57, %v2876_v56 }
 0x210   : > { %v3574_v35 = vpack.c.bf16 %v2875_v53, %v2874_v19 }
 0x211   : > { %3611 = vst [vmem:[%s5111_s19 + $0x58] sm:$0xff] %v3579_v58  }
 0x212   : > { %3610 = vst [vmem:[%s5111_s19 + $0x50] sm:$0xff] %v3574_v35  }
 0x213   : > { %v3781_v60 = vpop.f32.mrb[24].mxu0 }
 0x214   : > { %v3743_v52 = vpop.f32.mrb[24].mxu1  ;;  %v2624_v0 = vpop.f32.mrb[25].mxu0 }
 0x215   : > { %v3817_v62 = vadd.f32 %v3781_v60, %v3743_v52  ;;  %v1762_v42 = vpop.f32.mrb[25].mxu1  ;;  %v3782_v30 = vpop.f32.mrb[26].mxu0 }
 0x216   : > { %v3818_v63 = vadd.f32 %v2624_v0, %v1762_v42  ;;  %v3744_v5 = vpop.f32.mrb[26].mxu1  ;;  %v2627_v6 = vpop.f32.mrb[27].mxu0 }
 0x217   : > { %v2816_v43 = vadd.f32 %v3817_v62, %v5102_v59  ;;  %v3819_v7 = vadd.f32 %v3782_v30, %v3744_v5  ;;  %v1765_v8 = vpop.f32.mrb[27].mxu1 }
 0x218   : > { %v2814_v23 = vadd.f32 %v3818_v63, %v5102_v59  ;;  %v3820_v11 = vadd.f32 %v2627_v6, %v1765_v8 }
 0x219   : > { %v2848_v24 = vmax.f32 %v2816_v43, 0.0  ;;  %v2817_v16 = vadd.f32 %v3819_v7, %v5102_v59 }
 0x21a   : > { %v2846_v18 = vmax.f32 %v2814_v23, 0.0  ;;  %v2815_v22 = vadd.f32 %v3820_v11, %v5102_v59 }
 0x21b   : > { %v2849_v4 = vmax.f32 %v2817_v16, 0.0  ;;  %v2880_v14 = vmin.f32 %v2848_v24, 6.0 }
 0x21c   : > { %v2847_v38 = vmax.f32 %v2815_v22, 0.0  ;;  %v2878_v20 = vmin.f32 %v2846_v18, 6.0 }
 0x21d   : > { %v2881_v10 = vmin.f32 %v2849_v4, 6.0 }
 0x21e   : > { %v2879_v49 = vmin.f32 %v2847_v38, 6.0 }
 0x21f   : > { %v3589_v41 = vpack.c.bf16 %v2881_v10, %v2880_v14 }
 0x220   : > { %v3584_v9 = vpack.c.bf16 %v2879_v49, %v2878_v20 }
 0x221   : > { %3613 = vst [vmem:[%s5111_s19 + $0x68] sm:$0xff] %v3589_v41  }
 0x222   : > { %3612 = vst [vmem:[%s5111_s19 + $0x60] sm:$0xff] %v3584_v9  }
 0x223   : > { %v3785_v3 = vpop.f32.mrb[28].mxu0 }
 0x224   : > { %v3747_v21 = vpop.f32.mrb[28].mxu1  ;;  %v2640_v26 = vpop.f32.mrb[29].mxu0 }
 0x225   : > { %v3821_v34 = vadd.f32 %v3785_v3, %v3747_v21  ;;  %v1778_v61 = vpop.f32.mrb[29].mxu1  ;;  %v3786_v17 = vpop.f32.mrb[30].mxu0 }
 0x226   : > { %v3822_v28 = vadd.f32 %v2640_v26, %v1778_v61  ;;  %v3748_v37 = vpop.f32.mrb[30].mxu1  ;;  %v2643_v29 = vpop.f32.mrb[31].mxu0 }
 0x227   : > { %v2820_v40 = vadd.f32 %v3821_v34, %v5102_v59  ;;  %v3823_v31 = vadd.f32 %v3786_v17, %v3748_v37  ;;  %v1781_v27 = vpop.f32.mrb[31].mxu1 }
 0x228   : > { %v2818_v45 = vadd.f32 %v3822_v28, %v5102_v59  ;;  %v3824_v1 = vadd.f32 %v2643_v29, %v1781_v27 }
 0x229   : > { %v2852_v32 = vmax.f32 %v2820_v40, 0.0  ;;  %v2821_v55 = vadd.f32 %v3823_v31, %v5102_v59 }
 0x22a   : > { %v2850_v46 = vmax.f32 %v2818_v45, 0.0  ;;  %v2819_v33 = vadd.f32 %v3824_v1, %v5102_v59 }
 0x22b   : > { %v2853_v47 = vmax.f32 %v2821_v55, 0.0  ;;  %v2884_v25 = vmin.f32 %v2852_v32, 6.0 }
 0x22c   : > { %v2851_v36 = vmax.f32 %v2819_v33, 0.0  ;;  %v2882_v15 = vmin.f32 %v2850_v46, 6.0 }
 0x22d   : > { %v2885_v48 = vmin.f32 %v2853_v47, 6.0 }
 0x22e   : > { %v2883_v50 = vmin.f32 %v2851_v36, 6.0 }
 0x22f   : > { %v3599_v12 = vpack.c.bf16 %v2885_v48, %v2884_v25 }
 0x230   : > { %v3594_v59 = vpack.c.bf16 %v2883_v50, %v2882_v15 }
 0x231   : > { %3615 = vst [vmem:[%s5111_s19 + $0x78] sm:$0xff] %v3599_v12  }
 0x232   : > { %3614 = vst [vmem:[%s5111_s19 + $0x70] sm:$0xff] %v3594_v59  }
 0x233   : > { %4065 = shalt.err (!%p4062_p5)
}
 0x234   : > { %s4066_s6 = scalar_lea.hbm %s5166_s28, 2048  ;;  %s4070_s7 = scalar_lea.hbm %s5223_s3, 4096 }
 0x235   : > { %p4067_p6 = scmp.ne.s32.totalorder %s5166_s28, %s4066_s6  ;;  %p4071_p10 = scmp.lt.u32.totalorder %s5166_s28, %s5223_s3 }
 0x236   : > { %p4072_p11 = scmp.lt.u32.totalorder %s4070_s7, %s4066_s6  ;;  %p4074_p13 = scmp.lt.u32.totalorder %s4066_s6, %s5166_s28 }
 0x237   : > { %p4068_p7 = pnand %p4067_p6, %p4197_p4 }
 0x238   : > { %p4073_p12 = por %p4072_p11, %p4071_p10 }
 0x239   : > { %p4069_p9 = pneg %p4068_p7 }
 0x23a   : > { %p4075_p0 = por %p4074_p13, %p4073_p12 }
 0x23c   : > { %p4076_p1 = pnand %p4075_p0, %p4069_p9 }
 0x23e   : > { %4079 = shalt.err (!%p4076_p1)
}
 0x23f   : > { %s4135_s18 = smov 64   ;;  %s4136_s19 = smov 4  }
 0x240   : > { %3858 = dma.vmem_to_hbm [thread:$0]  (%p4197_p4), %s5168_s23, 2048, %s5166_s28, %s5174_s15, %s4135_s18, %s4135_s18, %s4136_s19  }
 0x241 PF: > { %p3864_p2 = scmp.ge.s32.totalorder %s4130_s17, 2  ;;  %s3079_s21 = sand.u32 1, %s4110_s12  }
 0x242   : > { %s3080_s26 = scalar_lea.sflag [#allocation4], %s3079_s21 }
 0x243   : > { %p3861_p3 = pnand %p3864_p2, %p4204_p8 }
 0x245   : > { %4105 = dma.done.wait (!%p3861_p3), %s3080_s26, 2048  }
 0x246   : > { %4107 = vsyncadd (!%p3861_p3), %s3080_s26, 4294965248  ;;  %s16_s17 = sadd.s32 1, %s4130_s17   ;;  %s5226_s12 = smov %s4114_s13 }
 0x247   : > { %p13_p5 = scmp.ge.s32.totalorder %s16_s17, 4   ;;  %s5227_s13 = smov %s4118_s14 }
 0x248   : > { %s5228_s14 = smov %s4210_s25  ;;  %s5229_s15 = smov %s4126_s16 }
 0x249   : > { %s5230_s16 = smov %s5232_s20  ;;  %15 = sbr.rel (!%p13_p5) target bundleno = 4 (0x4), region = 78 }
 0x250   :  { %3085 = vsyncpa [#allocation4], 1 }
 0x251   :  { %3087 = vsyncpa [#allocation4 + $0x1], 1 }

// kernel: tpu_custom_call.1
= control target key start
LH: loop header
LB: loop body
LE: loop exit
PB: predicated region body
PF: predicated region fallthrough
CT: control target
= control target key end

     0   :  { %8 = vsyncpa [#allocation4], 0  ;;  %s5218_s0 = inlined_call_operand.vmem [shape: bf16[2,18,18,16], index: 0, kind: input, shape index: {}]   ;;  %s5219_s1 = inlined_call_operand.vmem [shape: bf16[3,48,128], index: 1, kind: input, shape index: {}]   ;;  %s5220_s2 = inlined_call_operand.vmem [shape: f32[1,128], index: 2, kind: input, shape index: {}]   ;;  %s5221_s3 = inlined_call_operand.hbm [shape: bf16[2,16,16,128], index: 3, kind: output, shape index: {}]  }
   0x1   :  { %10 = vsyncpa [#allocation4 + $0x1], 0  ;;  %s4155_s12 = smov 0   ;;  %s4157_s13 = smov 0  }
   0x2   :  { %s4159_s14 = smov 0   ;;  %s4161_s15 = smov 0  }
   0x3   :  { %s4163_s16 = smov 0   ;;  %s4165_s17 = smov 0  }
   0x4 LB: > { %s3178_s18 = sadd.s32 4294967295, %s4128_s17   ;;  %s3179_s19 = sadd.s32 4294967294, %s4128_s17   ;;  %s4128_s17 = sphi %s4165_s17, %s16_s17   ;;  %s4124_s16 = sphi %s4163_s16, %s5228_s16   ;;  %s4120_s15 = sphi %s4161_s15, %s5227_s15   ;;  %s4116_s14 = sphi %s4159_s14, %s5226_s14   ;;  %s4112_s13 = sphi %s4157_s13, %s5225_s13   ;;  %s4108_s12 = sphi %s4155_s12, %s5224_s12  }
   0x5   : > { %s35_s20 = sadd.s32 1, %s4124_s16  ;;  %s124_s21 = sadd.s32 1, %s4116_s14 }
   0x6   : > { %p37_p0 = scmp.ge.s32.totalorder %s35_s20, 2  ;;  %p134_p1 = scmp.ne.s32.totalorder %s4116_s14, %s4112_s13 }
   0x7   : > { %p135_p2 = scmp.eq.s32.totalorder %s3178_s18, 1  ;;  %p140_p3 = scmp.ne.s32.totalorder %s4112_s13, %s4108_s12 }
   0x8   : > { %s5230_s20 = smov (%p37_p0, %s35_s20), 0  ;;  %p141_p5 = scmp.eq.s32.totalorder %s3179_s19, 1 }
   0x9   : > { %p4195_p4 = por %p135_p2, %p134_p1  ;;  %s117_s23 = ssub.s32 %s4124_s16, %s5230_s20 }
   0xa   : > { %p3184_p6 = scmp.ge.s32.totalorder %s4128_s17, 1  ;;  %p122_p7 = scmp.eq.s32.totalorder %s117_s23, 0 }
   0xb   : > { %p4202_p8 = por %p141_p5, %p140_p3  ;;  %p180_p9 = scmp.lt.s32.totalorder %s4128_s17, 3 }
   0xc   : > { %s4208_s25 = scalar_select %p122_p7, %s4116_s14, %s124_s21  }
   0xd   : > { %p181_p10 = pnand %p3184_p6, %p180_p9 }
   0xe   : > { %p211_p11 = scmp.lt.s32.totalorder (!%p181_p10), %s4120_s15, 1  ;;  %v3977_v0 = vld [vmem:[%s5219_s1] sm:$0xff] (!%p181_p10)   ;;  %v4218_v1 = vld [vmem:[%s5219_s1 + $0x18] sm:$0xff] (!%p181_p10)   ;;  %vm630_vm0 = vcmask (!%p181_p10), 1046528   ;;  %vm405_vm1 = vsmask.f32 (!%p181_p10), 7424 }
   0xf   : > { %184 = sbr.rel (%p181_p10) target bundleno = 577 (0x241), region = 32  ;;  %3671 = vmatprep.subr.bf16.mxu1 (!%p181_p10), %v3977_v0  ;;  %3709 = vmatprep.subr.bf16.mxu0 (!%p181_p10), %v4218_v1  ;;  %s4130_s8 = smov (!%p181_p10), 32   ;;  %vm711_vm2 = vcmask (!%p181_p10), 130048   ;;  %vm744_vm3 = vcmask (!%p181_p10), 261120   ;;  %vm801_vm4 = vcmask (!%p181_p10), 392192  }
  0x10   : > { %3672 = vmatpush3.bf16.msra.mxu1 (!%p181_p10), %v3977_v0  ;;  %3710 = vmatpush3.bf16.msra.mxu0 (!%p181_p10), %v4218_v1  ;;  %s4131_s9 = smov (!%p181_p10), 16   ;;  %s3518_s21 = sshll.u32 (!%p181_p10), %s4120_s15, 11 }
  0x11   : > { %s5164_s28 = scalar_lea.hbm (!%p181_p10), %s5221_s3, %s3518_s21  ;;  %s4132_s30 = smov (!%p181_p10), [#allocation3]  }
  0x16   : > { %s212_s26 = scalar_select %p211_p11, %s4120_s15, 1 }
  0x18   : > { %s3855_s4 = smul.u32 216, %s212_s26 }
  0x1a   : > { %s4224_s7 = scalar_lea.vmem %s5218_s0, %s3855_s4  ;;  %s4054_s4 = sshll.u32 %s4132_s30, 4  ;;  %s4055_s4 = int_to_ptr.vmem [resolvable:$false] %s4054_s4 }
  0x1b   : > { %v3915_v2 = vld [vmem:[%s4224_s7 + $0xc] sm:$0xff]   ;;  %v3916_v3 = vld [vmem:[%s4224_s7 + $0x14] ss:$0 sps:$4 sm:$0x11]   ;;  %v3917_v4 = vld [vmem:[%s4224_s7] sm:$0xff]   ;;  %s4056_s5 = scalar_lea.vmem %s4055_s4, 4096 }
  0x1c   : > { %v634_v5 = vrot.slane %v3915_v2, 1  ;;  %v635_v6 = vrot.slane %v3916_v3, 1  ;;  %v3918_v7 = vld [vmem:[%s4224_s7 + $0x8] ss:$0 sps:$4 sm:$0x11]   ;;  %v3919_v8 = vld [vmem:[%s4224_s7 + $0xc] sm:$0xff]  }
  0x1d   : > { %v631_v9 = vrot.slane %v3917_v4, 1  ;;  %v407_v10 = vshrl.u32 %v3917_v4, 16  ;;  %v632_v12 = vrot.slane %v3918_v7, 1  ;;  %v3920_v13 = vld [vmem:[%s4224_s7 + $0x14] ss:$0 sps:$4 sm:$0x11]  }
  0x1e   : > { %v636_v11 = vsel %vm630_vm0, %v634_v5, %v635_v6  ;;  %v1431_v14 = vrot.slane %v3919_v8, 1  ;;  %v409_v15 = vshll.u32 %v3917_v4, 16  ;;  %v414_v16 = vshll.u32 %v3918_v7, 16  ;;  %v3921_v17 = vld [vmem:[%s4224_s7 + $0x18] sm:$0xff]   ;;  %v4241_v33 = vld [vmem:[%s4224_s7 + $0x24] sm:$0xff]   ;;  %v4263_v62 = vld [vmem:[%s4224_s7 + $0x30] sm:$0xff]  }
  0x1f   : > { %681 = vrot.lane.b32.xlu0 %v636_v11, %s4130_s8  ;;  %v633_v18 = vsel %vm630_vm0, %v631_v9, %v632_v12  ;;  %v1432_v19 = vrot.slane %v3920_v13, 1  ;;  %v1208_v20 = vshrl.u32 %v3919_v8, 16  ;;  %v3922_v23 = vld [vmem:[%s4224_s7 + $0x20] ss:$0 sps:$4 sm:$0x11]   ;;  %v1434_v24 = vrot.slane %v3921_v17, 1 }
  0x20   : > { %679 = vrot.lane.b32.xlu1 %v633_v18, %s4130_s8  ;;  %v411_v21 = vrot.slane %v409_v15, 1  ;;  %v416_v22 = vrot.slane %v414_v16, 1  ;;  %v1210_v26 = vshll.u32 %v3919_v8, 16  ;;  %v1215_v27 = vshll.u32 %v3920_v13, 16  ;;  %v3925_v43 = vld [vmem:[%s4224_s7 + $0x18] sm:$0xff]   ;;  %v4257_v55 = vld [vmem:[%s4224_s7 + $0x24] sm:$0xff]  }
  0x21   : > { %v1433_v25 = vsel %vm630_vm0, %v1431_v14, %v1432_v19  ;;  %v419_v28 = vshrl.u32 %v3915_v2, 16  ;;  %v1435_v30 = vrot.slane %v3922_v23, 1  ;;  %v421_v31 = vshll.u32 %v3915_v2, 16  ;;  %v4247_v42 = vld [vmem:[%s4224_s7 + $0x2c] ss:$0 sps:$4 sm:$0x11]  }
  0x22   : > { %v412_v29 = vor.u32 %v411_v21, %v407_v10  ;;  %v426_v32 = vshll.u32 %v3916_v3, 16  ;;  %v1212_v34 = vrot.slane %v1210_v26, 1  ;;  %v1217_v35 = vrot.slane %v1215_v27, 1  ;;  %v3926_v54 = vld [vmem:[%s4224_s7 + $0x20] ss:$0 sps:$4 sm:$0x11]  }
  0x23   : > { %v1220_v36 = vshrl.u32 %v3921_v17, 16  ;;  %v1222_v37 = vshll.u32 %v3921_v17, 16  ;;  %v1436_v39 = vsel %vm630_vm0, %v1434_v24, %v1435_v30  ;;  %v423_v40 = vrot.slane %v421_v31, 1  ;;  %v4267_v3 = vld [vmem:[%s4224_s7 + $0x2c] ss:$0 sps:$4 sm:$0x11]  }
  0x24   : > { %1479 = vrot.lane.b32.xlu1 %v1433_v25, %s4130_s8  ;;  %v417_v38 = vsel %vm405_vm1, %v412_v29, %v416_v22  ;;  %v428_v41 = vrot.slane %v426_v32, 1  ;;  %v1213_v44 = vor.u32 %v1212_v34, %v1208_v20  ;;  %v1227_v46 = vshll.u32 %v3922_v23, 16  ;;  %v3930_v13 = vld [vmem:[%s4224_s7 + $0x38] ss:$0 sps:$4 sm:$0x11]   ;;  %v4280_v18 = vld [vmem:[%s4224_s7 + $0x3c] sm:$0xff]  }
  0x25   : > { %598 = vrot.lane.b32.xlu0 %v417_v38, %s4131_s9  ;;  %v1224_v45 = vrot.slane %v1222_v37, 1  ;;  %v1232_v47 = vshrl.u32 %v4241_v33, 16  ;;  %v424_v48 = vor.u32 %v423_v40, %v419_v28  ;;  %v1234_v49 = vshll.u32 %v4241_v33, 16  ;;  %v4283_v21 = vld [vmem:[%s4224_s7 + $0x30] sm:$0xff]   ;;  %v4291_v25 = vld [vmem:[%s4224_s7 + $0x3c] sm:$0xff]  }
  0x26   : > { %v1239_v50 = vshll.u32 %v4247_v42, 16  ;;  %v1218_v51 = vsel %vm405_vm1, %v1213_v44, %v1217_v35  ;;  %v1229_v53 = vrot.slane %v1227_v46, 1  ;;  %v431_v57 = vshrl.u32 %v3925_v43, 16  ;;  %v4288_v24 = vld [vmem:[%s4224_s7 + $0x44] ss:$0 sps:$4 sm:$0x11]  }
  0x27   : > { %v1225_v52 = vor.u32 %v1224_v45, %v1220_v36  ;;  %v1236_v56 = vrot.slane %v1234_v49, 1  ;;  %v433_v58 = vshll.u32 %v3925_v43, 16  ;;  %v429_v59 = vsel %vm405_vm1, %v424_v48, %v428_v41  ;;  %v3934_v35 = vld [vmem:[%s4224_s7 + $0x38] ss:$0 sps:$4 sm:$0x11]   ;;  %v4315_v48 = vld [vmem:[%s4224_s7 + $0x48] sm:$0xff]  }
  0x28   : > { %1481 = vrot.lane.b32.xlu1 %v1436_v39, %s4130_s8  ;;  %v1241_v60 = vrot.slane %v1239_v50, 1  ;;  %v438_v61 = vshll.u32 %v3926_v54, 16  ;;  %v443_v5 = vshrl.u32 %v4257_v55, 16  ;;  %v445_v6 = vshll.u32 %v4257_v55, 16 }
  0x29   : > { %1399 = vrot.lane.b32.xlu0 %v1218_v51, %s4131_s9  ;;  %v1230_v63 = vsel %vm405_vm1, %v1225_v52, %v1229_v53  ;;  %v1237_v0 = vor.u32 %v1236_v56, %v1232_v47  ;;  %v435_v2 = vrot.slane %v433_v58, 1  ;;  %v450_v8 = vshll.u32 %v4267_v3, 16  ;;  %v3938_v56 = vld [vmem:[%s4224_s7 + $0x50] ss:$0 sps:$4 sm:$0x11]  }
  0x2a   : > { %v440_v4 = vrot.slane %v438_v61, 1  ;;  %v637_v10 = vrot.slane %v3925_v43, 1  ;;  %v638_v11 = vrot.slane %v3926_v54, 1  ;;  %v447_v12 = vrot.slane %v445_v6, 1  ;;  %v4328_v61 = vld [vmem:[%s4224_s7 + $0x54] sm:$0xff]  }
  0x2b   : > { %v436_v7 = vor.u32 %v435_v2, %v431_v57  ;;  %v1242_v9 = vsel %vm405_vm1, %v1237_v0, %v1241_v60  ;;  %v452_v15 = vrot.slane %v450_v8, 1  ;;  %v1244_v16 = vshrl.u32 %v4263_v62, 16  ;;  %v4308_v43 = vld [vmem:[%s4224_s7 + $0x44] ss:$0 sps:$4 sm:$0x11]  }
  0x2c   : > { %600 = vrot.lane.b32.xlu1 %v429_v59, %s4131_s9  ;;  %v1246_v17 = vshll.u32 %v4263_v62, 16  ;;  %v448_v19 = vor.u32 %v447_v12, %v443_v5  ;;  %v1251_v20 = vshll.u32 %v3930_v13, 16  ;;  %v1437_v22 = vrot.slane %v4241_v33, 1  ;;  %v4345_v12 = vld [vmem:[%s4224_s7 + $0x54] sm:$0xff]  }
  0x2d   : > { %1401 = vrot.lane.b32.xlu0 %v1230_v63, %s4131_s9  ;;  %v441_v14 = vsel %vm405_vm1, %v436_v7, %v440_v4  ;;  %v639_v26 = vsel %vm630_vm0, %v637_v10, %v638_v11  ;;  %v1438_v27 = vrot.slane %v4247_v42, 1  ;;  %v1440_v28 = vrot.slane %v4263_v62, 1  ;;  %v4335_v7 = vld [vmem:[%s4224_s7 + $0x48] sm:$0xff]   ;;  %v4342_v11 = vld [vmem:[%s4224_s7 + $0x5c] ss:$0 sps:$4 sm:$0x11]  }
  0x2e   : > { %v1248_v23 = vrot.slane %v1246_v17, 1  ;;  %v453_v29 = vsel %vm405_vm1, %v448_v19, %v452_v15  ;;  %v1253_v31 = vrot.slane %v1251_v20, 1  ;;  %v1258_v32 = vshll.u32 %v4280_v18, 16  ;;  %v3942_v15 = vld [vmem:[%s4224_s7 + $0x50] ss:$0 sps:$4 sm:$0x11]  }
  0x2f   : > { %v1441_v33 = vrot.slane %v3930_v13, 1  ;;  %v1256_v34 = vshrl.u32 %v4280_v18, 16  ;;  %v457_v36 = vshll.u32 %v4283_v21, 16  ;;  %v1263_v37 = vshll.u32 %v4288_v24, 16 }
  0x30   : > { %1403 = vrot.lane.b32.xlu1 %v1242_v9, %s4131_s9  ;;  %v1249_v30 = vor.u32 %v1248_v23, %v1244_v16  ;;  %v455_v38 = vshrl.u32 %v4283_v21, 16  ;;  %v1439_v39 = vsel %vm630_vm0, %v1437_v22, %v1438_v27  ;;  %v1260_v40 = vrot.slane %v1258_v32, 1 }
  0x31   : > { %602 = vrot.lane.b32.xlu0 %v441_v14, %s4131_s9  ;;  %v459_v41 = vrot.slane %v457_v36, 1  ;;  %v462_v42 = vshll.u32 %v3934_v35, 16  ;;  %v640_v45 = vrot.slane %v4257_v55, 1  ;;  %v641_v46 = vrot.slane %v4267_v3, 1 }
  0x32   : > { %v1254_v44 = vsel %vm405_vm1, %v1249_v30, %v1253_v31  ;;  %v469_v47 = vshll.u32 %v4291_v25, 16  ;;  %v1265_v49 = vrot.slane %v1263_v37, 1  ;;  %v467_v51 = vshrl.u32 %v4291_v25, 16 }
  0x33   : > { %v464_v50 = vrot.slane %v462_v42, 1  ;;  %v1442_v52 = vsel %vm630_vm0, %v1440_v28, %v1441_v33  ;;  %v1261_v53 = vor.u32 %v1260_v40, %v1256_v34  ;;  %v460_v54 = vor.u32 %v459_v41, %v455_v38  ;;  %v3945_v33 = vld [vmem:[%s4224_s7 + $0x60] sm:$0xff]   ;;  %v3946_v40 = vld [vmem:[%s4224_s7 + $0x68] ss:$0 sps:$4 sm:$0x11]  }
  0x34   : > { %683 = vrot.lane.b32.xlu1 %v639_v26, %s4130_s8  ;;  %v474_v55 = vshll.u32 %v4308_v43, 16  ;;  %v642_v57 = vsel %vm630_vm0, %v640_v45, %v641_v46  ;;  %v471_v58 = vrot.slane %v469_v47, 1  ;;  %v1270_v59 = vshll.u32 %v4315_v48, 16  ;;  %v4359_v26 = vld [vmem:[%s4224_s7 + $0x5c] ss:$0 sps:$4 sm:$0x11]  }
  0x35   : > { %604 = vrot.lane.b32.xlu0 %v453_v29, %s4131_s9  ;;  %v643_v60 = vrot.slane %v4283_v21, 1  ;;  %v1266_v62 = vsel %vm405_vm1, %v1261_v53, %v1265_v49  ;;  %v465_v63 = vsel %vm405_vm1, %v460_v54, %v464_v50  ;;  %v644_v0 = vrot.slane %v3934_v35, 1 }
  0x36   : > { %v1268_v2 = vshrl.u32 %v4315_v48, 16  ;;  %v472_v3 = vor.u32 %v471_v58, %v467_v51  ;;  %v476_v4 = vrot.slane %v474_v55, 1  ;;  %v1272_v5 = vrot.slane %v1270_v59, 1  ;;  %v4383_v55 = vld [vmem:[%s4224_s7 + $0x60] sm:$0xff]  }
  0x37   : > { %v1275_v6 = vshll.u32 %v3938_v56, 16  ;;  %v1443_v8 = vrot.slane %v4280_v18, 1  ;;  %v1444_v9 = vrot.slane %v4288_v24, 1  ;;  %v1446_v10 = vrot.slane %v4315_v48, 1  ;;  %v4377_v48 = vld [vmem:[%s4224_s7 + $0x18] sm:$0xff]  }
  0x38   : > { %1483 = vrot.lane.b32.xlu1 %v1439_v39, %s4130_s8  ;;  %v645_v13 = vsel %vm630_vm0, %v643_v60, %v644_v0  ;;  %v1282_v14 = vshll.u32 %v4328_v61, 16  ;;  %v477_v16 = vsel %vm405_vm1, %v472_v3, %v476_v4  ;;  %v1273_v17 = vor.u32 %v1272_v5, %v1268_v2  ;;  %v4389_v60 = vld [vmem:[%s4224_s7 + $0x20] ss:$0 sps:$4 sm:$0x11]  }
  0x39   : > { %1405 = vrot.lane.b32.xlu0 %v1254_v44, %s4131_s9  ;;  %v1277_v18 = vrot.slane %v1275_v6, 1  ;;  %v481_v19 = vshll.u32 %v4335_v7, 16  ;;  %v1447_v20 = vrot.slane %v3938_v56, 1  ;;  %v646_v21 = vrot.slane %v4291_v25, 1  ;;  %v4399_v6 = vld [vmem:[%s4224_s7 + $0x6c] sm:$0xff]  }
  0x3a   : > { %v647_v22 = vrot.slane %v4308_v43, 1  ;;  %v1280_v23 = vshrl.u32 %v4328_v61, 16  ;;  %v1287_v24 = vshll.u32 %v4342_v11, 16  ;;  %v1445_v27 = vsel %vm630_vm0, %v1443_v8, %v1444_v9  ;;  %v3950_v2 = vld [vmem:[%s4224_s7 + $0x68] ss:$0 sps:$4 sm:$0x11]  }
  0x3b   : > { %v1284_v28 = vrot.slane %v1282_v14, 1  ;;  %v479_v29 = vshrl.u32 %v4335_v7, 16  ;;  %v1278_v25 = vsel %vm405_vm1, %v1273_v17, %v1277_v18  ;;  %v483_v30 = vrot.slane %v481_v19, 1 }
  0x3c   : > { %1485 = vrot.lane.b32.xlu1 %v1442_v52, %s4130_s8  ;;  %v486_v31 = vshll.u32 %v3942_v15, 16  ;;  %v493_v32 = vshll.u32 %v4345_v12, 16  ;;  %v1289_v34 = vrot.slane %v1287_v24, 1  ;;  %v491_v35 = vshrl.u32 %v4345_v12, 16 }
  0x3d   : > { %685 = vrot.lane.b32.xlu0 %v642_v57, %s4130_s8  ;;  %v1448_v36 = vsel %vm630_vm0, %v1446_v10, %v1447_v20  ;;  %v648_v37 = vsel %vm630_vm0, %v646_v21, %v647_v22  ;;  %v1285_v38 = vor.u32 %v1284_v28, %v1280_v23  ;;  %v498_v39 = vshll.u32 %v4359_v26, 16 }
  0x3e   : > { %v484_v41 = vor.u32 %v483_v30, %v479_v29  ;;  %v488_v42 = vrot.slane %v486_v31, 1  ;;  %v495_v43 = vrot.slane %v493_v32, 1  ;;  %v1294_v44 = vshll.u32 %v3945_v33, 16  ;;  %v3954_v29 = vld [vmem:[%s4224_s7 + $0x2c] ss:$0 sps:$4 sm:$0x11]  }
  0x3f   : > { %v649_v45 = vrot.slane %v4335_v7, 1  ;;  %v650_v46 = vrot.slane %v3942_v15, 1  ;;  %v1292_v47 = vshrl.u32 %v3945_v33, 16  ;;  %v1290_v49 = vsel %vm405_vm1, %v1285_v38, %v1289_v34  ;;  %v4412_v15 = vld [vmem:[%s4224_s7 + $0x74] ss:$0 sps:$4 sm:$0x11]  }
  0x40   : > { %1407 = vrot.lane.b32.xlu1 %v1266_v62, %s4131_s9  ;;  %v500_v50 = vrot.slane %v498_v39, 1  ;;  %v1299_v51 = vshll.u32 %v3946_v40, 16  ;;  %v489_v52 = vsel %vm405_vm1, %v484_v41, %v488_v42  ;;  %v496_v53 = vor.u32 %v495_v43, %v491_v35  ;;  %v4428_v32 = vld [vmem:[%s4224_s7 + $0x30] sm:$0xff]   ;;  %v4439_v43 = vld [vmem:[%s4224_s7 + $0x38] ss:$0 sps:$4 sm:$0x11]  }
  0x41   : > { %606 = vrot.lane.b32.xlu0 %v465_v63, %s4131_s9  ;;  %v1296_v54 = vrot.slane %v1294_v44, 1  ;;  %v1449_v56 = vrot.slane %v4328_v61, 1  ;;  %v1450_v57 = vrot.slane %v4342_v11, 1  ;;  %v1452_v58 = vrot.slane %v3945_v33, 1 }
  0x42   : > { %v1453_v59 = vrot.slane %v3946_v40, 1  ;;  %v2072_v62 = vshll.u32 %v4377_v48, 16  ;;  %v651_v63 = vsel %vm630_vm0, %v649_v45, %v650_v46  ;;  %v652_v0 = vrot.slane %v4345_v12, 1  ;;  %v4407_v12 = vld [vmem:[%s4224_s7 + $0x24] sm:$0xff]  }
  0x43   : > { %v501_v61 = vsel %vm405_vm1, %v496_v53, %v500_v50  ;;  %v1297_v3 = vor.u32 %v1296_v54, %v1292_v47  ;;  %v1301_v4 = vrot.slane %v1299_v51, 1  ;;  %v505_v5 = vshll.u32 %v4383_v55, 16  ;;  %v3958_v45 = vld [vmem:[%s4224_s7 + $0x80] ss:$0 sps:$4 sm:$0x11]  }
  0x44   : > { %687 = vrot.lane.b32.xlu1 %v645_v13, %s4130_s8  ;;  %v653_v7 = vrot.slane %v4359_v26, 1  ;;  %v2070_v8 = vshrl.u32 %v4377_v48, 16  ;;  %v2074_v9 = vrot.slane %v2072_v62, 1  ;;  %v2077_v10 = vshll.u32 %v4389_v60, 16 }
  0x45   : > { %608 = vrot.lane.b32.xlu0 %v477_v16, %s4131_s9  ;;  %v503_v11 = vshrl.u32 %v4383_v55, 16  ;;  %v1451_v13 = vsel %vm630_vm0, %v1449_v56, %v1450_v57  ;;  %v510_v14 = vshll.u32 %v3950_v2, 16  ;;  %v1302_v16 = vsel %vm405_vm1, %v1297_v3, %v1301_v4  ;;  %v4466_v3 = vld [vmem:[%s4224_s7 + $0x3c] sm:$0xff]  }
  0x46   : > { %v507_v17 = vrot.slane %v505_v5, 1  ;;  %v517_v18 = vshll.u32 %v4399_v6, 16  ;;  %v1454_v19 = vsel %vm630_vm0, %v1452_v58, %v1453_v59  ;;  %v654_v20 = vsel %vm630_vm0, %v652_v0, %v653_v7 }
  0x47   : > { %v2075_v21 = vor.u32 %v2074_v9, %v2070_v8  ;;  %v2079_v22 = vrot.slane %v2077_v10, 1  ;;  %v515_v23 = vshrl.u32 %v4399_v6, 16  ;;  %v522_v24 = vshll.u32 %v4412_v15, 16 }
  0x48   : > { %1487 = vrot.lane.b32.xlu1 %v1445_v27, %s4130_s8  ;;  %v508_v26 = vor.u32 %v507_v17, %v503_v11  ;;  %v512_v27 = vrot.slane %v510_v14, 1  ;;  %v519_v28 = vrot.slane %v517_v18, 1  ;;  %v655_v30 = vrot.slane %v4383_v55, 1  ;;  %v3962_v11 = vld [vmem:[%s4224_s7 + $0x44] ss:$0 sps:$4 sm:$0x11]  }
  0x49   : > { %1409 = vrot.lane.b32.xlu0 %v1278_v25, %s4131_s9  ;;  %v2084_v25 = vshll.u32 %v4407_v12, 16  ;;  %v2293_v31 = vrot.slane %v4377_v48, 1  ;;  %v2080_v33 = vsel %vm405_vm1, %v2075_v21, %v2079_v22  ;;  %v656_v34 = vrot.slane %v3950_v2, 1  ;;  %v4448_v48 = vld [vmem:[%s4224_s7 + $0x84] sm:$0xff]  }
  0x4a   : > { %v524_v35 = vrot.slane %v522_v24, 1  ;;  %v513_v38 = vsel %vm405_vm1, %v508_v26, %v512_v27  ;;  %v520_v39 = vor.u32 %v519_v28, %v515_v23  ;;  %v2089_v41 = vshll.u32 %v3954_v29, 16  ;;  %v4479_v17 = vld [vmem:[%s4224_s7 + $0x48] sm:$0xff]   ;;  %v4487_v27 = vld [vmem:[%s4224_s7 + $0x90] sm:$0xff]  }
  0x4b   : > { %v2086_v40 = vrot.slane %v2084_v25, 1  ;;  %v2294_v42 = vrot.slane %v4389_v60, 1  ;;  %v2096_v44 = vshll.u32 %v4428_v32, 16  ;;  %v657_v46 = vsel %vm630_vm0, %v655_v30, %v656_v34  ;;  %v4495_v25 = vld [vmem:[%s4224_s7 + $0x50] ss:$0 sps:$4 sm:$0x11]  }
  0x4c   : > { %1489 = vrot.lane.b32.xlu1 %v1448_v36, %s4130_s8  ;;  %v2082_v36 = vshrl.u32 %v4407_v12, 16  ;;  %v2091_v51 = vrot.slane %v2089_v41, 1  ;;  %v658_v54 = vrot.slane %v4399_v6, 1  ;;  %v659_v55 = vrot.slane %v4412_v15, 1  ;;  %v4505_v34 = vld [vmem:[%s4224_s7 + $0x9c] sm:$0xff]   ;;  %v4520_v41 = vld [vmem:[%s5219_s1 + $0x28] sm:$0xff]  }
  0x4d   : > { %689 = vrot.lane.b32.xlu0 %v648_v37, %s4130_s8  ;;  %v4434_v37 = vld [vmem:[%s4224_s7 + $0x78] sm:$0xff]   ;;  %v2295_v53 = vsel %vm630_vm0, %v2293_v31, %v2294_v42  ;;  %v2297_v56 = vrot.slane %v3954_v29, 1  ;;  %v2094_v57 = vshrl.u32 %v4428_v32, 16  ;;  %v2101_v58 = vshll.u32 %v4439_v43, 16  ;;  %v3981_v29 = vld [vmem:[%s5219_s1 + $0x8] sm:$0xff]  }
  0x4e   : > { %v529_v47 = vshll.u32 %v4434_v37, 16  ;;  %v2087_v50 = vor.u32 %v2086_v40, %v2082_v36  ;;  %v534_v59 = vshll.u32 %v3958_v45, 16  ;;  %v2098_v60 = vrot.slane %v2096_v44, 1  ;;  %3673 = vmatprep.subr.bf16.mxu1 %v3981_v29  ;;  %v3983_v40 = vld [vmem:[%s5219_s1 + $0x10] sm:$0xff]  }
  0x4f   : > { %v527_v62 = vshrl.u32 %v4434_v37, 16  ;;  %v541_v0 = vshll.u32 %v4448_v48, 16  ;;  %v2103_v4 = vrot.slane %v2101_v58, 1  ;;  %v539_v6 = vshrl.u32 %v4448_v48, 16  ;;  %3674 = vmatpush3.bf16.msra.mxu1 %v3981_v29 }
  0x50   : > { %1411 = vrot.lane.b32.xlu1 %v1290_v49, %s4131_s9  ;;  %v525_v49 = vsel %vm405_vm1, %v520_v39, %v524_v35  ;;  %v2092_v2 = vsel %vm405_vm1, %v2087_v50, %v2091_v51  ;;  %v536_v5 = vrot.slane %v534_v59, 1  ;;  %v2099_v8 = vor.u32 %v2098_v60, %v2094_v57  ;;  %v4510_v35 = vld [vmem:[%s5219_s1 + $0x20] sm:$0xff]   ;;  %3675 = vmatprep.subr.bf16.mxu1 %v3983_v40 }
  0x51   : > { %610 = vrot.lane.b32.xlu0 %v489_v52, %s4131_s9  ;;  %v2296_v52 = vrot.slane %v4407_v12, 1  ;;  %v543_v10 = vrot.slane %v541_v0, 1  ;;  %v660_v12 = vsel %vm630_vm0, %v658_v54, %v659_v55  ;;  %v2108_v14 = vshll.u32 %v4466_v3, 16  ;;  %3711 = vmatprep.subr.bf16.mxu0 %v4510_v35  ;;  %v4533_v50 = vld [vmem:[%s4224_s7 + $0xa4] ss:$0 sps:$4 sm:$0x11]  }
  0x52   : > { %v661_v15 = vrot.slane %v4434_v37, 1  ;;  %v2104_v18 = vsel %vm405_vm1, %v2099_v8, %v2103_v4  ;;  %v2299_v21 = vrot.slane %v4428_v32, 1  ;;  %v2106_v23 = vshrl.u32 %v4466_v3, 16  ;;  %3712 = vmatpush3.bf16.msra.mxu0 %v4510_v35  ;;  %v4539_v55 = vld [vmem:[%s4224_s7 + $0x54] sm:$0xff]   ;;  %v4555_v4 = vld [vmem:[%s4224_s7 + $0x60] sm:$0xff]  }
  0x53   : > { %v2298_v7 = vsel %vm630_vm0, %v2296_v52, %v2297_v56  ;;  %v2110_v24 = vrot.slane %v2108_v14, 1  ;;  %v2113_v26 = vshll.u32 %v3962_v11, 16  ;;  %v2300_v28 = vrot.slane %v4439_v43, 1  ;;  %3713 = vmatprep.subr.bf16.mxu0 %v4520_v41  ;;  %3676 = vmatpush3.bf16.msra.mxu1 %v3983_v40  ;;  %v4566_v14 = vld [vmem:[%s4224_s7 + $0x68] ss:$0 sps:$4 sm:$0x11]  }
  0x54   : > { %691 = vrot.lane.b32.xlu1 %v651_v63, %s4130_s8  ;;  %v531_v63 = vrot.slane %v529_v47, 1  ;;  %v2120_v30 = vshll.u32 %v4479_v17, 16  ;;  %v664_v32 = vrot.slane %v4448_v48, 1  ;;  %v553_v39 = vshll.u32 %v4487_v27, 16  ;;  %3785 = vmatprep.subr.bf16.mxu1 %v4218_v1  ;;  %v4595_v40 = vld [vmem:[%s4224_s7 + $0x6c] sm:$0xff]  }
  0x55   : > { %612 = vrot.lane.b32.xlu0 %v501_v61, %s4131_s9  ;;  %v4463_v61 = vld [vmem:[%s4224_s7 + $0x8c] ss:$0 sps:$4 sm:$0x11]   ;;  %v2111_v37 = vor.u32 %v2110_v24, %v2106_v23  ;;  %v2302_v42 = vrot.slane %v4466_v3, 1  ;;  %v2303_v43 = vrot.slane %v3962_v11, 1  ;;  %v2125_v47 = vshll.u32 %v4495_v25, 16 }
  0x56   : > { %v532_v9 = vor.u32 %v531_v63, %v527_v62  ;;  %v665_v44 = vrot.slane %v4463_v61, 1  ;;  %v2301_v48 = vsel %vm630_vm0, %v2299_v21, %v2300_v28  ;;  %v551_v52 = vshrl.u32 %v4487_v27, 16  ;;  %3714 = vmatpush3.bf16.msra.mxu0 %v4520_v41 }
  0x57   : > { %v565_v54 = vshll.u32 %v4505_v34, 16  ;;  %v2304_v56 = vsel %vm630_vm0, %v2302_v42, %v2303_v43  ;;  %v2127_v59 = vrot.slane %v2125_v47, 1  ;;  %v570_v62 = vshll.u32 %v4533_v50, 16 }
  0x58   : > { %1491 = vrot.lane.b32.xlu1 %v1451_v13, %s4130_s8  ;;  %v546_v13 = vshll.u32 %v4463_v61, 16  ;;  %v666_v57 = vsel %vm630_vm0, %v664_v32, %v665_v44  ;;  %v563_v1 = vshrl.u32 %v4505_v34, 16  ;;  %v2132_v61 = vshll.u32 %v4539_v55, 16  ;;  %v4601_v44 = vld [vmem:[%s4224_s7 + $0x74] ss:$0 sps:$4 sm:$0x11]  }
  0x59   : > { %1413 = vrot.lane.b32.xlu0 %v1302_v16, %s4131_s9  ;;  %v662_v16 = vrot.slane %v3958_v45, 1  ;;  %v2118_v45 = vshrl.u32 %v4479_v17, 16  ;;  %v567_v0 = vrot.slane %v565_v54, 1  ;;  %v667_v3 = vrot.slane %v4487_v27, 1  ;;  %v4579_v27 = vld [vmem:[%s4224_s7 + $0xb4] sm:$0xff]  }
  0x5a   : > { %v548_v22 = vrot.slane %v546_v13, 1  ;;  %v2130_v8 = vshrl.u32 %v4539_v55, 16  ;;  %v671_v29 = vrot.slane %v4533_v50, 1 }
  0x5b   : > { %v663_v31 = vsel %vm630_vm0, %v661_v15, %v662_v16  ;;  %v568_v11 = vor.u32 %v567_v0, %v563_v1  ;;  %v2305_v15 = vrot.slane %v4479_v17, 1  ;;  %v2144_v16 = vshll.u32 %v4555_v4, 16  ;;  %v4618_v1 = vld [vmem:[%s4224_s7 + $0x80] ss:$0 sps:$4 sm:$0x11]   ;;  %v4621_v0 = vld [vmem:[%s4224_s7 + $0x6c] sm:$0xff]  }
  0x5c   : > { %1493 = vrot.lane.b32.xlu1 %v1454_v19, %s4130_s8  ;;  %v537_v19 = vsel %vm405_vm1, %v532_v9, %v536_v5  ;;  %v4562_v9 = vld [vmem:[%s4224_s7 + $0xa8] sm:$0xff]   ;;  %v2308_v17 = vrot.slane %v4539_v55, 1  ;;  %v4610_v55 = vld [vmem:[%s4224_s7 + $0x78] sm:$0xff]  }
  0x5d   : > { %693 = vrot.lane.b32.xlu0 %v654_v20, %s4130_s8  ;;  %v544_v20 = vor.u32 %v543_v10, %v539_v6  ;;  %v577_v21 = vshll.u32 %v4562_v9, 16 }
  0x5f   : > { %v549_v36 = vsel %vm405_vm1, %v544_v20, %v548_v22  ;;  %v2306_v20 = vrot.slane %v4495_v25, 1  ;;  %v2146_v25 = vrot.slane %v2144_v16, 1  ;;  %v2314_v16 = vrot.slane %v4595_v40, 1 }
  0x60   : > { %2261 = vrot.lane.b32.xlu1 %v2080_v33, %s4131_s9  ;;  %v4502_v33 = vld [vmem:[%s4224_s7 + $0x98] ss:$0 sps:$4 sm:$0x11]  }
  0x61   : > { %614 = vrot.lane.b32.xlu0 %v513_v38, %s4131_s9  ;;  %v2115_v38 = vrot.slane %v2113_v26, 1  ;;  %v668_v6 = vrot.slane %v4502_v33, 1  ;;  %v670_v26 = vrot.slane %v4505_v34, 1  ;;  %v2307_v32 = vsel %vm630_vm0, %v2305_v15, %v2306_v20  ;;  %v4637_v15 = vld [vmem:[%s4224_s7 + $0x78] sm:$0xff]  }
  0x62   : > { %v579_v34 = vrot.slane %v577_v21, 1  ;;  %v2166_v20 = vshrl.u32 %v4610_v55, 16 }
  0x63   : > { %v2116_v51 = vsel %vm405_vm1, %v2111_v37, %v2115_v38  ;;  %v4590_v37 = vld [vmem:[%s4224_s7 + $0xbc] ss:$0 sps:$4 sm:$0x11]   ;;  %v672_v43 = vsel %vm630_vm0, %v670_v26, %v671_v29 }
  0x64   : > { %695 = vrot.lane.b32.xlu1 %v657_v46, %s4130_s8  ;;  %v2122_v46 = vrot.slane %v2120_v30, 1  ;;  %v2142_v30 = vshrl.u32 %v4555_v4, 16 }
  0x65   : > { %616 = vrot.lane.b32.xlu0 %v525_v49, %s4131_s9  ;;  %v558_v49 = vshll.u32 %v4502_v33, 16  ;;  %v575_v33 = vshrl.u32 %v4562_v9, 16 }
  0x66   : > { %v2123_v58 = vor.u32 %v2122_v46, %v2118_v45  ;;  %v2147_v45 = vor.u32 %v2146_v25, %v2142_v30  ;;  %v1318_v30 = vshll.u32 %v4637_v15, 16  ;;  %v4656_v25 = vld [vmem:[%s4224_s7 + $0x84] sm:$0xff]  }
  0x67   : > { %v560_v60 = vrot.slane %v558_v49, 1  ;;  %v580_v47 = vor.u32 %v579_v34, %v575_v33  ;;  %v1316_v33 = vshrl.u32 %v4637_v15, 16  ;;  %v4662_v34 = vld [vmem:[%s5219_s1 + $0x30] sm:$0xff]  }
  0x68   : > { %2341 = vrot.lane.b32.xlu1 %v2295_v53, %s4130_s8  ;;  %v555_v53 = vrot.slane %v553_v39, 1  ;;  %v2128_v5 = vsel %vm405_vm1, %v2123_v58, %v2127_v59  ;;  %v589_v39 = vshll.u32 %v4579_v27, 16  ;;  %v2161_v58 = vshll.u32 %v4601_v44, 16  ;;  %3747 = vmatprep.subr.bf16.mxu0 %v4662_v34 }
  0x69   : > { %2263 = vrot.lane.b32.xlu0 %v2092_v2, %s4131_s9  ;;  %v3970_v2 = vld [vmem:[%s4224_s7 + $0x5c] ss:$0 sps:$4 sm:$0x11]  }
  0x6a   : > { %v556_v63 = vor.u32 %v555_v53, %v551_v52  ;;  %v2137_v13 = vshll.u32 %v3970_v2, 16  ;;  %v2309_v28 = vrot.slane %v3970_v2, 1  ;;  %v591_v50 = vrot.slane %v589_v39, 1 }
  0x6b   : > { %v2156_v52 = vshll.u32 %v4595_v40, 16  ;;  %v673_v53 = vrot.slane %v4562_v9, 1  ;;  %v2168_v2 = vshll.u32 %v4610_v55, 16 }
  0x6c   : > { %2343 = vrot.lane.b32.xlu1 %v2298_v7, %s4130_s8  ;;  %v572_v7 = vrot.slane %v570_v62, 1  ;;  %v561_v10 = vsel %vm405_vm1, %v556_v63, %v560_v60  ;;  %v2139_v24 = vrot.slane %v2137_v13, 1  ;;  %v2310_v42 = vsel %vm630_vm0, %v2308_v17, %v2309_v28 }
  0x6d   : > { %697 = vrot.lane.b32.xlu0 %v660_v12, %s4130_s8  ;;  %v2134_v12 = vrot.slane %v2132_v61, 1  ;;  %v2158_v63 = vrot.slane %v2156_v52, 1  ;;  %v1306_v13 = vshll.u32 %v4621_v0, 16  ;;  %v2170_v21 = vrot.slane %v2168_v2, 1  ;;  %v4692_v2 = vld [vmem:[%s4224_s7 + $0x84] sm:$0xff]  }
  0x6e   : > { %v573_v22 = vsel %vm405_vm1, %v568_v11, %v572_v7  ;;  %v2163_v7 = vrot.slane %v2161_v58, 1  ;;  %v1304_v28 = vshrl.u32 %v4621_v0, 16  ;;  %v1455_v52 = vrot.slane %v4621_v0, 1 }
  0x6f   : > { %v2135_v23 = vor.u32 %v2134_v12, %v2130_v8  ;;  %v4632_v8 = vld [vmem:[%s4224_s7 + $0x74] ss:$0 sps:$4 sm:$0x11]   ;;  %v1308_v29 = vrot.slane %v1306_v13, 1  ;;  %v2317_v58 = vrot.slane %v4610_v55, 1 }
  0x70   : > { %2265 = vrot.lane.b32.xlu1 %v2104_v18, %s4131_s9  ;;  %v3974_v18 = vld [vmem:[%s4224_s7 + $0xb0] ss:$0 sps:$4 sm:$0x11]   ;;  %v4700_v13 = vld [vmem:[%s4224_s7 + $0x98] ss:$0 sps:$4 sm:$0x11]  }
  0x71   : > { %618 = vrot.lane.b32.xlu0 %v537_v19, %s4131_s9  ;;  %v669_v19 = vsel %vm630_vm0, %v667_v3, %v668_v6  ;;  %v2140_v38 = vsel %vm405_vm1, %v2135_v23, %v2139_v24  ;;  %v674_v54 = vrot.slane %v3974_v18, 1  ;;  %v2312_v6 = vrot.slane %v4566_v14, 1  ;;  %v4650_v24 = vld [vmem:[%s4224_s7 + $0x80] ss:$0 sps:$4 sm:$0x11]  }
  0x72   : > { %v1311_v23 = vshll.u32 %v4632_v8, 16 }
  0x73   : > { %v675_v3 = vsel %vm630_vm0, %v673_v53, %v674_v54  ;;  %v4680_v53 = vld [vmem:[%s4224_s7 + $0x90] sm:$0xff]  }
  0x74   : > { %699 = vrot.lane.b32.xlu1 %v663_v31, %s4130_s8  ;;  %v2149_v31 = vshll.u32 %v4566_v14, 16  ;;  %v676_v14 = vrot.slane %v4579_v27, 1  ;;  %v4021_v54 = vld [vmem:[%s4224_s7 + $0xc] sm:$0xff]  }
  0x75   : > { %620 = vrot.lane.b32.xlu0 %v549_v36, %s4131_s9  ;;  %v582_v36 = vshll.u32 %v3974_v18, 16  ;;  %v2315_v18 = vrot.slane %v4601_v44, 1  ;;  %v1323_v44 = vshll.u32 %v4650_v24, 16 }
  0x76   : > { %v2151_v46 = vrot.slane %v2149_v31, 1 }
  0x77   : > { %v584_v49 = vrot.slane %v582_v36, 1  ;;  %v4020_v36 = vld [vmem:[%s4224_s7] sm:$0xff]  }
  0x78   : > { %2345 = vrot.lane.b32.xlu1 %v2301_v48, %s4130_s8  ;;  %v587_v48 = vshrl.u32 %v4579_v27, 16 }
  0x79   : > { %2267 = vrot.lane.b32.xlu0 %v2116_v51, %s4131_s9  ;;  %v594_v51 = vshll.u32 %v4590_v37, 16  ;;  %v585_v59 = vsel %vm405_vm1, %v580_v47, %v584_v49  ;;  %v1320_v49 = vrot.slane %v1318_v30, 1  ;;  %v4723_v30 = vld [vmem:[%s4224_s7 + $0x90] sm:$0xff]  }
  0x7a   : > { %v592_v60 = vor.u32 %v591_v50, %v587_v48  ;;  %v1309_v48 = vor.u32 %v1308_v29, %v1304_v28  ;;  %v2180_v50 = vshll.u32 %v4656_v25, 16 }
  0x7b   : > { %v596_v62 = vrot.slane %v594_v51, 1 }
  0x7c   : > { %2347 = vrot.lane.b32.xlu1 %v2304_v56, %s4130_s8  ;;  %v2152_v56 = vsel %vm405_vm1, %v2147_v45, %v2151_v46  ;;  %v4672_v45 = vld [vmem:[%s4224_s7 + $0x8c] ss:$0 sps:$4 sm:$0x11]  }
  0x7d   : > { %701 = vrot.lane.b32.xlu0 %v666_v57, %s4130_s8  ;;  %v2154_v57 = vshrl.u32 %v4595_v40, 16  ;;  %v597_v11 = vsel %vm405_vm1, %v592_v60, %v596_v62  ;;  %v1325_v62 = vrot.slane %v1323_v44, 1 }
  0x7f   : > { %v2159_v12 = vor.u32 %v2158_v63, %v2154_v57  ;;  %v1456_v57 = vrot.slane %v4632_v8, 1  ;;  %v2178_v63 = vshrl.u32 %v4656_v25, 16  ;;  %v2185_v8 = vshll.u32 %v4672_v45, 16 }
  0x80   : > { %2269 = vrot.lane.b32.xlu1 %v2128_v5, %s4131_s9  ;;  %v2311_v5 = vrot.slane %v4555_v4, 1  ;;  %v2173_v4 = vshll.u32 %v4618_v1, 16 }
  0x81   : > { %622 = vrot.lane.b32.xlu0 %v561_v10, %s4131_s9  ;;  %v2164_v17 = vsel %vm405_vm1, %v2159_v12, %v2163_v7  ;;  %v2182_v7 = vrot.slane %v2180_v50, 1  ;;  %v2187_v29 = vrot.slane %v2185_v8, 1 }
  0x83   : > { %v2183_v28 = vor.u32 %v2182_v7, %v2178_v63  ;;  %v1340_v7 = vshrl.u32 %v4723_v30, 16 }
  0x84   : > { %703 = vrot.lane.b32.xlu1 %v669_v19, %s4130_s8  ;;  %v677_v19 = vrot.slane %v4590_v37, 1 }
  0x85   : > { %624 = vrot.lane.b32.xlu0 %v573_v22, %s4131_s9  ;;  %v2313_v22 = vsel %vm630_vm0, %v2311_v5, %v2312_v6  ;;  %v1321_v6 = vor.u32 %v1320_v49, %v1316_v33  ;;  %v2320_v33 = vrot.slane %v4656_v25, 1  ;;  %v2188_v50 = vsel %vm405_vm1, %v2183_v28, %v2187_v29 }
  0x86   : > { %v678_v47 = vsel %vm630_vm0, %v676_v14, %v677_v19  ;;  %v4709_v19 = vld [vmem:[%s4224_s7 + $0x8c] ss:$0 sps:$4 sm:$0x11]  }
  0x88   : > { %2349 = vrot.lane.b32.xlu1 %v2307_v32, %s4130_s8  ;;  %v2175_v32 = vrot.slane %v2173_v4, 1 }
  0x89   : > { %2271 = vrot.lane.b32.xlu0 %v2140_v38, %s4131_s9  ;;  %v2316_v38 = vsel %vm630_vm0, %v2314_v16, %v2315_v18  ;;  %v2192_v16 = vshll.u32 %v4680_v53, 16  ;;  %v4023_v18 = vld [vmem:[%s4224_s7 + $0x18] sm:$0xff]  }
  0x8c   : > { %2351 = vrot.lane.b32.xlu1 %v2310_v42, %s4130_s8  ;;  %v2171_v42 = vor.u32 %v2170_v21, %v2166_v20  ;;  %v4018_v20 = vld [vmem:[%s5219_s1 + $0x38] sm:$0xff]  }
  0x8d   : > { %705 = vrot.lane.b32.xlu0 %v672_v43, %s4130_s8  ;;  %v1313_v43 = vrot.slane %v1311_v23, 1  ;;  %v2318_v23 = vrot.slane %v4618_v1, 1  ;;  %v2321_v1 = vrot.slane %v4672_v45, 1  ;;  %v4742_v45 = vld [vmem:[%s4224_s7 + $0x98] ss:$0 sps:$4 sm:$0x11]  }
  0x8e   : > { %v2176_v60 = vsel %vm405_vm1, %v2171_v42, %v2175_v32  ;;  %v2197_v42 = vshll.u32 %v4700_v13, 16  ;;  %v1347_v63 = vshll.u32 %v4742_v45, 16 }
  0x8f   : > { %v1314_v5 = vsel %vm405_vm1, %v1309_v48, %v1313_v43  ;;  %v1328_v43 = vshrl.u32 %v4692_v2, 16  ;;  %v2319_v44 = vsel %vm630_vm0, %v2317_v58, %v2318_v23  ;;  %v4784_v23 = vld [vmem:[%s4224_s7 + $0x9c] sm:$0xff]  }
  0x90   : > { %2273 = vrot.lane.b32.xlu1 %v2152_v56, %s4131_s9 }
  0x91   : > { %626 = vrot.lane.b32.xlu0 %v585_v59, %s4131_s9  ;;  %v4626_v61 = vpop.permute.xlu0 %681 }
  0x92   : > { %v680_v10 = vpop.permute.xlu1 %679 }
  0x94   : > { %707 = vrot.lane.b32.xlu1 %v675_v3, %s4130_s8 }
  0x95   : > { %628 = vrot.lane.b32.xlu0 %v597_v11, %s4131_s9 }
  0x96   : > { %v1480_v26 = vpop.permute.xlu1 %1479 }
  0x97   : > { %v599_v31 = vpop.permute.xlu0 %598 }
  0x98   : > { %v713_v37 = vsel %vm711_vm2, %v4020_v36, %v599_v31  ;;  %2353 = vrot.lane.b32.xlu1 %v2313_v22, %s4130_s8  ;;  %v1457_v22 = vsel %vm630_vm0, %v1455_v52, %v1456_v57  ;;  %v4024_v31 = vld [vmem:[%s5219_s1 + $0x18] sm:$0xff]   ;;  %v1458_v36 = vrot.slane %v4637_v15, 1  ;;  %v2322_v57 = vsel %vm630_vm0, %v2320_v33, %v2321_v1 }
  0x99   : > { %2275 = vrot.lane.b32.xlu0 %v2164_v17, %s4131_s9  ;;  %v746_v39 = vsel %vm744_vm3, %v713_v37, %v680_v10  ;;  %v4022_v10 = vld [vmem:[%s4224_s7 + $0xc] sm:$0xff]   ;;  %v1326_v17 = vsel %vm405_vm1, %v1321_v6, %v1325_v62  ;;  %v1459_v37 = vrot.slane %v4650_v24, 1  ;;  %v4752_v52 = vld [vmem:[%s4224_s7 + $0x9c] sm:$0xff]  }
  0x9a   : > { %3677 = vmatprep.mubr.msk.bf16.mxu1 %vm801_vm4, %v746_v39  ;;  %v1482_v46 = vpop.permute.xlu1 %1481  ;;  %v2194_v39 = vrot.slane %v2192_v16, 1 }
  0x9b   : > { %v1400_v51 = vpop.permute.xlu0 %1399  ;;  %v1460_v58 = vsel %vm630_vm0, %v1458_v36, %v1459_v37  ;;  %v2323_v37 = vrot.slane %v4680_v53, 1 }
  0x9c   : > { %v1512_v56 = vsel %vm711_vm2, %v4021_v54, %v1400_v51  ;;  %2355 = vrot.lane.b32.xlu1 %v2316_v38, %s4130_s8  ;;  %v2190_v38 = vshrl.u32 %v4680_v53, 16  ;;  %v1342_v51 = vshll.u32 %v4723_v30, 16 }
  0x9d   : > { %709 = vrot.lane.b32.xlu0 %v678_v47, %s4130_s8  ;;  %v1544_v59 = vsel %vm744_vm3, %v1512_v56, %v1480_v26  ;;  %v1330_v26 = vshll.u32 %v4692_v2, 16  ;;  %v4025_v47 = vld [vmem:[%s4224_s7 + $0x18] sm:$0xff]  }
  0x9e   : > { %3715 = vmatprep.mubr.msk.bf16.mxu0 %vm801_vm4, %v1544_v59  ;;  %v601_v3 = vpop.permute.xlu1 %600  ;;  %v2195_v59 = vor.u32 %v2194_v39, %v2190_v38  ;;  %v1344_v8 = vrot.slane %v1342_v51, 1  ;;  %v4797_v38 = vld [vmem:[%s4224_s7 + $0xb0] ss:$0 sps:$4 sm:$0x11]   ;;  %v2326_v51 = vrot.slane %v4752_v52, 1 }
  0x9f   : > { %v715_v11 = vsel %vm711_vm2, %v4022_v10, %v601_v3  ;;  %v1402_v12 = vpop.permute.xlu0 %1401  ;;  %v1332_v24 = vrot.slane %v1330_v26, 1  ;;  %v4026_v3 = vld [vmem:[%s4224_s7 + $0x24] sm:$0xff]   ;;  %v4027_v26 = vld [vmem:[%s4224_s7 + $0x30] sm:$0xff]  }
  0xa0   : > { %v1514_v4 = vsel %vm711_vm2, %v4023_v18, %v1402_v12  ;;  %2277 = vrot.lane.b32.xlu1 %v2176_v60, %s4131_s9  ;;  %v748_v14 = vsel %vm744_vm3, %v715_v11, %v4626_v61  ;;  %v4767_v10 = vld [vmem:[%s4224_s7 + $0xa4] ss:$0 sps:$4 sm:$0x11]   ;;  %v2204_v11 = vshll.u32 %v4752_v52, 16  ;;  %v1461_v18 = vrot.slane %v4692_v2, 1 }
  0xa1   : > { %1415 = vrot.lane.b32.xlu0 %v1314_v5, %s4131_s9  ;;  %3678 = vmatmul.mubr.msk.bf16.vlgmr.msra.gmra.mrb[0].mxu1 %vm801_vm4, %v748_v14  ;;  %v1546_v21 = vsel %vm744_vm3, %v1514_v4, %v1482_v46  ;;  %v4019_v46 = vld [vmem:[%s5219_s1 + $0x40] sm:$0xff]   ;;  %v1333_v60 = vor.u32 %v1332_v24, %v1328_v43  ;;  %v1462_v4 = vrot.slane %v4709_v19, 1  ;;  %v1345_v28 = vor.u32 %v1344_v8, %v1340_v7 }
  0xa2   : > { %3716 = vmatmul.mubr.msk.bf16.vlgmr.msra.gmra.mrb[0].mxu0 %vm801_vm4, %v1546_v21  ;;  %v1404_v61 = vpop.permute.xlu1 %1403  ;;  %3788 = vmatpush3.bf16.msra.mxu1 %v4024_v31  ;;  %v2202_v21 = vshrl.u32 %v4752_v52, 16  ;;  %v2209_v29 = vshll.u32 %v4767_v10, 16  ;;  %v4028_v31 = vld [vmem:[%s4224_s7 + $0x24] sm:$0xff]   ;;  %v1354_v24 = vshll.u32 %v4784_v23, 16 }
  0xa3   : > { %v603_v32 = vpop.permute.xlu0 %602  ;;  %3748 = vmatpush3.bf16.msra.mxu0 %v4662_v34  ;;  %3786 = vmatprep.subr.bf16.mxu1 %v4510_v35  ;;  %v1335_v34 = vshll.u32 %v4709_v19, 16  ;;  %v1516_v5 = vsel %vm711_vm2, %v4026_v3, %v1404_v61  ;;  %v2206_v19 = vrot.slane %v2204_v11, 1  ;;  %v1463_v39 = vsel %vm630_vm0, %v1461_v18, %v1462_v4  ;;  %v4029_v3 = vld [vmem:[%s4224_s7 + $0x30] sm:$0xff]  }
  0xa4   : > { %1495 = vrot.lane.b32.xlu1 %v1457_v22, %s4130_s8  ;;  %3749 = vmatprep.subr.bf16.mxu0 %v4018_v20  ;;  %v717_v48 = vsel %vm711_vm2, %v4025_v47, %v603_v32  ;;  %v4781_v22 = vld [vmem:[%s4224_s7 + $0xa8] sm:$0xff]  }
  0xa5   : > { %1417 = vrot.lane.b32.xlu0 %v1326_v17, %s4131_s9  ;;  %v1337_v62 = vrot.slane %v1335_v34, 1  ;;  %v2216_v43 = vshll.u32 %v4781_v22, 16  ;;  %v2207_v47 = vor.u32 %v2206_v19, %v2202_v21 }
  0xa6   : > { %v684_v49 = vpop.permute.xlu1 %683  ;;  %3789 = vmatpush3.bf16.msra.mxu1 %v4510_v35  ;;  %v2199_v35 = vrot.slane %v2197_v42, 1  ;;  %v2324_v42 = vrot.slane %v4700_v13, 1  ;;  %v1464_v13 = vrot.slane %v4723_v30, 1 }
  0xa7   : > { %v750_v54 = vsel %vm744_vm3, %v717_v48, %v684_v49  ;;  %v605_v56 = vpop.permute.xlu0 %604  ;;  %3750 = vmatpush3.bf16.msra.mxu0 %v4018_v20  ;;  %3787 = vmatprep.subr.bf16.mxu1 %v4520_v41  ;;  %v1338_v20 = vsel %vm405_vm1, %v1333_v60, %v1337_v62  ;;  %v2211_v48 = vrot.slane %v2209_v29, 1  ;;  %v4810_v49 = vld [vmem:[%s4224_s7 + $0xa8] sm:$0xff]   ;;  %v2218_v60 = vrot.slane %v2216_v43, 1  ;;  %v4844_v29 = vld [vmem:[%s4224_s7 + $0xbc] ss:$0 sps:$4 sm:$0x11]  }
  0xa8   : > { %2357 = vrot.lane.b32.xlu1 %v2319_v44, %s4130_s8  ;;  %3681 = vmatprep.mubr.msk.bf16.mxu1 %vm801_vm4, %v750_v54  ;;  %v2200_v14 = vsel %vm405_vm1, %v2195_v59, %v2199_v35  ;;  %v719_v32 = vsel %vm711_vm2, %v4028_v31, %v605_v56  ;;  %v4805_v44 = vld [vmem:[%s4224_s7 + $0xa4] ss:$0 sps:$4 sm:$0x11]   ;;  %v1465_v54 = vrot.slane %v4742_v45, 1  ;;  %v2327_v56 = vrot.slane %v4767_v10, 1  ;;  %v4831_v10 = vld [vmem:[%s4224_s7 + $0xb4] sm:$0xff]  }
  0xa9   : > { %2279 = vrot.lane.b32.xlu0 %v2188_v50, %s4131_s9  ;;  %3751 = vmatprep.subr.bf16.mxu0 %v4019_v46  ;;  %v1352_v59 = vshrl.u32 %v4784_v23, 16  ;;  %v2325_v35 = vsel %vm630_vm0, %v2323_v37, %v2324_v42  ;;  %v1356_v62 = vrot.slane %v1354_v24, 1  ;;  %v4824_v45 = vld [vmem:[%s4224_s7 + $0xb0] ss:$0 sps:$4 sm:$0x11]   ;;  %v2212_v7 = vsel %vm405_vm1, %v2207_v47, %v2211_v48  ;;  %v4853_v37 = vld [vmem:[%s4224_s7 + $0xc0] sm:$0xff]  }
  0xaa   : > { %v1484_v6 = vpop.permute.xlu1 %1483  ;;  %3790 = vmatpush3.bf16.msra.mxu1 %v4520_v41  ;;  %v1349_v41 = vrot.slane %v1347_v63, 1  ;;  %v1359_v63 = vshll.u32 %v4805_v44, 16  ;;  %v1366_v8 = vshll.u32 %v4810_v49, 16  ;;  %v1466_v18 = vsel %vm630_vm0, %v1464_v13, %v1465_v54  ;;  %v4032_v13 = vld [vmem:[%s4224_s7 + $0x3c] sm:$0xff]  }
  0xab   : > { %v1548_v12 = vsel %vm744_vm3, %v1516_v5, %v1484_v6  ;;  %v1406_v16 = vpop.permute.xlu0 %1405  ;;  %3752 = vmatpush3.bf16.msra.mxu0 %v4019_v46  ;;  %v1371_v21 = vshll.u32 %v4824_v45, 16  ;;  %v2228_v31 = vshll.u32 %v4831_v10, 16  ;;  %v2226_v24 = vshrl.u32 %v4831_v10, 16 }
  0xac   : > { %2359 = vrot.lane.b32.xlu1 %v2322_v57, %s4130_s8  ;;  %3719 = vmatprep.mubr.msk.bf16.mxu0 %vm801_vm4, %v1548_v12  ;;  %v1518_v61 = vsel %vm711_vm2, %v4027_v26, %v1406_v16  ;;  %v1350_v46 = vsel %vm405_vm1, %v1345_v28, %v1349_v41  ;;  %v2214_v57 = vshrl.u32 %v4781_v22, 16  ;;  %v2328_v16 = vsel %vm630_vm0, %v2326_v51, %v2327_v56  ;;  %v4030_v26 = vld [vmem:[%s4224_s7 + $0x3c] sm:$0xff]  }
  0xad   : > { %1497 = vrot.lane.b32.xlu0 %v1460_v58, %s4130_s8  ;;  %v2221_v58 = vshll.u32 %v4797_v38, 16  ;;  %v1361_v41 = vrot.slane %v1359_v63, 1  ;;  %v1364_v28 = vshrl.u32 %v4810_v49, 16  ;;  %v1368_v19 = vrot.slane %v1366_v8, 1 }
  0xae   : > { %v1486_v17 = vpop.permute.xlu1 %1485  ;;  %v1373_v43 = vrot.slane %v1371_v21, 1  ;;  %v2233_v51 = vshll.u32 %v4844_v29, 16  ;;  %v2330_v63 = vrot.slane %v4797_v38, 1  ;;  %v1470_v38 = vrot.slane %v4810_v49, 1 }
  0xaf   : > { %v1550_v33 = vsel %vm744_vm3, %v1518_v61, %v1486_v17  ;;  %v686_v1 = vpop.permute.xlu0 %685  ;;  %v2223_v4 = vrot.slane %v2221_v58, 1 }
  0xb0   : > { %v752_v36 = vsel %vm744_vm3, %v719_v32, %v686_v1  ;;  %2281 = vrot.lane.b32.xlu1 %v2200_v14, %s4131_s9  ;;  %3720 = vmatmul.mubr.msk.bf16.gmra.mrb[4].mxu0 %vm801_vm4, %v1550_v33  ;;  %v2219_v14 = vor.u32 %v2218_v60, %v2214_v57  ;;  %v1467_v1 = vrot.slane %v4784_v23, 1 }
  0xb1   : > { %1419 = vrot.lane.b32.xlu0 %v1338_v20, %s4131_s9  ;;  %3682 = vmatmul.mubr.msk.bf16.gmra.mrb[4].mxu1 %vm801_vm4, %v752_v36  ;;  %v1357_v20 = vor.u32 %v1356_v62, %v1352_v59  ;;  %v1468_v36 = vrot.slane %v4805_v44, 1  ;;  %v2230_v44 = vrot.slane %v2228_v31, 1  ;;  %v4872_v59 = vld [vmem:[%s4224_s7 + $0xc8] ss:$0 sps:$4 sm:$0x11]   ;;  %v2329_v62 = vrot.slane %v4781_v22, 1 }
  0xb2   : > { %v1408_v34 = vpop.permute.xlu1 %1407  ;;  %v2245_v21 = vshll.u32 %v4872_v59, 16 }
  0xb3   : > { %v607_v50 = vpop.permute.xlu0 %606  ;;  %v1520_v61 = vsel %vm711_vm2, %v4030_v26, %v1408_v34  ;;  %v1362_v42 = vsel %vm405_vm1, %v1357_v20, %v1361_v41  ;;  %v4860_v34 = vld [vmem:[%s4224_s7 + $0xb4] sm:$0xff]   ;;  %v1469_v60 = vsel %vm630_vm0, %v1467_v1, %v1468_v36  ;;  %v2231_v8 = vor.u32 %v2230_v44, %v2226_v24  ;;  %v4907_v1 = vld [vmem:[%s4224_s7 + $0xcc] sm:$0xff]  }
  0xb4   : > { %1499 = vrot.lane.b32.xlu1 %v1463_v39, %s4130_s8  ;;  %v721_v5 = vsel %vm711_vm2, %v4029_v3, %v607_v50  ;;  %v2224_v39 = vsel %vm405_vm1, %v2219_v14, %v2223_v4  ;;  %v1369_v50 = vor.u32 %v1368_v19, %v1364_v28  ;;  %v4881_v3 = vld [vmem:[%s4224_s7 + $0xbc] ss:$0 sps:$4 sm:$0x11]   ;;  %v2333_v4 = vrot.slane %v4844_v29, 1  ;;  %v4033_v29 = vld [vmem:[%s4224_s7 + $0x48] sm:$0xff]   ;;  %v4034_v44 = vld [vmem:[%s4224_s7 + $0x54] sm:$0xff]  }
  0xb5   : > { %1421 = vrot.lane.b32.xlu0 %v1350_v46, %s4131_s9  ;;  %v4031_v46 = vld [vmem:[%s4224_s7 + $0x48] sm:$0xff]   ;;  %v1471_v14 = vrot.slane %v4824_v45, 1  ;;  %v2238_v20 = vshrl.u32 %v4853_v37, 16  ;;  %v2331_v26 = vsel %vm630_vm0, %v2329_v62, %v2330_v63  ;;  %v1383_v28 = vshll.u32 %v4881_v3, 16 }
  0xb6   : > { %v688_v6 = vpop.permute.xlu1 %687  ;;  %v4900_v19 = vld [vmem:[%s4224_s7 + $0xc8] ss:$0 sps:$4 sm:$0x11]   ;;  %v1473_v62 = vrot.slane %v4860_v34, 1  ;;  %v1474_v63 = vrot.slane %v4881_v3, 1 }
  0xb7   : > { %v754_v11 = vsel %vm744_vm3, %v721_v5, %v688_v6  ;;  %v609_v12 = vpop.permute.xlu0 %608  ;;  %v1378_v5 = vshll.u32 %v4860_v34, 16 }
  0xb8   : > { %2361 = vrot.lane.b32.xlu1 %v2325_v35, %s4130_s8  ;;  %3685 = vmatprep.mubr.msk.bf16.mxu1 %vm801_vm4, %v754_v11  ;;  %v723_v54 = vsel %vm711_vm2, %v4032_v13, %v609_v12  ;;  %v2240_v35 = vshll.u32 %v4853_v37, 16  ;;  %v2235_v11 = vrot.slane %v2233_v51, 1  ;;  %v4886_v12 = vld [vmem:[%s4224_s7 + $0xc0] sm:$0xff]  }
  0xb9   : > { %2283 = vrot.lane.b32.xlu0 %v2212_v7, %s4131_s9  ;;  %v1374_v7 = vsel %vm405_vm1, %v1369_v50, %v1373_v43  ;;  %v1472_v43 = vsel %vm630_vm0, %v1470_v38, %v1471_v14  ;;  %v1395_v50 = vshll.u32 %v4900_v19, 16 }
  0xba   : > { %v1488_v17 = vpop.permute.xlu1 %1487  ;;  %v2242_v41 = vrot.slane %v2240_v35, 1 }
  0xbb   : > { %v1552_v32 = vsel %vm744_vm3, %v1520_v61, %v1488_v17  ;;  %v1410_v33 = vpop.permute.xlu0 %1409  ;;  %v1376_v61 = vshrl.u32 %v4860_v34, 16  ;;  %v1380_v17 = vrot.slane %v1378_v5, 1 }
  0xbc   : > { %2363 = vrot.lane.b32.xlu1 %v2328_v16, %s4130_s8  ;;  %3723 = vmatprep.mubr.msk.bf16.mxu0 %vm801_vm4, %v1552_v32  ;;  %v1522_v47 = vsel %vm711_vm2, %v4031_v46, %v1410_v33  ;;  %v2236_v32 = vsel %vm405_vm1, %v2231_v8, %v2235_v11  ;;  %v1390_v33 = vshll.u32 %v4886_v12, 16  ;;  %v2243_v24 = vor.u32 %v2242_v41, %v2238_v20  ;;  %v4035_v11 = vld [vmem:[%s4224_s7 + $0x60] sm:$0xff]   ;;  %v4036_v20 = vld [vmem:[%s4224_s7 + $0x54] sm:$0xff]  }
  0xbd   : > { %1501 = vrot.lane.b32.xlu0 %v1466_v18, %s4130_s8  ;;  %v2332_v18 = vrot.slane %v4831_v10, 1  ;;  %v2247_v46 = vrot.slane %v2245_v21, 1  ;;  %v2250_v8 = vshrl.u32 %v4907_v1, 16 }
  0xbe   : > { %v1490_v48 = vpop.permute.xlu1 %1489 }
  0xbf   : > { %v1554_v56 = vsel %vm744_vm3, %v1522_v47, %v1490_v48  ;;  %v690_v57 = vpop.permute.xlu0 %689  ;;  %v1381_v47 = vor.u32 %v1380_v17, %v1376_v61  ;;  %v1385_v48 = vrot.slane %v1383_v28, 1  ;;  %v2248_v5 = vsel %vm405_vm1, %v2243_v24, %v2247_v46 }
  0xc0   : > { %v756_v58 = vsel %vm744_vm3, %v723_v54, %v690_v57  ;;  %2285 = vrot.lane.b32.xlu1 %v2224_v39, %s4131_s9  ;;  %3724 = vmatmul.mubr.msk.bf16.gmra.mrb[8].mxu0 %vm801_vm4, %v1554_v56  ;;  %v1388_v54 = vshrl.u32 %v4886_v12, 16  ;;  %v1392_v56 = vrot.slane %v1390_v33, 1  ;;  %v4017_v57 = vld [vmem:[%s4224_s7 + $0xd4] ss:$0 sps:$4 sm:$0x11]   ;;  %v1475_v61 = vsel %vm630_vm0, %v1473_v62, %v1474_v63  ;;  %v4040_v63 = vld [vmem:[%s4224_s7 + $0x6c] sm:$0xff]  }
  0xc1   : > { %1423 = vrot.lane.b32.xlu0 %v1362_v42, %s4131_s9  ;;  %3686 = vmatmul.mubr.msk.bf16.gmra.mrb[8].mxu1 %vm801_vm4, %v756_v58  ;;  %v2334_v42 = vsel %vm630_vm0, %v2332_v18, %v2333_v4  ;;  %v2252_v58 = vshll.u32 %v4907_v1, 16  ;;  %v2257_v14 = vshll.u32 %v4017_v57, 16  ;;  %v2335_v17 = vrot.slane %v4853_v37, 1 }
  0xc2   : > { %v1412_v6 = vpop.permute.xlu1 %1411  ;;  %v1393_v4 = vor.u32 %v1392_v56, %v1388_v54  ;;  %v2336_v28 = vrot.slane %v4872_v59, 1 }
  0xc3   : > { %v611_v16 = vpop.permute.xlu0 %610  ;;  %v1524_v51 = vsel %vm711_vm2, %v4034_v44, %v1412_v6  ;;  %v1386_v6 = vsel %vm405_vm1, %v1381_v47, %v1385_v48  ;;  %v2254_v38 = vrot.slane %v2252_v58, 1  ;;  %v1476_v47 = vrot.slane %v4886_v12, 1 }
  0xc4   : > { %1503 = vrot.lane.b32.xlu1 %v1469_v60, %s4130_s8  ;;  %v725_v31 = vsel %vm711_vm2, %v4033_v29, %v611_v16  ;;  %v1477_v48 = vrot.slane %v4900_v19, 1 }
  0xc5   : > { %1425 = vrot.lane.b32.xlu0 %v1374_v7, %s4131_s9  ;;  %v1397_v7 = vrot.slane %v1395_v50, 1 }
  0xc6   : > { %v692_v45 = vpop.permute.xlu1 %691 }
  0xc7   : > { %v758_v36 = vsel %vm744_vm3, %v725_v31, %v692_v45  ;;  %v613_v39 = vpop.permute.xlu0 %612  ;;  %v1398_v31 = vsel %vm405_vm1, %v1393_v4, %v1397_v7  ;;  %v2255_v45 = vor.u32 %v2254_v38, %v2250_v8 }
  0xc8   : > { %2365 = vrot.lane.b32.xlu1 %v2331_v26, %s4130_s8  ;;  %3689 = vmatprep.mubr.msk.bf16.mxu1 %vm801_vm4, %v758_v36  ;;  %v727_v41 = vsel %vm711_vm2, %v4036_v20, %v613_v39  ;;  %v2337_v36 = vsel %vm630_vm0, %v2335_v17, %v2336_v28  ;;  %v2338_v39 = vrot.slane %v4907_v1, 1  ;;  %v4043_v17 = vld [vmem:[%s4224_s7 + $0x3c] sm:$0xff]  }
  0xc9   : > { %2287 = vrot.lane.b32.xlu0 %v2236_v32, %s4131_s9  ;;  %v2259_v32 = vrot.slane %v2257_v14, 1 }
  0xca   : > { %v1492_v13 = vpop.permute.xlu1 %1491 }
  0xcb   : > { %v1556_v35 = vsel %vm744_vm3, %v1524_v51, %v1492_v13  ;;  %v1414_v60 = vpop.permute.xlu0 %1413  ;;  %v2260_v46 = vsel %vm405_vm1, %v2255_v45, %v2259_v32  ;;  %v4038_v13 = vld [vmem:[%s4224_s7 + $0x18] sm:$0xff]  }
  0xcc   : > { %2367 = vrot.lane.b32.xlu1 %v2334_v42, %s4130_s8  ;;  %3727 = vmatprep.mubr.msk.bf16.mxu0 %vm801_vm4, %v1556_v35  ;;  %v1526_v16 = vsel %vm711_vm2, %v4035_v11, %v1414_v60  ;;  %v2339_v42 = vrot.slane %v4017_v57, 1  ;;  %v1478_v57 = vsel %vm630_vm0, %v1476_v47, %v1477_v48  ;;  %v4039_v35 = vld [vmem:[%s4224_s7 + $0x24] sm:$0xff]  }
  0xcd   : > { %1505 = vrot.lane.b32.xlu0 %v1472_v43, %s4130_s8  ;;  %v4037_v43 = vld [vmem:[%s4224_s7 + $0x60] sm:$0xff]   ;;  %v4046_v48 = vld [vmem:[%s4224_s7 + $0x48] sm:$0xff]  }
  0xce   : > { %v1494_v18 = vpop.permute.xlu1 %1493  ;;  %v2340_v51 = vsel %vm630_vm0, %v2338_v39, %v2339_v42 }
  0xcf   : > { %v1558_v3 = vsel %vm744_vm3, %v1526_v16, %v1494_v18  ;;  %v694_v21 = vpop.permute.xlu0 %693  ;;  %v4041_v18 = vld [vmem:[%s4224_s7 + $0x78] sm:$0xff]  }
  0xd0   : > { %v760_v26 = vsel %vm744_vm3, %v727_v41, %v694_v21  ;;  %2289 = vrot.lane.b32.xlu1 %v2248_v5, %s4131_s9  ;;  %3728 = vmatmul.mubr.msk.bf16.gmra.mrb[12].mxu0 %vm801_vm4, %v1558_v3  ;;  %v4042_v41 = vld [vmem:[%s4224_s7 + $0x30] sm:$0xff]  }
  0xd1   : > { %1427 = vrot.lane.b32.xlu0 %v1386_v6, %s4131_s9  ;;  %3690 = vmatmul.mubr.msk.bf16.gmra.mrb[12].mxu1 %vm801_vm4, %v760_v26 }
  0xd2   : > { %v2262_v29 = vpop.permute.xlu1 %2261 }
  0xd3   : > { %v615_v33 = vpop.permute.xlu0 %614  ;;  %v2374_v54 = vsel %vm711_vm2, %v4038_v13, %v2262_v29 }
  0xd4   : > { %1507 = vrot.lane.b32.xlu1 %v1475_v61, %s4130_s8  ;;  %v729_v24 = vsel %vm711_vm2, %v4037_v43, %v615_v33  ;;  %v4045_v43 = vld [vmem:[%s4224_s7 + $0x90] sm:$0xff]  }
  0xd5   : > { %1429 = vrot.lane.b32.xlu0 %v1398_v31, %s4131_s9  ;;  %v4044_v31 = vld [vmem:[%s4224_s7 + $0x84] sm:$0xff]  }
  0xd6   : > { %v696_v59 = vpop.permute.xlu1 %695 }
  0xd7   : > { %v762_v50 = vsel %vm744_vm3, %v729_v24, %v696_v59  ;;  %v617_v44 = vpop.permute.xlu0 %616 }
  0xd8   : > { %2369 = vrot.lane.b32.xlu1 %v2337_v36, %s4130_s8  ;;  %3693 = vmatprep.mubr.msk.bf16.mxu1 %vm801_vm4, %v762_v50  ;;  %v731_v5 = vsel %vm711_vm2, %v4040_v63, %v617_v44 }
  0xd9   : > { %2291 = vrot.lane.b32.xlu0 %v2260_v46, %s4131_s9  ;;  %s208_s9 = sand.u32 1, %s4112_s13  }
  0xda   : > { %v2342_v56 = vpop.permute.xlu1 %2341  ;;  %s3185_s18 = sshll.u32 %s208_s9, 7  ;;  %s5172_s15 = scalar_lea.sflag [#allocation4], %s208_s9 }
  0xdb   : > { %v2406_v19 = vsel %vm744_vm3, %v2374_v54, %v2342_v56  ;;  %v2264_v58 = vpop.permute.xlu0 %2263  ;;  %v4047_v54 = vld [vmem:[%s4224_s7 + $0x54] sm:$0xff]   ;;  %s5109_s19 = scalar_lea.vmem [#allocation3], %s3185_s18 }
  0xdc   : > { %2371 = vrot.lane.b32.xlu1 %v2340_v51, %s4130_s8  ;;  %3753 = vmatprep.mubr.msk.bf16.mxu0 %vm801_vm4, %v2406_v19  ;;  %v2376_v60 = vsel %vm711_vm2, %v4039_v35, %v2264_v58  ;;  %v4048_v19 = vld [vmem:[%s4224_s7 + $0x9c] sm:$0xff]   ;;  %s3064_s23 = sshll.u32 %s5109_s19, 4  ;;  %s5166_s23 = int_to_ptr.vmem [resolvable:$true] %s3064_s23 }
  0xdd   : > { %1509 = vrot.lane.b32.xlu0 %v1478_v57, %s4130_s8  ;;  %s4050_s29 = scalar_lea.vmem %s5166_s23, 2048  ;;  %p4057_p1 = scmp.lt.s32.totalorder %s5166_s23, %s4055_s4 }
  0xde   : > { %v2344_v62 = vpop.permute.xlu1 %2343  ;;  %p4051_p12 = scmp.ne.s32.totalorder %s5166_s23, %s4050_s29  ;;  %p4058_p2 = scmp.lt.s32.totalorder %s4056_s5, %s4050_s29 }
  0xdf   : > { %v2408_v6 = vsel %vm744_vm3, %v2376_v60, %v2344_v62  ;;  %v698_v7 = vpop.permute.xlu0 %697 }
  0xe0   : > { %v764_v8 = vsel %vm744_vm3, %v731_v5, %v698_v7  ;;  %3754 = vmatmul.mubr.msk.bf16.vlgmr.msra.gmra.mrb[0].mxu0 %vm801_vm4, %v2408_v6  ;;  %p4052_p13 = pnand %p4051_p12, %p4195_p4  ;;  %p4059_p3 = por %p4058_p2, %p4057_p1 }
  0xe1   : > { %3694 = vmatmul.mubr.msk.bf16.gmra.mrb[16].mxu1 %vm801_vm4, %v764_v8 }
  0xe2   : > { %v2266_v11 = vpop.permute.xlu1 %2265  ;;  %p4053_p0 = pneg %p4052_p13 }
  0xe3   : > { %v619_v16 = vpop.permute.xlu0 %618  ;;  %v2378_v3 = vsel %vm711_vm2, %v4042_v41, %v2266_v11 }
  0xe4   : > { %v733_v4 = vsel %vm711_vm2, %v4041_v18, %v619_v16  ;;  %v4049_v16 = vld [vmem:[%s4224_s7 + $0x60] sm:$0xff]   ;;  %p4060_p5 = pnand %p4059_p3, %p4053_p0 }
  0xe6   : > { %v700_v38 = vpop.permute.xlu1 %699 }
  0xe7   : > { %v766_v14 = vsel %vm744_vm3, %v733_v4, %v700_v38  ;;  %v621_v20 = vpop.permute.xlu0 %620 }
  0xe8   : > { %3697 = vmatprep.mubr.msk.bf16.mxu1 %vm801_vm4, %v766_v14  ;;  %v735_v45 = vsel %vm711_vm2, %v4044_v31, %v621_v20 }
  0xea   : > { %v2346_v21 = vpop.permute.xlu1 %2345 }
  0xeb   : > { %v2410_v26 = vsel %vm744_vm3, %v2378_v3, %v2346_v21  ;;  %v2268_v61 = vpop.permute.xlu0 %2267 }
  0xec   : > { %3757 = vmatprep.mubr.msk.bf16.mxu0 %vm801_vm4, %v2410_v26  ;;  %v2380_v28 = vsel %vm711_vm2, %v4043_v17, %v2268_v61 }
  0xee   : > { %v2348_v29 = vpop.permute.xlu1 %2347 }
  0xef   : > { %v2412_v32 = vsel %vm744_vm3, %v2380_v28, %v2348_v29  ;;  %v702_v33 = vpop.permute.xlu0 %701 }
  0xf0   : > { %v768_v36 = vsel %vm744_vm3, %v735_v45, %v702_v33  ;;  %3758 = vmatmul.mubr.msk.bf16.gmra.mrb[4].mxu0 %vm801_vm4, %v2412_v32 }
  0xf1   : > { %3698 = vmatmul.mubr.msk.bf16.gmra.mrb[20].mxu1 %vm801_vm4, %v768_v36 }
  0xf2   : > { %v2270_v39 = vpop.permute.xlu1 %2269 }
  0xf3   : > { %v623_v42 = vpop.permute.xlu0 %622  ;;  %v2382_v50 = vsel %vm711_vm2, %v4046_v48, %v2270_v39 }
  0xf4   : > { %v737_v24 = vsel %vm711_vm2, %v4045_v43, %v623_v42 }
  0xf6   : > { %v704_v59 = vpop.permute.xlu1 %703 }
  0xf7   : > { %v770_v46 = vsel %vm744_vm3, %v737_v24, %v704_v59  ;;  %v625_v47 = vpop.permute.xlu0 %624 }
  0xf8   : > { %3701 = vmatprep.mubr.msk.bf16.mxu1 %vm801_vm4, %v770_v46  ;;  %v739_v58 = vsel %vm711_vm2, %v4048_v19, %v625_v47 }
  0xfa   : > { %v2350_v44 = vpop.permute.xlu1 %2349 }
  0xfb   : > { %v2414_v51 = vsel %vm744_vm3, %v2382_v50, %v2350_v44  ;;  %v2272_v13 = vpop.permute.xlu0 %2271 }
  0xfc   : > { %3761 = vmatprep.mubr.msk.bf16.mxu0 %vm801_vm4, %v2414_v51  ;;  %v2384_v56 = vsel %vm711_vm2, %v4047_v54, %v2272_v13 }
  0xfe   : > { %v2352_v57 = vpop.permute.xlu1 %2351 }
  0xff   : > { %v2416_v35 = vsel %vm744_vm3, %v2384_v56, %v2352_v57  ;;  %v706_v60 = vpop.permute.xlu0 %705 }
 0x100   : > { %v772_v62 = vsel %vm744_vm3, %v739_v58, %v706_v60  ;;  %3762 = vmatmul.mubr.msk.bf16.gmra.mrb[8].mxu0 %vm801_vm4, %v2416_v35 }
 0x101   : > { %3702 = vmatmul.mubr.msk.bf16.gmra.mrb[24].mxu1 %vm801_vm4, %v772_v62 }
 0x102   : > { %v2274_v63 = vpop.permute.xlu1 %2273 }
 0x103   : > { %v627_v5 = vpop.permute.xlu0 %626  ;;  %v2386_v18 = vsel %vm711_vm2, %v4049_v16, %v2274_v63 }
 0x104   : > { %v741_v6 = vsel %vm711_vm2, %v4562_v9, %v627_v5 }
 0x106   : > { %v708_v7 = vpop.permute.xlu1 %707 }
 0x107   : > { %v774_v8 = vsel %vm744_vm3, %v741_v6, %v708_v7  ;;  %v629_v11 = vpop.permute.xlu0 %628 }
 0x108   : > { %3705 = vmatprep.mubr.msk.bf16.mxu1 %vm801_vm4, %v774_v8  ;;  %v743_v9 = vsel %vm711_vm2, %v4579_v27, %v629_v11 }
 0x10a   : > { %v2354_v4 = vpop.permute.xlu1 %2353 }
 0x10b   : > { %v2418_v38 = vsel %vm744_vm3, %v2386_v18, %v2354_v4  ;;  %v2276_v14 = vpop.permute.xlu0 %2275 }
 0x10c   : > { %3765 = vmatprep.mubr.msk.bf16.mxu0 %vm801_vm4, %v2418_v38  ;;  %v2388_v20 = vsel %vm711_vm2, %v4595_v40, %v2276_v14 }
 0x10e   : > { %v2356_v41 = vpop.permute.xlu1 %2355 }
 0x10f   : > { %v2420_v3 = vsel %vm744_vm3, %v2388_v20, %v2356_v41  ;;  %v710_v21 = vpop.permute.xlu0 %709 }
 0x110   : > { %v776_v26 = vsel %vm744_vm3, %v743_v9, %v710_v21  ;;  %3766 = vmatmul.mubr.msk.bf16.gmra.mrb[12].mxu0 %vm801_vm4, %v2420_v3 }
 0x111   : > { %3706 = vmatmul.mubr.msk.bf16.gmra.mrb[28].mxu1 %vm801_vm4, %v776_v26 }
 0x112   : > { %v2278_v61 = vpop.permute.xlu1 %2277 }
 0x113   : > { %v1416_v17 = vpop.permute.xlu0 %1415  ;;  %v2390_v27 = vsel %vm711_vm2, %v4610_v55, %v2278_v61 }
 0x114   : > { %v1528_v28 = vsel %vm711_vm2, %v4621_v0, %v1416_v17 }
 0x116   : > { %v1496_v29 = vpop.permute.xlu1 %1495 }
 0x117   : > { %v1560_v40 = vsel %vm744_vm3, %v1528_v28, %v1496_v29  ;;  %v1418_v31 = vpop.permute.xlu0 %1417 }
 0x118   : > { %3731 = vmatprep.mubr.msk.bf16.mxu1 %vm801_vm4, %v1560_v40  ;;  %v1530_v0 = vsel %vm711_vm2, %v4637_v15, %v1418_v31 }
 0x11a   : > { %v2358_v45 = vpop.permute.xlu1 %2357 }
 0x11b   : > { %v2422_v32 = vsel %vm744_vm3, %v2390_v27, %v2358_v45  ;;  %v2280_v33 = vpop.permute.xlu0 %2279 }
 0x11c   : > { %3769 = vmatprep.mubr.msk.bf16.mxu0 %vm801_vm4, %v2422_v32  ;;  %v2392_v36 = vsel %vm711_vm2, %v4656_v25, %v2280_v33 }
 0x11e   : > { %v2360_v39 = vpop.permute.xlu1 %2359 }
 0x11f   : > { %v2424_v42 = vsel %vm744_vm3, %v2392_v36, %v2360_v39  ;;  %v1498_v43 = vpop.permute.xlu0 %1497 }
 0x120   : > { %v1562_v24 = vsel %vm744_vm3, %v1530_v0, %v1498_v43  ;;  %3770 = vmatmul.mubr.msk.bf16.gmra.mrb[16].mxu0 %vm801_vm4, %v2424_v42 }
 0x121   : > { %3732 = vmatmul.mubr.msk.bf16.vlgmr.msra.gmra.mrb[16].mxu1 %vm801_vm4, %v1562_v24 }
 0x122   : > { %v2282_v55 = vpop.permute.xlu1 %2281 }
 0x123   : > { %v1420_v59 = vpop.permute.xlu0 %1419  ;;  %v2394_v15 = vsel %vm711_vm2, %v4680_v53, %v2282_v55 }
 0x124   : > { %v1532_v46 = vsel %vm711_vm2, %v4692_v2, %v1420_v59  ;;  %v5100_v59 = vld [vmem:[%s5220_s2] ss:$0 sm:$0xff] }
 0x126   : > { %v1500_v47 = vpop.permute.xlu1 %1499 }
 0x127   : > { %v1564_v25 = vsel %vm744_vm3, %v1532_v46, %v1500_v47  ;;  %v1422_v48 = vpop.permute.xlu0 %1421 }
 0x128   : > { %3735 = vmatprep.mubr.msk.bf16.mxu1 %vm801_vm4, %v1564_v25  ;;  %v1534_v2 = vsel %vm711_vm2, %v4723_v30, %v1422_v48 }
 0x12a   : > { %v2362_v50 = vpop.permute.xlu1 %2361 }
 0x12b   : > { %v2426_v44 = vsel %vm744_vm3, %v2394_v15, %v2362_v50  ;;  %v2284_v51 = vpop.permute.xlu0 %2283 }
 0x12c   : > { %3773 = vmatprep.mubr.msk.bf16.mxu0 %vm801_vm4, %v2426_v44  ;;  %v2396_v13 = vsel %vm711_vm2, %v4752_v52, %v2284_v51 }
 0x12e   : > { %v2364_v54 = vpop.permute.xlu1 %2363 }
 0x12f   : > { %v2428_v56 = vsel %vm744_vm3, %v2396_v13, %v2364_v54  ;;  %v1502_v57 = vpop.permute.xlu0 %1501 }
 0x130   : > { %v1566_v19 = vsel %vm744_vm3, %v1534_v2, %v1502_v57  ;;  %3774 = vmatmul.mubr.msk.bf16.gmra.mrb[20].mxu0 %vm801_vm4, %v2428_v56 }
 0x131   : > { %3736 = vmatmul.mubr.msk.bf16.gmra.mrb[20].mxu1 %vm801_vm4, %v1566_v19 }
 0x132   : > { %v2286_v53 = vpop.permute.xlu1 %2285 }
 0x133   : > { %v1424_v58 = vpop.permute.xlu0 %1423  ;;  %v2398_v30 = vsel %vm711_vm2, %v4781_v22, %v2286_v53 }
 0x134   : > { %v1536_v35 = vsel %vm711_vm2, %v4784_v23, %v1424_v58 }
 0x136   : > { %v1504_v60 = vpop.permute.xlu1 %1503 }
 0x137   : > { %v1568_v52 = vsel %vm744_vm3, %v1536_v35, %v1504_v60  ;;  %v1426_v62 = vpop.permute.xlu0 %1425 }
 0x138   : > { %3739 = vmatprep.mubr.msk.bf16.mxu1 %vm801_vm4, %v1568_v52  ;;  %v1538_v23 = vsel %vm711_vm2, %v4810_v49, %v1426_v62 }
 0x13a   : > { %v2366_v63 = vpop.permute.xlu1 %2365 }
 0x13b   : > { %v2430_v5 = vsel %vm744_vm3, %v2398_v30, %v2366_v63  ;;  %v2288_v6 = vpop.permute.xlu0 %2287 }
 0x13c   : > { %3777 = vmatprep.mubr.msk.bf16.mxu0 %vm801_vm4, %v2430_v5  ;;  %v2400_v7 = vsel %vm711_vm2, %v4831_v10, %v2288_v6 }
 0x13e   : > { %v2368_v8 = vpop.permute.xlu1 %2367 }
 0x13f   : > { %v2432_v11 = vsel %vm744_vm3, %v2400_v7, %v2368_v8  ;;  %v1506_v16 = vpop.permute.xlu0 %1505 }
 0x140   : > { %v1570_v18 = vsel %vm744_vm3, %v1538_v23, %v1506_v16  ;;  %3778 = vmatmul.mubr.msk.bf16.gmra.mrb[24].mxu0 %vm801_vm4, %v2432_v11 }
 0x141   : > { %3740 = vmatmul.mubr.msk.bf16.gmra.mrb[24].mxu1 %vm801_vm4, %v1570_v18 }
 0x142   : > { %v2290_v22 = vpop.permute.xlu1 %2289 }
 0x143   : > { %v1428_v4 = vpop.permute.xlu0 %1427  ;;  %v2402_v49 = vsel %vm711_vm2, %v4853_v37, %v2290_v22 }
 0x144   : > { %v1540_v38 = vsel %vm711_vm2, %v4860_v34, %v1428_v4 }
 0x146   : > { %v1508_v14 = vpop.permute.xlu1 %1507 }
 0x147   : > { %v1572_v10 = vsel %vm744_vm3, %v1540_v38, %v1508_v14  ;;  %v1430_v20 = vpop.permute.xlu0 %1429 }
 0x148   : > { %3743 = vmatprep.mubr.msk.bf16.mxu1 %vm801_vm4, %v1572_v10  ;;  %v1542_v34 = vsel %vm711_vm2, %v4886_v12, %v1430_v20 }
 0x14a   : > { %v2370_v41 = vpop.permute.xlu1 %2369 }
 0x14b   : > { %v2434_v9 = vsel %vm744_vm3, %v2402_v49, %v2370_v41  ;;  %v2292_v3 = vpop.permute.xlu0 %2291 }
 0x14c   : > { %3781 = vmatprep.mubr.msk.bf16.mxu0 %vm801_vm4, %v2434_v9  ;;  %v2404_v21 = vsel %vm711_vm2, %v4907_v1, %v2292_v3 }
 0x14e   : > { %v2372_v26 = vpop.permute.xlu1 %2371 }
 0x14f   : > { %v2436_v61 = vsel %vm744_vm3, %v2404_v21, %v2372_v26  ;;  %v1510_v17 = vpop.permute.xlu0 %1509 }
 0x150   : > { %v1574_v28 = vsel %vm744_vm3, %v1542_v34, %v1510_v17  ;;  %3782 = vmatmul.mubr.msk.bf16.gmra.mrb[28].mxu0 %vm801_vm4, %v2436_v61 }
 0x151   : > { %3744 = vmatmul.mubr.msk.bf16.gmra.mrb[28].mxu1 %vm801_vm4, %v1574_v28 }
 0x174   : > { %v3679_v37 = vpop.f32.mrb[0].mxu1 }
 0x175   : > { %v868_v29 = vpop.f32.mrb[1].mxu1 }
 0x176   : > { %v3680_v40 = vpop.f32.mrb[2].mxu1 }
 0x177   : > { %v871_v31 = vpop.f32.mrb[3].mxu1 }
 0x184   : > { %v3683_v27 = vpop.f32.mrb[4].mxu1 }
 0x185   : > { %v884_v45 = vpop.f32.mrb[5].mxu1 }
 0x186   : > { %v3684_v1 = vpop.f32.mrb[6].mxu1 }
 0x187   : > { %v887_v32 = vpop.f32.mrb[7].mxu1 }
 0x194   : > { %v3687_v33 = vpop.f32.mrb[8].mxu1 }
 0x195   : > { %v900_v36 = vpop.f32.mrb[9].mxu1 }
 0x196   : > { %v5085_v12 = vpop.f32.mrb[10].mxu1 }
 0x197   : > { %v5087_v39 = vpop.f32.mrb[11].mxu1 }
 0x1a4   : > { %v5089_v0 = vpop.f32.mrb[12].mxu1 }
 0x1a5   : > { %v5091_v42 = vpop.f32.mrb[13].mxu1 }
 0x1a6   : > { %v5093_v43 = vpop.f32.mrb[14].mxu1 }
 0x1a7   : > { %v5095_v24 = vpop.f32.mrb[15].mxu1 }
 0x1b3   : > { %v3755_v55 = vpop.f32.mrb[0].mxu0 }
 0x1b4   : > { %v3791_v46 = vadd.f32 %v3755_v55, %v3679_v37  ;;  %v2528_v47 = vpop.f32.mrb[1].mxu0 }
 0x1b5   : > { %v3792_v25 = vadd.f32 %v2528_v47, %v868_v29  ;;  %v3756_v48 = vpop.f32.mrb[2].mxu0 }
 0x1b6   : > { %v2792_v15 = vadd.f32 %v3791_v46, %v5100_v59  ;;  %v3793_v50 = vadd.f32 %v3756_v48, %v3680_v40  ;;  %v2531_v44 = vpop.f32.mrb[3].mxu0 }
 0x1b7   : > { %v2790_v51 = vadd.f32 %v3792_v25, %v5100_v59  ;;  %v3794_v13 = vadd.f32 %v2531_v44, %v871_v31 }
 0x1b8   : > { %v2824_v54 = vmax.f32 %v2792_v15, 0.0  ;;  %v2793_v2 = vadd.f32 %v3793_v50, %v5100_v59 }
 0x1b9   : > { %v2822_v56 = vmax.f32 %v2790_v51, 0.0  ;;  %v2791_v57 = vadd.f32 %v3794_v13, %v5100_v59 }
 0x1ba   : > { %v2825_v19 = vmax.f32 %v2793_v2, 0.0  ;;  %v2856_v58 = vmin.f32 %v2824_v54, 6.0 }
 0x1bb   : > { %v2823_v53 = vmax.f32 %v2791_v57, 0.0  ;;  %v2854_v60 = vmin.f32 %v2822_v56, 6.0 }
 0x1bc   : > { %v2857_v35 = vmin.f32 %v2825_v19, 6.0 }
 0x1bd   : > { %v2855_v52 = vmin.f32 %v2823_v53, 6.0 }
 0x1be   : > { %v3527_v62 = vpack.c.bf16 %v2857_v35, %v2856_v58 }
 0x1bf   : > { %v3522_v30 = vpack.c.bf16 %v2855_v52, %v2854_v60 }
 0x1c0   : > { %3599 = vst [vmem:[%s5109_s19 + $0x8] sm:$0xff] %v3527_v62  }
 0x1c1   : > { %3523 = vst [vmem:[%s5109_s19] sm:$0xff] %v3522_v30  }
 0x1c3   : > { %v3759_v63 = vpop.f32.mrb[4].mxu0 }
 0x1c4   : > { %v3795_v5 = vadd.f32 %v3759_v63, %v3683_v27  ;;  %v2544_v6 = vpop.f32.mrb[5].mxu0 }
 0x1c5   : > { %v3796_v7 = vadd.f32 %v2544_v6, %v884_v45  ;;  %v3760_v8 = vpop.f32.mrb[6].mxu0 }
 0x1c6   : > { %v2796_v23 = vadd.f32 %v3795_v5, %v5100_v59  ;;  %v3797_v11 = vadd.f32 %v3760_v8, %v3684_v1  ;;  %v2547_v16 = vpop.f32.mrb[7].mxu0 }
 0x1c7   : > { %v2794_v18 = vadd.f32 %v3796_v7, %v5100_v59  ;;  %v3798_v22 = vadd.f32 %v2547_v16, %v887_v32 }
 0x1c8   : > { %v2828_v4 = vmax.f32 %v2796_v23, 0.0  ;;  %v2797_v38 = vadd.f32 %v3797_v11, %v5100_v59 }
 0x1c9   : > { %v2826_v14 = vmax.f32 %v2794_v18, 0.0  ;;  %v2795_v10 = vadd.f32 %v3798_v22, %v5100_v59 }
 0x1ca   : > { %v2829_v20 = vmax.f32 %v2797_v38, 0.0  ;;  %v2860_v41 = vmin.f32 %v2828_v4, 6.0 }
 0x1cb   : > { %v2827_v49 = vmax.f32 %v2795_v10, 0.0  ;;  %v2858_v3 = vmin.f32 %v2826_v14, 6.0 }
 0x1cc   : > { %v2861_v9 = vmin.f32 %v2829_v20, 6.0 }
 0x1cd   : > { %v2859_v21 = vmin.f32 %v2827_v49, 6.0 }
 0x1ce   : > { %v3537_v26 = vpack.c.bf16 %v2861_v9, %v2860_v41 }
 0x1cf   : > { %v3532_v34 = vpack.c.bf16 %v2859_v21, %v2858_v3 }
 0x1d0   : > { %3601 = vst [vmem:[%s5109_s19 + $0x18] sm:$0xff] %v3537_v26  }
 0x1d1   : > { %3600 = vst [vmem:[%s5109_s19 + $0x10] sm:$0xff] %v3532_v34  }
 0x1d3   : > { %v3763_v61 = vpop.f32.mrb[8].mxu0 }
 0x1d4   : > { %v3799_v17 = vadd.f32 %v3763_v61, %v3687_v33  ;;  %v2560_v28 = vpop.f32.mrb[9].mxu0 }
 0x1d5   : > { %v3800_v37 = vadd.f32 %v2560_v28, %v900_v36  ;;  %v3764_v29 = vpop.f32.mrb[10].mxu0 }
 0x1d6   : > { %v2800_v40 = vadd.f32 %v3799_v17, %v5100_v59  ;;  %v3801_v31 = vadd.f32 %v3764_v29, %v5085_v12  ;;  %v2563_v27 = vpop.f32.mrb[11].mxu0 }
 0x1d7   : > { %v2798_v45 = vadd.f32 %v3800_v37, %v5100_v59  ;;  %v3802_v1 = vadd.f32 %v2563_v27, %v5087_v39 }
 0x1d8   : > { %v2832_v32 = vmax.f32 %v2800_v40, 0.0  ;;  %v2801_v55 = vadd.f32 %v3801_v31, %v5100_v59 }
 0x1d9   : > { %v2830_v46 = vmax.f32 %v2798_v45, 0.0  ;;  %v2799_v33 = vadd.f32 %v3802_v1, %v5100_v59 }
 0x1da   : > { %v2833_v47 = vmax.f32 %v2801_v55, 0.0  ;;  %v2864_v25 = vmin.f32 %v2832_v32, 6.0 }
 0x1db   : > { %v2831_v36 = vmax.f32 %v2799_v33, 0.0  ;;  %v2862_v15 = vmin.f32 %v2830_v46, 6.0 }
 0x1dc   : > { %v2865_v48 = vmin.f32 %v2833_v47, 6.0 }
 0x1dd   : > { %v2863_v50 = vmin.f32 %v2831_v36, 6.0 }
 0x1de   : > { %v3547_v12 = vpack.c.bf16 %v2865_v48, %v2864_v25 }
 0x1df   : > { %v3542_v44 = vpack.c.bf16 %v2863_v50, %v2862_v15 }
 0x1e0   : > { %3603 = vst [vmem:[%s5109_s19 + $0x28] sm:$0xff] %v3547_v12  }
 0x1e1   : > { %3602 = vst [vmem:[%s5109_s19 + $0x20] sm:$0xff] %v3542_v44  }
 0x1e3   : > { %v3767_v51 = vpop.f32.mrb[12].mxu0 }
 0x1e4   : > { %v3803_v13 = vadd.f32 %v3767_v51, %v5089_v0  ;;  %v2576_v39 = vpop.f32.mrb[13].mxu0 }
 0x1e5   : > { %v3804_v54 = vadd.f32 %v2576_v39, %v5091_v42  ;;  %v3768_v2 = vpop.f32.mrb[14].mxu0 }
 0x1e6   : > { %v2804_v56 = vadd.f32 %v3803_v13, %v5100_v59  ;;  %v3805_v57 = vadd.f32 %v3768_v2, %v5093_v43  ;;  %v2579_v19 = vpop.f32.mrb[15].mxu0 }
 0x1e7   : > { %v2802_v53 = vadd.f32 %v3804_v54, %v5100_v59  ;;  %v3806_v58 = vadd.f32 %v2579_v19, %v5095_v24 }
 0x1e8   : > { %v2836_v35 = vmax.f32 %v2804_v56, 0.0  ;;  %v2805_v60 = vadd.f32 %v3805_v57, %v5100_v59 }
 0x1e9   : > { %v2834_v52 = vmax.f32 %v2802_v53, 0.0  ;;  %v2803_v0 = vadd.f32 %v3806_v58, %v5100_v59 }
 0x1ea   : > { %v2837_v62 = vmax.f32 %v2805_v60, 0.0  ;;  %v2868_v30 = vmin.f32 %v2836_v35, 6.0 }
 0x1eb   : > { %v2835_v42 = vmax.f32 %v2803_v0, 0.0  ;;  %v2866_v5 = vmin.f32 %v2834_v52, 6.0 }
 0x1ec   : > { %v2869_v63 = vmin.f32 %v2837_v62, 6.0 }
 0x1ed   : > { %v2867_v6 = vmin.f32 %v2835_v42, 6.0 }
 0x1ee   : > { %v3557_v43 = vpack.c.bf16 %v2869_v63, %v2868_v30 }
 0x1ef   : > { %v3552_v7 = vpack.c.bf16 %v2867_v6, %v2866_v5 }
 0x1f0   : > { %3605 = vst [vmem:[%s5109_s19 + $0x38] sm:$0xff] %v3557_v43  }
 0x1f1   : > { %3604 = vst [vmem:[%s5109_s19 + $0x30] sm:$0xff] %v3552_v7  }
 0x1f3   : > { %v3771_v8 = vpop.f32.mrb[16].mxu0 }
 0x1f4   : > { %v3733_v23 = vpop.f32.mrb[16].mxu1  ;;  %v2592_v11 = vpop.f32.mrb[17].mxu0 }
 0x1f5   : > { %v3807_v24 = vadd.f32 %v3771_v8, %v3733_v23  ;;  %v1730_v16 = vpop.f32.mrb[17].mxu1  ;;  %v3772_v18 = vpop.f32.mrb[18].mxu0 }
 0x1f6   : > { %v3808_v22 = vadd.f32 %v2592_v11, %v1730_v16  ;;  %v3734_v4 = vpop.f32.mrb[18].mxu1  ;;  %v2595_v38 = vpop.f32.mrb[19].mxu0 }
 0x1f7   : > { %v2808_v14 = vadd.f32 %v3807_v24, %v5100_v59  ;;  %v3809_v10 = vadd.f32 %v3772_v18, %v3734_v4  ;;  %v1733_v20 = vpop.f32.mrb[19].mxu1 }
 0x1f8   : > { %v2806_v49 = vadd.f32 %v3808_v22, %v5100_v59  ;;  %v3810_v41 = vadd.f32 %v2595_v38, %v1733_v20 }
 0x1f9   : > { %v2840_v9 = vmax.f32 %v2808_v14, 0.0  ;;  %v2809_v3 = vadd.f32 %v3809_v10, %v5100_v59 }
 0x1fa   : > { %v2838_v21 = vmax.f32 %v2806_v49, 0.0  ;;  %v2807_v26 = vadd.f32 %v3810_v41, %v5100_v59 }
 0x1fb   : > { %v2841_v34 = vmax.f32 %v2809_v3, 0.0  ;;  %v2872_v17 = vmin.f32 %v2840_v9, 6.0 }
 0x1fc   : > { %v2839_v61 = vmax.f32 %v2807_v26, 0.0  ;;  %v2870_v37 = vmin.f32 %v2838_v21, 6.0 }
 0x1fd   : > { %v2873_v28 = vmin.f32 %v2841_v34, 6.0 }
 0x1fe   : > { %v2871_v29 = vmin.f32 %v2839_v61, 6.0 }
 0x1ff   : > { %v3567_v40 = vpack.c.bf16 %v2873_v28, %v2872_v17 }
 0x200   : > { %v3562_v31 = vpack.c.bf16 %v2871_v29, %v2870_v37 }
 0x201   : > { %3607 = vst [vmem:[%s5109_s19 + $0x48] sm:$0xff] %v3567_v40  }
 0x202   : > { %3606 = vst [vmem:[%s5109_s19 + $0x40] sm:$0xff] %v3562_v31  }
 0x203   : > { %v3775_v27 = vpop.f32.mrb[20].mxu0 }
 0x204   : > { %v3737_v45 = vpop.f32.mrb[20].mxu1  ;;  %v2608_v1 = vpop.f32.mrb[21].mxu0 }
 0x205   : > { %v3811_v32 = vadd.f32 %v3775_v27, %v3737_v45  ;;  %v1746_v55 = vpop.f32.mrb[21].mxu1  ;;  %v3776_v46 = vpop.f32.mrb[22].mxu0 }
 0x206   : > { %v3812_v33 = vadd.f32 %v2608_v1, %v1746_v55  ;;  %v3738_v47 = vpop.f32.mrb[22].mxu1  ;;  %v2611_v36 = vpop.f32.mrb[23].mxu0 }
 0x207   : > { %v2812_v25 = vadd.f32 %v3811_v32, %v5100_v59  ;;  %v3813_v48 = vadd.f32 %v3776_v46, %v3738_v47  ;;  %v1749_v15 = vpop.f32.mrb[23].mxu1 }
 0x208   : > { %v2810_v50 = vadd.f32 %v3812_v33, %v5100_v59  ;;  %v3814_v12 = vadd.f32 %v2611_v36, %v1749_v15 }
 0x209   : > { %v2844_v44 = vmax.f32 %v2812_v25, 0.0  ;;  %v2813_v51 = vadd.f32 %v3813_v48, %v5100_v59 }
 0x20a   : > { %v2842_v13 = vmax.f32 %v2810_v50, 0.0  ;;  %v2811_v39 = vadd.f32 %v3814_v12, %v5100_v59 }
 0x20b   : > { %v2845_v54 = vmax.f32 %v2813_v51, 0.0  ;;  %v2876_v56 = vmin.f32 %v2844_v44, 6.0 }
 0x20c   : > { %v2843_v2 = vmax.f32 %v2811_v39, 0.0  ;;  %v2874_v19 = vmin.f32 %v2842_v13, 6.0 }
 0x20d   : > { %v2877_v57 = vmin.f32 %v2845_v54, 6.0 }
 0x20e   : > { %v2875_v53 = vmin.f32 %v2843_v2, 6.0 }
 0x20f   : > { %v3577_v58 = vpack.c.bf16 %v2877_v57, %v2876_v56 }
 0x210   : > { %v3572_v35 = vpack.c.bf16 %v2875_v53, %v2874_v19 }
 0x211   : > { %3609 = vst [vmem:[%s5109_s19 + $0x58] sm:$0xff] %v3577_v58  }
 0x212   : > { %3608 = vst [vmem:[%s5109_s19 + $0x50] sm:$0xff] %v3572_v35  }
 0x213   : > { %v3779_v60 = vpop.f32.mrb[24].mxu0 }
 0x214   : > { %v3741_v52 = vpop.f32.mrb[24].mxu1  ;;  %v2624_v0 = vpop.f32.mrb[25].mxu0 }
 0x215   : > { %v3815_v62 = vadd.f32 %v3779_v60, %v3741_v52  ;;  %v1762_v42 = vpop.f32.mrb[25].mxu1  ;;  %v3780_v30 = vpop.f32.mrb[26].mxu0 }
 0x216   : > { %v3816_v63 = vadd.f32 %v2624_v0, %v1762_v42  ;;  %v3742_v5 = vpop.f32.mrb[26].mxu1  ;;  %v2627_v6 = vpop.f32.mrb[27].mxu0 }
 0x217   : > { %v2816_v43 = vadd.f32 %v3815_v62, %v5100_v59  ;;  %v3817_v7 = vadd.f32 %v3780_v30, %v3742_v5  ;;  %v1765_v8 = vpop.f32.mrb[27].mxu1 }
 0x218   : > { %v2814_v23 = vadd.f32 %v3816_v63, %v5100_v59  ;;  %v3818_v11 = vadd.f32 %v2627_v6, %v1765_v8 }
 0x219   : > { %v2848_v24 = vmax.f32 %v2816_v43, 0.0  ;;  %v2817_v16 = vadd.f32 %v3817_v7, %v5100_v59 }
 0x21a   : > { %v2846_v18 = vmax.f32 %v2814_v23, 0.0  ;;  %v2815_v22 = vadd.f32 %v3818_v11, %v5100_v59 }
 0x21b   : > { %v2849_v4 = vmax.f32 %v2817_v16, 0.0  ;;  %v2880_v14 = vmin.f32 %v2848_v24, 6.0 }
 0x21c   : > { %v2847_v38 = vmax.f32 %v2815_v22, 0.0  ;;  %v2878_v20 = vmin.f32 %v2846_v18, 6.0 }
 0x21d   : > { %v2881_v10 = vmin.f32 %v2849_v4, 6.0 }
 0x21e   : > { %v2879_v49 = vmin.f32 %v2847_v38, 6.0 }
 0x21f   : > { %v3587_v41 = vpack.c.bf16 %v2881_v10, %v2880_v14 }
 0x220   : > { %v3582_v9 = vpack.c.bf16 %v2879_v49, %v2878_v20 }
 0x221   : > { %3611 = vst [vmem:[%s5109_s19 + $0x68] sm:$0xff] %v3587_v41  }
 0x222   : > { %3610 = vst [vmem:[%s5109_s19 + $0x60] sm:$0xff] %v3582_v9  }
 0x223   : > { %v3783_v3 = vpop.f32.mrb[28].mxu0 }
 0x224   : > { %v3745_v21 = vpop.f32.mrb[28].mxu1  ;;  %v2640_v26 = vpop.f32.mrb[29].mxu0 }
 0x225   : > { %v3819_v34 = vadd.f32 %v3783_v3, %v3745_v21  ;;  %v1778_v61 = vpop.f32.mrb[29].mxu1  ;;  %v3784_v17 = vpop.f32.mrb[30].mxu0 }
 0x226   : > { %v3820_v28 = vadd.f32 %v2640_v26, %v1778_v61  ;;  %v3746_v37 = vpop.f32.mrb[30].mxu1  ;;  %v2643_v29 = vpop.f32.mrb[31].mxu0 }
 0x227   : > { %v2820_v40 = vadd.f32 %v3819_v34, %v5100_v59  ;;  %v3821_v31 = vadd.f32 %v3784_v17, %v3746_v37  ;;  %v1781_v27 = vpop.f32.mrb[31].mxu1 }
 0x228   : > { %v2818_v45 = vadd.f32 %v3820_v28, %v5100_v59  ;;  %v3822_v1 = vadd.f32 %v2643_v29, %v1781_v27 }
 0x229   : > { %v2852_v32 = vmax.f32 %v2820_v40, 0.0  ;;  %v2821_v55 = vadd.f32 %v3821_v31, %v5100_v59 }
 0x22a   : > { %v2850_v46 = vmax.f32 %v2818_v45, 0.0  ;;  %v2819_v33 = vadd.f32 %v3822_v1, %v5100_v59 }
 0x22b   : > { %v2853_v47 = vmax.f32 %v2821_v55, 0.0  ;;  %v2884_v25 = vmin.f32 %v2852_v32, 6.0 }
 0x22c   : > { %v2851_v36 = vmax.f32 %v2819_v33, 0.0  ;;  %v2882_v15 = vmin.f32 %v2850_v46, 6.0 }
 0x22d   : > { %v2885_v48 = vmin.f32 %v2853_v47, 6.0 }
 0x22e   : > { %v2883_v50 = vmin.f32 %v2851_v36, 6.0 }
 0x22f   : > { %v3597_v12 = vpack.c.bf16 %v2885_v48, %v2884_v25 }
 0x230   : > { %v3592_v59 = vpack.c.bf16 %v2883_v50, %v2882_v15 }
 0x231   : > { %3613 = vst [vmem:[%s5109_s19 + $0x78] sm:$0xff] %v3597_v12  }
 0x232   : > { %3612 = vst [vmem:[%s5109_s19 + $0x70] sm:$0xff] %v3592_v59  }
 0x233   : > { %4063 = shalt.err (!%p4060_p5)
}
 0x234   : > { %s4064_s6 = scalar_lea.hbm %s5164_s28, 2048  ;;  %s4068_s7 = scalar_lea.hbm %s5221_s3, 4096 }
 0x235   : > { %p4065_p6 = scmp.ne.s32.totalorder %s5164_s28, %s4064_s6  ;;  %p4069_p10 = scmp.lt.u32.totalorder %s5164_s28, %s5221_s3 }
 0x236   : > { %p4070_p11 = scmp.lt.u32.totalorder %s4068_s7, %s4064_s6  ;;  %p4072_p13 = scmp.lt.u32.totalorder %s4064_s6, %s5164_s28 }
 0x237   : > { %p4066_p7 = pnand %p4065_p6, %p4195_p4 }
 0x238   : > { %p4071_p12 = por %p4070_p11, %p4069_p10 }
 0x239   : > { %p4067_p9 = pneg %p4066_p7 }
 0x23a   : > { %p4073_p0 = por %p4072_p13, %p4071_p12 }
 0x23c   : > { %p4074_p1 = pnand %p4073_p0, %p4067_p9 }
 0x23e   : > { %4077 = shalt.err (!%p4074_p1)
}
 0x23f   : > { %s4133_s18 = smov 64   ;;  %s4134_s19 = smov 4  }
 0x240   : > { %3856 = dma.vmem_to_hbm [thread:$0]  (%p4195_p4), %s5166_s23, 2048, %s5164_s28, %s5172_s15, %s4133_s18, %s4133_s18, %s4134_s19  }
 0x241 PF: > { %p3862_p2 = scmp.ge.s32.totalorder %s4128_s17, 2  ;;  %s3079_s21 = sand.u32 1, %s4108_s12  }
 0x242   : > { %s3080_s26 = scalar_lea.sflag [#allocation4], %s3079_s21 }
 0x243   : > { %p3859_p3 = pnand %p3862_p2, %p4202_p8 }
 0x245   : > { %4103 = dma.done.wait (!%p3859_p3), %s3080_s26, 2048  }
 0x246   : > { %4105 = vsyncadd (!%p3859_p3), %s3080_s26, 4294965248  ;;  %s16_s17 = sadd.s32 1, %s4128_s17   ;;  %s5224_s12 = smov %s4112_s13 }
 0x247   : > { %p13_p5 = scmp.ge.s32.totalorder %s16_s17, 4   ;;  %s5225_s13 = smov %s4116_s14 }
 0x248   : > { %s5226_s14 = smov %s4208_s25  ;;  %s5227_s15 = smov %s4124_s16 }
 0x249   : > { %s5228_s16 = smov %s5230_s20  ;;  %15 = sbr.rel (!%p13_p5) target bundleno = 4 (0x4), region = 78 }
 0x250   :  { %3085 = vsyncpa [#allocation4], 1 }
 0x251   :  { %3087 = vsyncpa [#allocation4 + $0x1], 1 }

// kernel: tpu_custom_call.1
= control target key start
LH: loop header
LB: loop body
LE: loop exit
PB: predicated region body
PF: predicated region fallthrough
CT: control target
= control target key end

     0   :  { %8 = vsyncpa [#allocation4], 0  ;;  %s9111_s0 = inlined_call_operand.vmem [shape: bf16[2,18,18,16], index: 0, kind: input, shape index: {}]   ;;  %s9112_s1 = inlined_call_operand.vmem [shape: bf16[3,48,128], index: 1, kind: input, shape index: {}]   ;;  %s9113_s2 = inlined_call_operand.vmem [shape: f32[1,128], index: 2, kind: input, shape index: {}]   ;;  %s9114_s3 = inlined_call_operand.hbm [shape: bf16[2,16,16,128], index: 3, kind: output, shape index: {}]  }
   0x1   :  { %10 = vsyncpa [#allocation4 + $0x1], 0  ;;  %s7695_s12 = smov 0   ;;  %s7697_s13 = smov 0  }
   0x2   :  { %s7699_s14 = smov 0   ;;  %s7701_s15 = smov 0  }
   0x3   :  { %s7703_s16 = smov 0   ;;  %s7705_s17 = smov 0  }
   0x4 LB: > { %s5970_s18 = sadd.s32 4294967295, %s7670_s17   ;;  %s5971_s19 = sadd.s32 4294967294, %s7670_s17   ;;  %s7670_s17 = sphi %s7705_s17, %s16_s17   ;;  %s7666_s16 = sphi %s7703_s16, %s9125_s16   ;;  %s7662_s15 = sphi %s7701_s15, %s9124_s15   ;;  %s7658_s14 = sphi %s7699_s14, %s9123_s14   ;;  %s7654_s13 = sphi %s7697_s13, %s9122_s13   ;;  %s7650_s12 = sphi %s7695_s12, %s9121_s12  }
   0x5   : > { %s35_s20 = sadd.s32 1, %s7666_s16  ;;  %s124_s21 = sadd.s32 1, %s7658_s14 }
   0x6   : > { %p37_p0 = scmp.ge.s32.totalorder %s35_s20, 2  ;;  %p134_p1 = scmp.ne.s32.totalorder %s7658_s14, %s7654_s13 }
   0x7   : > { %p135_p2 = scmp.eq.s32.totalorder %s5970_s18, 1  ;;  %p140_p3 = scmp.ne.s32.totalorder %s7654_s13, %s7650_s12 }
   0x8   : > { %s9127_s20 = smov (%p37_p0, %s35_s20), 0  ;;  %p141_p5 = scmp.eq.s32.totalorder %s5971_s19, 1 }
   0x9   : > { %p7735_p4 = por %p135_p2, %p134_p1  ;;  %s117_s23 = ssub.s32 %s7666_s16, %s9127_s20 }
   0xa   : > { %p5976_p6 = scmp.ge.s32.totalorder %s7670_s17, 1  ;;  %p122_p7 = scmp.eq.s32.totalorder %s117_s23, 0 }
   0xb   : > { %p7742_p8 = por %p141_p5, %p140_p3  ;;  %p180_p9 = scmp.lt.s32.totalorder %s7670_s17, 3 }
   0xc   : > { %s7748_s25 = scalar_select %p122_p7, %s7658_s14, %s124_s21  }
   0xd   : > { %p181_p10 = pnand %p5976_p6, %p180_p9 }
   0xe   : > { %v7533_v0 = vld [vmem:[%s9112_s1] sm:$0xff] (!%p181_p10)   ;;  %p211_p11 = scmp.lt.s32.totalorder (!%p181_p10), %s7662_s15, 1  ;;  %v7539_v2 = vld [vmem:[%s9112_s1 + $0x8] sm:$0xff] (!%p181_p10)   ;;  %vm349_vm0 = vcmask (!%p181_p10), 130048   ;;  %vm639_vm1 = vsmask.f32 (!%p181_p10), 3328 }
   0xf   : > { %184 = sbr.rel (%p181_p10) target bundleno = 570 (0x23a), region = 32  ;;  %v7536_v1 = vld [vmem:[%s9112_s1 + $0x20] sm:$0xff] (!%p181_p10)   ;;  %6911 = vmatprep.subr.bf16.mxu1 (!%p181_p10), %v7533_v0  ;;  %v7764_v3 = vld [vmem:[%s9112_s1 + $0x28] sm:$0xff] (!%p181_p10)   ;;  %vm640_vm2 = vsmask.f32 (!%p181_p10), 7440  ;;  %vm1483_vm4 = vcmask (!%p181_p10), 1042432  }
  0x10   : > { %6912 = vmatpush3.bf16.msra.mxu1 (!%p181_p10), %v7533_v0  ;;  %7047 = vmatprep.subr.bf16.mxu0 (!%p181_p10), %v7536_v1  ;;  %vm7788_vm3 = vmor (!%p181_p10), %vm639_vm1, %vm640_vm2  ;;  %vm1484_vm5 = vcmask (!%p181_p10), 1046532   ;;  %s6662_s21 = sshll.u32 (!%p181_p10), %s7662_s15, 11 }
  0x11   : > { %7048 = vmatpush3.bf16.msra.mxu0 (!%p181_p10), %v7536_v1  ;;  %6945 = vmatprep.subr.bf16.mxu1 (!%p181_p10), %v7539_v2  ;;  %vm7873_vm6 = vmor (!%p181_p10), %vm1483_vm4, %vm1484_vm5  ;;  %s9057_s28 = scalar_lea.hbm (!%p181_p10), %s9114_s3, %s6662_s21 }
  0x12   : > { %7081 = vmatprep.subr.bf16.mxu0 (!%p181_p10), %v7764_v3 }
  0x16   : > { %s212_s30 = scalar_select %p211_p11, %s7662_s15, 1 }
  0x18   : > { %s7475_s6 = smul.u32 216, %s212_s30  ;;  %s7672_s30 = smov [#allocation3]  }
  0x19   : > { %s7596_s4 = sshll.u32 %s7672_s30, 4  ;;  %s7597_s4 = int_to_ptr.vmem [resolvable:$false] %s7596_s4 }
  0x1a   : > { %s7769_s11 = scalar_lea.vmem %s9111_s0, %s7475_s6  ;;  %s7598_s5 = scalar_lea.vmem %s7597_s4, 4096 }
  0x1b   : > { %v7534_v4 = vld [vmem:[%s7769_s11] sm:$0xff]   ;;  %v7535_v5 = vld [vmem:[%s7769_s11 + $0xc] sm:$0xff]   ;;  %v7537_v6 = vld [vmem:[%s7769_s11 + $0x18] sm:$0xff]  }
  0x1c   : > { %6913 = vmatprep.mubr.msk.bf16.mxu1 %vm349_vm0, %v7534_v4  ;;  %v6161_v7 = vld [vmem:[%s7769_s11 + $0xc] sm:$0xf]  ;;  %v6162_v8 = vld [vmem:[%s7769_s11 + $0x10] sm:$0xf]  ;;  %v6163_v9 = vld [vmem:[%s7769_s11 + $0x14] sm:$0x1] }
  0x1d   : > { %6914 = vmatmul.mubr.msk.bf16.vlgmr.msra.gmra.mrb[0].mxu1 %vm349_vm0, %v7535_v5  ;;  %v7538_v10 = vld [vmem:[%s7769_s11 + $0x24] sm:$0xff]   ;;  %v2438_v11 = vshrl.u32 %v6161_v7, 16  ;;  %v2441_v12 = vshll.u32 %v6161_v7, 16  ;;  %v2447_v13 = vshll.u32 %v6162_v8, 16  ;;  %v2451_v14 = vshrl.u32 %v6162_v8, 16  ;;  %v7541_v32 = vld [vmem:[%s7769_s11 + $0x30] sm:$0xff]  }
  0x1e   : > { %6917 = vmatprep.mubr.msk.bf16.mxu1 %vm349_vm0, %v7537_v6  ;;  %6946 = vmatpush3.bf16.msra.mxu1 %v7539_v2  ;;  %v6164_v15 = vld [vmem:[%s7769_s11 + $0x18] sm:$0xf]  ;;  %v2457_v16 = vshll.u32 %v6163_v9, 16  ;;  %v6165_v17 = vld [vmem:[%s7769_s11 + $0x1c] sm:$0xf]  ;;  %v7543_v59 = vld [vmem:[%s7769_s11 + $0x48] sm:$0xff]  }
  0x1f   : > { %v6166_v18 = vld [vmem:[%s7769_s11 + $0x20] sm:$0x1]  ;;  %v2462_v19 = vshrl.u32 %v6164_v15, 16  ;;  %v2440_v20 = vrot.slane %v2438_v11, 4  ;;  %v2443_v21 = vrot.slane %v2441_v12, 5  ;;  %v2449_v22 = vrot.slane %v2447_v13, 5 }
  0x20   : > { %v2453_v23 = vrot.slane %v2451_v14, 4  ;;  %v2459_v24 = vrot.slane %v2457_v16, 5  ;;  %v2465_v26 = vshll.u32 %v6164_v15, 16  ;;  %v2471_v27 = vshll.u32 %v6165_v17, 16  ;;  %v6167_v36 = vld [vmem:[%s7769_s11 + $0x24] sm:$0xf] }
  0x21   : > { %v2464_v25 = vrot.slane %v2462_v19, 4  ;;  %v2444_v28 = vor.u32 %v2443_v21, %v2440_v20  ;;  %v2475_v30 = vshrl.u32 %v6165_v17, 16  ;;  %v2481_v31 = vshll.u32 %v6166_v18, 16  ;;  %v6168_v41 = vld [vmem:[%s7769_s11 + $0x28] sm:$0xf]  ;;  %v7542_v50 = vld [vmem:[%s7769_s11 + $0x3c] sm:$0xff]  }
  0x22   : > { %v2454_v29 = vor.u32 %v2453_v23, %v2449_v22  ;;  %v2467_v34 = vrot.slane %v2465_v26, 5  ;;  %v2473_v35 = vrot.slane %v2471_v27, 5  ;;  %v6169_v43 = vld [vmem:[%s7769_s11 + $0x2c] sm:$0x1]  ;;  %v2486_v44 = vshrl.u32 %v6167_v36, 16  ;;  %v7816_v15 = vld [vmem:[%s9112_s1 + $0x30] sm:$0xff]  }
  0x23   : > { %v2445_v37 = vrot.slane %v2444_v28, 4  ;;  %v2477_v39 = vrot.slane %v2475_v30, 4  ;;  %v2483_v40 = vrot.slane %v2481_v31, 5  ;;  %v2489_v45 = vshll.u32 %v6167_v36, 16  ;;  %v6170_v52 = vld [vmem:[%s7769_s11 + $0x30] sm:$0xf] }
  0x24   : > { %v2455_v38 = vrot.slane %v2454_v29, 4  ;;  %v2468_v42 = vor.u32 %v2467_v34, %v2464_v25  ;;  %v2495_v46 = vshll.u32 %v6168_v41, 16  ;;  %v2499_v51 = vshrl.u32 %v6168_v41, 16  ;;  %v6171_v53 = vld [vmem:[%s7769_s11 + $0x34] sm:$0xf]  ;;  %v7545_v41 = vld [vmem:[%s7769_s11 + $0x60] sm:$0xff]  }
  0x25   : > { %6918 = vmatmul.mubr.msk.bf16.gmra.mrb[4].mxu1 %vm349_vm0, %v7538_v10  ;;  %v2450_v47 = vsel %vm7788_vm3, %v2445_v37, %v2449_v22  ;;  %v2478_v49 = vor.u32 %v2477_v39, %v2473_v35  ;;  %v2488_v56 = vrot.slane %v2486_v44, 4  ;;  %v2491_v57 = vrot.slane %v2489_v45, 5  ;;  %v6172_v58 = vld [vmem:[%s7769_s11 + $0x38] sm:$0x1]  ;;  %v6173_v9 = vld [vmem:[%s7769_s11 + $0x3c] sm:$0xf] }
  0x26   : > { %6921 = vmatprep.mubr.msk.bf16.mxu1 %vm349_vm0, %v7541_v32  ;;  %v2460_v48 = vsel %vm7788_vm3, %v2455_v38, %v2459_v24  ;;  %v2469_v55 = vrot.slane %v2468_v42, 4  ;;  %v2497_v61 = vrot.slane %v2495_v46, 5  ;;  %v2501_v62 = vrot.slane %v2499_v51, 4  ;;  %v6174_v14 = vld [vmem:[%s7769_s11 + $0x40] sm:$0xf]  ;;  %v7544_v34 = vld [vmem:[%s7769_s11 + $0x54] sm:$0xff]  }
  0x27   : > { %v6211_v54 = vcombine.low %v2450_v47, %v2460_v48  ;;  %v2479_v60 = vrot.slane %v2478_v49, 4  ;;  %v2505_v63 = vshll.u32 %v6169_v43, 16  ;;  %v2492_v1 = vor.u32 %v2491_v57, %v2488_v56  ;;  %v6175_v22 = vld [vmem:[%s7769_s11 + $0x44] sm:$0x1]  ;;  %v6176_v25 = vld [vmem:[%s7769_s11 + $0x48] sm:$0xf] }
  0x28   : > { %v2474_v0 = vsel %vm7788_vm3, %v2469_v55, %v2473_v35  ;;  %v2510_v2 = vshrl.u32 %v6170_v52, 16  ;;  %v2513_v4 = vshll.u32 %v6170_v52, 16  ;;  %v2502_v6 = vor.u32 %v2501_v62, %v2497_v61  ;;  %v6177_v30 = vld [vmem:[%s7769_s11 + $0x4c] sm:$0xf]  ;;  %v6178_v37 = vld [vmem:[%s7769_s11 + $0x50] sm:$0x1] }
  0x29   : > { %7049 = vmatprep.mubr.msk.bf16.mxu0 %vm349_vm0, %v6211_v54  ;;  %v2484_v5 = vsel %vm7788_vm3, %v2479_v60, %v2483_v40  ;;  %v2507_v7 = vrot.slane %v2505_v63, 5  ;;  %v2519_v8 = vshll.u32 %v6171_v53, 16  ;;  %v2493_v11 = vrot.slane %v2492_v1, 4  ;;  %v6179_v54 = vld [vmem:[%s7769_s11 + $0x54] sm:$0xf] }
  0x2a   : > { %v6212_v10 = vcombine.low %v2474_v0, %v2484_v5  ;;  %v2512_v12 = vrot.slane %v2510_v2, 4  ;;  %v2515_v13 = vrot.slane %v2513_v4, 5  ;;  %v2503_v16 = vrot.slane %v2502_v6, 4  ;;  %v6181_v0 = vld [vmem:[%s7769_s11 + $0x5c] sm:$0x1] }
  0x2b   : > { %v2521_v17 = vrot.slane %v2519_v8, 5  ;;  %v2523_v18 = vshrl.u32 %v6171_v53, 16  ;;  %v2529_v19 = vshll.u32 %v6172_v58, 16  ;;  %v2498_v20 = vsel %vm7788_vm3, %v2493_v11, %v2497_v61  ;;  %v6182_v1 = vld [vmem:[%s7769_s11 + $0x60] sm:$0xf] }
  0x2c   : > { %7050 = vmatmul.mubr.msk.bf16.vlgmr.msra.gmra.mrb[0].mxu0 %vm349_vm0, %v6212_v10  ;;  %v2516_v21 = vor.u32 %v2515_v13, %v2512_v12  ;;  %v2534_v23 = vshrl.u32 %v6173_v9, 16  ;;  %v2537_v24 = vshll.u32 %v6173_v9, 16  ;;  %v2508_v26 = vsel %vm7788_vm3, %v2503_v16, %v2507_v7  ;;  %v6183_v7 = vld [vmem:[%s7769_s11 + $0x64] sm:$0xf]  ;;  %v7546_v10 = vld [vmem:[%s7769_s11 + $0x6c] sm:$0xff]  }
  0x2d   : > { %6922 = vmatmul.mubr.msk.bf16.gmra.mrb[8].mxu1 %vm349_vm0, %v7542_v50  ;;  %7082 = vmatpush3.bf16.msra.mxu0 %v7764_v3  ;;  %v2525_v27 = vrot.slane %v2523_v18, 4  ;;  %v2531_v28 = vrot.slane %v2529_v19, 5  ;;  %v2543_v29 = vshll.u32 %v6174_v14, 16  ;;  %v6213_v31 = vcombine.low %v2498_v20, %v2508_v26  ;;  %v6184_v18 = vld [vmem:[%s7769_s11 + $0x68] sm:$0x1]  ;;  %v7547_v19 = vld [vmem:[%s7769_s11 + $0x78] sm:$0xff]  }
  0x2e   : > { %6925 = vmatprep.mubr.msk.bf16.mxu1 %vm349_vm0, %v7543_v59  ;;  %v2517_v32 = vrot.slane %v2516_v21, 4  ;;  %v2536_v35 = vrot.slane %v2534_v23, 4  ;;  %v2539_v36 = vrot.slane %v2537_v24, 5  ;;  %7115 = vmatprep.subr.bf16.mxu0 %v7816_v15  ;;  %v2547_v40 = vshrl.u32 %v6174_v14, 16  ;;  %v6180_v59 = vld [vmem:[%s7769_s11 + $0x58] sm:$0xf] }
  0x2f   : > { %v2526_v38 = vor.u32 %v2525_v27, %v2521_v17  ;;  %v2545_v39 = vrot.slane %v2543_v29, 5  ;;  %v2553_v3 = vshll.u32 %v6175_v22, 16  ;;  %7053 = vmatprep.mubr.msk.bf16.mxu0 %vm349_vm0, %v6213_v31  ;;  %v2558_v44 = vshrl.u32 %v6176_v25, 16  ;;  %v6244_v24 = vld [vmem:[%s7769_s11 + $0xc] sm:$0xe] }
  0x30   : > { %v2522_v42 = vsel %vm7788_vm3, %v2517_v32, %v2521_v17  ;;  %v2540_v43 = vor.u32 %v2539_v36, %v2536_v35  ;;  %v2561_v45 = vshll.u32 %v6176_v25, 16  ;;  %v2549_v47 = vrot.slane %v2547_v40, 4  ;;  %v6245_v29 = vld [vmem:[%s7769_s11 + $0x10] sm:$0xf]  ;;  %v6246_v36 = vld [vmem:[%s7769_s11 + $0x14] sm:$0x1] }
  0x31   : > { %v2527_v46 = vrot.slane %v2526_v38, 4  ;;  %v2555_v48 = vrot.slane %v2553_v3, 5  ;;  %v2567_v49 = vshll.u32 %v6177_v30, 16  ;;  %v2560_v51 = vrot.slane %v2558_v44, 4  ;;  %v6247_v3 = vld [vmem:[%s7769_s11 + $0x18] sm:$0xe] }
  0x32   : > { %v2541_v50 = vrot.slane %v2540_v43, 4  ;;  %v2563_v52 = vrot.slane %v2561_v45, 5  ;;  %v2571_v53 = vshrl.u32 %v6177_v30, 16  ;;  %v2550_v56 = vor.u32 %v2549_v47, %v2545_v39  ;;  %v7860_v30 = vld [vmem:[%s9112_s1 + $0x10] sm:$0xff]   ;;  %v6249_v47 = vld [vmem:[%s7769_s11 + $0x20] sm:$0x1] }
  0x33   : > { %v2532_v55 = vsel %vm7788_vm3, %v2527_v46, %v2531_v28  ;;  %v2569_v57 = vrot.slane %v2567_v49, 5  ;;  %v2577_v58 = vshll.u32 %v6178_v37, 16  ;;  %v2582_v5 = vshrl.u32 %v6179_v54, 16  ;;  %6979 = vmatprep.subr.bf16.mxu1 %v7860_v30 }
  0x34   : > { %v6214_v60 = vcombine.low %v2522_v42, %v2532_v55  ;;  %v2546_v61 = vsel %vm7788_vm3, %v2541_v50, %v2545_v39  ;;  %v2564_v62 = vor.u32 %v2563_v52, %v2560_v51  ;;  %v2573_v63 = vrot.slane %v2571_v53, 4  ;;  %v7548_v50 = vld [vmem:[%s7769_s11 + $0x84] sm:$0xff]  }
  0x35   : > { %6926 = vmatmul.mubr.msk.bf16.gmra.mrb[12].mxu1 %vm349_vm0, %v7544_v34  ;;  %v2551_v2 = vrot.slane %v2550_v56, 4  ;;  %v2579_v4 = vrot.slane %v2577_v58, 5  ;;  %v2585_v6 = vshll.u32 %v6179_v54, 16  ;;  %v2591_v11 = vshll.u32 %v6180_v59, 16 }
  0x36   : > { %6929 = vmatprep.mubr.msk.bf16.mxu1 %vm349_vm0, %v7545_v41  ;;  %7054 = vmatmul.mubr.msk.bf16.gmra.mrb[4].mxu0 %vm349_vm0, %v6214_v60  ;;  %v2565_v8 = vrot.slane %v2564_v62, 4  ;;  %v2574_v9 = vor.u32 %v2573_v63, %v2569_v57  ;;  %v2595_v12 = vshrl.u32 %v6180_v59, 16  ;;  %v2584_v14 = vrot.slane %v2582_v5, 4  ;;  %v6248_v41 = vld [vmem:[%s7769_s11 + $0x1c] sm:$0xf] }
  0x37   : > { %v2556_v13 = vsel %vm7788_vm3, %v2551_v2, %v2555_v48  ;;  %v2587_v16 = vrot.slane %v2585_v6, 5  ;;  %v2601_v17 = vshll.u32 %v6181_v0, 16  ;;  %v2593_v23 = vrot.slane %v2591_v11, 5  ;;  %v7550_v2 = vld [vmem:[%s7769_s11 + $0x90] sm:$0xff]  }
  0x38   : > { %v6215_v20 = vcombine.low %v2546_v61, %v2556_v13  ;;  %v2570_v21 = vsel %vm7788_vm3, %v2565_v8, %v2569_v57  ;;  %v2575_v22 = vrot.slane %v2574_v9, 4  ;;  %v2597_v26 = vrot.slane %v2595_v12, 4  ;;  %v6250_v61 = vld [vmem:[%s7769_s11 + $0x24] sm:$0xe]  ;;  %v6253_v13 = vld [vmem:[%s7769_s11 + $0x30] sm:$0xe] }
  0x39   : > { %v2588_v25 = vor.u32 %v2587_v16, %v2584_v14  ;;  %v2603_v27 = vrot.slane %v2601_v17, 5  ;;  %v2606_v28 = vshrl.u32 %v6182_v1, 16  ;;  %v2609_v32 = vshll.u32 %v6182_v1, 16  ;;  %v6254_v14 = vld [vmem:[%s7769_s11 + $0x34] sm:$0xf] }
  0x3a   : > { %7057 = vmatprep.mubr.msk.bf16.mxu0 %vm349_vm0, %v6215_v20  ;;  %v2580_v31 = vsel %vm7788_vm3, %v2575_v22, %v2579_v4  ;;  %v2615_v34 = vshll.u32 %v6183_v7, 16  ;;  %v2619_v35 = vshrl.u32 %v6183_v7, 16  ;;  %v2598_v39 = vor.u32 %v2597_v26, %v2593_v23  ;;  %v6251_v4 = vld [vmem:[%s7769_s11 + $0x28] sm:$0xf]  ;;  %v6252_v7 = vld [vmem:[%s7769_s11 + $0x2c] sm:$0x1] }
  0x3b   : > { %v6216_v37 = vcombine.low %v2570_v21, %v2580_v31  ;;  %v2589_v38 = vrot.slane %v2588_v25, 4  ;;  %v2608_v40 = vrot.slane %v2606_v28, 4  ;;  %v2611_v42 = vrot.slane %v2609_v32, 5  ;;  %v6255_v16 = vld [vmem:[%s7769_s11 + $0x38] sm:$0x1] }
  0x3c   : > { %v2617_v43 = vrot.slane %v2615_v34, 5  ;;  %v2621_v44 = vrot.slane %v2619_v35, 4  ;;  %v2625_v45 = vshll.u32 %v6184_v18, 16  ;;  %v2599_v49 = vrot.slane %v2598_v39, 4  ;;  %v6257_v28 = vld [vmem:[%s7769_s11 + $0x40] sm:$0xf] }
  0x3d   : > { %6930 = vmatmul.mubr.msk.bf16.gmra.mrb[16].mxu1 %vm349_vm0, %v7546_v10  ;;  %v2594_v48 = vsel %vm7788_vm3, %v2589_v38, %v2593_v23  ;;  %v6292_v51 = vrot.slane %v6244_v24, 9  ;;  %v3280_v52 = vrot.slane %v6245_v29, 5  ;;  %v2612_v53 = vor.u32 %v2611_v42, %v2608_v40  ;;  %v7551_v29 = vld [vmem:[%s7769_s11 + $0x9c] sm:$0xff]   ;;  %v6258_v35 = vld [vmem:[%s7769_s11 + $0x44] sm:$0x1]  ;;  %v7552_v38 = vld [vmem:[%s7769_s11 + $0xa8] sm:$0xff]  }
  0x3e   : > { %6933 = vmatprep.mubr.msk.bf16.mxu1 %vm349_vm0, %v7547_v19  ;;  %7058 = vmatmul.mubr.msk.bf16.gmra.mrb[8].mxu0 %vm349_vm0, %v6216_v37  ;;  %v2622_v54 = vor.u32 %v2621_v44, %v2617_v43  ;;  %v2627_v55 = vrot.slane %v2625_v45, 5  ;;  %v3283_v56 = vrot.slane %v6246_v36, 5  ;;  %v2604_v57 = vsel %vm7788_vm3, %v2599_v49, %v2603_v27  ;;  %v6256_v27 = vld [vmem:[%s7769_s11 + $0x3c] sm:$0xe]  ;;  %v6259_v36 = vld [vmem:[%s7769_s11 + $0x48] sm:$0xe] }
  0x3f   : > { %v3281_v58 = vsel %vm7873_vm6, %v6292_v51, %v3280_v52  ;;  %v3282_v59 = vrot.slane %v3280_v52, 4  ;;  %v6293_v60 = vrot.slane %v6247_v3, 9  ;;  %v6217_v62 = vcombine.low %v2594_v48, %v2604_v57  ;;  %v6261_v44 = vld [vmem:[%s7769_s11 + $0x50] sm:$0x1]  ;;  %v591_v48 = vld [vmem:[%s7769_s11] sm:$0xf] }
  0x40   : > { %v2613_v63 = vrot.slane %v2612_v53, 4  ;;  %v2623_v0 = vrot.slane %v2622_v54, 4  ;;  %v3287_v1 = vrot.slane %v6248_v41, 5  ;;  %v3290_v6 = vrot.slane %v6249_v47, 5  ;;  %v6260_v41 = vld [vmem:[%s7769_s11 + $0x4c] sm:$0xf] }
  0x41   : > { %v3284_v5 = vsel %vm7873_vm6, %v3282_v59, %v3283_v56  ;;  %v6294_v8 = vrot.slane %v6250_v61, 9  ;;  %v3294_v9 = vrot.slane %v6251_v4, 5  ;;  %7061 = vmatprep.mubr.msk.bf16.mxu0 %vm349_vm0, %v6217_v62  ;;  %v3297_v21 = vrot.slane %v6252_v7, 5  ;;  %v592_v53 = vld [vmem:[%s7769_s11 + $0x4] sm:$0xf] }
  0x42   : > { %v2618_v10 = vsel %vm7788_vm3, %v2613_v63, %v2617_v43  ;;  %v2628_v11 = vsel %vm7788_vm3, %v2623_v0, %v2627_v55  ;;  %v6310_v12 = vcombine.low %v3281_v58, %v3284_v5  ;;  %v7903_v18 = vsel %vm7873_vm6, %v6293_v60, %v3287_v1  ;;  %v593_v54 = vld [vmem:[%s7769_s11 + $0x8] sm:$0x1]  ;;  %v594_v59 = vld [vmem:[%s7769_s11 + $0xc] sm:$0xf]  ;;  %v595_v0 = vld [vmem:[%s7769_s11 + $0x10] sm:$0xf] }
  0x43   : > { %v6218_v17 = vcombine.low %v2618_v10, %v2628_v11  ;;  %v3289_v19 = vrot.slane %v3287_v1, 4  ;;  %v3296_v20 = vrot.slane %v3294_v9, 4  ;;  %v6295_v22 = vrot.slane %v6253_v13, 9  ;;  %v7954_v1 = vld [vmem:[%s9112_s1 + $0x38] sm:$0xff]   ;;  %v596_v7 = vld [vmem:[%s7769_s11 + $0x14] sm:$0x1] }
  0x44   : > { %v3301_v23 = vrot.slane %v6254_v14, 5  ;;  %v3304_v24 = vrot.slane %v6255_v16, 5  ;;  %v3295_v26 = vsel %vm7873_vm6, %v6294_v8, %v3294_v9  ;;  %v6296_v39 = vrot.slane %v6256_v27, 9  ;;  %v6262_v8 = vld [vmem:[%s7769_s11 + $0x54] sm:$0xe] }
  0x45   : > { %6934 = vmatmul.mubr.msk.bf16.gmra.mrb[20].mxu1 %vm349_vm0, %v7548_v50  ;;  %v3291_v25 = vsel %vm7873_vm6, %v3289_v19, %v3290_v6  ;;  %v3298_v31 = vsel %vm7873_vm6, %v3296_v20, %v3297_v21  ;;  %v3308_v40 = vrot.slane %v6257_v28, 5  ;;  %v3311_v3 = vrot.slane %v6258_v35, 5  ;;  %v6263_v13 = vld [vmem:[%s7769_s11 + $0x58] sm:$0xf]  ;;  %v6264_v19 = vld [vmem:[%s7769_s11 + $0x5c] sm:$0x1] }
  0x46   : > { %6937 = vmatprep.mubr.msk.bf16.mxu1 %vm349_vm0, %v7550_v2  ;;  %7062 = vmatmul.mubr.msk.bf16.gmra.mrb[12].mxu0 %vm349_vm0, %v6218_v17  ;;  %v7918_v32 = vsel %vm7873_vm6, %v6295_v22, %v3301_v23  ;;  %v3303_v34 = vrot.slane %v3301_v23, 4  ;;  %v6311_v37 = vcombine.low %v7903_v18, %v3291_v25  ;;  %v6312_v42 = vcombine.low %v3295_v26, %v3298_v31  ;;  %v7553_v20 = vld [vmem:[%s7769_s11 + $0xb4] sm:$0xff]   ;;  %v6265_v25 = vld [vmem:[%s7769_s11 + $0x60] sm:$0xe]  ;;  %v6266_v31 = vld [vmem:[%s7769_s11 + $0x64] sm:$0xf] }
  0x47   : > { %7083 = vmatprep.mubr.msk.bf16.mxu0 %vm349_vm0, %v6310_v12  ;;  %v6297_v45 = vrot.slane %v6259_v36, 9  ;;  %v3315_v47 = vrot.slane %v6260_v41, 5  ;;  %v7936_v50 = vsel %vm7873_vm6, %v6296_v39, %v3308_v40  ;;  %v3310_v51 = vrot.slane %v3308_v40, 4  ;;  %v597_v41 = vld [vmem:[%s7769_s11 + $0x18] sm:$0xf] }
  0x48   : > { %v7928_v43 = vsel %vm7873_vm6, %v3303_v34, %v3304_v24  ;;  %v3318_v52 = vrot.slane %v6261_v44, 5  ;;  %v643_v57 = vshrl.u32 %v591_v48, 16  ;;  %v646_v58 = vshll.u32 %v591_v48, 16 }
  0x49   : > { %v6313_v49 = vcombine.low %v7918_v32, %v7928_v43  ;;  %v7942_v55 = vsel %vm7873_vm6, %v6297_v45, %v3315_v47  ;;  %v3317_v56 = vrot.slane %v3315_v47, 4  ;;  %v7948_v60 = vsel %vm7873_vm6, %v3310_v51, %v3311_v3 }
  0x4a   : > { %v652_v61 = vshll.u32 %v592_v53, 16  ;;  %v656_v62 = vshrl.u32 %v592_v53, 16  ;;  %v662_v63 = vshll.u32 %v593_v54, 16  ;;  %v6314_v2 = vcombine.low %v7936_v50, %v7948_v60  ;;  %v598_v54 = vld [vmem:[%s7769_s11 + $0x1c] sm:$0xf] }
  0x4b   : > { %v7961_v4 = vsel %vm7873_vm6, %v3317_v56, %v3318_v52  ;;  %v645_v5 = vrot.slane %v643_v57, 4  ;;  %v648_v6 = vrot.slane %v646_v58, 5  ;;  %v667_v16 = vshrl.u32 %v594_v59, 16  ;;  %v599_v58 = vld [vmem:[%s7769_s11 + $0x20] sm:$0x1] }
  0x4c   : > { %v6315_v9 = vcombine.low %v7942_v55, %v7961_v4  ;;  %v654_v10 = vrot.slane %v652_v61, 5  ;;  %v658_v11 = vrot.slane %v656_v62, 4  ;;  %v664_v12 = vrot.slane %v662_v63, 5 }
  0x4d   : > { %6938 = vmatmul.mubr.msk.bf16.gmra.mrb[24].mxu1 %vm349_vm0, %v7551_v29  ;;  %v649_v14 = vor.u32 %v648_v6, %v645_v5  ;;  %v670_v17 = vshll.u32 %v594_v59, 16  ;;  %v676_v18 = vshll.u32 %v595_v0, 16  ;;  %v680_v22 = vshrl.u32 %v595_v0, 16  ;;  %v600_v6 = vld [vmem:[%s7769_s11 + $0x24] sm:$0xf] }
  0x4e   : > { %6941 = vmatprep.mubr.msk.bf16.mxu1 %vm349_vm0, %v7552_v38  ;;  %7084 = vmatmul.mubr.msk.bf16.vlgmr.msra.gmra.mrb[0].mxu0 %vm349_vm0, %v6311_v37  ;;  %v659_v21 = vor.u32 %v658_v11, %v654_v10  ;;  %v686_v23 = vshll.u32 %v596_v7, 16  ;;  %v6298_v24 = vrot.slane %v6262_v8, 9  ;;  %v669_v27 = vrot.slane %v667_v16, 4  ;;  %v6267_v37 = vld [vmem:[%s7769_s11 + $0x68] sm:$0x1] }
  0x4f   : > { %7116 = vmatpush3.bf16.msra.mxu0 %v7816_v15  ;;  %7087 = vmatprep.mubr.msk.bf16.mxu0 %vm349_vm0, %v6312_v42  ;;  %v650_v26 = vrot.slane %v649_v14, 4  ;;  %v672_v28 = vrot.slane %v670_v17, 5  ;;  %v678_v29 = vrot.slane %v676_v18, 5  ;;  %v682_v35 = vrot.slane %v680_v22, 4  ;;  %v601_v8 = vld [vmem:[%s7769_s11 + $0x28] sm:$0xf] }
  0x50   : > { %7149 = vmatprep.subr.bf16.mxu0 %v7954_v1  ;;  %v660_v34 = vrot.slane %v659_v21, 4  ;;  %v688_v15 = vrot.slane %v686_v23, 5  ;;  %v3322_v36 = vrot.slane %v6263_v13, 5  ;;  %v3325_v40 = vrot.slane %v6264_v19, 5  ;;  %v6268_v13 = vld [vmem:[%s7769_s11 + $0x6c] sm:$0xe] }
  0x51   : > { %v655_v38 = vsel %vm7788_vm3, %v650_v26, %v654_v10  ;;  %v673_v39 = vor.u32 %v672_v28, %v669_v27  ;;  %v6299_v3 = vrot.slane %v6265_v25, 9  ;;  %v683_v44 = vor.u32 %v682_v35, %v678_v29  ;;  %v7564_v10 = vld [vmem:[%s9112_s1 + $0x18] sm:$0xff]   ;;  %v6269_v19 = vld [vmem:[%s7769_s11 + $0x70] sm:$0xf] }
  0x52   : > { %v665_v42 = vsel %vm7788_vm3, %v660_v34, %v664_v12  ;;  %v7985_v45 = vsel %vm7873_vm6, %v6298_v24, %v3322_v36  ;;  %v3324_v47 = vrot.slane %v3322_v36, 4  ;;  %v3329_v52 = vrot.slane %v6266_v31, 5  ;;  %v602_v12 = vld [vmem:[%s7769_s11 + $0x2c] sm:$0x1]  ;;  %v6271_v25 = vld [vmem:[%s7769_s11 + $0x78] sm:$0xe] }
  0x53   : > { %v6012_v48 = vcombine.low %v655_v38, %v665_v42  ;;  %v674_v51 = vrot.slane %v673_v39, 4  ;;  %v3332_v53 = vrot.slane %v6267_v37, 5  ;;  %v684_v56 = vrot.slane %v683_v44, 4  ;;  %v6272_v31 = vld [vmem:[%s7769_s11 + $0x7c] sm:$0xf] }
  0x54   : > { %v3326_v57 = vsel %vm7873_vm6, %v3324_v47, %v3325_v40  ;;  %v691_v59 = vshrl.u32 %v597_v41, 16  ;;  %v694_v61 = vshll.u32 %v597_v41, 16  ;;  %v8001_v0 = vsel %vm7873_vm6, %v6299_v3, %v3329_v52  ;;  %v6273_v37 = vld [vmem:[%s7769_s11 + $0x80] sm:$0x1]  ;;  %v603_v41 = vld [vmem:[%s7769_s11 + $0x30] sm:$0xf] }
  0x55   : > { %6942 = vmatmul.mubr.msk.bf16.gmra.mrb[28].mxu1 %vm349_vm0, %v7553_v20  ;;  %v679_v62 = vsel %vm7788_vm3, %v674_v51, %v678_v29  ;;  %v6316_v63 = vcombine.low %v7985_v45, %v3326_v57  ;;  %v3331_v5 = vrot.slane %v3329_v52, 4  ;;  %v689_v32 = vsel %vm7788_vm3, %v684_v56, %v688_v15  ;;  %v6270_v20 = vld [vmem:[%s7769_s11 + $0x74] sm:$0x1] }
  0x56   : > { %7088 = vmatmul.mubr.msk.bf16.gmra.mrb[4].mxu0 %vm349_vm0, %v6313_v49  ;;  %6947 = vmatprep.mubr.msk.bf16.mxu1 %vm349_vm0, %v6012_v48  ;;  %v693_v43 = vrot.slane %v691_v59, 4  ;;  %v696_v49 = vrot.slane %v694_v61, 5  ;;  %v700_v7 = vshll.u32 %v598_v54, 16  ;;  %v6013_v11 = vcombine.low %v679_v62, %v689_v32  ;;  %v605_v61 = vld [vmem:[%s7769_s11 + $0x38] sm:$0x1] }
  0x57   : > { %7091 = vmatprep.mubr.msk.bf16.mxu0 %vm349_vm0, %v6314_v2  ;;  %v8016_v50 = vsel %vm7873_vm6, %v3331_v5, %v3332_v53  ;;  %v704_v60 = vshrl.u32 %v598_v54, 16  ;;  %v710_v2 = vshll.u32 %v599_v58, 16  ;;  %v715_v18 = vshrl.u32 %v600_v6, 16  ;;  %v606_v62 = vld [vmem:[%s7769_s11 + $0x3c] sm:$0xf] }
  0x58   : > { %v6317_v14 = vcombine.low %v8001_v0, %v8016_v50  ;;  %v697_v16 = vor.u32 %v696_v49, %v693_v43  ;;  %v702_v17 = vrot.slane %v700_v7, 5  ;;  %v718_v23 = vshll.u32 %v600_v6, 16 }
  0x59   : > { %v706_v21 = vrot.slane %v704_v60, 4  ;;  %v712_v22 = vrot.slane %v710_v2, 5  ;;  %v724_v24 = vshll.u32 %v601_v8, 16  ;;  %v717_v27 = vrot.slane %v715_v18, 4 }
  0x5a   : > { %v698_v26 = vrot.slane %v697_v16, 4  ;;  %v728_v28 = vshrl.u32 %v601_v8, 16  ;;  %v734_v29 = vshll.u32 %v602_v12, 16  ;;  %v720_v35 = vrot.slane %v718_v23, 5  ;;  %v608_v12 = vld [vmem:[%s7769_s11 + $0x44] sm:$0x1] }
  0x5b   : > { %v707_v34 = vor.u32 %v706_v21, %v702_v17  ;;  %v726_v15 = vrot.slane %v724_v24, 5  ;;  %v6300_v36 = vrot.slane %v6268_v13, 9  ;;  %v3336_v3 = vrot.slane %v6269_v19, 5  ;;  %v6274_v16 = vld [vmem:[%s7769_s11 + $0x84] sm:$0xe] }
  0x5c   : > { %v703_v38 = vsel %vm7788_vm3, %v698_v26, %v702_v17  ;;  %v730_v39 = vrot.slane %v728_v28, 4  ;;  %v736_v40 = vrot.slane %v734_v29, 5  ;;  %v721_v44 = vor.u32 %v720_v35, %v717_v27  ;;  %v6275_v21 = vld [vmem:[%s7769_s11 + $0x88] sm:$0xf]  ;;  %v6277_v35 = vld [vmem:[%s7769_s11 + $0x90] sm:$0xe] }
  0x5d   : > { %6948 = vmatmul.mubr.msk.bf16.vlgmr.msra.gmra.mrb[0].mxu1 %vm349_vm0, %v6013_v11  ;;  %v708_v42 = vrot.slane %v707_v34, 4  ;;  %v3339_v45 = vrot.slane %v6270_v20, 5  ;;  %v3337_v48 = vsel %vm7873_vm6, %v6300_v36, %v3336_v3  ;;  %v3338_v51 = vrot.slane %v3336_v3, 4 }
  0x5e   : > { %6980 = vmatpush3.bf16.msra.mxu1 %v7860_v30  ;;  %7092 = vmatmul.mubr.msk.bf16.gmra.mrb[8].mxu0 %vm349_vm0, %v6315_v9  ;;  %v6301_v30 = vrot.slane %v6271_v25, 9  ;;  %v731_v47 = vor.u32 %v730_v39, %v726_v15  ;;  %v3343_v52 = vrot.slane %v6272_v31, 5  ;;  %v722_v55 = vrot.slane %v721_v44, 4  ;;  %v604_v9 = vld [vmem:[%s7769_s11 + $0x34] sm:$0xf] }
  0x5f   : > { %7013 = vmatprep.subr.bf16.mxu1 %v7564_v10  ;;  %7095 = vmatprep.mubr.msk.bf16.mxu0 %vm349_vm0, %v6316_v63  ;;  %v713_v53 = vsel %vm7788_vm3, %v708_v42, %v712_v22  ;;  %v3346_v4 = vrot.slane %v6273_v37, 5  ;;  %v739_v54 = vshrl.u32 %v603_v41, 16  ;;  %v3340_v58 = vsel %vm7873_vm6, %v3338_v51, %v3339_v45  ;;  %v607_v10 = vld [vmem:[%s7769_s11 + $0x40] sm:$0xf]  ;;  %v6276_v31 = vld [vmem:[%s7769_s11 + $0x8c] sm:$0x1] }
  0x60   : > { %v6014_v56 = vcombine.low %v703_v38, %v713_v53  ;;  %v732_v57 = vrot.slane %v731_v47, 4  ;;  %v8046_v59 = vsel %vm7873_vm6, %v6301_v30, %v3343_v52  ;;  %v727_v63 = vsel %vm7788_vm3, %v722_v55, %v726_v15  ;;  %v6278_v39 = vld [vmem:[%s7769_s11 + $0x94] sm:$0xf]  ;;  %v6279_v44 = vld [vmem:[%s7769_s11 + $0x98] sm:$0x1] }
  0x61   : > { %v6318_v5 = vcombine.low %v3337_v48, %v3340_v58  ;;  %v3345_v6 = vrot.slane %v3343_v52, 4  ;;  %v741_v32 = vrot.slane %v739_v54, 4  ;;  %v742_v49 = vshll.u32 %v603_v41, 16  ;;  %v609_v45 = vld [vmem:[%s7769_s11 + $0x48] sm:$0xf] }
  0x62   : > { %6951 = vmatprep.mubr.msk.bf16.mxu1 %vm349_vm0, %v6014_v56  ;;  %v737_v43 = vsel %vm7788_vm3, %v732_v57, %v736_v40  ;;  %v748_v7 = vshll.u32 %v604_v9, 16  ;;  %v752_v8 = vshrl.u32 %v604_v9, 16  ;;  %v758_v2 = vshll.u32 %v605_v61, 16  ;;  %v610_v9 = vld [vmem:[%s7769_s11 + $0x4c] sm:$0xf] }
  0x63   : > { %v6015_v11 = vcombine.low %v727_v63, %v737_v43  ;;  %v3347_v60 = vsel %vm7873_vm6, %v3345_v6, %v3346_v4  ;;  %v763_v13 = vshrl.u32 %v606_v62, 16  ;;  %v744_v18 = vrot.slane %v742_v49, 5  ;;  %v611_v58 = vld [vmem:[%s7769_s11 + $0x50] sm:$0x1]  ;;  %v612_v6 = vld [vmem:[%s7769_s11 + $0x54] sm:$0xf] }
  0x64   : > { %v6319_v17 = vcombine.low %v8046_v59, %v3347_v60  ;;  %v750_v19 = vrot.slane %v748_v7, 5  ;;  %v754_v20 = vrot.slane %v752_v8, 4  ;;  %v760_v22 = vrot.slane %v758_v2, 5  ;;  %v613_v8 = vld [vmem:[%s7769_s11 + $0x58] sm:$0xf] }
  0x65   : > { %6952 = vmatmul.mubr.msk.bf16.gmra.mrb[4].mxu1 %vm349_vm0, %v6015_v11  ;;  %v765_v23 = vrot.slane %v763_v13, 4  ;;  %v766_v24 = vshll.u32 %v606_v62, 16  ;;  %v772_v25 = vshll.u32 %v607_v10, 16  ;;  %v745_v26 = vor.u32 %v744_v18, %v741_v32  ;;  %v6280_v13 = vld [vmem:[%s7769_s11 + $0x9c] sm:$0xe] }
  0x66   : > { %7096 = vmatmul.mubr.msk.bf16.gmra.mrb[12].mxu0 %vm349_vm0, %v6317_v14  ;;  %v755_v27 = vor.u32 %v754_v20, %v750_v19  ;;  %v776_v28 = vshrl.u32 %v607_v10, 16  ;;  %v782_v29 = vshll.u32 %v608_v12, 16  ;;  %v6302_v14 = vrot.slane %v6274_v16, 9  ;;  %v614_v12 = vld [vmem:[%s7769_s11 + $0x5c] sm:$0x1] }
  0x67   : > { %7099 = vmatprep.mubr.msk.bf16.mxu0 %vm349_vm0, %v6318_v5  ;;  %v768_v0 = vrot.slane %v766_v24, 5  ;;  %v774_v50 = vrot.slane %v772_v25, 5  ;;  %v3350_v34 = vrot.slane %v6275_v21, 5  ;;  %v746_v15 = vrot.slane %v745_v26, 4  ;;  %v6281_v20 = vld [vmem:[%s7769_s11 + $0xa0] sm:$0xf] }
  0x68   : > { %v756_v36 = vrot.slane %v755_v27, 4  ;;  %v778_v37 = vrot.slane %v776_v28, 4  ;;  %v784_v38 = vrot.slane %v782_v29, 5  ;;  %v3353_v42 = vrot.slane %v6276_v31, 5  ;;  %v6282_v25 = vld [vmem:[%s7769_s11 + $0xa4] sm:$0x1] }
  0x69   : > { %v769_v40 = vor.u32 %v768_v0, %v765_v23  ;;  %v3351_v3 = vsel %vm7873_vm6, %v6302_v14, %v3350_v34  ;;  %v3352_v41 = vrot.slane %v3350_v34, 4  ;;  %v751_v30 = vsel %vm7788_vm3, %v746_v15, %v750_v19  ;;  %v6283_v31 = vld [vmem:[%s7769_s11 + $0xa8] sm:$0xe] }
  0x6a   : > { %v761_v47 = vsel %vm7788_vm3, %v756_v36, %v760_v22  ;;  %v779_v48 = vor.u32 %v778_v37, %v774_v50  ;;  %v6303_v51 = vrot.slane %v6277_v35, 9  ;;  %v3357_v4 = vrot.slane %v6278_v39, 5  ;;  %v6284_v35 = vld [vmem:[%s7769_s11 + $0xac] sm:$0xf]  ;;  %v6285_v39 = vld [vmem:[%s7769_s11 + $0xb0] sm:$0x1] }
  0x6b   : > { %v6016_v52 = vcombine.low %v751_v30, %v761_v47  ;;  %v770_v53 = vrot.slane %v769_v40, 4  ;;  %v3354_v55 = vsel %vm7873_vm6, %v3352_v41, %v3353_v42  ;;  %v3360_v57 = vrot.slane %v6279_v44, 5  ;;  %v615_v44 = vld [vmem:[%s7769_s11 + $0x60] sm:$0xf] }
  0x6c   : > { %v780_v54 = vrot.slane %v779_v48, 4  ;;  %v6320_v56 = vcombine.low %v3351_v3, %v3354_v55  ;;  %v787_v59 = vshrl.u32 %v609_v45, 16  ;;  %v3358_v62 = vsel %vm7873_vm6, %v6303_v51, %v3357_v4 }
  0x6d   : > { %6955 = vmatprep.mubr.msk.bf16.mxu1 %vm349_vm0, %v6016_v52  ;;  %v775_v61 = vsel %vm7788_vm3, %v770_v53, %v774_v50  ;;  %v3359_v63 = vrot.slane %v3357_v4, 4  ;;  %v790_v5 = vshll.u32 %v609_v45, 16  ;;  %v796_v49 = vshll.u32 %v610_v9, 16  ;;  %v616_v45 = vld [vmem:[%s7769_s11 + $0x64] sm:$0xf] }
  0x6e   : > { %7100 = vmatmul.mubr.msk.bf16.gmra.mrb[16].mxu0 %vm349_vm0, %v6319_v17  ;;  %v785_v32 = vsel %vm7788_vm3, %v780_v54, %v784_v38  ;;  %v789_v43 = vrot.slane %v787_v59, 4  ;;  %v800_v7 = vshrl.u32 %v610_v9, 16  ;;  %v806_v2 = vshll.u32 %v611_v58, 16  ;;  %v617_v52 = vld [vmem:[%s7769_s11 + $0x68] sm:$0x1] }
  0x6f   : > { %7103 = vmatprep.mubr.msk.bf16.mxu0 %vm349_vm0, %v6320_v56  ;;  %v6017_v10 = vcombine.low %v775_v61, %v785_v32  ;;  %v3361_v11 = vsel %vm7873_vm6, %v3359_v63, %v3360_v57  ;;  %v792_v60 = vrot.slane %v790_v5, 5  ;;  %v798_v17 = vrot.slane %v796_v49, 5  ;;  %v618_v54 = vld [vmem:[%s7769_s11 + $0x6c] sm:$0xf]  ;;  %v619_v61 = vld [vmem:[%s7769_s11 + $0x70] sm:$0xf] }
  0x70   : > { %v6321_v16 = vcombine.low %v3358_v62, %v3361_v11  ;;  %v802_v18 = vrot.slane %v800_v7, 4  ;;  %v811_v19 = vshrl.u32 %v612_v6, 16  ;;  %v808_v22 = vrot.slane %v806_v2, 5  ;;  %v620_v32 = vld [vmem:[%s7769_s11 + $0x74] sm:$0x1] }
  0x71   : > { %6956 = vmatmul.mubr.msk.bf16.gmra.mrb[8].mxu1 %vm349_vm0, %v6017_v10  ;;  %v793_v21 = vor.u32 %v792_v60, %v789_v43  ;;  %v814_v23 = vshll.u32 %v612_v6, 16  ;;  %v820_v24 = vshll.u32 %v613_v8, 16  ;;  %v824_v28 = vshrl.u32 %v613_v8, 16 }
  0x72   : > { %v803_v26 = vor.u32 %v802_v18, %v798_v17  ;;  %v813_v27 = vrot.slane %v811_v19, 4  ;;  %v830_v29 = vshll.u32 %v614_v12, 16  ;;  %v6304_v34 = vrot.slane %v6280_v13, 9  ;;  %v6286_v12 = vld [vmem:[%s7769_s11 + $0xb4] sm:$0xe] }
  0x73   : > { %v794_v0 = vrot.slane %v793_v21, 4  ;;  %v816_v50 = vrot.slane %v814_v23, 5  ;;  %v822_v14 = vrot.slane %v820_v24, 5  ;;  %v826_v36 = vrot.slane %v824_v28, 4  ;;  %v6287_v13 = vld [vmem:[%s7769_s11 + $0xb8] sm:$0xf] }
  0x74   : > { %v804_v15 = vrot.slane %v803_v26, 4  ;;  %v832_v37 = vrot.slane %v830_v29, 5  ;;  %v3364_v38 = vrot.slane %v6281_v20, 5  ;;  %v3367_v41 = vrot.slane %v6282_v25, 5  ;;  %v6288_v20 = vld [vmem:[%s7769_s11 + $0xbc] sm:$0x1] }
  0x75   : > { %v799_v40 = vsel %vm7788_vm3, %v794_v0, %v798_v17  ;;  %v817_v3 = vor.u32 %v816_v50, %v813_v27  ;;  %v6305_v42 = vrot.slane %v6283_v31, 9  ;;  %v827_v47 = vor.u32 %v826_v36, %v822_v14  ;;  %v6289_v21 = vld [vmem:[%s7769_s11 + $0xc0] sm:$0xe]  ;;  %v6290_v26 = vld [vmem:[%s7769_s11 + $0xc4] sm:$0xf] }
  0x76   : > { %7104 = vmatmul.mubr.msk.bf16.gmra.mrb[20].mxu0 %vm349_vm0, %v6321_v16  ;;  %v809_v30 = vsel %vm7788_vm3, %v804_v15, %v808_v22  ;;  %v3365_v48 = vsel %vm7873_vm6, %v6304_v34, %v3364_v38  ;;  %v3366_v51 = vrot.slane %v3364_v38, 4  ;;  %v3371_v4 = vrot.slane %v6284_v35, 5  ;;  %v6291_v0 = vld [vmem:[%s7769_s11 + $0xc8] sm:$0x1]  ;;  %v621_v50 = vld [vmem:[%s7769_s11 + $0x78] sm:$0xf] }
  0x77   : > { %v6018_v53 = vcombine.low %v799_v40, %v809_v30  ;;  %v818_v55 = vrot.slane %v817_v3, 4  ;;  %v3374_v9 = vrot.slane %v6285_v39, 5  ;;  %v828_v56 = vrot.slane %v827_v47, 4 }
  0x78   : > { %v3368_v57 = vsel %vm7873_vm6, %v3366_v51, %v3367_v41  ;;  %v835_v58 = vshrl.u32 %v615_v44, 16  ;;  %v838_v59 = vshll.u32 %v615_v44, 16  ;;  %v3372_v5 = vsel %vm7873_vm6, %v6305_v42, %v3371_v4 }
  0x79   : > { %6959 = vmatprep.mubr.msk.bf16.mxu1 %vm349_vm0, %v6018_v53  ;;  %v823_v62 = vsel %vm7788_vm3, %v818_v55, %v822_v14  ;;  %v6322_v63 = vcombine.low %v3365_v48, %v3368_v57  ;;  %v3373_v6 = vrot.slane %v3371_v4, 4  ;;  %v833_v43 = vsel %vm7788_vm3, %v828_v56, %v832_v37  ;;  %v622_v53 = vld [vmem:[%s7769_s11 + $0x7c] sm:$0xf]  ;;  %v623_v57 = vld [vmem:[%s7769_s11 + $0x80] sm:$0x1] }
  0x7a   : > { %v837_v49 = vrot.slane %v835_v58, 4  ;;  %v840_v7 = vrot.slane %v838_v59, 5  ;;  %v844_v8 = vshll.u32 %v616_v45, 16  ;;  %v6019_v10 = vcombine.low %v823_v62, %v833_v43  ;;  %v624_v58 = vld [vmem:[%s7769_s11 + $0x84] sm:$0xf] }
  0x7b   : > { %7107 = vmatprep.mubr.msk.bf16.mxu0 %vm349_vm0, %v6322_v63  ;;  %v3375_v11 = vsel %vm7873_vm6, %v3373_v6, %v3374_v9  ;;  %v848_v60 = vshrl.u32 %v616_v45, 16  ;;  %v854_v2 = vshll.u32 %v617_v52, 16  ;;  %v859_v19 = vshrl.u32 %v618_v54, 16  ;;  %v626_v6 = vld [vmem:[%s7769_s11 + $0x8c] sm:$0x1] }
  0x7c   : > { %v6323_v16 = vcombine.low %v3372_v5, %v3375_v11  ;;  %v841_v17 = vor.u32 %v840_v7, %v837_v49  ;;  %v846_v18 = vrot.slane %v844_v8, 5  ;;  %6960 = vmatmul.mubr.msk.bf16.gmra.mrb[12].mxu1 %vm349_vm0, %v6019_v10  ;;  %v862_v24 = vshll.u32 %v618_v54, 16  ;;  %v625_v5 = vld [vmem:[%s7769_s11 + $0x88] sm:$0xf]  ;;  %v7555_v8 = vld [vmem:[%s7769_s11 + $0x18] sm:$0xff]  }
  0x7d   : > { %v850_v22 = vrot.slane %v848_v60, 4  ;;  %v856_v23 = vrot.slane %v854_v2, 5  ;;  %v868_v25 = vshll.u32 %v619_v61, 16  ;;  %v861_v28 = vrot.slane %v859_v19, 4  ;;  %v627_v10 = vld [vmem:[%s7769_s11 + $0x90] sm:$0xf] }
  0x7e   : > { %7108 = vmatmul.mubr.msk.bf16.gmra.mrb[24].mxu0 %vm349_vm0, %v6323_v16  ;;  %v842_v27 = vrot.slane %v841_v17, 4  ;;  %v872_v29 = vshrl.u32 %v619_v61, 16  ;;  %v878_v31 = vshll.u32 %v620_v32, 16  ;;  %v864_v34 = vrot.slane %v862_v24, 5 }
  0x7f   : > { %v851_v14 = vor.u32 %v850_v22, %v846_v18  ;;  %v870_v35 = vrot.slane %v868_v25, 5  ;;  %v6306_v15 = vrot.slane %v6286_v12, 9  ;;  %v3378_v39 = vrot.slane %v6287_v13, 5 }
  0x80   : > { %v847_v36 = vsel %vm7788_vm3, %v842_v27, %v846_v18  ;;  %v874_v37 = vrot.slane %v872_v29, 4  ;;  %v880_v38 = vrot.slane %v878_v31, 5  ;;  %v865_v3 = vor.u32 %v864_v34, %v861_v28  ;;  %v628_v27 = vld [vmem:[%s7769_s11 + $0x94] sm:$0xf]  ;;  %v629_v31 = vld [vmem:[%s7769_s11 + $0x98] sm:$0x1] }
  0x81   : > { %v852_v40 = vrot.slane %v851_v14, 4  ;;  %v3381_v41 = vrot.slane %v6288_v20, 5  ;;  %v6307_v42 = vrot.slane %v6289_v21, 9  ;;  %v3379_v45 = vsel %vm7873_vm6, %v6306_v15, %v3378_v39 }
  0x82   : > { %v875_v44 = vor.u32 %v874_v37, %v870_v35  ;;  %v3380_v30 = vrot.slane %v3378_v39, 4  ;;  %v3385_v47 = vrot.slane %v6290_v26, 5  ;;  %v866_v51 = vrot.slane %v865_v3, 4  ;;  %v630_v37 = vld [vmem:[%s7769_s11 + $0x9c] sm:$0xf] }
  0x83   : > { %v857_v48 = vsel %vm7788_vm3, %v852_v40, %v856_v23  ;;  %v3388_v52 = vrot.slane %v6291_v0, 5  ;;  %v883_v55 = vshrl.u32 %v621_v50, 16  ;;  %v886_v43 = vshll.u32 %v621_v50, 16 }
  0x84   : > { %v6020_v4 = vcombine.low %v847_v36, %v857_v48  ;;  %v876_v9 = vrot.slane %v875_v44, 4  ;;  %v3382_v54 = vsel %vm7873_vm6, %v3380_v30, %v3381_v41  ;;  %v3386_v56 = vsel %vm7873_vm6, %v6307_v42, %v3385_v47  ;;  %v7557_v36 = vld [vmem:[%s7769_s11 + $0x24] sm:$0xff]   ;;  %v631_v41 = vld [vmem:[%s7769_s11 + $0xa0] sm:$0xf]  ;;  %v7558_v42 = vld [vmem:[%s7769_s11 + $0x30] sm:$0xff]  }
  0x85   : > { %v871_v59 = vsel %vm7788_vm3, %v866_v51, %v870_v35  ;;  %v6324_v61 = vcombine.low %v3379_v45, %v3382_v54  ;;  %v3387_v62 = vrot.slane %v3385_v47, 4  ;;  %v885_v63 = vrot.slane %v883_v55, 4  ;;  %v8179_v48 = vld [vmem:[%s9112_s1 + $0x40] sm:$0xff]  }
  0x86   : > { %6963 = vmatprep.mubr.msk.bf16.mxu1 %vm349_vm0, %v6020_v4  ;;  %v881_v32 = vsel %vm7788_vm3, %v876_v9, %v880_v38  ;;  %v892_v49 = vshll.u32 %v622_v53, 16  ;;  %v896_v7 = vshrl.u32 %v622_v53, 16  ;;  %v902_v2 = vshll.u32 %v623_v57, 16 }
  0x87   : > { %v6021_v11 = vcombine.low %v871_v59, %v881_v32  ;;  %7111 = vmatprep.mubr.msk.bf16.mxu0 %vm349_vm0, %v6324_v61  ;;  %v3389_v60 = vsel %vm7873_vm6, %v3387_v62, %v3388_v52  ;;  %v907_v12 = vshrl.u32 %v624_v58, 16  ;;  %v888_v16 = vrot.slane %v886_v43, 5 }
  0x88   : > { %v6325_v13 = vcombine.low %v3386_v56, %v3389_v60  ;;  %v894_v17 = vrot.slane %v892_v49, 5  ;;  %v898_v18 = vrot.slane %v896_v7, 4  ;;  %v904_v19 = vrot.slane %v902_v2, 5  ;;  %v632_v56 = vld [vmem:[%s7769_s11 + $0xa4] sm:$0x1] }
  0x89   : > { %6964 = vmatmul.mubr.msk.bf16.gmra.mrb[16].mxu1 %vm349_vm0, %v6021_v11  ;;  %v909_v20 = vrot.slane %v907_v12, 4  ;;  %v910_v21 = vshll.u32 %v624_v58, 16  ;;  %v916_v22 = vshll.u32 %v625_v5, 16  ;;  %v889_v23 = vor.u32 %v888_v16, %v885_v63  ;;  %v633_v63 = vld [vmem:[%s7769_s11 + $0xa8] sm:$0xf] }
  0x8a   : > { %7112 = vmatmul.mubr.msk.bf16.gmra.mrb[28].mxu0 %vm349_vm0, %v6325_v13  ;;  %v899_v24 = vor.u32 %v898_v18, %v894_v17  ;;  %v920_v25 = vshrl.u32 %v625_v5, 16  ;;  %v926_v26 = vshll.u32 %v626_v6, 16  ;;  %v931_v0 = vshrl.u32 %v627_v10, 16  ;;  %v634_v49 = vld [vmem:[%s7769_s11 + $0xac] sm:$0xf] }
  0x8b   : > { %v912_v28 = vrot.slane %v910_v21, 5  ;;  %v918_v29 = vrot.slane %v916_v22, 5  ;;  %7117 = vmatprep.mubr.msk.bf16.mxu0 %vm349_vm0, %v7555_v8  ;;  %v934_v50 = vshll.u32 %v627_v10, 16  ;;  %v890_v14 = vrot.slane %v889_v23, 4  ;;  %v635_v60 = vld [vmem:[%s7769_s11 + $0xb0] sm:$0x1] }
  0x8c   : > { %v900_v34 = vrot.slane %v899_v24, 4  ;;  %v922_v35 = vrot.slane %v920_v25, 4  ;;  %v928_v15 = vrot.slane %v926_v26, 5  ;;  %v933_v39 = vrot.slane %v931_v0, 4  ;;  %v636_v2 = vld [vmem:[%s7769_s11 + $0xb4] sm:$0xf] }
  0x8d   : > { %v913_v38 = vor.u32 %v912_v28, %v909_v20  ;;  %v936_v40 = vrot.slane %v934_v50, 5  ;;  %v940_v3 = vshll.u32 %v628_v27, 16  ;;  %v895_v44 = vsel %vm7788_vm3, %v890_v14, %v894_v17  ;;  %v637_v18 = vld [vmem:[%s7769_s11 + $0xb8] sm:$0xf]  ;;  %v7559_v25 = vld [vmem:[%s7769_s11 + $0x3c] sm:$0xff]   ;;  %v7560_v50 = vld [vmem:[%s7769_s11 + $0x48] sm:$0xff]  }
  0x8e   : > { %v905_v45 = vsel %vm7788_vm3, %v900_v34, %v904_v19  ;;  %v923_v30 = vor.u32 %v922_v35, %v918_v29  ;;  %v944_v47 = vshrl.u32 %v628_v27, 16  ;;  %v950_v54 = vshll.u32 %v629_v31, 16  ;;  %v638_v0 = vld [vmem:[%s7769_s11 + $0xbc] sm:$0x1]  ;;  %v1387_v14 = vld [vmem:[%s7769_s11] sm:$0xe] }
  0x8f   : > { %v6022_v51 = vcombine.low %v895_v44, %v905_v45  ;;  %v914_v52 = vrot.slane %v913_v38, 4  ;;  %v937_v53 = vor.u32 %v936_v40, %v933_v39  ;;  %v942_v55 = vrot.slane %v940_v3, 5  ;;  %v1388_v3 = vld [vmem:[%s7769_s11 + $0x4] sm:$0xf] }
  0x90   : > { %v924_v4 = vrot.slane %v923_v30, 4  ;;  %v946_v9 = vrot.slane %v944_v47, 4  ;;  %v955_v57 = vshrl.u32 %v630_v37, 16  ;;  %v958_v61 = vshll.u32 %v630_v37, 16  ;;  %v1390_v47 = vld [vmem:[%s7769_s11 + $0xc] sm:$0xe] }
  0x91   : > { %6967 = vmatprep.mubr.msk.bf16.mxu1 %vm349_vm0, %v6022_v51  ;;  %v919_v58 = vsel %vm7788_vm3, %v914_v52, %v918_v29  ;;  %v938_v59 = vrot.slane %v937_v53, 4  ;;  %v964_v62 = vshll.u32 %v631_v41, 16  ;;  %v952_v32 = vrot.slane %v950_v54, 5 }
  0x92   : > { %v929_v5 = vsel %vm7788_vm3, %v924_v4, %v928_v15  ;;  %7118 = vmatmul.mubr.msk.bf16.vlgmr.msra.gmra.mrb[0].mxu0 %vm349_vm0, %v7557_v36  ;;  %v947_v6 = vor.u32 %v946_v9, %v942_v55  ;;  %v957_v43 = vrot.slane %v955_v57, 4  ;;  %v960_v10 = vrot.slane %v958_v61, 5  ;;  %v1391_v4 = vld [vmem:[%s7769_s11 + $0x10] sm:$0xf]  ;;  %v1392_v9 = vld [vmem:[%s7769_s11 + $0x14] sm:$0x1] }
  0x93   : > { %v6023_v7 = vcombine.low %v919_v58, %v929_v5  ;;  %7150 = vmatpush3.bf16.msra.mxu0 %v7954_v1  ;;  %v943_v8 = vsel %vm7788_vm3, %v938_v59, %v942_v55  ;;  %v966_v11 = vrot.slane %v964_v62, 5  ;;  %7121 = vmatprep.mubr.msk.bf16.mxu0 %vm349_vm0, %v7558_v42  ;;  %v968_v13 = vshrl.u32 %v631_v41, 16  ;;  %v1389_v41 = vld [vmem:[%s7769_s11 + $0x8] sm:$0x1]  ;;  %v1393_v59 = vld [vmem:[%s7769_s11 + $0x18] sm:$0xe] }
  0x94   : > { %v948_v12 = vrot.slane %v947_v6, 4  ;;  %v974_v16 = vshll.u32 %v632_v56, 16  ;;  %v979_v17 = vshrl.u32 %v633_v63, 16  ;;  %7183 = vmatprep.subr.bf16.mxu0 %v8179_v48  ;;  %v961_v1 = vor.u32 %v960_v10, %v957_v43  ;;  %v7561_v6 = vld [vmem:[%s7769_s11 + $0x54] sm:$0xff]   ;;  %v1395_v43 = vld [vmem:[%s7769_s11 + $0x20] sm:$0x1] }
  0x95   : > { %6968 = vmatmul.mubr.msk.bf16.gmra.mrb[20].mxu1 %vm349_vm0, %v6023_v7  ;;  %v982_v19 = vshll.u32 %v633_v63, 16  ;;  %v988_v20 = vshll.u32 %v634_v49, 16  ;;  %v992_v21 = vshrl.u32 %v634_v49, 16  ;;  %v970_v23 = vrot.slane %v968_v13, 4 }
  0x96   : > { %v953_v22 = vsel %vm7788_vm3, %v948_v12, %v952_v32  ;;  %v976_v24 = vrot.slane %v974_v16, 5  ;;  %v981_v26 = vrot.slane %v979_v17, 4  ;;  %v962_v28 = vrot.slane %v961_v1, 4  ;;  %v1394_v32 = vld [vmem:[%s7769_s11 + $0x1c] sm:$0xf] }
  0x97   : > { %v6024_v27 = vcombine.low %v943_v8, %v953_v22  ;;  %v984_v29 = vrot.slane %v982_v19, 5  ;;  %v990_v31 = vrot.slane %v988_v20, 5  ;;  %v971_v34 = vor.u32 %v970_v23, %v966_v11  ;;  %v1396_v16 = vld [vmem:[%s7769_s11 + $0x24] sm:$0xe]  ;;  %v1397_v17 = vld [vmem:[%s7769_s11 + $0x28] sm:$0xf] }
  0x98   : > { %v994_v35 = vrot.slane %v992_v21, 4  ;;  %v998_v15 = vshll.u32 %v635_v60, 16  ;;  %v1003_v36 = vshrl.u32 %v636_v2, 16  ;;  %v967_v37 = vsel %vm7788_vm3, %v962_v28, %v966_v11  ;;  %v7562_v11 = vld [vmem:[%s7769_s11 + $0x60] sm:$0xff]   ;;  %v1398_v21 = vld [vmem:[%s7769_s11 + $0x2c] sm:$0x1] }
  0x99   : > { %6971 = vmatprep.mubr.msk.bf16.mxu1 %vm349_vm0, %v6024_v27  ;;  %v985_v38 = vor.u32 %v984_v29, %v981_v26  ;;  %v1006_v39 = vshll.u32 %v636_v2, 16  ;;  %v1012_v40 = vshll.u32 %v637_v18, 16  ;;  %v972_v42 = vrot.slane %v971_v34, 4  ;;  %v1399_v22 = vld [vmem:[%s7769_s11 + $0x30] sm:$0xe] }
  0x9a   : > { %7122 = vmatmul.mubr.msk.bf16.gmra.mrb[4].mxu0 %vm349_vm0, %v7559_v25  ;;  %v995_v44 = vor.u32 %v994_v35, %v990_v31  ;;  %v1000_v45 = vrot.slane %v998_v15, 5  ;;  %v1005_v30 = vrot.slane %v1003_v36, 4  ;;  %v1016_v55 = vshrl.u32 %v637_v18, 16  ;;  %v1400_v27 = vld [vmem:[%s7769_s11 + $0x34] sm:$0xf] }
  0x9b   : > { %v986_v51 = vrot.slane %v985_v38, 4  ;;  %v1008_v52 = vrot.slane %v1006_v39, 5  ;;  %v1014_v53 = vrot.slane %v1012_v40, 5  ;;  %7125 = vmatprep.mubr.msk.bf16.mxu0 %vm349_vm0, %v7560_v50  ;;  %v977_v54 = vsel %vm7788_vm3, %v972_v42, %v976_v24  ;;  %v1401_v50 = vld [vmem:[%s7769_s11 + $0x38] sm:$0x1] }
  0x9c   : > { %v996_v56 = vrot.slane %v995_v44, 4  ;;  %v1022_v57 = vshll.u32 %v638_v0, 16  ;;  %v6045_v58 = vrot.slane %v1387_v14, 9  ;;  %v6025_v61 = vcombine.low %v967_v37, %v977_v54  ;;  %v1402_v14 = vld [vmem:[%s7769_s11 + $0x3c] sm:$0xe] }
  0x9d   : > { %v991_v62 = vsel %vm7788_vm3, %v986_v51, %v990_v31  ;;  %v1009_v63 = vor.u32 %v1008_v52, %v1005_v30  ;;  %v1018_v5 = vrot.slane %v1016_v55, 4  ;;  %v1488_v8 = vrot.slane %v1388_v3, 5  ;;  %v1403_v34 = vld [vmem:[%s7769_s11 + $0x40] sm:$0xf]  ;;  %v1404_v38 = vld [vmem:[%s7769_s11 + $0x44] sm:$0x1] }
  0x9e   : > { %v1001_v49 = vsel %vm7788_vm3, %v996_v56, %v1000_v45  ;;  %v1024_v7 = vrot.slane %v1022_v57, 5  ;;  %v1491_v10 = vrot.slane %v1389_v41, 5  ;;  %6972 = vmatmul.mubr.msk.bf16.gmra.mrb[24].mxu1 %vm349_vm0, %v6025_v61  ;;  %v6046_v13 = vrot.slane %v1390_v47, 9  ;;  %v1405_v39 = vld [vmem:[%s7769_s11 + $0x48] sm:$0xe]  ;;  %v7563_v41 = vld [vmem:[%s7769_s11 + $0x6c] sm:$0xff]  }
  0x9f   : > { %v6026_v60 = vcombine.low %v991_v62, %v1001_v49  ;;  %v1010_v2 = vrot.slane %v1009_v63, 4  ;;  %v1019_v12 = vor.u32 %v1018_v5, %v1014_v53  ;;  %v1489_v18 = vsel %vm7873_vm6, %v6045_v58, %v1488_v8  ;;  %v1406_v45 = vld [vmem:[%s7769_s11 + $0x4c] sm:$0xf]  ;;  %v7565_v52 = vld [vmem:[%s7769_s11 + $0x78] sm:$0xff]   ;;  %v1407_v55 = vld [vmem:[%s7769_s11 + $0x50] sm:$0x1] }
  0xa0   : > { %v1490_v1 = vrot.slane %v1488_v8, 4  ;;  %v1495_v19 = vrot.slane %v1391_v4, 5  ;;  %v1498_v20 = vrot.slane %v1392_v9, 5  ;;  %v6047_v25 = vrot.slane %v1393_v59, 9  ;;  %v1408_v4 = vld [vmem:[%s7769_s11 + $0x54] sm:$0xe] }
  0xa1   : > { %6975 = vmatprep.mubr.msk.bf16.mxu1 %vm349_vm0, %v6026_v60  ;;  %v1015_v23 = vsel %vm7788_vm3, %v1010_v2, %v1014_v53  ;;  %v1020_v24 = vrot.slane %v1019_v12, 4  ;;  %v1502_v26 = vrot.slane %v1394_v32, 5  ;;  %v1505_v0 = vrot.slane %v1395_v43, 5  ;;  %v1409_v58 = vld [vmem:[%s7769_s11 + $0x58] sm:$0xf] }
  0xa2   : > { %7126 = vmatmul.mubr.msk.bf16.gmra.mrb[8].mxu0 %vm349_vm0, %v7561_v6  ;;  %v1492_v28 = vsel %vm7873_vm6, %v1490_v1, %v1491_v10  ;;  %v8242_v29 = vsel %vm7873_vm6, %v6046_v13, %v1495_v19  ;;  %v1497_v31 = vrot.slane %v1495_v19, 4  ;;  %v6048_v42 = vrot.slane %v1396_v16, 9  ;;  %v1410_v5 = vld [vmem:[%s7769_s11 + $0x5c] sm:$0x1]  ;;  %v1412_v8 = vld [vmem:[%s7769_s11 + $0x64] sm:$0xf] }
  0xa3   : > { %v1025_v35 = vsel %vm7788_vm3, %v1020_v24, %v1024_v7  ;;  %v6061_v15 = vcombine.low %v1489_v18, %v1492_v28  ;;  %7129 = vmatprep.mubr.msk.bf16.mxu0 %vm349_vm0, %v7562_v11  ;;  %v8252_v36 = vsel %vm7873_vm6, %v6047_v25, %v1502_v26  ;;  %v1504_v37 = vrot.slane %v1502_v26, 4  ;;  %v1411_v7 = vld [vmem:[%s7769_s11 + $0x60] sm:$0xe]  ;;  %v1413_v10 = vld [vmem:[%s7769_s11 + $0x68] sm:$0x1] }
  0xa4   : > { %v6027_v40 = vcombine.low %v1015_v23, %v1025_v35  ;;  %v8258_v3 = vsel %vm7873_vm6, %v1497_v31, %v1498_v20  ;;  %v1509_v44 = vrot.slane %v1397_v17, 5  ;;  %v1512_v51 = vrot.slane %v1398_v21, 5  ;;  %v1414_v13 = vld [vmem:[%s7769_s11 + $0x6c] sm:$0xe]  ;;  %v1415_v16 = vld [vmem:[%s7769_s11 + $0x70] sm:$0xf] }
  0xa5   : > { %v6062_v30 = vcombine.low %v8242_v29, %v8258_v3  ;;  %v8266_v47 = vsel %vm7873_vm6, %v1504_v37, %v1505_v0  ;;  %v6049_v53 = vrot.slane %v1399_v22, 9  ;;  %v1516_v57 = vrot.slane %v1400_v27, 5  ;;  %v1416_v20 = vld [vmem:[%s7769_s11 + $0x74] sm:$0x1]  ;;  %v7566_v25 = vld [vmem:[%s7769_s11 + $0x84] sm:$0xff]  }
  0xa6   : > { %v6063_v9 = vcombine.low %v8252_v36, %v8266_v47  ;;  %v8275_v54 = vsel %vm7873_vm6, %v6048_v42, %v1509_v44  ;;  %v1511_v56 = vrot.slane %v1509_v44, 4  ;;  %6976 = vmatmul.mubr.msk.bf16.gmra.mrb[28].mxu1 %vm349_vm0, %v6027_v40  ;;  %v1519_v59 = vrot.slane %v1401_v50, 5  ;;  %v1417_v31 = vld [vmem:[%s7769_s11 + $0x78] sm:$0xe]  ;;  %v7567_v0 = vld [vmem:[%s7769_s11 + $0x90] sm:$0xff]  }
  0xa7   : > { %v6050_v61 = vrot.slane %v1402_v14, 9  ;;  %v1523_v62 = vrot.slane %v1403_v34, 5  ;;  %v1526_v63 = vrot.slane %v1404_v38, 5  ;;  %6981 = vmatprep.mubr.msk.bf16.mxu1 %vm349_vm0, %v6061_v15  ;;  %v8287_v32 = vsel %vm7873_vm6, %v6049_v53, %v1516_v57  ;;  %v1418_v15 = vld [vmem:[%s7769_s11 + $0x7c] sm:$0xf] }
  0xa8   : > { %v8283_v6 = vsel %vm7873_vm6, %v1511_v56, %v1512_v51  ;;  %v1518_v43 = vrot.slane %v1516_v57, 4  ;;  %v6051_v49 = vrot.slane %v1405_v39, 9  ;;  %v1530_v12 = vrot.slane %v1406_v45, 5  ;;  %v1419_v40 = vld [vmem:[%s7769_s11 + $0x80] sm:$0x1] }
  0xa9   : > { %v6064_v11 = vcombine.low %v8275_v54, %v8283_v6  ;;  %v8296_v60 = vsel %vm7873_vm6, %v6050_v61, %v1523_v62  ;;  %v1525_v2 = vrot.slane %v1523_v62, 4  ;;  %v1533_v18 = vrot.slane %v1407_v55, 5  ;;  %v1420_v3 = vld [vmem:[%s7769_s11 + $0x84] sm:$0xe]  ;;  %v1421_v47 = vld [vmem:[%s7769_s11 + $0x88] sm:$0xf] }
  0xaa   : > { %7130 = vmatmul.mubr.msk.bf16.gmra.mrb[12].mxu0 %vm349_vm0, %v7563_v41  ;;  %v8303_v17 = vsel %vm7873_vm6, %v1518_v43, %v1519_v59  ;;  %v6052_v1 = vrot.slane %v1408_v4, 9  ;;  %v1537_v19 = vrot.slane %v1409_v58, 5  ;;  %v8315_v23 = vsel %vm7873_vm6, %v6051_v49, %v1530_v12  ;;  %v1422_v51 = vld [vmem:[%s7769_s11 + $0x8c] sm:$0x1]  ;;  %v6410_v56 = vld [vmem:[%s7769_s11 + $0x18] sm:$0xf] }
  0xab   : > { %7133 = vmatprep.mubr.msk.bf16.mxu0 %vm349_vm0, %v7565_v52  ;;  %v6065_v21 = vcombine.low %v8287_v32, %v8303_v17  ;;  %v8311_v22 = vsel %vm7873_vm6, %v1525_v2, %v1526_v63  ;;  %v1532_v24 = vrot.slane %v1530_v12, 4  ;;  %v1540_v29 = vrot.slane %v1410_v5, 5  ;;  %v7590_v52 = vld [vmem:[%s9112_s1 + $0x18] sm:$0xff]   ;;  %v8365_v62 = vld [vmem:[%s9112_s1 + $0x20] sm:$0xff]  }
  0xac   : > { %v6066_v26 = vcombine.low %v8296_v60, %v8311_v22  ;;  %v8322_v27 = vsel %vm7873_vm6, %v6052_v1, %v1537_v19  ;;  %v1539_v28 = vrot.slane %v1537_v19, 4  ;;  %v6053_v14 = vrot.slane %v1411_v7, 9  ;;  %v6411_v61 = vld [vmem:[%s7769_s11 + $0x1c] sm:$0xf]  ;;  %v6412_v7 = vld [vmem:[%s7769_s11 + $0x20] sm:$0x1] }
  0xad   : > { %v8328_v50 = vsel %vm7873_vm6, %v1532_v24, %v1533_v18  ;;  %v1544_v34 = vrot.slane %v1412_v8, 5  ;;  %v1547_v35 = vrot.slane %v1413_v10, 5  ;;  %v6054_v38 = vrot.slane %v1414_v13, 9  ;;  %v6413_v13 = vld [vmem:[%s7769_s11 + $0x24] sm:$0xf] }
  0xae   : > { %v6067_v36 = vcombine.low %v8315_v23, %v8328_v50  ;;  %v8335_v37 = vsel %vm7873_vm6, %v1539_v28, %v1540_v29  ;;  %v1551_v39 = vrot.slane %v1415_v16, 5  ;;  %6982 = vmatmul.mubr.msk.bf16.vlgmr.msra.gmra.mrb[0].mxu1 %vm349_vm0, %v6062_v30  ;;  %v1554_v45 = vrot.slane %v1416_v20, 5  ;;  %v7568_v16 = vld [vmem:[%s7769_s11 + $0x9c] sm:$0xff]   ;;  %v6414_v24 = vld [vmem:[%s7769_s11 + $0x28] sm:$0xf] }
  0xaf   : > { %v6068_v41 = vcombine.low %v8322_v27, %v8335_v37  ;;  %v8344_v42 = vsel %vm7873_vm6, %v6053_v14, %v1544_v34  ;;  %v1546_v44 = vrot.slane %v1544_v34, 4  ;;  %6985 = vmatprep.mubr.msk.bf16.mxu1 %vm349_vm0, %v6063_v9  ;;  %7014 = vmatpush3.bf16.msra.mxu1 %v7590_v52  ;;  %v6055_v55 = vrot.slane %v1417_v31, 9  ;;  %v1423_v14 = vld [vmem:[%s7769_s11 + $0x90] sm:$0xe]  ;;  %v7569_v34 = vld [vmem:[%s7769_s11 + $0xa8] sm:$0xff]  }
  0xb0   : > { %v8354_v30 = vsel %vm7873_vm6, %v6054_v38, %v1551_v39  ;;  %v1553_v53 = vrot.slane %v1551_v39, 4  ;;  %v1558_v4 = vrot.slane %v1418_v15, 5  ;;  %v1561_v58 = vrot.slane %v1419_v40, 5  ;;  %7217 = vmatprep.subr.bf16.mxu1 %v8365_v62  ;;  %v1424_v40 = vld [vmem:[%s7769_s11 + $0x94] sm:$0xf] }
  0xb1   : > { %v8359_v57 = vsel %vm7873_vm6, %v1546_v44, %v1547_v35  ;;  %v6056_v9 = vrot.slane %v1420_v3, 9  ;;  %v1565_v59 = vrot.slane %v1421_v47, 5  ;;  %v1568_v12 = vrot.slane %v1422_v51, 5  ;;  %v1425_v51 = vld [vmem:[%s7769_s11 + $0x98] sm:$0x1] }
  0xb2   : > { %7134 = vmatmul.mubr.msk.bf16.gmra.mrb[16].mxu0 %vm349_vm0, %v7566_v25  ;;  %v6069_v63 = vcombine.low %v8344_v42, %v8359_v57  ;;  %v8373_v5 = vsel %vm7873_vm6, %v1553_v53, %v1554_v45  ;;  %v8377_v43 = vsel %vm7873_vm6, %v6055_v55, %v1558_v4  ;;  %v1560_v49 = vrot.slane %v1558_v4, 4  ;;  %v6423_v57 = vld [vmem:[%s7769_s11 + $0x4c] sm:$0xf] }
  0xb3   : > { %7137 = vmatprep.mubr.msk.bf16.mxu0 %vm349_vm0, %v7567_v0  ;;  %v6070_v8 = vcombine.low %v8354_v30, %v8373_v5  ;;  %v8385_v10 = vsel %vm7873_vm6, %v6056_v9, %v1565_v59  ;;  %v1567_v2 = vrot.slane %v1565_v59, 4  ;;  %v4230_v1 = vshrl.u32 %v6410_v56, 16  ;;  %v6415_v0 = vld [vmem:[%s7769_s11 + $0x2c] sm:$0x1]  ;;  %v1427_v9 = vld [vmem:[%s7769_s11 + $0xa0] sm:$0xf] }
  0xb4   : > { %v8391_v18 = vsel %vm7873_vm6, %v1560_v49, %v1561_v58  ;;  %v4233_v19 = vshll.u32 %v6410_v56, 16  ;;  %v4239_v20 = vshll.u32 %v6411_v61, 16  ;;  %v4243_v29 = vshrl.u32 %v6411_v61, 16  ;;  %v1426_v56 = vld [vmem:[%s7769_s11 + $0x9c] sm:$0xe] }
  0xb5   : > { %v6071_v25 = vcombine.low %v8377_v43, %v8391_v18  ;;  %v8398_v28 = vsel %vm7873_vm6, %v1567_v2, %v1568_v12  ;;  %v4249_v31 = vshll.u32 %v6412_v7, 16  ;;  %v4232_v15 = vrot.slane %v4230_v1, 4  ;;  %v1428_v1 = vld [vmem:[%s7769_s11 + $0xa4] sm:$0x1]  ;;  %v6430_v43 = vld [vmem:[%s7769_s11 + $0x68] sm:$0x1] }
  0xb6   : > { %v6072_v35 = vcombine.low %v8385_v10, %v8398_v28  ;;  %v4235_v38 = vrot.slane %v4233_v19, 5  ;;  %v4241_v39 = vrot.slane %v4239_v20, 5  ;;  %6986 = vmatmul.mubr.msk.bf16.gmra.mrb[4].mxu1 %vm349_vm0, %v6064_v11  ;;  %v4245_v3 = vrot.slane %v4243_v29, 4  ;;  %v6416_v20 = vld [vmem:[%s7769_s11 + $0x30] sm:$0xf] }
  0xb7   : > { %v4251_v44 = vrot.slane %v4249_v31, 5  ;;  %v4254_v45 = vshrl.u32 %v6413_v13, 16  ;;  %v4257_v47 = vshll.u32 %v6413_v13, 16  ;;  %6989 = vmatprep.mubr.msk.bf16.mxu1 %vm349_vm0, %v6065_v21  ;;  %v4263_v53 = vshll.u32 %v6414_v24, 16 }
  0xb8   : > { %v4236_v52 = vor.u32 %v4235_v38, %v4232_v15  ;;  %v4267_v55 = vshrl.u32 %v6414_v24, 16  ;;  %v4273_v4 = vshll.u32 %v6415_v0, 16  ;;  %v4246_v58 = vor.u32 %v4245_v3, %v4241_v39  ;;  %v7571_v3 = vld [vmem:[%s7769_s11 + $0xc0] sm:$0xff]  }
  0xb9   : > { %v4256_v54 = vrot.slane %v4254_v45, 4  ;;  %v4259_v6 = vrot.slane %v4257_v47, 5  ;;  %v6057_v11 = vrot.slane %v1423_v14, 9  ;;  %v4265_v61 = vrot.slane %v4263_v53, 5  ;;  %v6417_v14 = vld [vmem:[%s7769_s11 + $0x34] sm:$0xf] }
  0xba   : > { %7138 = vmatmul.mubr.msk.bf16.gmra.mrb[20].mxu0 %vm349_vm0, %v7568_v16  ;;  %v4237_v59 = vrot.slane %v4236_v52, 4  ;;  %v4269_v49 = vrot.slane %v4267_v55, 4  ;;  %v4275_v32 = vrot.slane %v4273_v4, 5  ;;  %v4247_v17 = vrot.slane %v4246_v58, 4  ;;  %v6419_v55 = vld [vmem:[%s7769_s11 + $0x3c] sm:$0xf] }
  0xbb   : > { %7141 = vmatprep.mubr.msk.bf16.mxu0 %vm349_vm0, %v7569_v34  ;;  %v4260_v21 = vor.u32 %v4259_v6, %v4256_v54  ;;  %v1572_v7 = vrot.slane %v1424_v40, 5  ;;  %v1575_v2 = vrot.slane %v1425_v51, 5  ;;  %v6058_v19 = vrot.slane %v1426_v56, 9  ;;  %v7570_v34 = vld [vmem:[%s7769_s11 + $0xb4] sm:$0xff]   ;;  %v6420_v4 = vld [vmem:[%s7769_s11 + $0x40] sm:$0xf] }
  0xbc   : > { %v4242_v12 = vsel %vm7788_vm3, %v4237_v59, %v4241_v39  ;;  %v4270_v13 = vor.u32 %v4269_v49, %v4265_v61  ;;  %v1579_v16 = vrot.slane %v1427_v9, 5  ;;  %v4252_v24 = vsel %vm7788_vm3, %v4247_v17, %v4251_v44  ;;  %v6418_v51 = vld [vmem:[%s7769_s11 + $0x38] sm:$0x1]  ;;  %v1429_v54 = vld [vmem:[%s7769_s11 + $0xa8] sm:$0xe] }
  0xbd   : > { %v4261_v29 = vrot.slane %v4260_v21, 4  ;;  %v8427_v31 = vsel %vm7873_vm6, %v6057_v11, %v1572_v7  ;;  %v1574_v0 = vrot.slane %v1572_v7, 4  ;;  %v8431_v15 = vcombine.low %v4242_v12, %v4252_v24  ;;  %v1431_v7 = vld [vmem:[%s7769_s11 + $0xb0] sm:$0x1] }
  0xbe   : > { %v4271_v38 = vrot.slane %v4270_v13, 4  ;;  %v8435_v39 = vsel %vm7873_vm6, %v6058_v19, %v1579_v16  ;;  %v1581_v40 = vrot.slane %v1579_v16, 4  ;;  %6990 = vmatmul.mubr.msk.bf16.gmra.mrb[8].mxu1 %vm349_vm0, %v6066_v26  ;;  %v1582_v47 = vrot.slane %v1428_v1, 5  ;;  %v1432_v19 = vld [vmem:[%s7769_s11 + $0xb4] sm:$0xe]  ;;  %v7572_v16 = vld [vmem:[%s7769_s11 + $0xcc] sm:$0xff]  }
  0xbf   : > { %v4266_v44 = vsel %vm7788_vm3, %v4261_v29, %v4265_v61  ;;  %v8446_v45 = vsel %vm7873_vm6, %v1574_v0, %v1575_v2  ;;  %v4278_v52 = vshrl.u32 %v6416_v20, 16  ;;  %6993 = vmatprep.mubr.msk.bf16.mxu1 %vm349_vm0, %v6067_v36  ;;  %v4281_v26 = vshll.u32 %v6416_v20, 16  ;;  %v6421_v36 = vld [vmem:[%s7769_s11 + $0x44] sm:$0x1]  ;;  %v1430_v61 = vld [vmem:[%s7769_s11 + $0xac] sm:$0xf] }
  0xc0   : > { %v4276_v60 = vsel %vm7788_vm3, %v4271_v38, %v4275_v32  ;;  %v6073_v22 = vcombine.low %v8427_v31, %v8446_v45  ;;  %v4287_v53 = vshll.u32 %v6417_v14, 16  ;;  %v8463_v58 = vsel %vm7873_vm6, %v1581_v40, %v1582_v47  ;;  %v6422_v47 = vld [vmem:[%s7769_s11 + $0x48] sm:$0xf] }
  0xc1   : > { %v8459_v56 = vcombine.low %v4266_v44, %v4276_v60  ;;  %v4280_v23 = vrot.slane %v4278_v52, 4  ;;  %v4291_v50 = vshrl.u32 %v6417_v14, 16  ;;  %v6074_v6 = vcombine.low %v8435_v39, %v8463_v58  ;;  %v1433_v14 = vld [vmem:[%s7769_s11 + $0xb8] sm:$0xf]  ;;  %v1434_v44 = vld [vmem:[%s7769_s11 + $0xbc] sm:$0x1] }
  0xc2   : > { %7142 = vmatmul.mubr.msk.bf16.gmra.mrb[24].mxu0 %vm349_vm0, %v7570_v34  ;;  %v4283_v11 = vrot.slane %v4281_v26, 5  ;;  %v4289_v9 = vrot.slane %v4287_v53, 5  ;;  %v4297_v59 = vshll.u32 %v6418_v51, 16  ;;  %v4302_v32 = vshrl.u32 %v6419_v55, 16 }
  0xc3   : > { %7145 = vmatprep.mubr.msk.bf16.mxu0 %vm349_vm0, %v7571_v3  ;;  %v4293_v49 = vrot.slane %v4291_v50, 4  ;;  %v4305_v17 = vshll.u32 %v6419_v55, 16  ;;  %v4311_v21 = vshll.u32 %v6420_v4, 16  ;;  %v4315_v13 = vshrl.u32 %v6420_v4, 16 }
  0xc4   : > { %v4284_v2 = vor.u32 %v4283_v11, %v4280_v23  ;;  %v4299_v12 = vrot.slane %v4297_v59, 5  ;;  %v4321_v1 = vshll.u32 %v6421_v36, 16  ;;  %v4304_v24 = vrot.slane %v4302_v32, 4  ;;  %v6424_v11 = vld [vmem:[%s7769_s11 + $0x50] sm:$0x1] }
  0xc5   : > { %v4294_v20 = vor.u32 %v4293_v49, %v4289_v9  ;;  %v4307_v29 = vrot.slane %v4305_v17, 5  ;;  %v4313_v0 = vrot.slane %v4311_v21, 5  ;;  %v4317_v38 = vrot.slane %v4315_v13, 4  ;;  %v6425_v32 = vld [vmem:[%s7769_s11 + $0x54] sm:$0xf] }
  0xc6   : > { %v4285_v34 = vrot.slane %v4284_v2, 4  ;;  %v4323_v40 = vrot.slane %v4321_v1, 5  ;;  %v6059_v3 = vrot.slane %v1429_v54, 9  ;;  %6994 = vmatmul.mubr.msk.bf16.gmra.mrb[12].mxu1 %vm349_vm0, %v6068_v41  ;;  %v1586_v60 = vrot.slane %v1430_v61, 5  ;;  %v6426_v17 = vld [vmem:[%s7769_s11 + $0x58] sm:$0xf] }
  0xc7   : > { %v4295_v51 = vrot.slane %v4294_v20, 4  ;;  %v4308_v52 = vor.u32 %v4307_v29, %v4304_v24  ;;  %v1589_v26 = vrot.slane %v1431_v7, 5  ;;  %6997 = vmatprep.mubr.msk.bf16.mxu1 %vm349_vm0, %v6069_v63  ;;  %v4318_v55 = vor.u32 %v4317_v38, %v4313_v0 }
  0xc8   : > { %v4290_v53 = vsel %vm7788_vm3, %v4285_v34, %v4289_v9  ;;  %v6060_v4 = vrot.slane %v1432_v19, 9  ;;  %v1593_v23 = vrot.slane %v1433_v14, 5  ;;  %v8492_v41 = vsel %vm7873_vm6, %v6059_v3, %v1586_v60  ;;  %v6428_v3 = vld [vmem:[%s7769_s11 + $0x60] sm:$0xf] }
  0xc9   : > { %v4300_v27 = vsel %vm7788_vm3, %v4295_v51, %v4299_v12  ;;  %v4309_v37 = vrot.slane %v4308_v52, 4  ;;  %v1588_v42 = vrot.slane %v1586_v60, 4  ;;  %v4319_v50 = vrot.slane %v4318_v55, 4  ;;  %v6427_v12 = vld [vmem:[%s7769_s11 + $0x5c] sm:$0x1] }
  0xca   : > { %7146 = vmatmul.mubr.msk.bf16.gmra.mrb[28].mxu0 %vm349_vm0, %v7572_v16  ;;  %v6462_v63 = vcombine.low %v4290_v53, %v4300_v27  ;;  %v8498_v36 = vsel %vm7873_vm6, %v6060_v4, %v1593_v23  ;;  %v1595_v54 = vrot.slane %v1593_v23, 4  ;;  %v1596_v61 = vrot.slane %v1434_v44, 5  ;;  %v6429_v60 = vld [vmem:[%s7769_s11 + $0x64] sm:$0xf] }
  0xcb   : > { %7151 = vmatprep.mubr.msk.bf16.mxu0 %vm349_vm0, %v8431_v15  ;;  %v4314_v9 = vsel %vm7788_vm3, %v4309_v37, %v4313_v0  ;;  %v8507_v59 = vsel %vm7873_vm6, %v1588_v42, %v1589_v26  ;;  %v4326_v49 = vshrl.u32 %v6422_v47, 16  ;;  %v4324_v21 = vsel %vm7788_vm3, %v4319_v50, %v4323_v40  ;;  %v6431_v42 = vld [vmem:[%s7769_s11 + $0x6c] sm:$0xf] }
  0xcc   : > { %v6075_v7 = vcombine.low %v8492_v41, %v8507_v59  ;;  %v4329_v2 = vshll.u32 %v6422_v47, 16  ;;  %v4335_v15 = vshll.u32 %v6423_v57, 16  ;;  %v8516_v13 = vcombine.low %v4314_v9, %v4324_v21 }
  0xcd   : > { %v8520_v1 = vsel %vm7873_vm6, %v1595_v54, %v1596_v61  ;;  %v4328_v19 = vrot.slane %v4326_v49, 4  ;;  %v4339_v16 = vshrl.u32 %v6423_v57, 16  ;;  %v4345_v0 = vshll.u32 %v6424_v11, 16  ;;  %v6432_v11 = vld [vmem:[%s7769_s11 + $0x70] sm:$0xf] }
  0xce   : > { %v6076_v20 = vcombine.low %v8498_v36, %v8520_v1  ;;  %v4331_v24 = vrot.slane %v4329_v2, 5  ;;  %v4337_v29 = vrot.slane %v4335_v15, 5  ;;  %6998 = vmatmul.mubr.msk.bf16.gmra.mrb[16].mxu1 %vm349_vm0, %v6070_v8  ;;  %v4350_v34 = vshrl.u32 %v6425_v32, 16 }
  0xcf   : > { %v4341_v14 = vrot.slane %v4339_v16, 4  ;;  %v4353_v38 = vshll.u32 %v6425_v32, 16  ;;  %v4359_v40 = vshll.u32 %v6426_v17, 16  ;;  %7001 = vmatprep.mubr.msk.bf16.mxu1 %vm349_vm0, %v6071_v25  ;;  %v4347_v47 = vrot.slane %v4345_v0, 5  ;;  %v6435_v0 = vld [vmem:[%s7769_s11 + $0x7c] sm:$0xf] }
  0xd0   : > { %v4332_v44 = vor.u32 %v4331_v24, %v4328_v19  ;;  %v4363_v51 = vshrl.u32 %v6426_v17, 16  ;;  %v4369_v52 = vshll.u32 %v6427_v12, 16  ;;  %v4352_v30 = vrot.slane %v4350_v34, 4  ;;  %v6433_v12 = vld [vmem:[%s7769_s11 + $0x74] sm:$0x1] }
  0xd1   : > { %v4342_v26 = vor.u32 %v4341_v14, %v4337_v29  ;;  %v4355_v5 = vrot.slane %v4353_v38, 5  ;;  %v4361_v8 = vrot.slane %v4359_v40, 5  ;;  %v4374_v18 = vshrl.u32 %v6428_v3, 16 }
  0xd2   : > { %7152 = vmatmul.mubr.msk.bf16.vlgmr.msra.gmra.mrb[0].mxu0 %vm349_vm0, %v8459_v56  ;;  %v4333_v53 = vrot.slane %v4332_v44, 4  ;;  %v4365_v55 = vrot.slane %v4363_v51, 4  ;;  %v4371_v4 = vrot.slane %v4369_v52, 5  ;;  %v4377_v27 = vshll.u32 %v6428_v3, 16  ;;  %v6436_v3 = vld [vmem:[%s7769_s11 + $0x80] sm:$0x1] }
  0xd3   : > { %7184 = vmatpush3.bf16.msra.mxu0 %v8179_v48  ;;  %7155 = vmatprep.mubr.msk.bf16.mxu0 %vm349_vm0, %v6462_v63  ;;  %v4343_v25 = vrot.slane %v4342_v26, 4  ;;  %v4356_v23 = vor.u32 %v4355_v5, %v4352_v30  ;;  %v4383_v37 = vshll.u32 %v6429_v60, 16  ;;  %v4376_v50 = vrot.slane %v4374_v18, 4  ;;  %v6438_v30 = vld [vmem:[%s7769_s11 + $0x88] sm:$0xf] }
  0xd4   : > { %v4338_v57 = vsel %vm7788_vm3, %v4333_v53, %v4337_v29  ;;  %v4366_v56 = vor.u32 %v4365_v55, %v4361_v8  ;;  %v4387_v54 = vshrl.u32 %v6429_v60, 16  ;;  %v4379_v48 = vrot.slane %v4377_v27, 5  ;;  %v6434_v29 = vld [vmem:[%s7769_s11 + $0x78] sm:$0xf] }
  0xd5   : > { %v4348_v9 = vsel %vm7788_vm3, %v4343_v25, %v4347_v47  ;;  %v4357_v61 = vrot.slane %v4356_v23, 4  ;;  %v4385_v49 = vrot.slane %v4383_v37, 5  ;;  %v4393_v21 = vshll.u32 %v6430_v43, 16  ;;  %v6437_v47 = vld [vmem:[%s7769_s11 + $0x84] sm:$0xf] }
  0xd6   : > { %v6464_v63 = vcombine.low %v4338_v57, %v4348_v9  ;;  %v4367_v32 = vrot.slane %v4366_v56, 4  ;;  %v4389_v17 = vrot.slane %v4387_v54, 4  ;;  %7002 = vmatmul.mubr.msk.bf16.gmra.mrb[20].mxu1 %vm349_vm0, %v6072_v35  ;;  %v4380_v15 = vor.u32 %v4379_v48, %v4376_v50  ;;  %v6439_v56 = vld [vmem:[%s7769_s11 + $0x8c] sm:$0x1] }
  0xd7   : > { %v4362_v2 = vsel %vm7788_vm3, %v4357_v61, %v4361_v8  ;;  %v4398_v19 = vshrl.u32 %v6431_v42, 16  ;;  %v4401_v16 = vshll.u32 %v6431_v42, 16  ;;  %7005 = vmatprep.mubr.msk.bf16.mxu1 %vm349_vm0, %v6073_v22  ;;  %v4395_v28 = vrot.slane %v4393_v21, 5  ;;  %v6442_v21 = vld [vmem:[%s7769_s11 + $0x98] sm:$0x1] }
  0xd8   : > { %v4372_v24 = vsel %vm7788_vm3, %v4367_v32, %v4371_v4  ;;  %v4390_v10 = vor.u32 %v4389_v17, %v4385_v49  ;;  %v4407_v35 = vshll.u32 %v6432_v11, 16  ;;  %v4381_v34 = vrot.slane %v4380_v15, 4  ;;  %v6441_v17 = vld [vmem:[%s7769_s11 + $0x94] sm:$0xf] }
  0xd9   : > { %v6465_v14 = vcombine.low %v4362_v2, %v4372_v24  ;;  %v4400_v38 = vrot.slane %v4398_v19, 4  ;;  %v4403_v40 = vrot.slane %v4401_v16, 5  ;;  %v4411_v22 = vshrl.u32 %v6432_v11, 16  ;;  %v7574_v2 = vld [vmem:[%s7769_s11 + $0xc] sm:$0xff]   ;;  %v6443_v24 = vld [vmem:[%s7769_s11 + $0x9c] sm:$0xf] }
  0xda   : > { %7156 = vmatmul.mubr.msk.bf16.gmra.mrb[4].mxu0 %vm349_vm0, %v8516_v13  ;;  %v4391_v31 = vrot.slane %v4390_v10, 4  ;;  %v4409_v45 = vrot.slane %v4407_v35, 5  ;;  %v4417_v44 = vshll.u32 %v6433_v12, 16  ;;  %v4386_v51 = vsel %vm7788_vm3, %v4381_v34, %v4385_v49 }
  0xdb   : > { %7159 = vmatprep.mubr.msk.bf16.mxu0 %vm349_vm0, %v6464_v63  ;;  %v4404_v52 = vor.u32 %v4403_v40, %v4400_v38  ;;  %v4422_v60 = vshrl.u32 %v6434_v29, 16  ;;  %v4425_v26 = vshll.u32 %v6434_v29, 16  ;;  %v4413_v8 = vrot.slane %v4411_v22, 4  ;;  %v6440_v63 = vld [vmem:[%s7769_s11 + $0x90] sm:$0xf] }
  0xdc   : > { %v4396_v5 = vsel %vm7788_vm3, %v4391_v31, %v4395_v28  ;;  %v4419_v13 = vrot.slane %v4417_v44, 5  ;;  %v4431_v53 = vshll.u32 %v6435_v0, 16  ;;  %v4435_v27 = vshrl.u32 %v6435_v0, 16  ;;  %v6444_v22 = vld [vmem:[%s7769_s11 + $0xa0] sm:$0xf] }
  0xdd   : > { %v6466_v55 = vcombine.low %v4386_v51, %v4396_v5  ;;  %v4405_v4 = vrot.slane %v4404_v52, 4  ;;  %v4424_v43 = vrot.slane %v4422_v60, 4  ;;  %v4427_v18 = vrot.slane %v4425_v26, 5  ;;  %v6445_v5 = vld [vmem:[%s7769_s11 + $0xa4] sm:$0x1] }
  0xde   : > { %v4414_v25 = vor.u32 %v4413_v8, %v4409_v45  ;;  %v4433_v23 = vrot.slane %v4431_v53, 5  ;;  %v4441_v37 = vshll.u32 %v6436_v3, 16  ;;  %7006 = vmatmul.mubr.msk.bf16.gmra.mrb[24].mxu1 %vm349_vm0, %v6074_v6  ;;  %v4446_v50 = vshrl.u32 %v6437_v47, 16 }
  0xdf   : > { %v4410_v42 = vsel %vm7788_vm3, %v4405_v4, %v4409_v45  ;;  %v4428_v57 = vor.u32 %v4427_v18, %v4424_v43  ;;  %v4449_v54 = vshll.u32 %v6437_v47, 16  ;;  %7009 = vmatprep.mubr.msk.bf16.mxu1 %vm349_vm0, %v6075_v7  ;;  %v4437_v39 = vrot.slane %v4435_v27, 4 }
  0xe0   : > { %v4415_v11 = vrot.slane %v4414_v25, 4  ;;  %v4443_v58 = vrot.slane %v4441_v37, 5  ;;  %v4455_v9 = vshll.u32 %v6438_v30, 16  ;;  %v4448_v61 = vrot.slane %v4446_v50, 4  ;;  %v7576_v50 = vld [vmem:[%s7769_s11 + $0x24] sm:$0xff]  }
  0xe1   : > { %v4429_v6 = vrot.slane %v4428_v57, 4  ;;  %v4451_v48 = vrot.slane %v4449_v54, 5  ;;  %v4459_v49 = vshrl.u32 %v6438_v30, 16  ;;  %v4438_v59 = vor.u32 %v4437_v39, %v4433_v23 }
  0xe2   : > { %7160 = vmatmul.mubr.msk.bf16.gmra.mrb[8].mxu0 %vm349_vm0, %v6465_v14  ;;  %v4420_v41 = vsel %vm7788_vm3, %v4415_v11, %v4419_v13  ;;  %v4457_v32 = vrot.slane %v4455_v9, 5  ;;  %v4465_v7 = vshll.u32 %v6439_v56, 16  ;;  %v4470_v35 = vshrl.u32 %v6440_v63, 16  ;;  %v7575_v13 = vld [vmem:[%s7769_s11 + $0x18] sm:$0xff]   ;;  %v6448_v56 = vld [vmem:[%s7769_s11 + $0xb0] sm:$0x1] }
  0xe3   : > { %7163 = vmatprep.mubr.msk.bf16.mxu0 %vm349_vm0, %v6466_v55  ;;  %v6467_v15 = vcombine.low %v4410_v42, %v4420_v41  ;;  %v4434_v12 = vsel %vm7788_vm3, %v4429_v6, %v4433_v23  ;;  %v4452_v19 = vor.u32 %v4451_v48, %v4448_v61  ;;  %v4461_v16 = vrot.slane %v4459_v49, 4  ;;  %v6446_v55 = vld [vmem:[%s7769_s11 + $0xa8] sm:$0xf]  ;;  %v6447_v23 = vld [vmem:[%s7769_s11 + $0xac] sm:$0xf] }
  0xe4   : > { %v4439_v10 = vrot.slane %v4438_v59, 4  ;;  %v4467_v28 = vrot.slane %v4465_v7, 5  ;;  %v4473_v29 = vshll.u32 %v6440_v63, 16  ;;  %v4479_v34 = vshll.u32 %v6441_v17, 16  ;;  %v6449_v49 = vld [vmem:[%s7769_s11 + $0xb4] sm:$0xf] }
  0xe5   : > { %v4453_v0 = vrot.slane %v4452_v19, 4  ;;  %v4462_v14 = vor.u32 %v4461_v16, %v4457_v32  ;;  %v4483_v38 = vshrl.u32 %v6441_v17, 16  ;;  %v4472_v3 = vrot.slane %v4470_v35, 4  ;;  %v6450_v7 = vld [vmem:[%s7769_s11 + $0xb8] sm:$0xf] }
  0xe6   : > { %v4444_v40 = vsel %vm7788_vm3, %v4439_v10, %v4443_v58  ;;  %v4475_v31 = vrot.slane %v4473_v29, 5  ;;  %v4489_v45 = vshll.u32 %v6442_v21, 16  ;;  %7010 = vmatmul.mubr.msk.bf16.gmra.mrb[28].mxu1 %vm349_vm0, %v6076_v20  ;;  %v4481_v52 = vrot.slane %v4479_v34, 5  ;;  %v6452_v34 = vld [vmem:[%s7769_s11 + $0xc0] sm:$0xf] }
  0xe7   : > { %v6468_v44 = vcombine.low %v4434_v12, %v4444_v40  ;;  %v4458_v47 = vsel %vm7788_vm3, %v4453_v0, %v4457_v32  ;;  %v4463_v51 = vrot.slane %v4462_v14, 4  ;;  %7015 = vmatprep.mubr.msk.bf16.mxu1 %vm349_vm0, %v7574_v2  ;;  %v4485_v26 = vrot.slane %v4483_v38, 4  ;;  %v6453_v38 = vld [vmem:[%s7769_s11 + $0xc4] sm:$0xf] }
  0xe8   : > { %v4476_v60 = vor.u32 %v4475_v31, %v4472_v3  ;;  %v4491_v30 = vrot.slane %v4489_v45, 5  ;;  %v4494_v8 = vshrl.u32 %v6443_v24, 16  ;;  %v4497_v1 = vshll.u32 %v6443_v24, 16  ;;  %v6451_v24 = vld [vmem:[%s7769_s11 + $0xbc] sm:$0x1] }
  0xe9   : > { %v4468_v36 = vsel %vm7788_vm3, %v4463_v51, %v4467_v28  ;;  %v4503_v20 = vshll.u32 %v6444_v22, 16  ;;  %v4507_v53 = vshrl.u32 %v6444_v22, 16  ;;  %v4486_v18 = vor.u32 %v4485_v26, %v4481_v52  ;;  %v7577_v28 = vld [vmem:[%s7769_s11 + $0x30] sm:$0xff]   ;;  %v6454_v51 = vld [vmem:[%s7769_s11 + $0xc8] sm:$0x1] }
  0xea   : > { %7164 = vmatmul.mubr.msk.bf16.gmra.mrb[12].mxu0 %vm349_vm0, %v6467_v15  ;;  %v6469_v4 = vcombine.low %v4458_v47, %v4468_v36  ;;  %v4477_v43 = vrot.slane %v4476_v60, 4  ;;  %v4496_v25 = vrot.slane %v4494_v8, 4  ;;  %v4499_v27 = vrot.slane %v4497_v1, 5 }
  0xeb   : > { %7167 = vmatprep.mubr.msk.bf16.mxu0 %vm349_vm0, %v6468_v44  ;;  %v4505_v37 = vrot.slane %v4503_v20, 5  ;;  %v4509_v42 = vrot.slane %v4507_v53, 4  ;;  %v4513_v57 = vshll.u32 %v6445_v5, 16  ;;  %v4487_v11 = vrot.slane %v4486_v18, 4  ;;  %v6455_v20 = vld [vmem:[%s7769_s11 + $0xcc] sm:$0xf] }
  0xec   : > { %v4482_v54 = vsel %vm7788_vm3, %v4477_v43, %v4481_v52  ;;  %v4518_v39 = vshrl.u32 %v6446_v55, 16  ;;  %v4521_v58 = vshll.u32 %v6446_v55, 16  ;;  %v4500_v9 = vor.u32 %v4499_v27, %v4496_v25  ;;  %v7578_v52 = vld [vmem:[%s7769_s11 + $0x3c] sm:$0xff]  }
  0xed   : > { %v4510_v6 = vor.u32 %v4509_v42, %v4505_v37  ;;  %v4515_v61 = vrot.slane %v4513_v57, 5  ;;  %v4527_v48 = vshll.u32 %v6447_v23, 16  ;;  %v4492_v63 = vsel %vm7788_vm3, %v4487_v11, %v4491_v30 }
  0xee   : > { %v4520_v41 = vrot.slane %v4518_v39, 4  ;;  %v4523_v59 = vrot.slane %v4521_v58, 5  ;;  %v4531_v32 = vshrl.u32 %v6447_v23, 16  ;;  %7016 = vmatmul.mubr.msk.bf16.vlgmr.msra.gmra.mrb[0].mxu1 %vm349_vm0, %v7575_v13  ;;  %v6470_v17 = vcombine.low %v4482_v54, %v4492_v63 }
  0xef   : > { %v4501_v21 = vrot.slane %v4500_v9, 4  ;;  %v4511_v2 = vrot.slane %v4510_v6, 4  ;;  %v4529_v15 = vrot.slane %v4527_v48, 5  ;;  %7019 = vmatprep.mubr.msk.bf16.mxu1 %vm349_vm0, %v7576_v50  ;;  %7218 = vmatpush3.bf16.msra.mxu1 %v8365_v62  ;;  %v4537_v16 = vshll.u32 %v6448_v56, 16  ;;  %v6457_v50 = vld [vmem:[%s7769_s11 + $0xd4] sm:$0x1] }
  0xf0   : > { %v4524_v12 = vor.u32 %v4523_v59, %v4520_v41  ;;  %v4533_v19 = vrot.slane %v4531_v32, 4  ;;  %v4542_v10 = vshrl.u32 %v6449_v49, 16  ;;  %v4545_v0 = vshll.u32 %v6449_v49, 16  ;;  %v6493_v6 = vld [vmem:[%s7769_s11 + $0x18] sm:$0xe]  ;;  %v7579_v32 = vld [vmem:[%s7769_s11 + $0x48] sm:$0xff]  }
  0xf1   : > { %v4506_v35 = vsel %vm7788_vm3, %v4501_v21, %v4505_v37  ;;  %v4516_v29 = vsel %vm7788_vm3, %v4511_v2, %v4515_v61  ;;  %v4551_v14 = vshll.u32 %v6450_v7, 16  ;;  %v4539_v31 = vrot.slane %v4537_v16, 5  ;;  %v6456_v37 = vld [vmem:[%s7769_s11 + $0xd0] sm:$0xf]  ;;  %v6494_v61 = vld [vmem:[%s7769_s11 + $0x1c] sm:$0xf] }
  0xf2   : > { %7168 = vmatmul.mubr.msk.bf16.gmra.mrb[16].mxu0 %vm349_vm0, %v6469_v4  ;;  %v6471_v62 = vcombine.low %v4506_v35, %v4516_v29  ;;  %v4525_v40 = vrot.slane %v4524_v12, 4  ;;  %v4534_v3 = vor.u32 %v4533_v19, %v4529_v15  ;;  %v4544_v45 = vrot.slane %v4542_v10, 4  ;;  %v6495_v59 = vld [vmem:[%s7769_s11 + $0x20] sm:$0x1]  ;;  %v6497_v12 = vld [vmem:[%s7769_s11 + $0x28] sm:$0xf] }
  0xf3   : > { %7171 = vmatprep.mubr.msk.bf16.mxu0 %vm349_vm0, %v6470_v17  ;;  %v4547_v22 = vrot.slane %v4545_v0, 5  ;;  %v4553_v44 = vrot.slane %v4551_v14, 5  ;;  %v4555_v47 = vshrl.u32 %v6450_v7, 16  ;;  %v4561_v30 = vshll.u32 %v6451_v24, 16  ;;  %v7580_v19 = vld [vmem:[%s7769_s11 + $0x54] sm:$0xff]  }
  0xf4   : > { %v4530_v60 = vsel %vm7788_vm3, %v4525_v40, %v4529_v15  ;;  %v4535_v26 = vrot.slane %v4534_v3, 4  ;;  %v4566_v5 = vshrl.u32 %v6452_v34, 16  ;;  %v4569_v36 = vshll.u32 %v6452_v34, 16  ;;  %v6496_v15 = vld [vmem:[%s7769_s11 + $0x24] sm:$0xe] }
  0xf5   : > { %v4548_v8 = vor.u32 %v4547_v22, %v4544_v45  ;;  %v4557_v13 = vrot.slane %v4555_v47, 4  ;;  %v4575_v1 = vshll.u32 %v6453_v38, 16  ;;  %v4563_v55 = vrot.slane %v4561_v30, 5  ;;  %v6498_v14 = vld [vmem:[%s7769_s11 + $0x2c] sm:$0x1] }
  0xf6   : > { %v4540_v53 = vsel %vm7788_vm3, %v4535_v26, %v4539_v31  ;;  %v4568_v4 = vrot.slane %v4566_v5, 4  ;;  %v4579_v43 = vshrl.u32 %v6453_v38, 16  ;;  %7020 = vmatmul.mubr.msk.bf16.gmra.mrb[4].mxu1 %vm349_vm0, %v7577_v28  ;;  %v4571_v27 = vrot.slane %v4569_v36, 5  ;;  %v6499_v34 = vld [vmem:[%s7769_s11 + $0x30] sm:$0xe] }
  0xf7   : > { %v6472_v18 = vcombine.low %v4530_v60, %v4540_v53  ;;  %v4549_v25 = vrot.slane %v4548_v8, 4  ;;  %v4558_v23 = vor.u32 %v4557_v13, %v4553_v44  ;;  %7023 = vmatprep.mubr.msk.bf16.mxu1 %vm349_vm0, %v7578_v52  ;;  %v4577_v42 = vrot.slane %v4575_v1, 5  ;;  %v6500_v31 = vld [vmem:[%s7769_s11 + $0x34] sm:$0xf]  ;;  %v6502_v5 = vld [vmem:[%s7769_s11 + $0x3c] sm:$0xe] }
  0xf8   : > { %v4581_v57 = vrot.slane %v4579_v43, 4  ;;  %v4585_v56 = vshll.u32 %v6454_v51, 16  ;;  %v4590_v54 = vshrl.u32 %v6455_v20, 16  ;;  %v4572_v58 = vor.u32 %v4571_v27, %v4568_v4  ;;  %v6501_v51 = vld [vmem:[%s7769_s11 + $0x38] sm:$0x1]  ;;  %v7582_v43 = vld [vmem:[%s7769_s11 + $0x6c] sm:$0xff]  }
  0xf9   : > { %v4554_v11 = vsel %vm7788_vm3, %v4549_v25, %v4553_v44  ;;  %v4559_v39 = vrot.slane %v4558_v23, 4  ;;  %v4593_v9 = vshll.u32 %v6455_v20, 16  ;;  %v4599_v41 = vshll.u32 %v6456_v37, 16  ;;  %v6503_v1 = vld [vmem:[%s7769_s11 + $0x40] sm:$0xf] }
  0xfa   : > { %7172 = vmatmul.mubr.msk.bf16.gmra.mrb[20].mxu0 %vm349_vm0, %v6471_v62  ;;  %v4582_v48 = vor.u32 %v4581_v57, %v4577_v42  ;;  %v4587_v49 = vrot.slane %v4585_v56, 5  ;;  %v4592_v63 = vrot.slane %v4590_v54, 4  ;;  %v4573_v17 = vrot.slane %v4572_v58, 4  ;;  %v7581_v20 = vld [vmem:[%s7769_s11 + $0x60] sm:$0xff]  }
  0xfb   : > { %7175 = vmatprep.mubr.msk.bf16.mxu0 %vm349_vm0, %v6472_v18  ;;  %v4564_v7 = vsel %vm7788_vm3, %v4559_v39, %v4563_v55  ;;  %v4595_v21 = vrot.slane %v4593_v9, 5  ;;  %v4603_v2 = vshrl.u32 %v6456_v37, 16  ;;  %v4601_v24 = vrot.slane %v4599_v41, 5  ;;  %v6504_v37 = vld [vmem:[%s7769_s11 + $0x44] sm:$0x1] }
  0xfc   : > { %v4583_v16 = vrot.slane %v4582_v48, 4  ;;  %v4609_v10 = vshll.u32 %v6457_v50, 16  ;;  %v6473_v28 = vcombine.low %v4554_v11, %v4564_v7  ;;  %v4578_v35 = vsel %vm7788_vm3, %v4573_v17, %v4577_v42  ;;  %v6506_v42 = vld [vmem:[%s7769_s11 + $0x4c] sm:$0xf]  ;;  %v6505_v11 = vld [vmem:[%s7769_s11 + $0x48] sm:$0xe] }
  0xfd   : > { %v4596_v29 = vor.u32 %v4595_v21, %v4592_v63  ;;  %v4605_v0 = vrot.slane %v4603_v2, 4  ;;  %v6541_v40 = vrot.slane %v6493_v6, 9  ;;  %v5072_v3 = vrot.slane %v6494_v61, 5  ;;  %v6509_v39 = vld [vmem:[%s7769_s11 + $0x58] sm:$0xf] }
  0xfe   : > { %v4588_v38 = vsel %vm7788_vm3, %v4583_v16, %v4587_v49  ;;  %v4611_v62 = vrot.slane %v4609_v10, 5  ;;  %7024 = vmatmul.mubr.msk.bf16.gmra.mrb[8].mxu1 %vm349_vm0, %v7579_v32  ;;  %v5075_v47 = vrot.slane %v6495_v59, 5  ;;  %v6542_v60 = vrot.slane %v6496_v15, 9  ;;  %v6507_v6 = vld [vmem:[%s7769_s11 + $0x50] sm:$0x1] }
  0xff   : > { %v6474_v45 = vcombine.low %v4578_v35, %v4588_v38  ;;  %v4597_v22 = vrot.slane %v4596_v29, 4  ;;  %v4606_v44 = vor.u32 %v4605_v0, %v4601_v24  ;;  %7027 = vmatprep.mubr.msk.bf16.mxu1 %vm349_vm0, %v7580_v19  ;;  %v5074_v52 = vrot.slane %v5072_v3, 4  ;;  %v6508_v61 = vld [vmem:[%s7769_s11 + $0x54] sm:$0xe]  ;;  %v6185_v48 = vld [vmem:[%s7769_s11 + $0x6c] sm:$0xf] }
 0x100   : > { %v5079_v26 = vrot.slane %v6497_v12, 5  ;;  %v5082_v30 = vrot.slane %v6498_v14, 5  ;;  %v6543_v13 = vrot.slane %v6499_v34, 9  ;;  %v5086_v36 = vrot.slane %v6500_v31, 5  ;;  %v6510_v32 = vld [vmem:[%s7769_s11 + $0x5c] sm:$0x1] }
 0x101   : > { %v4607_v8 = vrot.slane %v4606_v44, 4  ;;  %v5073_v53 = vsel %vm7873_vm6, %v6541_v40, %v5072_v3  ;;  %v5089_v4 = vrot.slane %v6501_v51, 5  ;;  %v4602_v18 = vsel %vm7788_vm3, %v4597_v22, %v4601_v24  ;;  %v6186_v15 = vld [vmem:[%s7769_s11 + $0x70] sm:$0xf]  ;;  %v6187_v24 = vld [vmem:[%s7769_s11 + $0x74] sm:$0x1] }
 0x102   : > { %7176 = vmatmul.mubr.msk.bf16.gmra.mrb[24].mxu0 %vm349_vm0, %v6473_v28  ;;  %v5081_v55 = vrot.slane %v5079_v26, 4  ;;  %v5076_v23 = vsel %vm7873_vm6, %v5074_v52, %v5075_v47  ;;  %v5088_v27 = vrot.slane %v5086_v36, 4  ;;  %v8683_v57 = vsel %vm7873_vm6, %v6542_v60, %v5079_v26  ;;  %v6188_v14 = vld [vmem:[%s7769_s11 + $0x78] sm:$0xf]  ;;  %v6189_v3 = vld [vmem:[%s7769_s11 + $0x7c] sm:$0xf] }
 0x103   : > { %7179 = vmatprep.mubr.msk.bf16.mxu0 %vm349_vm0, %v6474_v45  ;;  %v4612_v25 = vsel %vm7788_vm3, %v4607_v8, %v4611_v62  ;;  %v6544_v50 = vrot.slane %v6502_v5, 9  ;;  %v5093_v54 = vrot.slane %v6503_v1, 5  ;;  %v8693_v58 = vsel %vm7873_vm6, %v6543_v13, %v5086_v36  ;;  %v7583_v31 = vld [vmem:[%s7769_s11 + $0x78] sm:$0xff]   ;;  %v7584_v51 = vld [vmem:[%s7769_s11 + $0x84] sm:$0xff]  }
 0x104   : > { %v8687_v56 = vsel %vm7873_vm6, %v5081_v55, %v5082_v30  ;;  %v8697_v9 = vsel %vm7873_vm6, %v5088_v27, %v5089_v4  ;;  %v6475_v49 = vcombine.low %v4602_v18, %v4612_v25  ;;  %v5096_v41 = vrot.slane %v6504_v37, 5  ;;  %v6190_v30 = vld [vmem:[%s7769_s11 + $0x80] sm:$0x1]  ;;  %v6513_v25 = vld [vmem:[%s7769_s11 + $0x68] sm:$0x1] }
 0x105   : > { %v5095_v63 = vrot.slane %v5093_v54, 4  ;;  %v5100_v59 = vrot.slane %v6506_v42, 5  ;;  %v6559_v7 = vcombine.low %v5073_v53, %v5076_v23  ;;  %v6560_v17 = vcombine.low %v8683_v57, %v8687_v56  ;;  %v6512_v53 = vld [vmem:[%s7769_s11 + $0x64] sm:$0xf] }
 0x106   : > { %7028 = vmatmul.mubr.msk.bf16.gmra.mrb[12].mxu1 %vm349_vm0, %v7581_v20  ;;  %v6545_v21 = vrot.slane %v6505_v11, 9  ;;  %v5107_v2 = vrot.slane %v6509_v39, 5  ;;  %v6561_v12 = vcombine.low %v8693_v58, %v8697_v9  ;;  %v8712_v19 = vsel %vm7873_vm6, %v6544_v50, %v5093_v54  ;;  %v6511_v20 = vld [vmem:[%s7769_s11 + $0x60] sm:$0xe]  ;;  %v6515_v11 = vld [vmem:[%s7769_s11 + $0x70] sm:$0xf] }
 0x107   : > { %7031 = vmatprep.mubr.msk.bf16.mxu1 %vm349_vm0, %v7582_v43  ;;  %v6546_v16 = vrot.slane %v6508_v61, 9  ;;  %v2630_v10 = vshrl.u32 %v6185_v48, 16  ;;  %v5102_v28 = vrot.slane %v5100_v59, 4  ;;  %v5103_v35 = vrot.slane %v6507_v6, 5 }
 0x108   : > { %v5110_v29 = vrot.slane %v6510_v32, 5  ;;  %v2633_v0 = vshll.u32 %v6185_v48, 16  ;;  %v8719_v34 = vsel %vm7873_vm6, %v5095_v63, %v5096_v41  ;;  %v2639_v62 = vshll.u32 %v6186_v15, 16  ;;  %v6191_v63 = vld [vmem:[%s7769_s11 + $0x84] sm:$0xf] }
 0x109   : > { %v2632_v38 = vrot.slane %v2630_v10, 4  ;;  %v2643_v40 = vshrl.u32 %v6186_v15, 16  ;;  %v8726_v45 = vsel %vm7873_vm6, %v6545_v21, %v5100_v59  ;;  %v5109_v22 = vrot.slane %v5107_v2, 4  ;;  %v6516_v21 = vld [vmem:[%s7769_s11 + $0x74] sm:$0x1]  ;;  %v7586_v15 = vld [vmem:[%s7769_s11 + $0x9c] sm:$0xff]  }
 0x10a   : > { %7180 = vmatmul.mubr.msk.bf16.gmra.mrb[28].mxu0 %vm349_vm0, %v6475_v49  ;;  %v2635_v44 = vrot.slane %v2633_v0, 5  ;;  %v2649_v47 = vshll.u32 %v6187_v24, 16  ;;  %v8731_v52 = vsel %vm7873_vm6, %v6546_v16, %v5107_v2  ;;  %v2641_v60 = vrot.slane %v2639_v62, 5  ;;  %v6514_v49 = vld [vmem:[%s7769_s11 + $0x6c] sm:$0xe]  ;;  %v7585_v2 = vld [vmem:[%s7769_s11 + $0x90] sm:$0xff]  }
 0x10b   : > { %7185 = vmatprep.mubr.msk.bf16.mxu0 %vm349_vm0, %v6559_v7  ;;  %v2645_v26 = vrot.slane %v2643_v40, 4  ;;  %v2654_v5 = vshrl.u32 %v6188_v14, 16  ;;  %v8736_v8 = vsel %vm7873_vm6, %v5102_v28, %v5103_v35  ;;  %v2657_v36 = vshll.u32 %v6188_v14, 16  ;;  %v6192_v10 = vld [vmem:[%s7769_s11 + $0x88] sm:$0xf] }
 0x10c   : > { %v2636_v13 = vor.u32 %v2635_v44, %v2632_v38  ;;  %v2663_v1 = vshll.u32 %v6189_v3, 16  ;;  %v2651_v4 = vrot.slane %v2649_v47, 5  ;;  %v2667_v18 = vshrl.u32 %v6189_v3, 16  ;;  %v6194_v38 = vld [vmem:[%s7769_s11 + $0x90] sm:$0xf] }
 0x10d   : > { %v2646_v55 = vor.u32 %v2645_v26, %v2641_v60  ;;  %v2656_v43 = vrot.slane %v2654_v5, 4  ;;  %v8744_v23 = vsel %vm7873_vm6, %v5109_v22, %v5110_v29  ;;  %v2659_v37 = vrot.slane %v2657_v36, 5  ;;  %v6193_v29 = vld [vmem:[%s7769_s11 + $0x8c] sm:$0x1]  ;;  %v6518_v36 = vld [vmem:[%s7769_s11 + $0x7c] sm:$0xf] }
 0x10e   : > { %7032 = vmatmul.mubr.msk.bf16.gmra.mrb[16].mxu1 %vm349_vm0, %v7583_v31  ;;  %v2637_v27 = vrot.slane %v2636_v13, 4  ;;  %v8746_v42 = vrot.slane %v2663_v1, 5  ;;  %v2669_v56 = vrot.slane %v2667_v18, 4  ;;  %v2673_v50 = vshll.u32 %v6190_v30, 16  ;;  %v6517_v13 = vld [vmem:[%s7769_s11 + $0x78] sm:$0xe] }
 0x10f   : > { %7035 = vmatprep.mubr.msk.bf16.mxu1 %vm349_vm0, %v7584_v51  ;;  %v2647_v57 = vrot.slane %v2646_v55, 4  ;;  %v5114_v54 = vrot.slane %v6512_v53, 5  ;;  %v6562_v39 = vcombine.low %v8712_v19, %v8719_v34  ;;  %v2660_v6 = vor.u32 %v2659_v37, %v2656_v43  ;;  %v7587_v43 = vld [vmem:[%s7769_s11 + $0xa8] sm:$0xff]  }
 0x110   : > { %v6547_v61 = vrot.slane %v6511_v20, 9  ;;  %v5117_v48 = vrot.slane %v6513_v25, 5  ;;  %v6563_v41 = vcombine.low %v8726_v45, %v8736_v8  ;;  %v2642_v59 = vsel %vm7788_vm3, %v2637_v27, %v2641_v60  ;;  %v6195_v45 = vld [vmem:[%s7769_s11 + $0x94] sm:$0xf]  ;;  %v6196_v60 = vld [vmem:[%s7769_s11 + $0x98] sm:$0x1] }
 0x111   : > { %v2652_v32 = vsel %vm7788_vm3, %v2647_v57, %v2651_v4  ;;  %v5116_v7 = vrot.slane %v5114_v54, 4  ;;  %v8770_v19 = vrot.slane %v2660_v6, 4  ;;  %v2670_v16 = vor.u32 %v2669_v56, %v8746_v42  ;;  %v6519_v4 = vld [vmem:[%s7769_s11 + $0x80] sm:$0x1]  ;;  %v6520_v57 = vld [vmem:[%s7769_s11 + $0x84] sm:$0xe] }
 0x112   : > { %7186 = vmatmul.mubr.msk.bf16.vlgmr.msra.gmra.mrb[0].mxu0 %vm349_vm0, %v6560_v17  ;;  %v6564_v17 = vcombine.low %v8731_v52, %v8744_v23  ;;  %v5121_v24 = vrot.slane %v6515_v11, 5  ;;  %v8774_v28 = vrot.slane %v2673_v50, 5  ;;  %v6548_v35 = vrot.slane %v6514_v49, 9  ;;  %v7588_v56 = vld [vmem:[%s7769_s11 + $0xb4] sm:$0xff]   ;;  %v6521_v6 = vld [vmem:[%s7769_s11 + $0x88] sm:$0xf] }
 0x113   : > { %7189 = vmatprep.mubr.msk.bf16.mxu0 %vm349_vm0, %v6561_v12  ;;  %v2678_v0 = vshrl.u32 %v6191_v63, 16  ;;  %v2681_v14 = vshll.u32 %v6191_v63, 16  ;;  %v8777_v58 = vcombine.low %v2642_v59, %v2652_v32  ;;  %v8781_v9 = vsel %vm7873_vm6, %v6547_v61, %v5114_v54  ;;  %v6197_v59 = vld [vmem:[%s7769_s11 + $0x9c] sm:$0xf] }
 0x114   : > { %v8785_v12 = vsel %vm7873_vm6, %v5116_v7, %v5117_v48  ;;  %v5124_v34 = vrot.slane %v6516_v21, 5  ;;  %v5123_v62 = vrot.slane %v5121_v24, 4  ;;  %v2687_v31 = vshll.u32 %v6192_v10, 16 }
 0x115   : > { %v2680_v40 = vrot.slane %v2678_v0, 4  ;;  %v2683_v3 = vrot.slane %v2681_v14, 5  ;;  %v2666_v22 = vsel %vm7788_vm3, %v8770_v19, %v8746_v42  ;;  %v8794_v44 = vrot.slane %v2670_v16, 4  ;;  %v6198_v14 = vld [vmem:[%s7769_s11 + $0xa0] sm:$0xf] }
 0x116   : > { %7036 = vmatmul.mubr.msk.bf16.gmra.mrb[20].mxu1 %vm349_vm0, %v7585_v2  ;;  %v2691_v47 = vshrl.u32 %v6192_v10, 16  ;;  %v2697_v51 = vshll.u32 %v6193_v29, 16  ;;  %v6565_v26 = vcombine.low %v8781_v9, %v8785_v12  ;;  %v8800_v5 = vrot.slane %v2687_v31, 5  ;;  %v6200_v31 = vld [vmem:[%s7769_s11 + $0xa8] sm:$0xf] }
 0x117   : > { %7039 = vmatprep.mubr.msk.bf16.mxu1 %vm349_vm0, %v7586_v15  ;;  %v2684_v30 = vor.u32 %v2683_v3, %v2680_v40  ;;  %v2702_v8 = vshrl.u32 %v6194_v38, 16  ;;  %v8806_v1 = vsel %vm7873_vm6, %v6548_v35, %v5121_v24  ;;  %v2705_v53 = vshll.u32 %v6194_v38, 16  ;;  %v6522_v24 = vld [vmem:[%s7769_s11 + $0x8c] sm:$0x1]  ;;  %v6199_v3 = vld [vmem:[%s7769_s11 + $0xa4] sm:$0x1] }
 0x118   : > { %v2693_v20 = vrot.slane %v2691_v47, 4  ;;  %v2711_v55 = vshll.u32 %v6195_v45, 16  ;;  %v8813_v18 = vsel %vm7873_vm6, %v5123_v62, %v5124_v34  ;;  %v8815_v25 = vrot.slane %v2697_v51, 5  ;;  %v6528_v42 = vld [vmem:[%s7769_s11 + $0xa4] sm:$0x1] }
 0x119   : > { %v2704_v27 = vrot.slane %v2702_v8, 4  ;;  %v2715_v37 = vshrl.u32 %v6195_v45, 16  ;;  %v8820_v50 = vrot.slane %v2684_v30, 4  ;;  %v2707_v11 = vrot.slane %v2705_v53, 5 }
 0x11a   : > { %7190 = vmatmul.mubr.msk.bf16.gmra.mrb[4].mxu0 %vm349_vm0, %v6562_v39  ;;  %v2694_v54 = vor.u32 %v2693_v20, %v8800_v5  ;;  %v8823_v39 = vrot.slane %v2711_v55, 5  ;;  %v2721_v48 = vshll.u32 %v6196_v60, 16  ;;  %v6549_v49 = vrot.slane %v6517_v13, 9  ;;  %v6201_v13 = vld [vmem:[%s7769_s11 + $0xac] sm:$0xf] }
 0x11b   : > { %7193 = vmatprep.mubr.msk.bf16.mxu0 %vm349_vm0, %v6563_v41  ;;  %v2717_v61 = vrot.slane %v2715_v37, 4  ;;  %v5128_v63 = vrot.slane %v6518_v36, 5  ;;  %v2708_v7 = vor.u32 %v2707_v11, %v2704_v27  ;;  %v5131_v21 = vrot.slane %v6519_v4, 5  ;;  %v7589_v36 = vld [vmem:[%s7769_s11 + $0xc0] sm:$0xff]   ;;  %v6523_v27 = vld [vmem:[%s7769_s11 + $0x90] sm:$0xe] }
 0x11c   : > { %v8827_v32 = vrot.slane %v2694_v54, 4  ;;  %v6550_v41 = vrot.slane %v6520_v57, 9  ;;  %v2676_v2 = vsel %vm7788_vm3, %v8794_v44, %v8774_v28  ;;  %v5135_v10 = vrot.slane %v6521_v6, 5  ;;  %v6525_v54 = vld [vmem:[%s7769_s11 + $0x98] sm:$0x1] }
 0x11d   : > { %v2718_v15 = vor.u32 %v2717_v61, %v8823_v39  ;;  %v5130_v16 = vrot.slane %v5128_v63, 4  ;;  %v6566_v35 = vcombine.low %v8806_v1, %v8813_v18  ;;  %v2690_v29 = vsel %vm7788_vm3, %v8820_v50, %v8800_v5  ;;  %v6524_v18 = vld [vmem:[%s7769_s11 + $0x94] sm:$0xf] }
 0x11e   : > { %7040 = vmatmul.mubr.msk.bf16.gmra.mrb[24].mxu1 %vm349_vm0, %v7587_v43  ;;  %v2709_v0 = vrot.slane %v2708_v7, 4  ;;  %v2726_v28 = vshrl.u32 %v6197_v59, 16  ;;  %v2723_v38 = vrot.slane %v2721_v48, 5  ;;  %v5129_v62 = vsel %vm7873_vm6, %v6549_v49, %v5128_v63 }
 0x11f   : > { %7043 = vmatprep.mubr.msk.bf16.mxu1 %vm349_vm0, %v7588_v56  ;;  %v2719_v34 = vrot.slane %v2718_v15, 4  ;;  %v5132_v40 = vsel %vm7873_vm6, %v5130_v16, %v5131_v21  ;;  %v2700_v45 = vsel %vm7788_vm3, %v8827_v32, %v8815_v25  ;;  %v8856_v44 = vsel %vm7873_vm6, %v6550_v41, %v5135_v10  ;;  %v6527_v32 = vld [vmem:[%s7769_s11 + $0xa0] sm:$0xf]  ;;  %v6203_v16 = vld [vmem:[%s7769_s11 + $0xb4] sm:$0xf] }
 0x120   : > { %v5137_v47 = vrot.slane %v5135_v10, 4  ;;  %v5138_v51 = vrot.slane %v6522_v24, 5  ;;  %v2728_v60 = vrot.slane %v2726_v28, 4  ;;  %v2729_v30 = vshll.u32 %v6197_v59, 16 }
 0x121   : > { %v2735_v5 = vshll.u32 %v6198_v14, 16  ;;  %v2739_v8 = vshrl.u32 %v6198_v14, 16  ;;  %v2714_v1 = vsel %vm7788_vm3, %v2709_v0, %v8823_v39  ;;  %v6567_v52 = vcombine.low %v5129_v62, %v5132_v40  ;;  %v6526_v14 = vld [vmem:[%s7769_s11 + $0x9c] sm:$0xe]  ;;  %v6205_v62 = vld [vmem:[%s7769_s11 + $0xbc] sm:$0x1] }
 0x122   : > { %7194 = vmatmul.mubr.msk.bf16.gmra.mrb[8].mxu0 %vm349_vm0, %v6564_v17  ;;  %v2745_v23 = vshll.u32 %v6199_v3, 16  ;;  %v6202_v17 = vld [vmem:[%s7769_s11 + $0xb0] sm:$0x1]  ;;  %v2750_v20 = vshrl.u32 %v6200_v31, 16  ;;  %v2724_v53 = vsel %vm7788_vm3, %v2719_v34, %v2723_v38  ;;  %v2731_v55 = vrot.slane %v2729_v30, 5 }
 0x123   : > { %7197 = vmatprep.mubr.msk.bf16.mxu0 %vm349_vm0, %v6565_v26  ;;  %v2737_v4 = vrot.slane %v2735_v5, 5  ;;  %v2741_v43 = vrot.slane %v2739_v8, 4  ;;  %v8877_v9 = vsel %vm7873_vm6, %v5137_v47, %v5138_v51  ;;  %v2753_v26 = vshll.u32 %v6200_v31, 16  ;;  %v6206_v47 = vld [vmem:[%s7769_s11 + $0xc0] sm:$0xf] }
 0x124   : > { %v2752_v12 = vrot.slane %v2750_v20, 4  ;;  %v2759_v25 = vshll.u32 %v6201_v13, 16  ;;  %v2732_v37 = vor.u32 %v2731_v55, %v2728_v60  ;;  %v2747_v56 = vrot.slane %v2745_v23, 5  ;;  %v6207_v8 = vld [vmem:[%s7769_s11 + $0xc4] sm:$0xf] }
 0x125   : > { %v2742_v57 = vor.u32 %v2741_v43, %v2737_v4  ;;  %v2763_v50 = vshrl.u32 %v6201_v13, 16  ;;  %v2755_v11 = vrot.slane %v2753_v26, 5  ;;  %v2769_v6 = vshll.u32 %v6202_v17, 16  ;;  %v6529_v55 = vld [vmem:[%s7769_s11 + $0xa8] sm:$0xe] }
 0x126   : > { %7044 = vmatmul.mubr.msk.bf16.gmra.mrb[28].mxu1 %vm349_vm0, %v7589_v36  ;;  %v8882_v39 = vrot.slane %v2759_v25, 5  ;;  %v5142_v61 = vrot.slane %v6524_v18, 5  ;;  %v2733_v48 = vrot.slane %v2732_v37, 4  ;;  %v6551_v59 = vrot.slane %v6523_v27, 9  ;;  %v6208_v18 = vld [vmem:[%s7769_s11 + $0xc8] sm:$0x1] }
 0x127   : > { %7065 = vmatprep.mubr.msk.bf16.mxu1 %vm349_vm0, %v8777_v58  ;;  %v2743_v49 = vrot.slane %v2742_v57, 4  ;;  %v2765_v63 = vrot.slane %v2763_v50, 4  ;;  %v6220_v7 = vcombine.low %v2666_v22, %v2676_v2  ;;  %v2756_v21 = vor.u32 %v2755_v11, %v2752_v12  ;;  %v6530_v26 = vld [vmem:[%s7769_s11 + $0xac] sm:$0xf]  ;;  %v6532_v50 = vld [vmem:[%s7769_s11 + $0xb4] sm:$0xe] }
 0x128   : > { %v5144_v41 = vrot.slane %v5142_v61, 4  ;;  %v5145_v15 = vrot.slane %v6525_v54, 5  ;;  %v6221_v58 = vcombine.low %v2690_v29, %v2700_v45  ;;  %v8894_v24 = vcombine.low %v2714_v1, %v2724_v53  ;;  %v6204_v29 = vld [vmem:[%s7769_s11 + $0xb8] sm:$0xf] }
 0x129   : > { %v2738_v10 = vsel %vm7788_vm3, %v2733_v48, %v2737_v4  ;;  %v2748_v0 = vsel %vm7788_vm3, %v2743_v49, %v2747_v56  ;;  %v6568_v19 = vcombine.low %v8856_v44, %v8877_v9  ;;  %v2766_v22 = vor.u32 %v2765_v63, %v8882_v39  ;;  %v6531_v56 = vld [vmem:[%s7769_s11 + $0xb0] sm:$0x1] }
 0x12a   : > { %7198 = vmatmul.mubr.msk.bf16.gmra.mrb[12].mxu0 %vm349_vm0, %v6566_v35  ;;  %v8906_v2 = vrot.slane %v2769_v6, 5  ;;  %v5149_v35 = vrot.slane %v6527_v32, 5  ;;  %v8909_v28 = vrot.slane %v2756_v21, 4  ;;  %v5143_v34 = vsel %vm7873_vm6, %v6551_v59, %v5142_v61  ;;  %v6533_v61 = vld [vmem:[%s7769_s11 + $0xb8] sm:$0xf] }
 0x12b   : > { %7201 = vmatprep.mubr.msk.bf16.mxu0 %vm349_vm0, %v6567_v52  ;;  %v5146_v38 = vsel %vm7873_vm6, %v5144_v41, %v5145_v15  ;;  %v2774_v40 = vshrl.u32 %v6203_v16, 16  ;;  %v6223_v3 = vcombine.low %v2738_v10, %v2748_v0  ;;  %v6552_v31 = vrot.slane %v6526_v14, 9  ;;  %v6534_v32 = vld [vmem:[%s7769_s11 + $0xbc] sm:$0x1] }
 0x12c   : > { %v5152_v45 = vrot.slane %v6528_v42, 5  ;;  %v2777_v44 = vshll.u32 %v6203_v16, 16  ;;  %v5151_v51 = vrot.slane %v5149_v35, 4  ;;  %v2783_v30 = vshll.u32 %v6204_v29, 16  ;;  %v6535_v16 = vld [vmem:[%s7769_s11 + $0xc0] sm:$0xe] }
 0x12d   : > { %v2776_v60 = vrot.slane %v2774_v40, 4  ;;  %v2787_v5 = vshrl.u32 %v6204_v29, 16  ;;  %v2767_v13 = vrot.slane %v2766_v22, 4  ;;  %v6569_v36 = vcombine.low %v5143_v34, %v5146_v38  ;;  %v6537_v29 = vld [vmem:[%s7769_s11 + $0xc8] sm:$0x1] }
 0x12e   : > { %7066 = vmatmul.mubr.msk.bf16.vlgmr.msra.gmra.mrb[16].mxu1 %vm349_vm0, %v6220_v7  ;;  %v2779_v1 = vrot.slane %v2777_v44, 5  ;;  %v2793_v52 = vshll.u32 %v6205_v62, 16  ;;  %v2762_v23 = vsel %vm7788_vm3, %v8909_v28, %v8882_v39  ;;  %v2785_v17 = vrot.slane %v2783_v30, 5  ;;  %v6539_v40 = vld [vmem:[%s7769_s11 + $0xd0] sm:$0xf] }
 0x12f   : > { %7069 = vmatprep.mubr.msk.bf16.mxu1 %vm349_vm0, %v6221_v58  ;;  %v2789_v20 = vrot.slane %v2787_v5, 4  ;;  %v2798_v53 = vshrl.u32 %v6206_v47, 16  ;;  %v5150_v4 = vsel %vm7873_vm6, %v6552_v31, %v5149_v35  ;;  %v2801_v9 = vshll.u32 %v6206_v47, 16  ;;  %v6536_v58 = vld [vmem:[%s7769_s11 + $0xc4] sm:$0xf] }
 0x130   : > { %v2780_v43 = vor.u32 %v2779_v1, %v2776_v60  ;;  %v2807_v12 = vshll.u32 %v6207_v8, 16  ;;  %v5153_v25 = vsel %vm7873_vm6, %v5151_v51, %v5152_v45  ;;  %v2811_v57 = vshrl.u32 %v6207_v8, 16 }
 0x131   : > { %v2790_v27 = vor.u32 %v2789_v20, %v2785_v17  ;;  %v2800_v37 = vrot.slane %v2798_v53, 4  ;;  %v2795_v11 = vrot.slane %v2793_v52, 5  ;;  %v2803_v39 = vrot.slane %v2801_v9, 5  ;;  %v6538_v52 = vld [vmem:[%s7769_s11 + $0xcc] sm:$0xe] }
 0x132   : > { %7202 = vmatmul.mubr.msk.bf16.gmra.mrb[16].mxu0 %vm349_vm0, %v6568_v19  ;;  %v2781_v54 = vrot.slane %v2780_v43, 4  ;;  %v6553_v6 = vrot.slane %v6529_v55, 9  ;;  %v2809_v49 = vrot.slane %v2807_v12, 5  ;;  %v2813_v63 = vrot.slane %v2811_v57, 4 }
 0x133   : > { %7205 = vmatprep.mubr.msk.bf16.mxu0 %vm349_vm0, %v6569_v36  ;;  %v2791_v48 = vrot.slane %v2790_v27, 4  ;;  %v5156_v59 = vrot.slane %v6530_v26, 5  ;;  %v2772_v7 = vsel %vm7788_vm3, %v2767_v13, %v8906_v2  ;;  %v6570_v21 = vcombine.low %v5150_v4, %v5153_v25 }
 0x134   : > { %v2817_v41 = vshll.u32 %v6208_v18, 16  ;;  %v5159_v15 = vrot.slane %v6531_v56, 5  ;;  %v2786_v10 = vsel %vm7788_vm3, %v2781_v54, %v2785_v17  ;;  %v2804_v0 = vor.u32 %v2803_v39, %v2800_v37 }
 0x135   : > { %v5157_v14 = vsel %vm7873_vm6, %v6553_v6, %v5156_v59  ;;  %v5158_v42 = vrot.slane %v5156_v59, 4  ;;  %v2796_v19 = vsel %vm7788_vm3, %v2791_v48, %v2795_v11  ;;  %v6554_v22 = vrot.slane %v6532_v50, 9 }
 0x136   : > { %7070 = vmatmul.mubr.msk.bf16.gmra.mrb[20].mxu1 %vm349_vm0, %v8894_v24  ;;  %v5163_v2 = vrot.slane %v6533_v61, 5  ;;  %v5166_v35 = vrot.slane %v6534_v32, 5  ;;  %v2814_v28 = vor.u32 %v2813_v63, %v2809_v49  ;;  %v6555_v38 = vrot.slane %v6535_v16, 9 }
 0x137   : > { %7073 = vmatprep.mubr.msk.bf16.mxu1 %vm349_vm0, %v6223_v3  ;;  %v5160_v34 = vsel %vm7873_vm6, %v5158_v42, %v5159_v15  ;;  %v5170_v62 = vrot.slane %v6536_v58, 5  ;;  %v6224_v24 = vcombine.low %v2762_v23, %v2772_v7  ;;  %v2819_v44 = vrot.slane %v2817_v41, 5  ;;  %v6540_v23 = vld [vmem:[%s7769_s11 + $0xd4] sm:$0x1]  ;;  %v8994_v7 = vld [vmem:[%s9113_s2] ss:$0 sm:$0xff] }
 0x138   : > { %v6571_v31 = vcombine.low %v5157_v14, %v5160_v34  ;;  %v5165_v45 = vrot.slane %v5163_v2, 4  ;;  %v5173_v51 = vrot.slane %v6537_v29, 5  ;;  %v6225_v60 = vcombine.low %v2786_v10, %v2796_v19  ;;  %s208_s11 = sand.u32 1, %s7654_s13  }
 0x139   : > { %v5172_v47 = vrot.slane %v5170_v62, 4  ;;  %v5164_v3 = vsel %vm7873_vm6, %v6554_v22, %v5163_v2  ;;  %v5177_v5 = vrot.slane %v6539_v40, 5  ;;  %v2805_v8 = vrot.slane %v2804_v0, 4  ;;  %s5977_s18 = sshll.u32 %s208_s11, 7  ;;  %s9065_s15 = scalar_lea.sflag [#allocation4], %s208_s11 }
 0x13a   : > { %7206 = vmatmul.mubr.msk.bf16.gmra.mrb[20].mxu0 %vm349_vm0, %v6570_v21  ;;  %v5167_v30 = vsel %vm7873_vm6, %v5165_v45, %v5166_v35  ;;  %v2815_v13 = vrot.slane %v2814_v28, 4  ;;  %v5171_v36 = vsel %vm7873_vm6, %v6555_v38, %v5170_v62  ;;  %v6556_v53 = vrot.slane %v6538_v52, 9  ;;  %s9005_s19 = scalar_lea.vmem [#allocation3], %s5977_s18 }
 0x13b   : > { %7209 = vmatprep.mubr.msk.bf16.mxu0 %vm349_vm0, %v6571_v31  ;;  %v5174_v1 = vsel %vm7873_vm6, %v5172_v47, %v5173_v51  ;;  %v6572_v17 = vcombine.low %v5164_v3, %v5167_v30  ;;  %v5179_v55 = vrot.slane %v5177_v5, 4  ;;  %v5180_v4 = vrot.slane %v6540_v23, 5  ;;  %s5856_s23 = sshll.u32 %s9005_s19, 4  ;;  %s9059_s23 = int_to_ptr.vmem [resolvable:$true] %s5856_s23 }
 0x13c   : > { %v6573_v20 = vcombine.low %v5171_v36, %v5174_v1  ;;  %v2810_v43 = vsel %vm7788_vm3, %v2805_v8, %v2809_v49  ;;  %v2820_v18 = vsel %vm7788_vm3, %v2815_v13, %v2819_v44  ;;  %v5178_v12 = vsel %vm7873_vm6, %v6556_v53, %v5177_v5  ;;  %s7592_s29 = scalar_lea.vmem %s9059_s23, 2048  ;;  %p7599_p1 = scmp.lt.s32.totalorder %s9059_s23, %s7597_s4 }
 0x13d   : > { %v6226_v9 = vcombine.low %v2810_v43, %v2820_v18  ;;  %v5181_v26 = vsel %vm7873_vm6, %v5179_v55, %v5180_v4  ;;  %p7593_p12 = scmp.ne.s32.totalorder %s9059_s23, %s7592_s29  ;;  %p7600_p2 = scmp.lt.s32.totalorder %s7598_s5, %s7592_s29 }
 0x13e   : > { %7074 = vmatmul.mubr.msk.bf16.gmra.mrb[24].mxu1 %vm349_vm0, %v6224_v24  ;;  %v6574_v25 = vcombine.low %v5178_v12, %v5181_v26 }
 0x13f   : > { %7077 = vmatprep.mubr.msk.bf16.mxu1 %vm349_vm0, %v6225_v60  ;;  %p7594_p13 = pnand %p7593_p12, %p7735_p4  ;;  %p7601_p3 = por %p7600_p2, %p7599_p1 }
 0x141   : > { %p7595_p0 = pneg %p7594_p13 }
 0x142   : > { %7210 = vmatmul.mubr.msk.bf16.gmra.mrb[24].mxu0 %vm349_vm0, %v6572_v17 }
 0x143   : > { %7213 = vmatprep.mubr.msk.bf16.mxu0 %vm349_vm0, %v6573_v20  ;;  %p7602_p5 = pnand %p7601_p3, %p7595_p0 }
 0x146   : > { %7078 = vmatmul.mubr.msk.bf16.gmra.mrb[28].mxu1 %vm349_vm0, %v6226_v9 }
 0x14a   : > { %7214 = vmatmul.mubr.msk.bf16.gmra.mrb[28].mxu0 %vm349_vm0, %v6574_v25 }
 0x1c1   : > { %v7017_v27 = vpop.f32.mrb[0].mxu1 }
 0x1c2   : > { %v2166_v37 = vpop.f32.mrb[1].mxu1 }
 0x1c3   : > { %v7018_v33 = vpop.f32.mrb[2].mxu1 }
 0x1c4   : > { %v2169_v57 = vpop.f32.mrb[3].mxu1 }
 0x1c9   : > { %v7021_v56 = vpop.f32.mrb[4].mxu1 }
 0x1ca   : > { %v2182_v50 = vpop.f32.mrb[5].mxu1 }
 0x1cb   : > { %v7022_v54 = vpop.f32.mrb[6].mxu1 }
 0x1cc   : > { %v2185_v11 = vpop.f32.mrb[7].mxu1 }
 0x1d1   : > { %v7025_v39 = vpop.f32.mrb[8].mxu1 }
 0x1d2   : > { %v2198_v6 = vpop.f32.mrb[9].mxu1 }
 0x1d3   : > { %v7026_v61 = vpop.f32.mrb[10].mxu1 }
 0x1d4   : > { %v8981_v48 = vpop.f32.mrb[11].mxu1 }
 0x1d9   : > { %v8983_v46 = vpop.f32.mrb[12].mxu1 }
 0x1da   : > { %v8985_v49 = vpop.f32.mrb[13].mxu1 }
 0x1db   : > { %v8987_v63 = vpop.f32.mrb[14].mxu1 }
 0x1dc   : > { %v8989_v59 = vpop.f32.mrb[15].mxu1 }
 0x1e5   : > { %v7187_v32 = vpop.f32.mrb[0].mxu0 }
 0x1e6   : > { %v7219_v21 = vadd.f32 %v7187_v32, %v7017_v27  ;;  %v5320_v41 = vpop.f32.mrb[1].mxu0 }
 0x1e7   : > { %v7220_v15 = vadd.f32 %v5320_v41, %v2166_v37  ;;  %v7188_v16 = vpop.f32.mrb[2].mxu0 }
 0x1e8   : > { %v5584_v58 = vadd.f32 %v7219_v21, %v8994_v7  ;;  %v7221_v10 = vadd.f32 %v7188_v16, %v7018_v33  ;;  %v5323_v0 = vpop.f32.mrb[3].mxu0 }
 0x1e9   : > { %v5582_v14 = vadd.f32 %v7220_v15, %v8994_v7  ;;  %v7222_v42 = vadd.f32 %v5323_v0, %v2169_v57 }
 0x1ea   : > { %v5616_v19 = vmax.f32 %v5584_v58, 0.0  ;;  %v5585_v22 = vadd.f32 %v7221_v10, %v8994_v7 }
 0x1eb   : > { %v5614_v2 = vmax.f32 %v5582_v14, 0.0  ;;  %v5583_v35 = vadd.f32 %v7222_v42, %v8994_v7 }
 0x1ec   : > { %v5617_v29 = vmax.f32 %v5585_v22, 0.0  ;;  %v5648_v38 = vmin.f32 %v5616_v19, 6.0 }
 0x1ed   : > { %v5615_v28 = vmax.f32 %v5583_v35, 0.0  ;;  %v7191_v34 = vpop.f32.mrb[4].mxu0  ;;  %v5646_v45 = vmin.f32 %v5614_v2, 6.0 }
 0x1ee   : > { %v5649_v62 = vmin.f32 %v5617_v29, 6.0  ;;  %v7223_v40 = vadd.f32 %v7191_v34, %v7021_v56  ;;  %v5336_v31 = vpop.f32.mrb[5].mxu0 }
 0x1ef   : > { %v5647_v24 = vmin.f32 %v5615_v28, 6.0  ;;  %v7224_v44 = vadd.f32 %v5336_v31, %v2182_v50  ;;  %v7192_v47 = vpop.f32.mrb[6].mxu0 }
 0x1f0   : > { %v6671_v51 = vpack.c.bf16 %v5649_v62, %v5648_v38  ;;  %v5588_v60 = vadd.f32 %v7223_v40, %v8994_v7  ;;  %v7225_v3 = vadd.f32 %v7192_v47, %v7022_v54  ;;  %v5339_v30 = vpop.f32.mrb[7].mxu0 }
 0x1f1   : > { %v6666_v5 = vpack.c.bf16 %v5647_v24, %v5646_v45  ;;  %v5586_v8 = vadd.f32 %v7224_v44, %v8994_v7  ;;  %v7226_v13 = vadd.f32 %v5339_v30, %v2185_v11 }
 0x1f2   : > { %6743 = vst [vmem:[%s9005_s19 + $0x8] sm:$0xff] %v6671_v51   ;;  %v5620_v36 = vmax.f32 %v5588_v60, 0.0  ;;  %v5589_v1 = vadd.f32 %v7225_v3, %v8994_v7 }
 0x1f3   : > { %6667 = vst [vmem:[%s9005_s19] sm:$0xff] %v6666_v5   ;;  %v5618_v52 = vmax.f32 %v5586_v8, 0.0  ;;  %v5587_v23 = vadd.f32 %v7226_v13, %v8994_v7 }
 0x1f4   : > { %v5621_v17 = vmax.f32 %v5589_v1, 0.0  ;;  %v5652_v55 = vmin.f32 %v5620_v36, 6.0 }
 0x1f5   : > { %v5619_v20 = vmax.f32 %v5587_v23, 0.0  ;;  %v7195_v53 = vpop.f32.mrb[8].mxu0  ;;  %v5650_v9 = vmin.f32 %v5618_v52, 6.0 }
 0x1f6   : > { %v5653_v4 = vmin.f32 %v5621_v17, 6.0  ;;  %v7227_v43 = vadd.f32 %v7195_v53, %v7025_v39  ;;  %v5352_v18 = vpop.f32.mrb[9].mxu0 }
 0x1f7   : > { %v5651_v12 = vmin.f32 %v5619_v20, 6.0  ;;  %v7228_v26 = vadd.f32 %v5352_v18, %v2198_v6  ;;  %v7196_v25 = vpop.f32.mrb[10].mxu0 }
 0x1f8   : > { %v6681_v27 = vpack.c.bf16 %v5653_v4, %v5652_v55  ;;  %v5592_v37 = vadd.f32 %v7227_v43, %v8994_v7  ;;  %v7229_v33 = vadd.f32 %v7196_v25, %v7026_v61  ;;  %v5355_v57 = vpop.f32.mrb[11].mxu0 }
 0x1f9   : > { %v6676_v56 = vpack.c.bf16 %v5651_v12, %v5650_v9  ;;  %v5590_v50 = vadd.f32 %v7228_v26, %v8994_v7  ;;  %v7230_v54 = vadd.f32 %v5355_v57, %v8981_v48 }
 0x1fa   : > { %6745 = vst [vmem:[%s9005_s19 + $0x18] sm:$0xff] %v6681_v27   ;;  %v5624_v11 = vmax.f32 %v5592_v37, 0.0  ;;  %v5593_v39 = vadd.f32 %v7229_v33, %v8994_v7 }
 0x1fb   : > { %6744 = vst [vmem:[%s9005_s19 + $0x10] sm:$0xff] %v6676_v56   ;;  %v5622_v32 = vmax.f32 %v5590_v50, 0.0  ;;  %v5591_v21 = vadd.f32 %v7230_v54, %v8994_v7 }
 0x1fc   : > { %v5625_v6 = vmax.f32 %v5593_v39, 0.0  ;;  %v5656_v16 = vmin.f32 %v5624_v11, 6.0 }
 0x1fd   : > { %v5623_v41 = vmax.f32 %v5591_v21, 0.0  ;;  %v7199_v15 = vpop.f32.mrb[12].mxu0  ;;  %v5654_v0 = vmin.f32 %v5622_v32, 6.0 }
 0x1fe   : > { %v5657_v61 = vmin.f32 %v5625_v6, 6.0  ;;  %v7231_v58 = vadd.f32 %v7199_v15, %v8983_v46  ;;  %v5368_v10 = vpop.f32.mrb[13].mxu0 }
 0x1ff   : > { %v5655_v48 = vmin.f32 %v5623_v41, 6.0  ;;  %v7232_v14 = vadd.f32 %v5368_v10, %v8985_v49  ;;  %v7200_v42 = vpop.f32.mrb[14].mxu0 }
 0x200   : > { %v6691_v19 = vpack.c.bf16 %v5657_v61, %v5656_v16  ;;  %v5596_v22 = vadd.f32 %v7231_v58, %v8994_v7  ;;  %v7233_v2 = vadd.f32 %v7200_v42, %v8987_v63  ;;  %v5371_v35 = vpop.f32.mrb[15].mxu0 }
 0x201   : > { %v6686_v29 = vpack.c.bf16 %v5655_v48, %v5654_v0  ;;  %v5594_v28 = vadd.f32 %v7232_v14, %v8994_v7  ;;  %v7234_v34 = vadd.f32 %v5371_v35, %v8989_v59  ;;  %v7067_v46 = vpop.f32.mrb[16].mxu1 }
 0x202   : > { %6747 = vst [vmem:[%s9005_s19 + $0x28] sm:$0xff] %v6691_v19   ;;  %v5628_v38 = vmax.f32 %v5596_v22, 0.0  ;;  %v5597_v62 = vadd.f32 %v7233_v2, %v8994_v7  ;;  %v3023_v40 = vpop.f32.mrb[17].mxu1 }
 0x203   : > { %6746 = vst [vmem:[%s9005_s19 + $0x20] sm:$0xff] %v6686_v29   ;;  %v5626_v49 = vmax.f32 %v5594_v28, 0.0  ;;  %v5595_v31 = vadd.f32 %v7234_v34, %v8994_v7  ;;  %v7068_v45 = vpop.f32.mrb[18].mxu1 }
 0x204   : > { %v5629_v24 = vmax.f32 %v5597_v62, 0.0  ;;  %v3026_v44 = vpop.f32.mrb[19].mxu1  ;;  %v5660_v51 = vmin.f32 %v5628_v38, 6.0 }
 0x205   : > { %v5627_v63 = vmax.f32 %v5595_v31, 0.0  ;;  %v7203_v47 = vpop.f32.mrb[16].mxu0  ;;  %v5658_v30 = vmin.f32 %v5626_v49, 6.0 }
 0x206   : > { %v5661_v60 = vmin.f32 %v5629_v24, 6.0  ;;  %v7235_v3 = vadd.f32 %v7203_v47, %v7067_v46  ;;  %v5384_v59 = vpop.f32.mrb[17].mxu0 }
 0x207   : > { %v5659_v5 = vmin.f32 %v5627_v63, 6.0  ;;  %v7236_v8 = vadd.f32 %v5384_v59, %v3023_v40  ;;  %v7204_v13 = vpop.f32.mrb[18].mxu0 }
 0x208   : > { %v6701_v36 = vpack.c.bf16 %v5661_v60, %v5660_v51  ;;  %v5600_v1 = vadd.f32 %v7235_v3, %v8994_v7  ;;  %v7237_v52 = vadd.f32 %v7204_v13, %v7068_v45  ;;  %v5387_v23 = vpop.f32.mrb[19].mxu0 }
 0x209   : > { %v6696_v17 = vpack.c.bf16 %v5659_v5, %v5658_v30  ;;  %v5598_v20 = vadd.f32 %v7236_v8, %v8994_v7  ;;  %v7238_v53 = vadd.f32 %v5387_v23, %v3026_v44  ;;  %v7071_v55 = vpop.f32.mrb[20].mxu1 }
 0x20a   : > { %6749 = vst [vmem:[%s9005_s19 + $0x38] sm:$0xff] %v6701_v36   ;;  %v5632_v4 = vmax.f32 %v5600_v1, 0.0  ;;  %v5601_v43 = vadd.f32 %v7237_v52, %v8994_v7  ;;  %v3039_v18 = vpop.f32.mrb[21].mxu1 }
 0x20b   : > { %6748 = vst [vmem:[%s9005_s19 + $0x30] sm:$0xff] %v6696_v17   ;;  %v5630_v9 = vmax.f32 %v5598_v20, 0.0  ;;  %v5599_v12 = vadd.f32 %v7238_v53, %v8994_v7  ;;  %v7072_v26 = vpop.f32.mrb[22].mxu1 }
 0x20c   : > { %v5633_v25 = vmax.f32 %v5601_v43, 0.0  ;;  %v3042_v27 = vpop.f32.mrb[23].mxu1  ;;  %v5664_v57 = vmin.f32 %v5632_v4, 6.0 }
 0x20d   : > { %v5631_v37 = vmax.f32 %v5599_v12, 0.0  ;;  %v7207_v33 = vpop.f32.mrb[20].mxu0  ;;  %v5662_v11 = vmin.f32 %v5630_v9, 6.0 }
 0x20e   : > { %v5665_v56 = vmin.f32 %v5633_v25, 6.0  ;;  %v7239_v50 = vadd.f32 %v7207_v33, %v7071_v55  ;;  %v5400_v54 = vpop.f32.mrb[21].mxu0 }
 0x20f   : > { %v5663_v39 = vmin.f32 %v5631_v37, 6.0  ;;  %v7240_v32 = vadd.f32 %v5400_v54, %v3039_v18  ;;  %v7208_v21 = vpop.f32.mrb[22].mxu0 }
 0x210   : > { %v6711_v6 = vpack.c.bf16 %v5665_v56, %v5664_v57  ;;  %v5604_v41 = vadd.f32 %v7239_v50, %v8994_v7  ;;  %v7241_v15 = vadd.f32 %v7208_v21, %v7072_v26  ;;  %v5403_v16 = vpop.f32.mrb[23].mxu0 }
 0x211   : > { %v6706_v61 = vpack.c.bf16 %v5663_v39, %v5662_v11  ;;  %v5602_v58 = vadd.f32 %v7240_v32, %v8994_v7  ;;  %v7242_v10 = vadd.f32 %v5403_v16, %v3042_v27  ;;  %v7075_v0 = vpop.f32.mrb[24].mxu1 }
 0x212   : > { %6751 = vst [vmem:[%s9005_s19 + $0x48] sm:$0xff] %v6711_v6   ;;  %v5636_v48 = vmax.f32 %v5604_v41, 0.0  ;;  %v5605_v14 = vadd.f32 %v7241_v15, %v8994_v7  ;;  %v3055_v42 = vpop.f32.mrb[25].mxu1 }
 0x213   : > { %6750 = vst [vmem:[%s9005_s19 + $0x40] sm:$0xff] %v6706_v61   ;;  %v5634_v19 = vmax.f32 %v5602_v58, 0.0  ;;  %v5603_v22 = vadd.f32 %v7242_v10, %v8994_v7  ;;  %v7076_v2 = vpop.f32.mrb[26].mxu1 }
 0x214   : > { %v5637_v35 = vmax.f32 %v5605_v14, 0.0  ;;  %v3058_v29 = vpop.f32.mrb[27].mxu1  ;;  %v5668_v46 = vmin.f32 %v5636_v48, 6.0 }
 0x215   : > { %v5635_v28 = vmax.f32 %v5603_v22, 0.0  ;;  %v7211_v34 = vpop.f32.mrb[24].mxu0  ;;  %v5666_v49 = vmin.f32 %v5634_v19, 6.0 }
 0x216   : > { %v5669_v38 = vmin.f32 %v5637_v35, 6.0  ;;  %v7243_v62 = vadd.f32 %v7211_v34, %v7075_v0  ;;  %v5416_v40 = vpop.f32.mrb[25].mxu0 }
 0x217   : > { %v5667_v31 = vmin.f32 %v5635_v28, 6.0  ;;  %v7244_v45 = vadd.f32 %v5416_v40, %v3055_v42  ;;  %v7212_v24 = vpop.f32.mrb[26].mxu0 }
 0x218   : > { %v6721_v44 = vpack.c.bf16 %v5669_v38, %v5668_v46  ;;  %v5608_v63 = vadd.f32 %v7243_v62, %v8994_v7  ;;  %v7245_v47 = vadd.f32 %v7212_v24, %v7076_v2  ;;  %v5419_v51 = vpop.f32.mrb[27].mxu0 }
 0x219   : > { %v6716_v60 = vpack.c.bf16 %v5667_v31, %v5666_v49  ;;  %v5606_v3 = vadd.f32 %v7244_v45, %v8994_v7  ;;  %v7246_v59 = vadd.f32 %v5419_v51, %v3058_v29  ;;  %v7079_v30 = vpop.f32.mrb[28].mxu1 }
 0x21a   : > { %6753 = vst [vmem:[%s9005_s19 + $0x58] sm:$0xff] %v6721_v44   ;;  %v5640_v5 = vmax.f32 %v5608_v63, 0.0  ;;  %v5609_v8 = vadd.f32 %v7245_v47, %v8994_v7  ;;  %v3071_v13 = vpop.f32.mrb[29].mxu1 }
 0x21b   : > { %6752 = vst [vmem:[%s9005_s19 + $0x50] sm:$0xff] %v6716_v60   ;;  %v5638_v36 = vmax.f32 %v5606_v3, 0.0  ;;  %v5607_v1 = vadd.f32 %v7246_v59, %v8994_v7  ;;  %v7080_v52 = vpop.f32.mrb[30].mxu1 }
 0x21c   : > { %v5641_v23 = vmax.f32 %v5609_v8, 0.0  ;;  %v3074_v17 = vpop.f32.mrb[31].mxu1  ;;  %v5672_v55 = vmin.f32 %v5640_v5, 6.0 }
 0x21d   : > { %v5639_v20 = vmax.f32 %v5607_v1, 0.0  ;;  %v7215_v53 = vpop.f32.mrb[28].mxu0  ;;  %v5670_v9 = vmin.f32 %v5638_v36, 6.0 }
 0x21e   : > { %v5673_v4 = vmin.f32 %v5641_v23, 6.0  ;;  %v7247_v43 = vadd.f32 %v7215_v53, %v7079_v30  ;;  %v5432_v18 = vpop.f32.mrb[29].mxu0 }
 0x21f   : > { %v5671_v12 = vmin.f32 %v5639_v20, 6.0  ;;  %v7248_v26 = vadd.f32 %v5432_v18, %v3071_v13  ;;  %v7216_v25 = vpop.f32.mrb[30].mxu0 }
 0x220   : > { %v6731_v27 = vpack.c.bf16 %v5673_v4, %v5672_v55  ;;  %v5612_v37 = vadd.f32 %v7247_v43, %v8994_v7  ;;  %v7249_v33 = vadd.f32 %v7216_v25, %v7080_v52  ;;  %v5435_v57 = vpop.f32.mrb[31].mxu0 }
 0x221   : > { %v6726_v56 = vpack.c.bf16 %v5671_v12, %v5670_v9  ;;  %v5610_v50 = vadd.f32 %v7248_v26, %v8994_v7  ;;  %v7250_v54 = vadd.f32 %v5435_v57, %v3074_v17 }
 0x222   : > { %6755 = vst [vmem:[%s9005_s19 + $0x68] sm:$0xff] %v6731_v27   ;;  %v5644_v11 = vmax.f32 %v5612_v37, 0.0  ;;  %v5613_v39 = vadd.f32 %v7249_v33, %v8994_v7 }
 0x223   : > { %6754 = vst [vmem:[%s9005_s19 + $0x60] sm:$0xff] %v6726_v56   ;;  %v5642_v32 = vmax.f32 %v5610_v50, 0.0  ;;  %v5611_v21 = vadd.f32 %v7250_v54, %v8994_v7 }
 0x224   : > { %v5645_v6 = vmax.f32 %v5613_v39, 0.0  ;;  %v5676_v15 = vmin.f32 %v5644_v11, 6.0 }
 0x225   : > { %v5643_v41 = vmax.f32 %v5611_v21, 0.0  ;;  %v5674_v61 = vmin.f32 %v5642_v32, 6.0 }
 0x226   : > { %v5677_v16 = vmin.f32 %v5645_v6, 6.0 }
 0x227   : > { %v5675_v58 = vmin.f32 %v5643_v41, 6.0 }
 0x228   : > { %v6741_v10 = vpack.c.bf16 %v5677_v16, %v5676_v15 }
 0x229   : > { %v6736_v7 = vpack.c.bf16 %v5675_v58, %v5674_v61 }
 0x22a   : > { %6757 = vst [vmem:[%s9005_s19 + $0x78] sm:$0xff] %v6741_v10  }
 0x22b   : > { %6756 = vst [vmem:[%s9005_s19 + $0x70] sm:$0xff] %v6736_v7  }
 0x22c   : > { %7605 = shalt.err (!%p7602_p5)
}
 0x22d   : > { %s7606_s6 = scalar_lea.hbm %s9057_s28, 2048  ;;  %s7610_s9 = scalar_lea.hbm %s9114_s3, 4096 }
 0x22e   : > { %p7607_p6 = scmp.ne.s32.totalorder %s9057_s28, %s7606_s6  ;;  %p7611_p10 = scmp.lt.u32.totalorder %s9057_s28, %s9114_s3 }
 0x22f   : > { %p7612_p11 = scmp.lt.u32.totalorder %s7610_s9, %s7606_s6  ;;  %p7614_p13 = scmp.lt.u32.totalorder %s7606_s6, %s9057_s28 }
 0x230   : > { %p7608_p7 = pnand %p7607_p6, %p7735_p4 }
 0x231   : > { %p7613_p12 = por %p7612_p11, %p7611_p10 }
 0x232   : > { %p7609_p9 = pneg %p7608_p7 }
 0x233   : > { %p7615_p0 = por %p7614_p13, %p7613_p12 }
 0x235   : > { %p7616_p1 = pnand %p7615_p0, %p7609_p9 }
 0x237   : > { %7619 = shalt.err (!%p7616_p1)
}
 0x238   : > { %s7673_s18 = smov 64   ;;  %s7674_s19 = smov 4  }
 0x239   : > { %7476 = dma.vmem_to_hbm [thread:$0]  (%p7735_p4), %s9059_s23, 2048, %s9057_s28, %s9065_s15, %s7673_s18, %s7673_s18, %s7674_s19  }
 0x23a PF: > { %p7482_p2 = scmp.ge.s32.totalorder %s7670_s17, 2  ;;  %s5871_s21 = sand.u32 1, %s7650_s12  }
 0x23b   : > { %s5872_s26 = scalar_lea.sflag [#allocation4], %s5871_s21 }
 0x23c   : > { %p7479_p3 = pnand %p7482_p2, %p7742_p8 }
 0x23e   : > { %7645 = dma.done.wait (!%p7479_p3), %s5872_s26, 2048  }
 0x23f   : > { %7647 = vsyncadd (!%p7479_p3), %s5872_s26, 4294965248  ;;  %s16_s17 = sadd.s32 1, %s7670_s17   ;;  %s9121_s12 = smov %s7654_s13 }
 0x240   : > { %p13_p5 = scmp.ge.s32.totalorder %s16_s17, 4   ;;  %s9122_s13 = smov %s7658_s14 }
 0x241   : > { %s9123_s14 = smov %s7748_s25  ;;  %s9124_s15 = smov %s7666_s16 }
 0x242   : > { %s9125_s16 = smov %s9127_s20  ;;  %15 = sbr.rel (!%p13_p5) target bundleno = 4 (0x4), region = 78 }
 0x249   :  { %5877 = vsyncpa [#allocation4], 1 }
 0x24a   :  { %5879 = vsyncpa [#allocation4 + $0x1], 1 }

</bundles_post_ra>
